<compile_context>
chip_gen: v7x
topology: tpu7x:2x2x1
jax: 0.10.0
libtpu: 0.0.40
codegen_flags: <defaults>
</compile_context>

<pallas_src>
import functools
import math

import jax
import jax.numpy as jnp
from jax import lax
from jax.experimental import pallas as pl
from jax.experimental.pallas import tpu as pltpu


def _round_up(x, m):
    return -(-x // m) * m


# ----------------------------------------------------------------------------
# Fused dilated-GRU recurrence kernel.
#   - input-gate matmul fused in (weights resident in VMEM, x streamed in bf16)
#   - k time-steps unrolled per grid iteration, hidden state carried in VMEM
#   - gates padded to Hp=round_up(H,128) lanes -> 128-aligned r/z/n slices and
#     lane-dense bf16 output stores
# ----------------------------------------------------------------------------
def _gru_kernel(x_ref, wih_ref, bih_ref, whh_ref, bhh_ref, out_ref, h_ref):
    """x_ref: (k, tb, Fp) bf16; wih_ref: (Fp, 3*Hp) bf16; bih_ref: (1, 3*Hp) f32;
    whh_ref: (Hp, 3*Hp) bf16; bhh_ref: (1, 3*Hp) f32; out_ref: (k, tb, Hp) bf16;
    h_ref: (tb, Hp) f32 scratch (persists across the time grid axis)."""

    @pl.when(pl.program_id(1) == 0)          # new batch tile -> reset hidden
    def _init():
        h_ref[...] = jnp.zeros_like(h_ref)

    k, tb, Fp = x_ref.shape
    Hp = h_ref.shape[-1]

    # Fused input-gate matmul for all k steps at once (bf16 operands, f32 acc).
    x = x_ref[...].reshape(k * tb, Fp)
    gx_all = (jnp.dot(x, wih_ref[...], preferred_element_type=jnp.float32)
              + bih_ref[...]).reshape(k, tb, 3 * Hp)

    whh = whh_ref[...]                        # hoisted out of the step loop
    bhh = bhh_ref[...]
    h = h_ref[...]
    for s in range(k):                        # fully unrolled serial recurrence
        gh = jnp.dot(h.astype(whh.dtype), whh,
                     preferred_element_type=jnp.float32) + bhh
        gx = gx_all[s]
        r = jax.nn.sigmoid(gx[:, 0:Hp] + gh[:, 0:Hp])            # 128-aligned
        z = jax.nn.sigmoid(gx[:, Hp:2 * Hp] + gh[:, Hp:2 * Hp])  # slices
        n = jnp.tanh(gx[:, 2 * Hp:3 * Hp] + r * gh[:, 2 * Hp:3 * Hp])
        h = (1.0 - z) * n + z * h
        out_ref[s] = h.astype(out_ref.dtype)  # dense bf16 store
    h_ref[...] = h


_GRU_VMEM_BUDGET = 24 * 1024 * 1024  # keep double-buffered tiles well under v7x 64 MiB


def _gru_vmem_bytes(k, tile_b, Fp, Hp):
    x_blk = k * tile_b * Fp * 2
    out_blk = k * tile_b * Hp * 2
    weights = (Fp + Hp) * 3 * Hp * 2 + 2 * 3 * Hp * 4
    scratch = tile_b * Hp * 4
    return 2 * (x_blk + out_blk) + 2 * weights + scratch


def _pick_tile_b(Bd):
    if Bd <= 256:
        return Bd
    for t in (256, 128, 64, 32, 16, 8):
        if Bd % t == 0:
            return t
    return Bd


def _pick_k(Td, tile_b, Fp, Hp, kmax=8):
    """Largest k <= kmax dividing Td (no wasted padded steps) that fits VMEM."""
    best = 1
    for k in range(1, min(kmax, Td) + 1):
        if Td % k == 0 and _gru_vmem_bytes(k, tile_b, Fp, Hp) <= _GRU_VMEM_BUDGET:
            best = k
    return best


def gru_sequence(x_dil, wih_t, bih, whh_t, bhh, k, tile_b):
    """x_dil: (Td, Bd, Fp) bf16 with Td % k == 0, Bd % tile_b == 0.
    Returns (Td, Bd, Hp) bf16."""
    Td, Bd, Fp = x_dil.shape
    Hp = whh_t.shape[0]
    H3 = whh_t.shape[1]
    return pl.pallas_call(
        _gru_kernel,
        out_shape=jax.ShapeDtypeStruct((Td, Bd, Hp), jnp.bfloat16),
        grid=(Bd // tile_b, Td // k),
        in_specs=[
            pl.BlockSpec((k, tile_b, Fp), lambda b, t: (t, b, 0)),
            pl.BlockSpec((Fp, H3), lambda b, t: (0, 0)),   # W_ih^T resident
            pl.BlockSpec((1, H3), lambda b, t: (0, 0)),
            pl.BlockSpec((Hp, H3), lambda b, t: (0, 0)),   # W_hh^T resident
            pl.BlockSpec((1, H3), lambda b, t: (0, 0)),
        ],
        out_specs=pl.BlockSpec((k, tile_b, Hp), lambda b, t: (t, b, 0)),
        scratch_shapes=[pltpu.VMEM((tile_b, Hp), jnp.float32)],
        compiler_params=pltpu.CompilerParams(
            # batch tiles are independent (megacore on v7x); time is a recurrence
            dimension_semantics=("parallel", "arbitrary"),
            vmem_limit_bytes=48 * 1024 * 1024),
    )(x_dil, wih_t, bih, whh_t, bhh)


# ----------------------------------------------------------------------------
# Fully fused THOC hierarchy kernel: all L=3 levels (cosine sim -> softmax ->
# responsibilities -> weighted-distance mean -> cnet -> P^T @ c_vectors ->
# shared MLP) in ONE gridless kernel; only per-level mean distances are emitted.
# ----------------------------------------------------------------------------
def _thoc_fused_kernel(L, f0_ref, lh_ref, cl_ref, cw_ref, cb_ref,
                       w1_ref, b1_ref, w2_ref, b2_ref, w3_ref, b3_ref, md_ref):
    eps = 1e-8
    B = f0_ref.shape[0]
    H = f0_ref.shape[2]

    f = f0_ref[...]                            # (B, 1, H)
    r = jnp.ones((B, 1), jnp.float32)
    w1 = w1_ref[...]                           # (2H, 2H), split-matmul for concat
    md_cols = []
    for i in range(L):                         # statically unrolled levels
        c = cl_ref[i]                          # (H, K)
        p = f.shape[1]
        K = c.shape[1]

        f_norm = jnp.maximum(jnp.sqrt(jnp.sum(f * f, axis=-1, keepdims=True)), eps)
        c_norm = jnp.maximum(jnp.sqrt(jnp.sum(c * c, axis=0, keepdims=True)), eps)
        cos = jnp.dot((f / f_norm).reshape(B * p, H), c / c_norm,
                      preferred_element_type=jnp.float32).reshape(B, p, K)

        # softmax over clusters (tau == 1)
        m = jnp.max(cos, axis=-1, keepdims=True)
        e = jnp.exp(cos - m)
        P = e / jnp.sum(e, axis=-1, keepdims=True)             # (B, p, K)

        R = jnp.sum(r[:, :, None] * P, axis=1)                 # (B, K)
        dist = R[:, None, :] * (1.0 - cos)                     # (B, p, K)
        md = jnp.sum(jnp.sum(dist, axis=2), axis=1,
                     keepdims=True) * (1.0 / float(p * K))     # (B, 1)
        md_cols.append(md)

        if i < L - 1:
            # cnet (Linear + ReLU)
            cvec = jnp.maximum(
                jnp.dot(f.reshape(B * p, H), cw_ref[i],
                        preferred_element_type=jnp.float32) + cb_ref[i],
                0.0).reshape(B, p, H)

            # f_new[b,k,h] = sum_p P[b,p,k] * cvec[b,p,h]   (p small & static)
            fnew = P[:, 0, :, None] * cvec[:, 0, None, :]
            for j in range(1, p):
                fnew = fnew + P[:, j, :, None] * cvec[:, j, None, :]   # (B,K,H)

            # MLP(cat(fnew, last_hidden)) with the concat folded into a split matmul
            lh = lh_ref[i]                                             # (B, H)
            g1 = jnp.dot(fnew.reshape(B * K, H), w1[:H, :],
                         preferred_element_type=jnp.float32).reshape(B, K, 2 * H)
            g2 = jnp.dot(lh, w1[H:, :], preferred_element_type=jnp.float32)
            h1 = jnp.maximum(g1 + g2[:, None, :] + b1_ref[...],
                             0.0).reshape(B * K, 2 * H)
            h2 = jnp.maximum(jnp.dot(h1, w2_ref[...],
                                     preferred_element_type=jnp.float32)
                             + b2_ref[...], 0.0)
            f = (jnp.dot(h2, w3_ref[...],
                         preferred_element_type=jnp.float32)
                 + b3_ref[...]).reshape(B, K, H)
            r = R
        # last level: f_t_bar is never consumed afterwards -> skip its update

    md_ref[...] = jnp.concatenate(md_cols, axis=1)   # (B, L)


def thoc_levels_fused(f0, lh, clusters_st, cw_st, cb_st, mlp):
    B = f0.shape[0]
    L = clusters_st.shape[0]
    (w1_t, b1), (w2_t, b2), (w3_t, b3) = mlp
    return pl.pallas_call(
        functools.partial(_thoc_fused_kernel, L),
        out_shape=jax.ShapeDtypeStruct((B, L), jnp.float32),
    )(f0, lh, clusters_st, cw_st, cb_st, w1_t, b1, w2_t, b2, w3_t, b3)


# ----------------------------------------------------------------------------
# Fused TSS kernel: (src @ W^T + b - tgt)^2 summed per tile (row-masked),
# reduced into a (1,1) accumulator -- predictions never hit HBM. src is bf16.
# ----------------------------------------------------------------------------
def _tss_kernel(n_valid, x_ref, w_ref, b_ref, t_ref, o_ref, acc_ref):
    @pl.when(pl.program_id(0) == 0)
    def _init():
        acc_ref[...] = jnp.zeros_like(acc_ref)

    tile_m = x_ref.shape[0]
    pred = jnp.dot(x_ref[...], w_ref[...],
                   preferred_element_type=jnp.float32) + b_ref[...]
    err = pred - t_ref[...]
    rows = pl.program_id(0) * tile_m + lax.broadcasted_iota(jnp.int32, err.shape, 0)
    sq = jnp.where(rows < n_valid, err * err, 0.0)
    acc_ref[...] += jnp.sum(sq, keepdims=True)

    @pl.when(pl.program_id(0) == pl.num_programs(0) - 1)
    def _fin():
        o_ref[...] = acc_ref[...]


def tss_sse(src, tgt, w_t, b):
    """src: (M, Hp) bf16, tgt: (M, C) f32, w_t: (Hp, C) bf16, b: (1, C) f32.
    Returns the sum of squared prediction errors over the M valid rows."""
    M, Hp = src.shape
    C = tgt.shape[1]
    tile_m = min(1024, _round_up(M, 8))
    M_pad = _round_up(M, tile_m)
    if M_pad != M:
        src = jnp.pad(src, ((0, M_pad - M), (0, 0)))
        tgt = jnp.pad(tgt, ((0, M_pad - M), (0, 0)))
    out = pl.pallas_call(
        functools.partial(_tss_kernel, M),
        out_shape=jax.ShapeDtypeStruct((1, 1), jnp.float32),
        grid=(M_pad // tile_m,),
        in_specs=[
            pl.BlockSpec((tile_m, Hp), lambda i: (i, 0)),
            pl.BlockSpec((Hp, C), lambda i: (0, 0)),
            pl.BlockSpec((1, C), lambda i: (0, 0)),
            pl.BlockSpec((tile_m, C), lambda i: (i, 0)),
        ],
        out_specs=pl.BlockSpec((1, 1), lambda i: (0, 0)),
        scratch_shapes=[pltpu.VMEM((1, 1), jnp.float32)],
        compiler_params=pltpu.CompilerParams(dimension_semantics=("arbitrary",)),
    )(src, w_t, b, tgt)
    return out[0, 0]


# ----------------------------------------------------------------------------
# DRNN (dilated GRU stack), time-major end to end, bf16 activation streams.
# ----------------------------------------------------------------------------
def drnn_forward(Xt, gru_params, L):
    """Xt: (T, B, C) time-major f32. Returns list of L outputs, each (T, B, Hp) bf16
    (hidden lanes [H:Hp] are exactly zero)."""
    T, B, C = Xt.shape
    inputs = None
    outputs = []
    for i in range(L):
        rate = 2 ** i
        wih_t, bih, whh_t, bhh = gru_params[i]
        Fp = wih_t.shape[0]
        Hp = whh_t.shape[0]

        if i == 0:
            x = Xt
            if C != Fp:
                x = jnp.pad(x, ((0, 0), (0, 0), (0, Fp - C)))
            x = x.astype(jnp.bfloat16)
        else:
            x = inputs                            # (T, B, Hp) bf16, Fp == Hp

        Td = -(-T // rate)
        pad_t = Td * rate - T
        if pad_t:
            x = jnp.pad(x, ((0, pad_t), (0, 0), (0, 0)))
        Bd = rate * B
        dil = x.reshape(Td, Bd, Fp)               # matches torch _prepare_inputs

        tile_b = _pick_tile_b(Bd)
        k = _pick_k(Td, tile_b, Fp, Hp)           # k divides Td -> no tail waste
        Td_pad = _round_up(Td, k)
        if Td_pad != Td:                          # safety only; unreachable here
            dil = jnp.pad(dil, ((0, Td_pad - Td), (0, 0), (0, 0)))

        h_seq = gru_sequence(dil, wih_t, bih, whh_t, bhh, k, tile_b)
        out = h_seq.reshape(Td_pad * rate, B, Hp)[:T]   # un-dilate + unpad
        outputs.append(out)                             # stays time-major
        inputs = out
    return outputs


# ----------------------------------------------------------------------------
# THOC forward
# ----------------------------------------------------------------------------
def thoc_forward(X, params):
    B, W, C = X.shape
    L = 3
    H = params["clusters_st"].shape[1]
    K = params["clusters_st"].shape[2]

    Xt = jnp.transpose(X, (1, 0, 2))               # time-major once
    mtf = drnn_forward(Xt, params["gru"], L)       # list of (W, B, Hp) bf16

    # fused hierarchical clustering stage (single kernel over all L levels)
    f0 = mtf[0][W - 1, :, :H].astype(jnp.float32)[:, None, :]         # (B, 1, H)
    lh = jnp.stack([mtf[i + 1][W - 1, :, :H] for i in range(L - 1)]
                   ).astype(jnp.float32)                              # (L-1, B, H)
    md = thoc_levels_fused(f0, lh, params["clusters_st"],
                           params["cnet_w_st"], params["cnet_b_st"],
                           params["mlp"])                             # (B, L)
    anomaly = jnp.sum(md, axis=1) / L
    L_THOC = jnp.sum(jnp.mean(md, axis=0))

    # orthogonality loss on 6x6 matrices: plain jnp (dispatch >> math)
    eyeK = jnp.eye(K, dtype=jnp.float32)
    L_orth = jnp.float32(0.0)
    for i in range(L):
        cl = params["clusters_st"][i]
        csq = cl.T @ cl
        L_orth = L_orth + jnp.sqrt(jnp.sum((csq - eyeK) ** 2))
    L_orth = L_orth / L

    # temporal self-supervision loss (fused linear + masked MSE reduction)
    L_TSS = jnp.float32(0.0)
    for i in range(L):
        rate = 2 ** i
        M = (W - rate) * B
        Hp = mtf[i].shape[2]
        src = mtf[i][:W - rate].reshape(M, Hp)     # bf16 stream, no transpose
        tgt = Xt[rate:].reshape(M, C)
        tw_t, tb = params["tss"][i]
        L_TSS = L_TSS + tss_sse(src, tgt, tw_t, tb) / (M * C)
    L_TSS = L_TSS / L

    return anomaly, {"L_THOC": L_THOC, "L_orth": L_orth, "L_TSS": L_TSS}


# ----------------------------------------------------------------------------
# deterministic parameter init (PyTorch layout) + one-time preparation
# (gate-padded / transposed MXU layouts, bf16 matmul weights, stacked levels).
# ----------------------------------------------------------------------------
def init_params(key, C, H, L=3, K=6):
    keys = iter(jax.random.split(key, 64))

    def u(shape, scale):
        return jax.random.uniform(next(keys), shape, jnp.float32, -scale, scale)

    params = {}
    gru = []
    for i in range(L):
        in_dim = C if i == 0 else H
        s = 1.0 / math.sqrt(H)
        gru.append((u((3 * H, in_dim), s), u((3 * H, H), s),
                    u((3 * H,), s), u((3 * H,), s)))
    params["gru"] = gru
    xs = math.sqrt(6.0 / (H + K))
    params["clusters"] = [u((H, K), xs) for _ in range(L)]
    s = 1.0 / math.sqrt(H)
    params["cnets"] = [(u((H, H), s), u((H,), s)) for _ in range(L)]
    s2 = 1.0 / math.sqrt(2 * H)
    params["mlp"] = [
        (u((2 * H, 2 * H), s2), u((2 * H,), s2)),
        (u((H, 2 * H), s2), u((H,), s2)),
        (u((H, H), s), u((H,), s)),
    ]
    params["tss"] = [(u((C, H), s), u((C,), s)) for _ in range(L)]
    return params


def prepare_params(params):
    """One-time weight prep:
      * GRU weights transposed and laid out gate-padded: each gate occupies a
        128-aligned lane block of width Hp = round_up(H, 128); padded rows/cols
        are zero so padded hidden lanes stay exactly zero through the recurrence.
      * MXU matmul weights cast to bf16; biases stay f32.
      * Per-level cluster / cnet tensors stacked for the fused THOC kernel.
      * TSS projection padded to Hp contraction rows (zeros) and cast to bf16.
    """
    H = params["clusters"][0].shape[0]
    Hp = _round_up(H, 128)
    prep = {}

    gru = []
    for li, (wih, whh, bih, bhh) in enumerate(params["gru"]):
        F = wih.shape[1]
        Fp = Hp if li > 0 else _round_up(F, 8)
        wih_t = jnp.zeros((Fp, 3 * Hp), jnp.float32)
        whh_t = jnp.zeros((Hp, 3 * Hp), jnp.float32)
        bih_p = jnp.zeros((1, 3 * Hp), jnp.float32)
        bhh_p = jnp.zeros((1, 3 * Hp), jnp.float32)
        for g in range(3):  # PyTorch gate order: r | z | n
            wih_t = wih_t.at[:F, g * Hp:g * Hp + H].set(wih[g * H:(g + 1) * H, :].T)
            whh_t = whh_t.at[:H, g * Hp:g * Hp + H].set(whh[g * H:(g + 1) * H, :].T)
            bih_p = bih_p.at[0, g * Hp:g * Hp + H].set(bih[g * H:(g + 1) * H])
            bhh_p = bhh_p.at[0, g * Hp:g * Hp + H].set(bhh[g * H:(g + 1) * H])
        gru.append((wih_t.astype(jnp.bfloat16), bih_p,
                    whh_t.astype(jnp.bfloat16), bhh_p))
    prep["gru"] = gru

    prep["clusters_st"] = jnp.stack(params["clusters"])                     # (L,H,K)
    prep["cnet_w_st"] = jnp.stack([w.T for (w, _) in params["cnets"]])      # (L,H,H)
    prep["cnet_b_st"] = jnp.stack([b.reshape(1, -1)
                                   for (_, b) in params["cnets"]])          # (L,1,H)
    prep["mlp"] = [(w.T, b.reshape(1, -1)) for (w, b) in params["mlp"]]

    tss = []
    for (w, b) in params["tss"]:
        Cc = w.shape[0]
        w_t = jnp.zeros((Hp, Cc), jnp.float32).at[:H].set(w.T).astype(jnp.bfloat16)
        tss.append((w_t, b.reshape(1, -1)))
    prep["tss"] = tss
    return prep


# TODO(synk): Detrender ('Detrend' normalization) path not implemented; the
# module default normalization='None' is what is reproduced here.

if __name__ == "__main__":
    B, W, C, H = 2, 8, 4, 32
    key = jax.random.PRNGKey(0)
    kx, kp = jax.random.split(key)
    X = jax.random.normal(kx, (B, W, C), dtype=jnp.float32)
    params = prepare_params(init_params(kp, C, H))

    fwd = jax.jit(thoc_forward)
    scores, losses = fwd(X, params)
    jax.block_until_ready((scores, losses))
    assert scores.shape == (B,)
    assert all(bool(jnp.isfinite(jnp.asarray(v))) for v in losses.values())
    print("KERNEL_OK")
</pallas_src>

<mosaic_0001>
module attributes {stable_mosaic.version = 11 : i64} {
  func.func @_gru_kernel(%arg0: i32, %arg1: i32, %arg2: memref<8x2x8xbf16, #tpu.memory_space<vmem>>, %arg3: memref<8x384xbf16, #tpu.memory_space<vmem>>, %arg4: memref<1x384xf32, #tpu.memory_space<vmem>>, %arg5: memref<128x384xbf16, #tpu.memory_space<vmem>>, %arg6: memref<1x384xf32, #tpu.memory_space<vmem>>, %arg7: memref<8x2x128xbf16, #tpu.memory_space<vmem>>, %arg8: memref<2x128xf32, #tpu.memory_space<vmem>>) attributes {dimension_semantics = [#tpu.dimension_semantics<parallel>, #tpu.dimension_semantics<arbitrary>], iteration_bounds = array<i64: 1, 1>, scalar_prefetch = 0 : i64, scratch_operands = 1 : i64, tpu.core_type = #tpu.core_type<tc>, window_params = [{transform_indices = @transform_0, window_bounds = array<i64: 8, 2, 8>}, {pipeline_mode = #tpu.pipeline_mode<synchronous>, transform_indices = @transform_1, window_bounds = array<i64: 8, 384>}, {pipeline_mode = #tpu.pipeline_mode<synchronous>, transform_indices = @transform_2, window_bounds = array<i64: 1, 384>}, {pipeline_mode = #tpu.pipeline_mode<synchronous>, transform_indices = @transform_3, window_bounds = array<i64: 128, 384>}, {pipeline_mode = #tpu.pipeline_mode<synchronous>, transform_indices = @transform_4, window_bounds = array<i64: 1, 384>}, {transform_indices = @transform_5, window_bounds = array<i64: 8, 2, 128>}]} {
    %c0_i32 = arith.constant 0 : i32
    %0 = arith.cmpi eq, %arg1, %c0_i32 : i32
    %1 = arith.extui %0 : i1 to i32
    %c0_i32_0 = arith.constant 0 : i32
    %2 = arith.cmpi ne, %1, %c0_i32_0 : i32
    scf.if %2 {
      %cst_64 = arith.constant 0.000000e+00 : f32
      %303 = vector.broadcast %cst_64 : f32 to vector<2x128xf32>
      %c0_65 = arith.constant 0 : index
      %c0_66 = arith.constant 0 : index
      %304 = vector.load %arg8[%c0_65, %c0_66] : memref<2x128xf32, #tpu.memory_space<vmem>>, vector<2x128xf32>
      tpu.vector_store %arg8[%c0_65, %c0_66], %303 {strides = array<i32>} : memref<2x128xf32, #tpu.memory_space<vmem>>, vector<2x128xf32>,
    } else {
    }
    %c0 = arith.constant 0 : index
    %c0_1 = arith.constant 0 : index
    %c0_2 = arith.constant 0 : index
    %3 = vector.load %arg2[%c0, %c0_1, %c0_2] : memref<8x2x8xbf16, #tpu.memory_space<vmem>>, vector<8x2x8xbf16>
    %4 = vector.shape_cast %3 : vector<8x2x8xbf16> to vector<16x8xbf16>
    %c0_3 = arith.constant 0 : index
    %c0_4 = arith.constant 0 : index
    %5 = vector.load %arg3[%c0_3, %c0_4] : memref<8x384xbf16, #tpu.memory_space<vmem>>, vector<8x384xbf16>
    %cst = arith.constant dense<0.000000e+00> : vector<16x384xf32>
    %6 = tpu.matmul %4, %5, %cst {dimension_numbers = #tpu.dot_dimension_numbers<[1], [0], [0], [1], [0, 0, 1, 1], [], []>} : vector<16x8xbf16>, vector<8x384xbf16>, vector<16x384xf32> -> vector<16x384xf32>
    %c0_5 = arith.constant 0 : index
    %c0_6 = arith.constant 0 : index
    %7 = vector.load %arg4[%c0_5, %c0_6] : memref<1x384xf32, #tpu.memory_space<vmem>>, vector<1x384xf32>
    %8 = vector.broadcast %7 : vector<1x384xf32> to vector<16x384xf32>
    %9 = arith.addf %6, %8 : vector<16x384xf32>
    %10 = vector.shape_cast %9 : vector<16x384xf32> to vector<8x2x384xf32>
    %c0_7 = arith.constant 0 : index
    %c0_8 = arith.constant 0 : index
    %11 = vector.load %arg5[%c0_7, %c0_8] : memref<128x384xbf16, #tpu.memory_space<vmem>>, vector<128x384xbf16>
    %c0_9 = arith.constant 0 : index
    %c0_10 = arith.constant 0 : index
    %12 = vector.load %arg6[%c0_9, %c0_10] : memref<1x384xf32, #tpu.memory_space<vmem>>, vector<1x384xf32>
    %c0_11 = arith.constant 0 : index
    %c0_12 = arith.constant 0 : index
    %13 = vector.load %arg8[%c0_11, %c0_12] : memref<2x128xf32, #tpu.memory_space<vmem>>, vector<2x128xf32>
    %14 = arith.truncf %13 : vector<2x128xf32> to vector<2x128xbf16>
    %cst_13 = arith.constant dense<0.000000e+00> : vector<2x384xf32>
    %15 = tpu.matmul %14, %11, %cst_13 {dimension_numbers = #tpu.dot_dimension_numbers<[1], [0], [0], [1], [0, 0, 1, 1], [], []>} : vector<2x128xbf16>, vector<128x384xbf16>, vector<2x384xf32> -> vector<2x384xf32>
    %16 = vector.broadcast %12 : vector<1x384xf32> to vector<2x384xf32>
    %17 = arith.addf %15, %16 : vector<2x384xf32>
    %18 = vector.extract_strided_slice %10 {offsets = [0, 0, 0], sizes = [1, 2, 384], strides = [1, 1, 1]} : vector<8x2x384xf32> to vector<1x2x384xf32>
    %19 = vector.shape_cast %18 : vector<1x2x384xf32> to vector<2x384xf32>
    %20 = vector.extract_strided_slice %19 {offsets = [0, 0], sizes = [2, 128], strides = [1, 1]} : vector<2x384xf32> to vector<2x128xf32>
    %21 = vector.extract_strided_slice %17 {offsets = [0, 0], sizes = [2, 128], strides = [1, 1]} : vector<2x384xf32> to vector<2x128xf32>
    %22 = arith.addf %20, %21 : vector<2x128xf32>
    %23 = arith.negf %22 : vector<2x128xf32>
    %24 = math.exp %23 : vector<2x128xf32>
    %cst_14 = arith.constant 1.000000e+00 : f32
    %25 = vector.broadcast %cst_14 : f32 to vector<2x128xf32>
    %26 = arith.addf %25, %24 : vector<2x128xf32>
    %27 = arith.divf %25, %26 : vector<2x128xf32>
    %28 = vector.extract_strided_slice %19 {offsets = [0, 128], sizes = [2, 128], strides = [1, 1]} : vector<2x384xf32> to vector<2x128xf32>
    %29 = vector.extract_strided_slice %17 {offsets = [0, 128], sizes = [2, 128], strides = [1, 1]} : vector<2x384xf32> to vector<2x128xf32>
    %30 = arith.addf %28, %29 : vector<2x128xf32>
    %31 = arith.negf %30 : vector<2x128xf32>
    %32 = math.exp %31 : vector<2x128xf32>
    %cst_15 = arith.constant 1.000000e+00 : f32
    %33 = vector.broadcast %cst_15 : f32 to vector<2x128xf32>
    %34 = arith.addf %33, %32 : vector<2x128xf32>
    %35 = arith.divf %33, %34 : vector<2x128xf32>
    %36 = vector.extract_strided_slice %19 {offsets = [0, 256], sizes = [2, 128], strides = [1, 1]} : vector<2x384xf32> to vector<2x128xf32>
    %37 = vector.extract_strided_slice %17 {offsets = [0, 256], sizes = [2, 128], strides = [1, 1]} : vector<2x384xf32> to vector<2x128xf32>
    %38 = arith.mulf %27, %37 : vector<2x128xf32>
    %39 = arith.addf %36, %38 : vector<2x128xf32>
    %40 = math.tanh %39 : vector<2x128xf32>
    %cst_16 = arith.constant 1.000000e+00 : f32
    %41 = vector.broadcast %cst_16 : f32 to vector<2x128xf32>
    %42 = arith.subf %41, %35 : vector<2x128xf32>
    %43 = arith.mulf %42, %40 : vector<2x128xf32>
    %44 = arith.mulf %35, %13 : vector<2x128xf32>
    %45 = arith.addf %43, %44 : vector<2x128xf32>
    %46 = arith.truncf %45 : vector<2x128xf32> to vector<2x128xbf16>
    %c0_17 = arith.constant 0 : index
    %c0_18 = arith.constant 0 : index
    %c0_19 = arith.constant 0 : index
    %47 = vector.load %arg7[%c0_17, %c0_18, %c0_19] : memref<8x2x128xbf16, #tpu.memory_space<vmem>>, vector<1x2x128xbf16>
    %48 = vector.shape_cast %47 : vector<1x2x128xbf16> to vector<2x128xbf16>
    %49 = vector.shape_cast %46 : vector<2x128xbf16> to vector<1x2x128xbf16>
    tpu.vector_store %arg7[%c0_17, %c0_18, %c0_19], %49 {strides = array<i32>} : memref<8x2x128xbf16, #tpu.memory_space<vmem>>, vector<1x2x128xbf16>,
    %50 = arith.truncf %45 : vector<2x128xf32> to vector<2x128xbf16>
    %cst_20 = arith.constant dense<0.000000e+00> : vector<2x384xf32>
    %51 = tpu.matmul %50, %11, %cst_20 {dimension_numbers = #tpu.dot_dimension_numbers<[1], [0], [0], [1], [0, 0, 1, 1], [], []>} : vector<2x128xbf16>, vector<128x384xbf16>, vector<2x384xf32> -> vector<2x384xf32>
    %52 = vector.broadcast %12 : vector<1x384xf32> to vector<2x384xf32>
    %53 = arith.addf %51, %52 : vector<2x384xf32>
    %54 = vector.extract_strided_slice %10 {offsets = [1, 0, 0], sizes = [1, 2, 384], strides = [1, 1, 1]} : vector<8x2x384xf32> to vector<1x2x384xf32>
    %55 = vector.shape_cast %54 : vector<1x2x384xf32> to vector<2x384xf32>
    %56 = vector.extract_strided_slice %55 {offsets = [0, 0], sizes = [2, 128], strides = [1, 1]} : vector<2x384xf32> to vector<2x128xf32>
    %57 = vector.extract_strided_slice %53 {offsets = [0, 0], sizes = [2, 128], strides = [1, 1]} : vector<2x384xf32> to vector<2x128xf32>
    %58 = arith.addf %56, %57 : vector<2x128xf32>
    %59 = arith.negf %58 : vector<2x128xf32>
    %60 = math.exp %59 : vector<2x128xf32>
    %cst_21 = arith.constant 1.000000e+00 : f32
    %61 = vector.broadcast %cst_21 : f32 to vector<2x128xf32>
    %62 = arith.addf %61, %60 : vector<2x128xf32>
    %63 = arith.divf %61, %62 : vector<2x128xf32>
    %64 = vector.extract_strided_slice %55 {offsets = [0, 128], sizes = [2, 128], strides = [1, 1]} : vector<2x384xf32> to vector<2x128xf32>
    %65 = vector.extract_strided_slice %53 {offsets = [0, 128], sizes = [2, 128], strides = [1, 1]} : vector<2x384xf32> to vector<2x128xf32>
    %66 = arith.addf %64, %65 : vector<2x128xf32>
    %67 = arith.negf %66 : vector<2x128xf32>
    %68 = math.exp %67 : vector<2x128xf32>
    %cst_22 = arith.constant 1.000000e+00 : f32
    %69 = vector.broadcast %cst_22 : f32 to vector<2x128xf32>
    %70 = arith.addf %69, %68 : vector<2x128xf32>
    %71 = arith.divf %69, %70 : vector<2x128xf32>
    %72 = vector.extract_strided_slice %55 {offsets = [0, 256], sizes = [2, 128], strides = [1, 1]} : vector<2x384xf32> to vector<2x128xf32>
    %73 = vector.extract_strided_slice %53 {offsets = [0, 256], sizes = [2, 128], strides = [1, 1]} : vector<2x384xf32> to vector<2x128xf32>
    %74 = arith.mulf %63, %73 : vector<2x128xf32>
    %75 = arith.addf %72, %74 : vector<2x128xf32>
    %76 = math.tanh %75 : vector<2x128xf32>
    %cst_23 = arith.constant 1.000000e+00 : f32
    %77 = vector.broadcast %cst_23 : f32 to vector<2x128xf32>
    %78 = arith.subf %77, %71 : vector<2x128xf32>
    %79 = arith.mulf %78, %76 : vector<2x128xf32>
    %80 = arith.mulf %71, %45 : vector<2x128xf32>
    %81 = arith.addf %79, %80 : vector<2x128xf32>
    %82 = arith.truncf %81 : vector<2x128xf32> to vector<2x128xbf16>
    %c1 = arith.constant 1 : index
    %c0_24 = arith.constant 0 : index
    %c0_25 = arith.constant 0 : index
    %83 = vector.load %arg7[%c1, %c0_24, %c0_25] : memref<8x2x128xbf16, #tpu.memory_space<vmem>>, vector<1x2x128xbf16>
    %84 = vector.shape_cast %83 : vector<1x2x128xbf16> to vector<2x128xbf16>
    %85 = vector.shape_cast %82 : vector<2x128xbf16> to vector<1x2x128xbf16>
    tpu.vector_store %arg7[%c1, %c0_24, %c0_25], %85 {strides = array<i32>} : memref<8x2x128xbf16, #tpu.memory_space<vmem>>, vector<1x2x128xbf16>,
    %86 = arith.truncf %81 : vector<2x128xf32> to vector<2x128xbf16>
    %cst_26 = arith.constant dense<0.000000e+00> : vector<2x384xf32>
    %87 = tpu.matmul %86, %11, %cst_26 {dimension_numbers = #tpu.dot_dimension_numbers<[1], [0], [0], [1], [0, 0, 1, 1], [], []>} : vector<2x128xbf16>, vector<128x384xbf16>, vector<2x384xf32> -> vector<2x384xf32>
    %88 = vector.broadcast %12 : vector<1x384xf32> to vector<2x384xf32>
    %89 = arith.addf %87, %88 : vector<2x384xf32>
    %90 = vector.extract_strided_slice %10 {offsets = [2, 0, 0], sizes = [1, 2, 384], strides = [1, 1, 1]} : vector<8x2x384xf32> to vector<1x2x384xf32>
    %91 = vector.shape_cast %90 : vector<1x2x384xf32> to vector<2x384xf32>
    %92 = vector.extract_strided_slice %91 {offsets = [0, 0], sizes = [2, 128], strides = [1, 1]} : vector<2x384xf32> to vector<2x128xf32>
    %93 = vector.extract_strided_slice %89 {offsets = [0, 0], sizes = [2, 128], strides = [1, 1]} : vector<2x384xf32> to vector<2x128xf32>
    %94 = arith.addf %92, %93 : vector<2x128xf32>
    %95 = arith.negf %94 : vector<2x128xf32>
    %96 = math.exp %95 : vector<2x128xf32>
    %cst_27 = arith.constant 1.000000e+00 : f32
    %97 = vector.broadcast %cst_27 : f32 to vector<2x128xf32>
    %98 = arith.addf %97, %96 : vector<2x128xf32>
    %99 = arith.divf %97, %98 : vector<2x128xf32>
    %100 = vector.extract_strided_slice %91 {offsets = [0, 128], sizes = [2, 128], strides = [1, 1]} : vector<2x384xf32> to vector<2x128xf32>
    %101 = vector.extract_strided_slice %89 {offsets = [0, 128], sizes = [2, 128], strides = [1, 1]} : vector<2x384xf32> to vector<2x128xf32>
    %102 = arith.addf %100, %101 : vector<2x128xf32>
    %103 = arith.negf %102 : vector<2x128xf32>
    %104 = math.exp %103 : vector<2x128xf32>
    %cst_28 = arith.constant 1.000000e+00 : f32
    %105 = vector.broadcast %cst_28 : f32 to vector<2x128xf32>
    %106 = arith.addf %105, %104 : vector<2x128xf32>
    %107 = arith.divf %105, %106 : vector<2x128xf32>
    %108 = vector.extract_strided_slice %91 {offsets = [0, 256], sizes = [2, 128], strides = [1, 1]} : vector<2x384xf32> to vector<2x128xf32>
    %109 = vector.extract_strided_slice %89 {offsets = [0, 256], sizes = [2, 128], strides = [1, 1]} : vector<2x384xf32> to vector<2x128xf32>
    %110 = arith.mulf %99, %109 : vector<2x128xf32>
    %111 = arith.addf %108, %110 : vector<2x128xf32>
    %112 = math.tanh %111 : vector<2x128xf32>
    %cst_29 = arith.constant 1.000000e+00 : f32
    %113 = vector.broadcast %cst_29 : f32 to vector<2x128xf32>
    %114 = arith.subf %113, %107 : vector<2x128xf32>
    %115 = arith.mulf %114, %112 : vector<2x128xf32>
    %116 = arith.mulf %107, %81 : vector<2x128xf32>
    %117 = arith.addf %115, %116 : vector<2x128xf32>
    %118 = arith.truncf %117 : vector<2x128xf32> to vector<2x128xbf16>
    %c2 = arith.constant 2 : index
    %c0_30 = arith.constant 0 : index
    %c0_31 = arith.constant 0 : index
    %119 = vector.load %arg7[%c2, %c0_30, %c0_31] : memref<8x2x128xbf16, #tpu.memory_space<vmem>>, vector<1x2x128xbf16>
    %120 = vector.shape_cast %119 : vector<1x2x128xbf16> to vector<2x128xbf16>
    %121 = vector.shape_cast %118 : vector<2x128xbf16> to vector<1x2x128xbf16>
    tpu.vector_store %arg7[%c2, %c0_30, %c0_31], %121 {strides = array<i32>} : memref<8x2x128xbf16, #tpu.memory_space<vmem>>, vector<1x2x128xbf16>,
    %122 = arith.truncf %117 : vector<2x128xf32> to vector<2x128xbf16>
    %cst_32 = arith.constant dense<0.000000e+00> : vector<2x384xf32>
    %123 = tpu.matmul %122, %11, %cst_32 {dimension_numbers = #tpu.dot_dimension_numbers<[1], [0], [0], [1], [0, 0, 1, 1], [], []>} : vector<2x128xbf16>, vector<128x384xbf16>, vector<2x384xf32> -> vector<2x384xf32>
    %124 = vector.broadcast %12 : vector<1x384xf32> to vector<2x384xf32>
    %125 = arith.addf %123, %124 : vector<2x384xf32>
    %126 = vector.extract_strided_slice %10 {offsets = [3, 0, 0], sizes = [1, 2, 384], strides = [1, 1, 1]} : vector<8x2x384xf32> to vector<1x2x384xf32>
    %127 = vector.shape_cast %126 : vector<1x2x384xf32> to vector<2x384xf32>
    %128 = vector.extract_strided_slice %127 {offsets = [0, 0], sizes = [2, 128], strides = [1, 1]} : vector<2x384xf32> to vector<2x128xf32>
    %129 = vector.extract_strided_slice %125 {offsets = [0, 0], sizes = [2, 128], strides = [1, 1]} : vector<2x384xf32> to vector<2x128xf32>
    %130 = arith.addf %128, %129 : vector<2x128xf32>
    %131 = arith.negf %130 : vector<2x128xf32>
    %132 = math.exp %131 : vector<2x128xf32>
    %cst_33 = arith.constant 1.000000e+00 : f32
    %133 = vector.broadcast %cst_33 : f32 to vector<2x128xf32>
    %134 = arith.addf %133, %132 : vector<2x128xf32>
    %135 = arith.divf %133, %134 : vector<2x128xf32>
    %136 = vector.extract_strided_slice %127 {offsets = [0, 128], sizes = [2, 128], strides = [1, 1]} : vector<2x384xf32> to vector<2x128xf32>
    %137 = vector.extract_strided_slice %125 {offsets = [0, 128], sizes = [2, 128], strides = [1, 1]} : vector<2x384xf32> to vector<2x128xf32>
    %138 = arith.addf %136, %137 : vector<2x128xf32>
    %139 = arith.negf %138 : vector<2x128xf32>
    %140 = math.exp %139 : vector<2x128xf32>
    %cst_34 = arith.constant 1.000000e+00 : f32
    %141 = vector.broadcast %cst_34 : f32 to vector<2x128xf32>
    %142 = arith.addf %141, %140 : vector<2x128xf32>
    %143 = arith.divf %141, %142 : vector<2x128xf32>
    %144 = vector.extract_strided_slice %127 {offsets = [0, 256], sizes = [2, 128], strides = [1, 1]} : vector<2x384xf32> to vector<2x128xf32>
    %145 = vector.extract_strided_slice %125 {offsets = [0, 256], sizes = [2, 128], strides = [1, 1]} : vector<2x384xf32> to vector<2x128xf32>
    %146 = arith.mulf %135, %145 : vector<2x128xf32>
    %147 = arith.addf %144, %146 : vector<2x128xf32>
    %148 = math.tanh %147 : vector<2x128xf32>
    %cst_35 = arith.constant 1.000000e+00 : f32
    %149 = vector.broadcast %cst_35 : f32 to vector<2x128xf32>
    %150 = arith.subf %149, %143 : vector<2x128xf32>
    %151 = arith.mulf %150, %148 : vector<2x128xf32>
    %152 = arith.mulf %143, %117 : vector<2x128xf32>
    %153 = arith.addf %151, %152 : vector<2x128xf32>
    %154 = arith.truncf %153 : vector<2x128xf32> to vector<2x128xbf16>
    %c3 = arith.constant 3 : index
    %c0_36 = arith.constant 0 : index
    %c0_37 = arith.constant 0 : index
    %155 = vector.load %arg7[%c3, %c0_36, %c0_37] : memref<8x2x128xbf16, #tpu.memory_space<vmem>>, vector<1x2x128xbf16>
    %156 = vector.shape_cast %155 : vector<1x2x128xbf16> to vector<2x128xbf16>
    %157 = vector.shape_cast %154 : vector<2x128xbf16> to vector<1x2x128xbf16>
    tpu.vector_store %arg7[%c3, %c0_36, %c0_37], %157 {strides = array<i32>} : memref<8x2x128xbf16, #tpu.memory_space<vmem>>, vector<1x2x128xbf16>,
    %158 = arith.truncf %153 : vector<2x128xf32> to vector<2x128xbf16>
    %cst_38 = arith.constant dense<0.000000e+00> : vector<2x384xf32>
    %159 = tpu.matmul %158, %11, %cst_38 {dimension_numbers = #tpu.dot_dimension_numbers<[1], [0], [0], [1], [0, 0, 1, 1], [], []>} : vector<2x128xbf16>, vector<128x384xbf16>, vector<2x384xf32> -> vector<2x384xf32>
    %160 = vector.broadcast %12 : vector<1x384xf32> to vector<2x384xf32>
    %161 = arith.addf %159, %160 : vector<2x384xf32>
    %162 = vector.extract_strided_slice %10 {offsets = [4, 0, 0], sizes = [1, 2, 384], strides = [1, 1, 1]} : vector<8x2x384xf32> to vector<1x2x384xf32>
    %163 = vector.shape_cast %162 : vector<1x2x384xf32> to vector<2x384xf32>
    %164 = vector.extract_strided_slice %163 {offsets = [0, 0], sizes = [2, 128], strides = [1, 1]} : vector<2x384xf32> to vector<2x128xf32>
    %165 = vector.extract_strided_slice %161 {offsets = [0, 0], sizes = [2, 128], strides = [1, 1]} : vector<2x384xf32> to vector<2x128xf32>
    %166 = arith.addf %164, %165 : vector<2x128xf32>
    %167 = arith.negf %166 : vector<2x128xf32>
    %168 = math.exp %167 : vector<2x128xf32>
    %cst_39 = arith.constant 1.000000e+00 : f32
    %169 = vector.broadcast %cst_39 : f32 to vector<2x128xf32>
    %170 = arith.addf %169, %168 : vector<2x128xf32>
    %171 = arith.divf %169, %170 : vector<2x128xf32>
    %172 = vector.extract_strided_slice %163 {offsets = [0, 128], sizes = [2, 128], strides = [1, 1]} : vector<2x384xf32> to vector<2x128xf32>
    %173 = vector.extract_strided_slice %161 {offsets = [0, 128], sizes = [2, 128], strides = [1, 1]} : vector<2x384xf32> to vector<2x128xf32>
    %174 = arith.addf %172, %173 : vector<2x128xf32>
    %175 = arith.negf %174 : vector<2x128xf32>
    %176 = math.exp %175 : vector<2x128xf32>
    %cst_40 = arith.constant 1.000000e+00 : f32
    %177 = vector.broadcast %cst_40 : f32 to vector<2x128xf32>
    %178 = arith.addf %177, %176 : vector<2x128xf32>
    %179 = arith.divf %177, %178 : vector<2x128xf32>
    %180 = vector.extract_strided_slice %163 {offsets = [0, 256], sizes = [2, 128], strides = [1, 1]} : vector<2x384xf32> to vector<2x128xf32>
    %181 = vector.extract_strided_slice %161 {offsets = [0, 256], sizes = [2, 128], strides = [1, 1]} : vector<2x384xf32> to vector<2x128xf32>
    %182 = arith.mulf %171, %181 : vector<2x128xf32>
    %183 = arith.addf %180, %182 : vector<2x128xf32>
    %184 = math.tanh %183 : vector<2x128xf32>
    %cst_41 = arith.constant 1.000000e+00 : f32
    %185 = vector.broadcast %cst_41 : f32 to vector<2x128xf32>
    %186 = arith.subf %185, %179 : vector<2x128xf32>
    %187 = arith.mulf %186, %184 : vector<2x128xf32>
    %188 = arith.mulf %179, %153 : vector<2x128xf32>
    %189 = arith.addf %187, %188 : vector<2x128xf32>
    %190 = arith.truncf %189 : vector<2x128xf32> to vector<2x128xbf16>
    %c4 = arith.constant 4 : index
    %c0_42 = arith.constant 0 : index
    %c0_43 = arith.constant 0 : index
    %191 = vector.load %arg7[%c4, %c0_42, %c0_43] : memref<8x2x128xbf16, #tpu.memory_space<vmem>>, vector<1x2x128xbf16>
    %192 = vector.shape_cast %191 : vector<1x2x128xbf16> to vector<2x128xbf16>
    %193 = vector.shape_cast %190 : vector<2x128xbf16> to vector<1x2x128xbf16>
    tpu.vector_store %arg7[%c4, %c0_42, %c0_43], %193 {strides = array<i32>} : memref<8x2x128xbf16, #tpu.memory_space<vmem>>, vector<1x2x128xbf16>,
    %194 = arith.truncf %189 : vector<2x128xf32> to vector<2x128xbf16>
    %cst_44 = arith.constant dense<0.000000e+00> : vector<2x384xf32>
    %195 = tpu.matmul %194, %11, %cst_44 {dimension_numbers = #tpu.dot_dimension_numbers<[1], [0], [0], [1], [0, 0, 1, 1], [], []>} : vector<2x128xbf16>, vector<128x384xbf16>, vector<2x384xf32> -> vector<2x384xf32>
    %196 = vector.broadcast %12 : vector<1x384xf32> to vector<2x384xf32>
    %197 = arith.addf %195, %196 : vector<2x384xf32>
    %198 = vector.extract_strided_slice %10 {offsets = [5, 0, 0], sizes = [1, 2, 384], strides = [1, 1, 1]} : vector<8x2x384xf32> to vector<1x2x384xf32>
    %199 = vector.shape_cast %198 : vector<1x2x384xf32> to vector<2x384xf32>
    %200 = vector.extract_strided_slice %199 {offsets = [0, 0], sizes = [2, 128], strides = [1, 1]} : vector<2x384xf32> to vector<2x128xf32>
    %201 = vector.extract_strided_slice %197 {offsets = [0, 0], sizes = [2, 128], strides = [1, 1]} : vector<2x384xf32> to vector<2x128xf32>
    %202 = arith.addf %200, %201 : vector<2x128xf32>
    %203 = arith.negf %202 : vector<2x128xf32>
    %204 = math.exp %203 : vector<2x128xf32>
    %cst_45 = arith.constant 1.000000e+00 : f32
    %205 = vector.broadcast %cst_45 : f32 to vector<2x128xf32>
    %206 = arith.addf %205, %204 : vector<2x128xf32>
    %207 = arith.divf %205, %206 : vector<2x128xf32>
    %208 = vector.extract_strided_slice %199 {offsets = [0, 128], sizes = [2, 128], strides = [1, 1]} : vector<2x384xf32> to vector<2x128xf32>
    %209 = vector.extract_strided_slice %197 {offsets = [0, 128], sizes = [2, 128], strides = [1, 1]} : vector<2x384xf32> to vector<2x128xf32>
    %210 = arith.addf %208, %209 : vector<2x128xf32>
    %211 = arith.negf %210 : vector<2x128xf32>
    %212 = math.exp %211 : vector<2x128xf32>
    %cst_46 = arith.constant 1.000000e+00 : f32
    %213 = vector.broadcast %cst_46 : f32 to vector<2x128xf32>
    %214 = arith.addf %213, %212 : vector<2x128xf32>
    %215 = arith.divf %213, %214 : vector<2x128xf32>
    %216 = vector.extract_strided_slice %199 {offsets = [0, 256], sizes = [2, 128], strides = [1, 1]} : vector<2x384xf32> to vector<2x128xf32>
    %217 = vector.extract_strided_slice %197 {offsets = [0, 256], sizes = [2, 128], strides = [1, 1]} : vector<2x384xf32> to vector<2x128xf32>
    %218 = arith.mulf %207, %217 : vector<2x128xf32>
    %219 = arith.addf %216, %218 : vector<2x128xf32>
    %220 = math.tanh %219 : vector<2x128xf32>
    %cst_47 = arith.constant 1.000000e+00 : f32
    %221 = vector.broadcast %cst_47 : f32 to vector<2x128xf32>
    %222 = arith.subf %221, %215 : vector<2x128xf32>
    %223 = arith.mulf %222, %220 : vector<2x128xf32>
    %224 = arith.mulf %215, %189 : vector<2x128xf32>
    %225 = arith.addf %223, %224 : vector<2x128xf32>
    %226 = arith.truncf %225 : vector<2x128xf32> to vector<2x128xbf16>
    %c5 = arith.constant 5 : index
    %c0_48 = arith.constant 0 : index
    %c0_49 = arith.constant 0 : index
    %227 = vector.load %arg7[%c5, %c0_48, %c0_49] : memref<8x2x128xbf16, #tpu.memory_space<vmem>>, vector<1x2x128xbf16>
    %228 = vector.shape_cast %227 : vector<1x2x128xbf16> to vector<2x128xbf16>
    %229 = vector.shape_cast %226 : vector<2x128xbf16> to vector<1x2x128xbf16>
    tpu.vector_store %arg7[%c5, %c0_48, %c0_49], %229 {strides = array<i32>} : memref<8x2x128xbf16, #tpu.memory_space<vmem>>, vector<1x2x128xbf16>,
    %230 = arith.truncf %225 : vector<2x128xf32> to vector<2x128xbf16>
    %cst_50 = arith.constant dense<0.000000e+00> : vector<2x384xf32>
    %231 = tpu.matmul %230, %11, %cst_50 {dimension_numbers = #tpu.dot_dimension_numbers<[1], [0], [0], [1], [0, 0, 1, 1], [], []>} : vector<2x128xbf16>, vector<128x384xbf16>, vector<2x384xf32> -> vector<2x384xf32>
    %232 = vector.broadcast %12 : vector<1x384xf32> to vector<2x384xf32>
    %233 = arith.addf %231, %232 : vector<2x384xf32>
    %234 = vector.extract_strided_slice %10 {offsets = [6, 0, 0], sizes = [1, 2, 384], strides = [1, 1, 1]} : vector<8x2x384xf32> to vector<1x2x384xf32>
    %235 = vector.shape_cast %234 : vector<1x2x384xf32> to vector<2x384xf32>
    %236 = vector.extract_strided_slice %235 {offsets = [0, 0], sizes = [2, 128], strides = [1, 1]} : vector<2x384xf32> to vector<2x128xf32>
    %237 = vector.extract_strided_slice %233 {offsets = [0, 0], sizes = [2, 128], strides = [1, 1]} : vector<2x384xf32> to vector<2x128xf32>
    %238 = arith.addf %236, %237 : vector<2x128xf32>
    %239 = arith.negf %238 : vector<2x128xf32>
    %240 = math.exp %239 : vector<2x128xf32>
    %cst_51 = arith.constant 1.000000e+00 : f32
    %241 = vector.broadcast %cst_51 : f32 to vector<2x128xf32>
    %242 = arith.addf %241, %240 : vector<2x128xf32>
    %243 = arith.divf %241, %242 : vector<2x128xf32>
    %244 = vector.extract_strided_slice %235 {offsets = [0, 128], sizes = [2, 128], strides = [1, 1]} : vector<2x384xf32> to vector<2x128xf32>
    %245 = vector.extract_strided_slice %233 {offsets = [0, 128], sizes = [2, 128], strides = [1, 1]} : vector<2x384xf32> to vector<2x128xf32>
    %246 = arith.addf %244, %245 : vector<2x128xf32>
    %247 = arith.negf %246 : vector<2x128xf32>
    %248 = math.exp %247 : vector<2x128xf32>
    %cst_52 = arith.constant 1.000000e+00 : f32
    %249 = vector.broadcast %cst_52 : f32 to vector<2x128xf32>
    %250 = arith.addf %249, %248 : vector<2x128xf32>
    %251 = arith.divf %249, %250 : vector<2x128xf32>
    %252 = vector.extract_strided_slice %235 {offsets = [0, 256], sizes = [2, 128], strides = [1, 1]} : vector<2x384xf32> to vector<2x128xf32>
    %253 = vector.extract_strided_slice %233 {offsets = [0, 256], sizes = [2, 128], strides = [1, 1]} : vector<2x384xf32> to vector<2x128xf32>
    %254 = arith.mulf %243, %253 : vector<2x128xf32>
    %255 = arith.addf %252, %254 : vector<2x128xf32>
    %256 = math.tanh %255 : vector<2x128xf32>
    %cst_53 = arith.constant 1.000000e+00 : f32
    %257 = vector.broadcast %cst_53 : f32 to vector<2x128xf32>
    %258 = arith.subf %257, %251 : vector<2x128xf32>
    %259 = arith.mulf %258, %256 : vector<2x128xf32>
    %260 = arith.mulf %251, %225 : vector<2x128xf32>
    %261 = arith.addf %259, %260 : vector<2x128xf32>
    %262 = arith.truncf %261 : vector<2x128xf32> to vector<2x128xbf16>
    %c6 = arith.constant 6 : index
    %c0_54 = arith.constant 0 : index
    %c0_55 = arith.constant 0 : index
    %263 = vector.load %arg7[%c6, %c0_54, %c0_55] : memref<8x2x128xbf16, #tpu.memory_space<vmem>>, vector<1x2x128xbf16>
    %264 = vector.shape_cast %263 : vector<1x2x128xbf16> to vector<2x128xbf16>
    %265 = vector.shape_cast %262 : vector<2x128xbf16> to vector<1x2x128xbf16>
    tpu.vector_store %arg7[%c6, %c0_54, %c0_55], %265 {strides = array<i32>} : memref<8x2x128xbf16, #tpu.memory_space<vmem>>, vector<1x2x128xbf16>,
    %266 = arith.truncf %261 : vector<2x128xf32> to vector<2x128xbf16>
    %cst_56 = arith.constant dense<0.000000e+00> : vector<2x384xf32>
    %267 = tpu.matmul %266, %11, %cst_56 {dimension_numbers = #tpu.dot_dimension_numbers<[1], [0], [0], [1], [0, 0, 1, 1], [], []>} : vector<2x128xbf16>, vector<128x384xbf16>, vector<2x384xf32> -> vector<2x384xf32>
    %268 = vector.broadcast %12 : vector<1x384xf32> to vector<2x384xf32>
    %269 = arith.addf %267, %268 : vector<2x384xf32>
    %270 = vector.extract_strided_slice %10 {offsets = [7, 0, 0], sizes = [1, 2, 384], strides = [1, 1, 1]} : vector<8x2x384xf32> to vector<1x2x384xf32>
    %271 = vector.shape_cast %270 : vector<1x2x384xf32> to vector<2x384xf32>
    %272 = vector.extract_strided_slice %271 {offsets = [0, 0], sizes = [2, 128], strides = [1, 1]} : vector<2x384xf32> to vector<2x128xf32>
    %273 = vector.extract_strided_slice %269 {offsets = [0, 0], sizes = [2, 128], strides = [1, 1]} : vector<2x384xf32> to vector<2x128xf32>
    %274 = arith.addf %272, %273 : vector<2x128xf32>
    %275 = arith.negf %274 : vector<2x128xf32>
    %276 = math.exp %275 : vector<2x128xf32>
    %cst_57 = arith.constant 1.000000e+00 : f32
    %277 = vector.broadcast %cst_57 : f32 to vector<2x128xf32>
    %278 = arith.addf %277, %276 : vector<2x128xf32>
    %279 = arith.divf %277, %278 : vector<2x128xf32>
    %280 = vector.extract_strided_slice %271 {offsets = [0, 128], sizes = [2, 128], strides = [1, 1]} : vector<2x384xf32> to vector<2x128xf32>
    %281 = vector.extract_strided_slice %269 {offsets = [0, 128], sizes = [2, 128], strides = [1, 1]} : vector<2x384xf32> to vector<2x128xf32>
    %282 = arith.addf %280, %281 : vector<2x128xf32>
    %283 = arith.negf %282 : vector<2x128xf32>
    %284 = math.exp %283 : vector<2x128xf32>
    %cst_58 = arith.constant 1.000000e+00 : f32
    %285 = vector.broadcast %cst_58 : f32 to vector<2x128xf32>
    %286 = arith.addf %285, %284 : vector<2x128xf32>
    %287 = arith.divf %285, %286 : vector<2x128xf32>
    %288 = vector.extract_strided_slice %271 {offsets = [0, 256], sizes = [2, 128], strides = [1, 1]} : vector<2x384xf32> to vector<2x128xf32>
    %289 = vector.extract_strided_slice %269 {offsets = [0, 256], sizes = [2, 128], strides = [1, 1]} : vector<2x384xf32> to vector<2x128xf32>
    %290 = arith.mulf %279, %289 : vector<2x128xf32>
    %291 = arith.addf %288, %290 : vector<2x128xf32>
    %292 = math.tanh %291 : vector<2x128xf32>
    %cst_59 = arith.constant 1.000000e+00 : f32
    %293 = vector.broadcast %cst_59 : f32 to vector<2x128xf32>
    %294 = arith.subf %293, %287 : vector<2x128xf32>
    %295 = arith.mulf %294, %292 : vector<2x128xf32>
    %296 = arith.mulf %287, %261 : vector<2x128xf32>
    %297 = arith.addf %295, %296 : vector<2x128xf32>
    %298 = arith.truncf %297 : vector<2x128xf32> to vector<2x128xbf16>
    %c7 = arith.constant 7 : index
    %c0_60 = arith.constant 0 : index
    %c0_61 = arith.constant 0 : index
    %299 = vector.load %arg7[%c7, %c0_60, %c0_61] : memref<8x2x128xbf16, #tpu.memory_space<vmem>>, vector<1x2x128xbf16>
    %300 = vector.shape_cast %299 : vector<1x2x128xbf16> to vector<2x128xbf16>
    %301 = vector.shape_cast %298 : vector<2x128xbf16> to vector<1x2x128xbf16>
    tpu.vector_store %arg7[%c7, %c0_60, %c0_61], %301 {strides = array<i32>} : memref<8x2x128xbf16, #tpu.memory_space<vmem>>, vector<1x2x128xbf16>,
    %c0_62 = arith.constant 0 : index
    %c0_63 = arith.constant 0 : index
    %302 = vector.load %arg8[%c0_62, %c0_63] : memref<2x128xf32, #tpu.memory_space<vmem>>, vector<2x128xf32>
    tpu.vector_store %arg8[%c0_62, %c0_63], %297 {strides = array<i32>} : memref<2x128xf32, #tpu.memory_space<vmem>>, vector<2x128xf32>,
    return
  }
  func.func @transform_0(%arg0: i32, %arg1: i32) -> (i32, i32, i32) {
    %c0_i32 = arith.constant 0 : i32
    %c0_i32_0 = arith.constant 0 : i32
    return %arg1, %arg0, %c0_i32 : i32, i32, i32
  }
  func.func @transform_1(%arg0: i32, %arg1: i32) -> (i32, i32) {
    %c0_i32 = arith.constant 0 : i32
    %c0_i32_0 = arith.constant 0 : i32
    %c0_i32_1 = arith.constant 0 : i32
    return %c0_i32, %c0_i32_0 : i32, i32
  }
  func.func @transform_2(%arg0: i32, %arg1: i32) -> (i32, i32) {
    %c0_i32 = arith.constant 0 : i32
    %c0_i32_0 = arith.constant 0 : i32
    %c0_i32_1 = arith.constant 0 : i32
    return %c0_i32, %c0_i32_0 : i32, i32
  }
  func.func @transform_3(%arg0: i32, %arg1: i32) -> (i32, i32) {
    %c0_i32 = arith.constant 0 : i32
    %c0_i32_0 = arith.constant 0 : i32
    %c0_i32_1 = arith.constant 0 : i32
    return %c0_i32, %c0_i32_0 : i32, i32
  }
  func.func @transform_4(%arg0: i32, %arg1: i32) -> (i32, i32) {
    %c0_i32 = arith.constant 0 : i32
    %c0_i32_0 = arith.constant 0 : i32
    %c0_i32_1 = arith.constant 0 : i32
    return %c0_i32, %c0_i32_0 : i32, i32
  }
  func.func @transform_5(%arg0: i32, %arg1: i32) -> (i32, i32, i32) {
    %c0_i32 = arith.constant 0 : i32
    %c0_i32_0 = arith.constant 0 : i32
    return %arg1, %arg0, %c0_i32 : i32, i32, i32
  }
}

module attributes {stable_mosaic.version = 11 : i64} {
  func.func @_tss_kernel(%arg0: i32, %arg1: memref<16x128xbf16, #tpu.memory_space<vmem>>, %arg2: memref<128x4xbf16, #tpu.memory_space<vmem>>, %arg3: memref<1x4xf32, #tpu.memory_space<vmem>>, %arg4: memref<16x4xf32, #tpu.memory_space<vmem>>, %arg5: memref<1x1xf32, #tpu.memory_space<vmem>>, %arg6: memref<1x1xf32, #tpu.memory_space<vmem>>) attributes {dimension_semantics = [#tpu.dimension_semantics<arbitrary>], iteration_bounds = array<i64: 1>, scalar_prefetch = 0 : i64, scratch_operands = 1 : i64, tpu.core_type = #tpu.core_type<tc>, window_params = [{transform_indices = @transform_0, window_bounds = array<i64: 16, 128>}, {pipeline_mode = #tpu.pipeline_mode<synchronous>, transform_indices = @transform_1, window_bounds = array<i64: 128, 4>}, {pipeline_mode = #tpu.pipeline_mode<synchronous>, transform_indices = @transform_2, window_bounds = array<i64: 1, 4>}, {transform_indices = @transform_3, window_bounds = array<i64: 16, 4>}, {pipeline_mode = #tpu.pipeline_mode<synchronous>, transform_indices = @transform_4, window_bounds = array<i64: 1, 1>}]} {
    %c0_i32 = arith.constant 0 : i32
    %0 = arith.cmpi eq, %arg0, %c0_i32 : i32
    %1 = arith.extui %0 : i1 to i32
    %c0_i32_0 = arith.constant 0 : i32
    %2 = arith.cmpi ne, %1, %c0_i32_0 : i32
    scf.if %2 {
      %cst_16 = arith.constant 0.000000e+00 : f32
      %31 = vector.broadcast %cst_16 : f32 to vector<1x1xf32>
      %c0_17 = arith.constant 0 : index
      %c0_18 = arith.constant 0 : index
      %32 = vector.load %arg6[%c0_17, %c0_18] : memref<1x1xf32, #tpu.memory_space<vmem>>, vector<1x1xf32>
      tpu.vector_store %arg6[%c0_17, %c0_18], %31 {strides = array<i32>} : memref<1x1xf32, #tpu.memory_space<vmem>>, vector<1x1xf32>,
    } else {
    }
    %c0 = arith.constant 0 : index
    %c0_1 = arith.constant 0 : index
    %3 = vector.load %arg1[%c0, %c0_1] : memref<16x128xbf16, #tpu.memory_space<vmem>>, vector<16x128xbf16>
    %c0_2 = arith.constant 0 : index
    %c0_3 = arith.constant 0 : index
    %4 = vector.load %arg2[%c0_2, %c0_3] : memref<128x4xbf16, #tpu.memory_space<vmem>>, vector<128x4xbf16>
    %cst = arith.constant dense<0.000000e+00> : vector<16x4xf32>
    %5 = tpu.matmul %3, %4, %cst {dimension_numbers = #tpu.dot_dimension_numbers<[1], [0], [0], [1], [0, 0, 1, 1], [], []>} : vector<16x128xbf16>, vector<128x4xbf16>, vector<16x4xf32> -> vector<16x4xf32>
    %c0_4 = arith.constant 0 : index
    %c0_5 = arith.constant 0 : index
    %6 = vector.load %arg3[%c0_4, %c0_5] : memref<1x4xf32, #tpu.memory_space<vmem>>, vector<1x4xf32>
    %7 = vector.broadcast %6 : vector<1x4xf32> to vector<16x4xf32>
    %8 = arith.addf %5, %7 : vector<16x4xf32>
    %c0_6 = arith.constant 0 : index
    %c0_7 = arith.constant 0 : index
    %9 = vector.load %arg4[%c0_6, %c0_7] : memref<16x4xf32, #tpu.memory_space<vmem>>, vector<16x4xf32>
    %10 = arith.subf %8, %9 : vector<16x4xf32>
    %c16_i32 = arith.constant 16 : i32
    %11 = arith.muli %arg0, %c16_i32 : i32
    %12 = tpu.iota {dimensions = array<i32: 0>} : vector<16x4xi32>
    %13 = vector.broadcast %11 : i32 to vector<16x4xi32>
    %14 = arith.addi %13, %12 : vector<16x4xi32>
    %c12_i32 = arith.constant 12 : i32
    %15 = vector.broadcast %c12_i32 : i32 to vector<16x4xi32>
    %16 = arith.cmpi slt, %14, %15 : vector<16x4xi32>
    %17 = arith.mulf %10, %10 : vector<16x4xf32>
    %cst_8 = arith.constant 0.000000e+00 : f32
    %18 = vector.broadcast %cst_8 : f32 to vector<16x4xf32>
    %19 = arith.select %16, %17, %18 : vector<16x4xi1>, vector<16x4xf32>
    %c0_9 = arith.constant 0 : index
    %c0_10 = arith.constant 0 : index
    %20 = vector.load %arg6[%c0_9, %c0_10] : memref<1x1xf32, #tpu.memory_space<vmem>>, vector<1x1xf32>
    %21 = vector.shape_cast %19 : vector<16x4xf32> to vector<1x16x4xf32>
    %cst_11 = arith.constant dense<0.000000e+00> : vector<1xf32>
    %22 = vector.multi_reduction <add>, %21, %cst_11 [1, 2] : vector<1x16x4xf32> to vector<1xf32>
    %23 = vector.shape_cast %22 : vector<1xf32> to vector<1x1x1xf32>
    %24 = vector.extract %23[0, 0, 0] : f32 from vector<1x1x1xf32>
    %25 = vector.broadcast %24 : f32 to vector<1x1xf32>
    %26 = arith.addf %20, %25 : vector<1x1xf32>
    %c0_12 = arith.constant 0 : index
    %c0_13 = arith.constant 0 : index
    %27 = vector.load %arg6[%c0_12, %c0_13] : memref<1x1xf32, #tpu.memory_space<vmem>>, vector<1x1xf32>
    tpu.vector_store %arg6[%c0_12, %c0_13], %26 {strides = array<i32>} : memref<1x1xf32, #tpu.memory_space<vmem>>, vector<1x1xf32>,
    %c0_i32_14 = arith.constant 0 : i32
    %28 = arith.cmpi eq, %arg0, %c0_i32_14 : i32
    %29 = arith.extui %28 : i1 to i32
    %c0_i32_15 = arith.constant 0 : i32
    %30 = arith.cmpi ne, %29, %c0_i32_15 : i32
    scf.if %30 {
      %c0_16 = arith.constant 0 : index
      %c0_17 = arith.constant 0 : index
      %31 = vector.load %arg6[%c0_16, %c0_17] : memref<1x1xf32, #tpu.memory_space<vmem>>, vector<1x1xf32>
      %c0_18 = arith.constant 0 : index
      %c0_19 = arith.constant 0 : index
      %32 = vector.load %arg5[%c0_18, %c0_19] : memref<1x1xf32, #tpu.memory_space<vmem>>, vector<1x1xf32>
      tpu.vector_store %arg5[%c0_18, %c0_19], %31 {strides = array<i32>} : memref<1x1xf32, #tpu.memory_space<vmem>>, vector<1x1xf32>,
    } else {
    }
    return
  }
  func.func @transform_0(%arg0: i32) -> (i32, i32) {
    %c0_i32 = arith.constant 0 : i32
    %c0_i32_0 = arith.constant 0 : i32
    return %arg0, %c0_i32 : i32, i32
  }
  func.func @transform_1(%arg0: i32) -> (i32, i32) {
    %c0_i32 = arith.constant 0 : i32
    %c0_i32_0 = arith.constant 0 : i32
    %c0_i32_1 = arith.constant 0 : i32
    return %c0_i32, %c0_i32_0 : i32, i32
  }
  func.func @transform_2(%arg0: i32) -> (i32, i32) {
    %c0_i32 = arith.constant 0 : i32
    %c0_i32_0 = arith.constant 0 : i32
    %c0_i32_1 = arith.constant 0 : i32
    return %c0_i32, %c0_i32_0 : i32, i32
  }
  func.func @transform_3(%arg0: i32) -> (i32, i32) {
    %c0_i32 = arith.constant 0 : i32
    %c0_i32_0 = arith.constant 0 : i32
    return %arg0, %c0_i32 : i32, i32
  }
  func.func @transform_4(%arg0: i32) -> (i32, i32) {
    %c0_i32 = arith.constant 0 : i32
    %c0_i32_0 = arith.constant 0 : i32
    %c0_i32_1 = arith.constant 0 : i32
    return %c0_i32, %c0_i32_0 : i32, i32
  }
}

module attributes {stable_mosaic.version = 11 : i64} {
  func.func @_gru_kernel(%arg0: i32, %arg1: i32, %arg2: memref<4x4x128xbf16, #tpu.memory_space<vmem>>, %arg3: memref<128x384xbf16, #tpu.memory_space<vmem>>, %arg4: memref<1x384xf32, #tpu.memory_space<vmem>>, %arg5: memref<128x384xbf16, #tpu.memory_space<vmem>>, %arg6: memref<1x384xf32, #tpu.memory_space<vmem>>, %arg7: memref<4x4x128xbf16, #tpu.memory_space<vmem>>, %arg8: memref<4x128xf32, #tpu.memory_space<vmem>>) attributes {dimension_semantics = [#tpu.dimension_semantics<parallel>, #tpu.dimension_semantics<arbitrary>], iteration_bounds = array<i64: 1, 1>, scalar_prefetch = 0 : i64, scratch_operands = 1 : i64, tpu.core_type = #tpu.core_type<tc>, window_params = [{transform_indices = @transform_0, window_bounds = array<i64: 4, 4, 128>}, {pipeline_mode = #tpu.pipeline_mode<synchronous>, transform_indices = @transform_1, window_bounds = array<i64: 128, 384>}, {pipeline_mode = #tpu.pipeline_mode<synchronous>, transform_indices = @transform_2, window_bounds = array<i64: 1, 384>}, {pipeline_mode = #tpu.pipeline_mode<synchronous>, transform_indices = @transform_3, window_bounds = array<i64: 128, 384>}, {pipeline_mode = #tpu.pipeline_mode<synchronous>, transform_indices = @transform_4, window_bounds = array<i64: 1, 384>}, {transform_indices = @transform_5, window_bounds = array<i64: 4, 4, 128>}]} {
    %c0_i32 = arith.constant 0 : i32
    %0 = arith.cmpi eq, %arg1, %c0_i32 : i32
    %1 = arith.extui %0 : i1 to i32
    %c0_i32_0 = arith.constant 0 : i32
    %2 = arith.cmpi ne, %1, %c0_i32_0 : i32
    scf.if %2 {
      %cst_40 = arith.constant 0.000000e+00 : f32
      %159 = vector.broadcast %cst_40 : f32 to vector<4x128xf32>
      %c0_41 = arith.constant 0 : index
      %c0_42 = arith.constant 0 : index
      %160 = vector.load %arg8[%c0_41, %c0_42] : memref<4x128xf32, #tpu.memory_space<vmem>>, vector<4x128xf32>
      tpu.vector_store %arg8[%c0_41, %c0_42], %159 {strides = array<i32>} : memref<4x128xf32, #tpu.memory_space<vmem>>, vector<4x128xf32>,
    } else {
    }
    %c0 = arith.constant 0 : index
    %c0_1 = arith.constant 0 : index
    %c0_2 = arith.constant 0 : index
    %3 = vector.load %arg2[%c0, %c0_1, %c0_2] : memref<4x4x128xbf16, #tpu.memory_space<vmem>>, vector<4x4x128xbf16>
    %4 = vector.shape_cast %3 : vector<4x4x128xbf16> to vector<16x128xbf16>
    %c0_3 = arith.constant 0 : index
    %c0_4 = arith.constant 0 : index
    %5 = vector.load %arg3[%c0_3, %c0_4] : memref<128x384xbf16, #tpu.memory_space<vmem>>, vector<128x384xbf16>
    %cst = arith.constant dense<0.000000e+00> : vector<16x384xf32>
    %6 = tpu.matmul %4, %5, %cst {dimension_numbers = #tpu.dot_dimension_numbers<[1], [0], [0], [1], [0, 0, 1, 1], [], []>} : vector<16x128xbf16>, vector<128x384xbf16>, vector<16x384xf32> -> vector<16x384xf32>
    %c0_5 = arith.constant 0 : index
    %c0_6 = arith.constant 0 : index
    %7 = vector.load %arg4[%c0_5, %c0_6] : memref<1x384xf32, #tpu.memory_space<vmem>>, vector<1x384xf32>
    %8 = vector.broadcast %7 : vector<1x384xf32> to vector<16x384xf32>
    %9 = arith.addf %6, %8 : vector<16x384xf32>
    %10 = vector.shape_cast %9 : vector<16x384xf32> to vector<4x4x384xf32>
    %c0_7 = arith.constant 0 : index
    %c0_8 = arith.constant 0 : index
    %11 = vector.load %arg5[%c0_7, %c0_8] : memref<128x384xbf16, #tpu.memory_space<vmem>>, vector<128x384xbf16>
    %c0_9 = arith.constant 0 : index
    %c0_10 = arith.constant 0 : index
    %12 = vector.load %arg6[%c0_9, %c0_10] : memref<1x384xf32, #tpu.memory_space<vmem>>, vector<1x384xf32>
    %c0_11 = arith.constant 0 : index
    %c0_12 = arith.constant 0 : index
    %13 = vector.load %arg8[%c0_11, %c0_12] : memref<4x128xf32, #tpu.memory_space<vmem>>, vector<4x128xf32>
    %14 = arith.truncf %13 : vector<4x128xf32> to vector<4x128xbf16>
    %cst_13 = arith.constant dense<0.000000e+00> : vector<4x384xf32>
    %15 = tpu.matmul %14, %11, %cst_13 {dimension_numbers = #tpu.dot_dimension_numbers<[1], [0], [0], [1], [0, 0, 1, 1], [], []>} : vector<4x128xbf16>, vector<128x384xbf16>, vector<4x384xf32> -> vector<4x384xf32>
    %16 = vector.broadcast %12 : vector<1x384xf32> to vector<4x384xf32>
    %17 = arith.addf %15, %16 : vector<4x384xf32>
    %18 = vector.extract_strided_slice %10 {offsets = [0, 0, 0], sizes = [1, 4, 384], strides = [1, 1, 1]} : vector<4x4x384xf32> to vector<1x4x384xf32>
    %19 = vector.shape_cast %18 : vector<1x4x384xf32> to vector<4x384xf32>
    %20 = vector.extract_strided_slice %19 {offsets = [0, 0], sizes = [4, 128], strides = [1, 1]} : vector<4x384xf32> to vector<4x128xf32>
    %21 = vector.extract_strided_slice %17 {offsets = [0, 0], sizes = [4, 128], strides = [1, 1]} : vector<4x384xf32> to vector<4x128xf32>
    %22 = arith.addf %20, %21 : vector<4x128xf32>
    %23 = arith.negf %22 : vector<4x128xf32>
    %24 = math.exp %23 : vector<4x128xf32>
    %cst_14 = arith.constant 1.000000e+00 : f32
    %25 = vector.broadcast %cst_14 : f32 to vector<4x128xf32>
    %26 = arith.addf %25, %24 : vector<4x128xf32>
    %27 = arith.divf %25, %26 : vector<4x128xf32>
    %28 = vector.extract_strided_slice %19 {offsets = [0, 128], sizes = [4, 128], strides = [1, 1]} : vector<4x384xf32> to vector<4x128xf32>
    %29 = vector.extract_strided_slice %17 {offsets = [0, 128], sizes = [4, 128], strides = [1, 1]} : vector<4x384xf32> to vector<4x128xf32>
    %30 = arith.addf %28, %29 : vector<4x128xf32>
    %31 = arith.negf %30 : vector<4x128xf32>
    %32 = math.exp %31 : vector<4x128xf32>
    %cst_15 = arith.constant 1.000000e+00 : f32
    %33 = vector.broadcast %cst_15 : f32 to vector<4x128xf32>
    %34 = arith.addf %33, %32 : vector<4x128xf32>
    %35 = arith.divf %33, %34 : vector<4x128xf32>
    %36 = vector.extract_strided_slice %19 {offsets = [0, 256], sizes = [4, 128], strides = [1, 1]} : vector<4x384xf32> to vector<4x128xf32>
    %37 = vector.extract_strided_slice %17 {offsets = [0, 256], sizes = [4, 128], strides = [1, 1]} : vector<4x384xf32> to vector<4x128xf32>
    %38 = arith.mulf %27, %37 : vector<4x128xf32>
    %39 = arith.addf %36, %38 : vector<4x128xf32>
    %40 = math.tanh %39 : vector<4x128xf32>
    %cst_16 = arith.constant 1.000000e+00 : f32
    %41 = vector.broadcast %cst_16 : f32 to vector<4x128xf32>
    %42 = arith.subf %41, %35 : vector<4x128xf32>
    %43 = arith.mulf %42, %40 : vector<4x128xf32>
    %44 = arith.mulf %35, %13 : vector<4x128xf32>
    %45 = arith.addf %43, %44 : vector<4x128xf32>
    %46 = arith.truncf %45 : vector<4x128xf32> to vector<4x128xbf16>
    %c0_17 = arith.constant 0 : index
    %c0_18 = arith.constant 0 : index
    %c0_19 = arith.constant 0 : index
    %47 = vector.load %arg7[%c0_17, %c0_18, %c0_19] : memref<4x4x128xbf16, #tpu.memory_space<vmem>>, vector<1x4x128xbf16>
    %48 = vector.shape_cast %47 : vector<1x4x128xbf16> to vector<4x128xbf16>
    %49 = vector.shape_cast %46 : vector<4x128xbf16> to vector<1x4x128xbf16>
    tpu.vector_store %arg7[%c0_17, %c0_18, %c0_19], %49 {strides = array<i32>} : memref<4x4x128xbf16, #tpu.memory_space<vmem>>, vector<1x4x128xbf16>,
    %50 = arith.truncf %45 : vector<4x128xf32> to vector<4x128xbf16>
    %cst_20 = arith.constant dense<0.000000e+00> : vector<4x384xf32>
    %51 = tpu.matmul %50, %11, %cst_20 {dimension_numbers = #tpu.dot_dimension_numbers<[1], [0], [0], [1], [0, 0, 1, 1], [], []>} : vector<4x128xbf16>, vector<128x384xbf16>, vector<4x384xf32> -> vector<4x384xf32>
    %52 = vector.broadcast %12 : vector<1x384xf32> to vector<4x384xf32>
    %53 = arith.addf %51, %52 : vector<4x384xf32>
    %54 = vector.extract_strided_slice %10 {offsets = [1, 0, 0], sizes = [1, 4, 384], strides = [1, 1, 1]} : vector<4x4x384xf32> to vector<1x4x384xf32>
    %55 = vector.shape_cast %54 : vector<1x4x384xf32> to vector<4x384xf32>
    %56 = vector.extract_strided_slice %55 {offsets = [0, 0], sizes = [4, 128], strides = [1, 1]} : vector<4x384xf32> to vector<4x128xf32>
    %57 = vector.extract_strided_slice %53 {offsets = [0, 0], sizes = [4, 128], strides = [1, 1]} : vector<4x384xf32> to vector<4x128xf32>
    %58 = arith.addf %56, %57 : vector<4x128xf32>
    %59 = arith.negf %58 : vector<4x128xf32>
    %60 = math.exp %59 : vector<4x128xf32>
    %cst_21 = arith.constant 1.000000e+00 : f32
    %61 = vector.broadcast %cst_21 : f32 to vector<4x128xf32>
    %62 = arith.addf %61, %60 : vector<4x128xf32>
    %63 = arith.divf %61, %62 : vector<4x128xf32>
    %64 = vector.extract_strided_slice %55 {offsets = [0, 128], sizes = [4, 128], strides = [1, 1]} : vector<4x384xf32> to vector<4x128xf32>
    %65 = vector.extract_strided_slice %53 {offsets = [0, 128], sizes = [4, 128], strides = [1, 1]} : vector<4x384xf32> to vector<4x128xf32>
    %66 = arith.addf %64, %65 : vector<4x128xf32>
    %67 = arith.negf %66 : vector<4x128xf32>
    %68 = math.exp %67 : vector<4x128xf32>
    %cst_22 = arith.constant 1.000000e+00 : f32
    %69 = vector.broadcast %cst_22 : f32 to vector<4x128xf32>
    %70 = arith.addf %69, %68 : vector<4x128xf32>
    %71 = arith.divf %69, %70 : vector<4x128xf32>
    %72 = vector.extract_strided_slice %55 {offsets = [0, 256], sizes = [4, 128], strides = [1, 1]} : vector<4x384xf32> to vector<4x128xf32>
    %73 = vector.extract_strided_slice %53 {offsets = [0, 256], sizes = [4, 128], strides = [1, 1]} : vector<4x384xf32> to vector<4x128xf32>
    %74 = arith.mulf %63, %73 : vector<4x128xf32>
    %75 = arith.addf %72, %74 : vector<4x128xf32>
    %76 = math.tanh %75 : vector<4x128xf32>
    %cst_23 = arith.constant 1.000000e+00 : f32
    %77 = vector.broadcast %cst_23 : f32 to vector<4x128xf32>
    %78 = arith.subf %77, %71 : vector<4x128xf32>
    %79 = arith.mulf %78, %76 : vector<4x128xf32>
    %80 = arith.mulf %71, %45 : vector<4x128xf32>
    %81 = arith.addf %79, %80 : vector<4x128xf32>
    %82 = arith.truncf %81 : vector<4x128xf32> to vector<4x128xbf16>
    %c1 = arith.constant 1 : index
    %c0_24 = arith.constant 0 : index
    %c0_25 = arith.constant 0 : index
    %83 = vector.load %arg7[%c1, %c0_24, %c0_25] : memref<4x4x128xbf16, #tpu.memory_space<vmem>>, vector<1x4x128xbf16>
    %84 = vector.shape_cast %83 : vector<1x4x128xbf16> to vector<4x128xbf16>
    %85 = vector.shape_cast %82 : vector<4x128xbf16> to vector<1x4x128xbf16>
    tpu.vector_store %arg7[%c1, %c0_24, %c0_25], %85 {strides = array<i32>} : memref<4x4x128xbf16, #tpu.memory_space<vmem>>, vector<1x4x128xbf16>,
    %86 = arith.truncf %81 : vector<4x128xf32> to vector<4x128xbf16>
    %cst_26 = arith.constant dense<0.000000e+00> : vector<4x384xf32>
    %87 = tpu.matmul %86, %11, %cst_26 {dimension_numbers = #tpu.dot_dimension_numbers<[1], [0], [0], [1], [0, 0, 1, 1], [], []>} : vector<4x128xbf16>, vector<128x384xbf16>, vector<4x384xf32> -> vector<4x384xf32>
    %88 = vector.broadcast %12 : vector<1x384xf32> to vector<4x384xf32>
    %89 = arith.addf %87, %88 : vector<4x384xf32>
    %90 = vector.extract_strided_slice %10 {offsets = [2, 0, 0], sizes = [1, 4, 384], strides = [1, 1, 1]} : vector<4x4x384xf32> to vector<1x4x384xf32>
    %91 = vector.shape_cast %90 : vector<1x4x384xf32> to vector<4x384xf32>
    %92 = vector.extract_strided_slice %91 {offsets = [0, 0], sizes = [4, 128], strides = [1, 1]} : vector<4x384xf32> to vector<4x128xf32>
    %93 = vector.extract_strided_slice %89 {offsets = [0, 0], sizes = [4, 128], strides = [1, 1]} : vector<4x384xf32> to vector<4x128xf32>
    %94 = arith.addf %92, %93 : vector<4x128xf32>
    %95 = arith.negf %94 : vector<4x128xf32>
    %96 = math.exp %95 : vector<4x128xf32>
    %cst_27 = arith.constant 1.000000e+00 : f32
    %97 = vector.broadcast %cst_27 : f32 to vector<4x128xf32>
    %98 = arith.addf %97, %96 : vector<4x128xf32>
    %99 = arith.divf %97, %98 : vector<4x128xf32>
    %100 = vector.extract_strided_slice %91 {offsets = [0, 128], sizes = [4, 128], strides = [1, 1]} : vector<4x384xf32> to vector<4x128xf32>
    %101 = vector.extract_strided_slice %89 {offsets = [0, 128], sizes = [4, 128], strides = [1, 1]} : vector<4x384xf32> to vector<4x128xf32>
    %102 = arith.addf %100, %101 : vector<4x128xf32>
    %103 = arith.negf %102 : vector<4x128xf32>
    %104 = math.exp %103 : vector<4x128xf32>
    %cst_28 = arith.constant 1.000000e+00 : f32
    %105 = vector.broadcast %cst_28 : f32 to vector<4x128xf32>
    %106 = arith.addf %105, %104 : vector<4x128xf32>
    %107 = arith.divf %105, %106 : vector<4x128xf32>
    %108 = vector.extract_strided_slice %91 {offsets = [0, 256], sizes = [4, 128], strides = [1, 1]} : vector<4x384xf32> to vector<4x128xf32>
    %109 = vector.extract_strided_slice %89 {offsets = [0, 256], sizes = [4, 128], strides = [1, 1]} : vector<4x384xf32> to vector<4x128xf32>
    %110 = arith.mulf %99, %109 : vector<4x128xf32>
    %111 = arith.addf %108, %110 : vector<4x128xf32>
    %112 = math.tanh %111 : vector<4x128xf32>
    %cst_29 = arith.constant 1.000000e+00 : f32
    %113 = vector.broadcast %cst_29 : f32 to vector<4x128xf32>
    %114 = arith.subf %113, %107 : vector<4x128xf32>
    %115 = arith.mulf %114, %112 : vector<4x128xf32>
    %116 = arith.mulf %107, %81 : vector<4x128xf32>
    %117 = arith.addf %115, %116 : vector<4x128xf32>
    %118 = arith.truncf %117 : vector<4x128xf32> to vector<4x128xbf16>
    %c2 = arith.constant 2 : index
    %c0_30 = arith.constant 0 : index
    %c0_31 = arith.constant 0 : index
    %119 = vector.load %arg7[%c2, %c0_30, %c0_31] : memref<4x4x128xbf16, #tpu.memory_space<vmem>>, vector<1x4x128xbf16>
    %120 = vector.shape_cast %119 : vector<1x4x128xbf16> to vector<4x128xbf16>
    %121 = vector.shape_cast %118 : vector<4x128xbf16> to vector<1x4x128xbf16>
    tpu.vector_store %arg7[%c2, %c0_30, %c0_31], %121 {strides = array<i32>} : memref<4x4x128xbf16, #tpu.memory_space<vmem>>, vector<1x4x128xbf16>,
    %122 = arith.truncf %117 : vector<4x128xf32> to vector<4x128xbf16>
    %cst_32 = arith.constant dense<0.000000e+00> : vector<4x384xf32>
    %123 = tpu.matmul %122, %11, %cst_32 {dimension_numbers = #tpu.dot_dimension_numbers<[1], [0], [0], [1], [0, 0, 1, 1], [], []>} : vector<4x128xbf16>, vector<128x384xbf16>, vector<4x384xf32> -> vector<4x384xf32>
    %124 = vector.broadcast %12 : vector<1x384xf32> to vector<4x384xf32>
    %125 = arith.addf %123, %124 : vector<4x384xf32>
    %126 = vector.extract_strided_slice %10 {offsets = [3, 0, 0], sizes = [1, 4, 384], strides = [1, 1, 1]} : vector<4x4x384xf32> to vector<1x4x384xf32>
    %127 = vector.shape_cast %126 : vector<1x4x384xf32> to vector<4x384xf32>
    %128 = vector.extract_strided_slice %127 {offsets = [0, 0], sizes = [4, 128], strides = [1, 1]} : vector<4x384xf32> to vector<4x128xf32>
    %129 = vector.extract_strided_slice %125 {offsets = [0, 0], sizes = [4, 128], strides = [1, 1]} : vector<4x384xf32> to vector<4x128xf32>
    %130 = arith.addf %128, %129 : vector<4x128xf32>
    %131 = arith.negf %130 : vector<4x128xf32>
    %132 = math.exp %131 : vector<4x128xf32>
    %cst_33 = arith.constant 1.000000e+00 : f32
    %133 = vector.broadcast %cst_33 : f32 to vector<4x128xf32>
    %134 = arith.addf %133, %132 : vector<4x128xf32>
    %135 = arith.divf %133, %134 : vector<4x128xf32>
    %136 = vector.extract_strided_slice %127 {offsets = [0, 128], sizes = [4, 128], strides = [1, 1]} : vector<4x384xf32> to vector<4x128xf32>
    %137 = vector.extract_strided_slice %125 {offsets = [0, 128], sizes = [4, 128], strides = [1, 1]} : vector<4x384xf32> to vector<4x128xf32>
    %138 = arith.addf %136, %137 : vector<4x128xf32>
    %139 = arith.negf %138 : vector<4x128xf32>
    %140 = math.exp %139 : vector<4x128xf32>
    %cst_34 = arith.constant 1.000000e+00 : f32
    %141 = vector.broadcast %cst_34 : f32 to vector<4x128xf32>
    %142 = arith.addf %141, %140 : vector<4x128xf32>
    %143 = arith.divf %141, %142 : vector<4x128xf32>
    %144 = vector.extract_strided_slice %127 {offsets = [0, 256], sizes = [4, 128], strides = [1, 1]} : vector<4x384xf32> to vector<4x128xf32>
    %145 = vector.extract_strided_slice %125 {offsets = [0, 256], sizes = [4, 128], strides = [1, 1]} : vector<4x384xf32> to vector<4x128xf32>
    %146 = arith.mulf %135, %145 : vector<4x128xf32>
    %147 = arith.addf %144, %146 : vector<4x128xf32>
    %148 = math.tanh %147 : vector<4x128xf32>
    %cst_35 = arith.constant 1.000000e+00 : f32
    %149 = vector.broadcast %cst_35 : f32 to vector<4x128xf32>
    %150 = arith.subf %149, %143 : vector<4x128xf32>
    %151 = arith.mulf %150, %148 : vector<4x128xf32>
    %152 = arith.mulf %143, %117 : vector<4x128xf32>
    %153 = arith.addf %151, %152 : vector<4x128xf32>
    %154 = arith.truncf %153 : vector<4x128xf32> to vector<4x128xbf16>
    %c3 = arith.constant 3 : index
    %c0_36 = arith.constant 0 : index
    %c0_37 = arith.constant 0 : index
    %155 = vector.load %arg7[%c3, %c0_36, %c0_37] : memref<4x4x128xbf16, #tpu.memory_space<vmem>>, vector<1x4x128xbf16>
    %156 = vector.shape_cast %155 : vector<1x4x128xbf16> to vector<4x128xbf16>
    %157 = vector.shape_cast %154 : vector<4x128xbf16> to vector<1x4x128xbf16>
    tpu.vector_store %arg7[%c3, %c0_36, %c0_37], %157 {strides = array<i32>} : memref<4x4x128xbf16, #tpu.memory_space<vmem>>, vector<1x4x128xbf16>,
    %c0_38 = arith.constant 0 : index
    %c0_39 = arith.constant 0 : index
    %158 = vector.load %arg8[%c0_38, %c0_39] : memref<4x128xf32, #tpu.memory_space<vmem>>, vector<4x128xf32>
    tpu.vector_store %arg8[%c0_38, %c0_39], %153 {strides = array<i32>} : memref<4x128xf32, #tpu.memory_space<vmem>>, vector<4x128xf32>,
    return
  }
  func.func @transform_0(%arg0: i32, %arg1: i32) -> (i32, i32, i32) {
    %c0_i32 = arith.constant 0 : i32
    %c0_i32_0 = arith.constant 0 : i32
    return %arg1, %arg0, %c0_i32 : i32, i32, i32
  }
  func.func @transform_1(%arg0: i32, %arg1: i32) -> (i32, i32) {
    %c0_i32 = arith.constant 0 : i32
    %c0_i32_0 = arith.constant 0 : i32
    %c0_i32_1 = arith.constant 0 : i32
    return %c0_i32, %c0_i32_0 : i32, i32
  }
  func.func @transform_2(%arg0: i32, %arg1: i32) -> (i32, i32) {
    %c0_i32 = arith.constant 0 : i32
    %c0_i32_0 = arith.constant 0 : i32
    %c0_i32_1 = arith.constant 0 : i32
    return %c0_i32, %c0_i32_0 : i32, i32
  }
  func.func @transform_3(%arg0: i32, %arg1: i32) -> (i32, i32) {
    %c0_i32 = arith.constant 0 : i32
    %c0_i32_0 = arith.constant 0 : i32
    %c0_i32_1 = arith.constant 0 : i32
    return %c0_i32, %c0_i32_0 : i32, i32
  }
  func.func @transform_4(%arg0: i32, %arg1: i32) -> (i32, i32) {
    %c0_i32 = arith.constant 0 : i32
    %c0_i32_0 = arith.constant 0 : i32
    %c0_i32_1 = arith.constant 0 : i32
    return %c0_i32, %c0_i32_0 : i32, i32
  }
  func.func @transform_5(%arg0: i32, %arg1: i32) -> (i32, i32, i32) {
    %c0_i32 = arith.constant 0 : i32
    %c0_i32_0 = arith.constant 0 : i32
    return %arg1, %arg0, %c0_i32 : i32, i32, i32
  }
}

module attributes {stable_mosaic.version = 11 : i64} {
  func.func @_tss_kernel(%arg0: i32, %arg1: memref<16x128xbf16, #tpu.memory_space<vmem>>, %arg2: memref<128x4xbf16, #tpu.memory_space<vmem>>, %arg3: memref<1x4xf32, #tpu.memory_space<vmem>>, %arg4: memref<16x4xf32, #tpu.memory_space<vmem>>, %arg5: memref<1x1xf32, #tpu.memory_space<vmem>>, %arg6: memref<1x1xf32, #tpu.memory_space<vmem>>) attributes {dimension_semantics = [#tpu.dimension_semantics<arbitrary>], iteration_bounds = array<i64: 1>, scalar_prefetch = 0 : i64, scratch_operands = 1 : i64, tpu.core_type = #tpu.core_type<tc>, window_params = [{transform_indices = @transform_0, window_bounds = array<i64: 16, 128>}, {pipeline_mode = #tpu.pipeline_mode<synchronous>, transform_indices = @transform_1, window_bounds = array<i64: 128, 4>}, {pipeline_mode = #tpu.pipeline_mode<synchronous>, transform_indices = @transform_2, window_bounds = array<i64: 1, 4>}, {transform_indices = @transform_3, window_bounds = array<i64: 16, 4>}, {pipeline_mode = #tpu.pipeline_mode<synchronous>, transform_indices = @transform_4, window_bounds = array<i64: 1, 1>}]} {
    %c0_i32 = arith.constant 0 : i32
    %0 = arith.cmpi eq, %arg0, %c0_i32 : i32
    %1 = arith.extui %0 : i1 to i32
    %c0_i32_0 = arith.constant 0 : i32
    %2 = arith.cmpi ne, %1, %c0_i32_0 : i32
    scf.if %2 {
      %cst_16 = arith.constant 0.000000e+00 : f32
      %31 = vector.broadcast %cst_16 : f32 to vector<1x1xf32>
      %c0_17 = arith.constant 0 : index
      %c0_18 = arith.constant 0 : index
      %32 = vector.load %arg6[%c0_17, %c0_18] : memref<1x1xf32, #tpu.memory_space<vmem>>, vector<1x1xf32>
      tpu.vector_store %arg6[%c0_17, %c0_18], %31 {strides = array<i32>} : memref<1x1xf32, #tpu.memory_space<vmem>>, vector<1x1xf32>,
    } else {
    }
    %c0 = arith.constant 0 : index
    %c0_1 = arith.constant 0 : index
    %3 = vector.load %arg1[%c0, %c0_1] : memref<16x128xbf16, #tpu.memory_space<vmem>>, vector<16x128xbf16>
    %c0_2 = arith.constant 0 : index
    %c0_3 = arith.constant 0 : index
    %4 = vector.load %arg2[%c0_2, %c0_3] : memref<128x4xbf16, #tpu.memory_space<vmem>>, vector<128x4xbf16>
    %cst = arith.constant dense<0.000000e+00> : vector<16x4xf32>
    %5 = tpu.matmul %3, %4, %cst {dimension_numbers = #tpu.dot_dimension_numbers<[1], [0], [0], [1], [0, 0, 1, 1], [], []>} : vector<16x128xbf16>, vector<128x4xbf16>, vector<16x4xf32> -> vector<16x4xf32>
    %c0_4 = arith.constant 0 : index
    %c0_5 = arith.constant 0 : index
    %6 = vector.load %arg3[%c0_4, %c0_5] : memref<1x4xf32, #tpu.memory_space<vmem>>, vector<1x4xf32>
    %7 = vector.broadcast %6 : vector<1x4xf32> to vector<16x4xf32>
    %8 = arith.addf %5, %7 : vector<16x4xf32>
    %c0_6 = arith.constant 0 : index
    %c0_7 = arith.constant 0 : index
    %9 = vector.load %arg4[%c0_6, %c0_7] : memref<16x4xf32, #tpu.memory_space<vmem>>, vector<16x4xf32>
    %10 = arith.subf %8, %9 : vector<16x4xf32>
    %c16_i32 = arith.constant 16 : i32
    %11 = arith.muli %arg0, %c16_i32 : i32
    %12 = tpu.iota {dimensions = array<i32: 0>} : vector<16x4xi32>
    %13 = vector.broadcast %11 : i32 to vector<16x4xi32>
    %14 = arith.addi %13, %12 : vector<16x4xi32>
    %c14_i32 = arith.constant 14 : i32
    %15 = vector.broadcast %c14_i32 : i32 to vector<16x4xi32>
    %16 = arith.cmpi slt, %14, %15 : vector<16x4xi32>
    %17 = arith.mulf %10, %10 : vector<16x4xf32>
    %cst_8 = arith.constant 0.000000e+00 : f32
    %18 = vector.broadcast %cst_8 : f32 to vector<16x4xf32>
    %19 = arith.select %16, %17, %18 : vector<16x4xi1>, vector<16x4xf32>
    %c0_9 = arith.constant 0 : index
    %c0_10 = arith.constant 0 : index
    %20 = vector.load %arg6[%c0_9, %c0_10] : memref<1x1xf32, #tpu.memory_space<vmem>>, vector<1x1xf32>
    %21 = vector.shape_cast %19 : vector<16x4xf32> to vector<1x16x4xf32>
    %cst_11 = arith.constant dense<0.000000e+00> : vector<1xf32>
    %22 = vector.multi_reduction <add>, %21, %cst_11 [1, 2] : vector<1x16x4xf32> to vector<1xf32>
    %23 = vector.shape_cast %22 : vector<1xf32> to vector<1x1x1xf32>
    %24 = vector.extract %23[0, 0, 0] : f32 from vector<1x1x1xf32>
    %25 = vector.broadcast %24 : f32 to vector<1x1xf32>
    %26 = arith.addf %20, %25 : vector<1x1xf32>
    %c0_12 = arith.constant 0 : index
    %c0_13 = arith.constant 0 : index
    %27 = vector.load %arg6[%c0_12, %c0_13] : memref<1x1xf32, #tpu.memory_space<vmem>>, vector<1x1xf32>
    tpu.vector_store %arg6[%c0_12, %c0_13], %26 {strides = array<i32>} : memref<1x1xf32, #tpu.memory_space<vmem>>, vector<1x1xf32>,
    %c0_i32_14 = arith.constant 0 : i32
    %28 = arith.cmpi eq, %arg0, %c0_i32_14 : i32
    %29 = arith.extui %28 : i1 to i32
    %c0_i32_15 = arith.constant 0 : i32
    %30 = arith.cmpi ne, %29, %c0_i32_15 : i32
    scf.if %30 {
      %c0_16 = arith.constant 0 : index
      %c0_17 = arith.constant 0 : index
      %31 = vector.load %arg6[%c0_16, %c0_17] : memref<1x1xf32, #tpu.memory_space<vmem>>, vector<1x1xf32>
      %c0_18 = arith.constant 0 : index
      %c0_19 = arith.constant 0 : index
      %32 = vector.load %arg5[%c0_18, %c0_19] : memref<1x1xf32, #tpu.memory_space<vmem>>, vector<1x1xf32>
      tpu.vector_store %arg5[%c0_18, %c0_19], %31 {strides = array<i32>} : memref<1x1xf32, #tpu.memory_space<vmem>>, vector<1x1xf32>,
    } else {
    }
    return
  }
  func.func @transform_0(%arg0: i32) -> (i32, i32) {
    %c0_i32 = arith.constant 0 : i32
    %c0_i32_0 = arith.constant 0 : i32
    return %arg0, %c0_i32 : i32, i32
  }
  func.func @transform_1(%arg0: i32) -> (i32, i32) {
    %c0_i32 = arith.constant 0 : i32
    %c0_i32_0 = arith.constant 0 : i32
    %c0_i32_1 = arith.constant 0 : i32
    return %c0_i32, %c0_i32_0 : i32, i32
  }
  func.func @transform_2(%arg0: i32) -> (i32, i32) {
    %c0_i32 = arith.constant 0 : i32
    %c0_i32_0 = arith.constant 0 : i32
    %c0_i32_1 = arith.constant 0 : i32
    return %c0_i32, %c0_i32_0 : i32, i32
  }
  func.func @transform_3(%arg0: i32) -> (i32, i32) {
    %c0_i32 = arith.constant 0 : i32
    %c0_i32_0 = arith.constant 0 : i32
    return %arg0, %c0_i32 : i32, i32
  }
  func.func @transform_4(%arg0: i32) -> (i32, i32) {
    %c0_i32 = arith.constant 0 : i32
    %c0_i32_0 = arith.constant 0 : i32
    %c0_i32_1 = arith.constant 0 : i32
    return %c0_i32, %c0_i32_0 : i32, i32
  }
}

module attributes {stable_mosaic.version = 11 : i64} {
  func.func @_gru_kernel(%arg0: i32, %arg1: i32, %arg2: memref<2x8x128xbf16, #tpu.memory_space<vmem>>, %arg3: memref<128x384xbf16, #tpu.memory_space<vmem>>, %arg4: memref<1x384xf32, #tpu.memory_space<vmem>>, %arg5: memref<128x384xbf16, #tpu.memory_space<vmem>>, %arg6: memref<1x384xf32, #tpu.memory_space<vmem>>, %arg7: memref<2x8x128xbf16, #tpu.memory_space<vmem>>, %arg8: memref<8x128xf32, #tpu.memory_space<vmem>>) attributes {dimension_semantics = [#tpu.dimension_semantics<parallel>, #tpu.dimension_semantics<arbitrary>], iteration_bounds = array<i64: 1, 1>, scalar_prefetch = 0 : i64, scratch_operands = 1 : i64, tpu.core_type = #tpu.core_type<tc>, window_params = [{transform_indices = @transform_0, window_bounds = array<i64: 2, 8, 128>}, {pipeline_mode = #tpu.pipeline_mode<synchronous>, transform_indices = @transform_1, window_bounds = array<i64: 128, 384>}, {pipeline_mode = #tpu.pipeline_mode<synchronous>, transform_indices = @transform_2, window_bounds = array<i64: 1, 384>}, {pipeline_mode = #tpu.pipeline_mode<synchronous>, transform_indices = @transform_3, window_bounds = array<i64: 128, 384>}, {pipeline_mode = #tpu.pipeline_mode<synchronous>, transform_indices = @transform_4, window_bounds = array<i64: 1, 384>}, {transform_indices = @transform_5, window_bounds = array<i64: 2, 8, 128>}]} {
    %c0_i32 = arith.constant 0 : i32
    %0 = arith.cmpi eq, %arg1, %c0_i32 : i32
    %1 = arith.extui %0 : i1 to i32
    %c0_i32_0 = arith.constant 0 : i32
    %2 = arith.cmpi ne, %1, %c0_i32_0 : i32
    scf.if %2 {
      %cst_28 = arith.constant 0.000000e+00 : f32
      %87 = vector.broadcast %cst_28 : f32 to vector<8x128xf32>
      %c0_29 = arith.constant 0 : index
      %c0_30 = arith.constant 0 : index
      %88 = vector.load %arg8[%c0_29, %c0_30] : memref<8x128xf32, #tpu.memory_space<vmem>>, vector<8x128xf32>
      tpu.vector_store %arg8[%c0_29, %c0_30], %87 {strides = array<i32>} : memref<8x128xf32, #tpu.memory_space<vmem>>, vector<8x128xf32>,
    } else {
    }
    %c0 = arith.constant 0 : index
    %c0_1 = arith.constant 0 : index
    %c0_2 = arith.constant 0 : index
    %3 = vector.load %arg2[%c0, %c0_1, %c0_2] : memref<2x8x128xbf16, #tpu.memory_space<vmem>>, vector<2x8x128xbf16>
    %4 = vector.shape_cast %3 : vector<2x8x128xbf16> to vector<16x128xbf16>
    %c0_3 = arith.constant 0 : index
    %c0_4 = arith.constant 0 : index
    %5 = vector.load %arg3[%c0_3, %c0_4] : memref<128x384xbf16, #tpu.memory_space<vmem>>, vector<128x384xbf16>
    %cst = arith.constant dense<0.000000e+00> : vector<16x384xf32>
    %6 = tpu.matmul %4, %5, %cst {dimension_numbers = #tpu.dot_dimension_numbers<[1], [0], [0], [1], [0, 0, 1, 1], [], []>} : vector<16x128xbf16>, vector<128x384xbf16>, vector<16x384xf32> -> vector<16x384xf32>
    %c0_5 = arith.constant 0 : index
    %c0_6 = arith.constant 0 : index
    %7 = vector.load %arg4[%c0_5, %c0_6] : memref<1x384xf32, #tpu.memory_space<vmem>>, vector<1x384xf32>
    %8 = vector.broadcast %7 : vector<1x384xf32> to vector<16x384xf32>
    %9 = arith.addf %6, %8 : vector<16x384xf32>
    %10 = vector.shape_cast %9 : vector<16x384xf32> to vector<2x8x384xf32>
    %c0_7 = arith.constant 0 : index
    %c0_8 = arith.constant 0 : index
    %11 = vector.load %arg5[%c0_7, %c0_8] : memref<128x384xbf16, #tpu.memory_space<vmem>>, vector<128x384xbf16>
    %c0_9 = arith.constant 0 : index
    %c0_10 = arith.constant 0 : index
    %12 = vector.load %arg6[%c0_9, %c0_10] : memref<1x384xf32, #tpu.memory_space<vmem>>, vector<1x384xf32>
    %c0_11 = arith.constant 0 : index
    %c0_12 = arith.constant 0 : index
    %13 = vector.load %arg8[%c0_11, %c0_12] : memref<8x128xf32, #tpu.memory_space<vmem>>, vector<8x128xf32>
    %14 = arith.truncf %13 : vector<8x128xf32> to vector<8x128xbf16>
    %cst_13 = arith.constant dense<0.000000e+00> : vector<8x384xf32>
    %15 = tpu.matmul %14, %11, %cst_13 {dimension_numbers = #tpu.dot_dimension_numbers<[1], [0], [0], [1], [0, 0, 1, 1], [], []>} : vector<8x128xbf16>, vector<128x384xbf16>, vector<8x384xf32> -> vector<8x384xf32>
    %16 = vector.broadcast %12 : vector<1x384xf32> to vector<8x384xf32>
    %17 = arith.addf %15, %16 : vector<8x384xf32>
    %18 = vector.extract_strided_slice %10 {offsets = [0, 0, 0], sizes = [1, 8, 384], strides = [1, 1, 1]} : vector<2x8x384xf32> to vector<1x8x384xf32>
    %19 = vector.shape_cast %18 : vector<1x8x384xf32> to vector<8x384xf32>
    %20 = vector.extract_strided_slice %19 {offsets = [0, 0], sizes = [8, 128], strides = [1, 1]} : vector<8x384xf32> to vector<8x128xf32>
    %21 = vector.extract_strided_slice %17 {offsets = [0, 0], sizes = [8, 128], strides = [1, 1]} : vector<8x384xf32> to vector<8x128xf32>
    %22 = arith.addf %20, %21 : vector<8x128xf32>
    %23 = arith.negf %22 : vector<8x128xf32>
    %24 = math.exp %23 : vector<8x128xf32>
    %cst_14 = arith.constant 1.000000e+00 : f32
    %25 = vector.broadcast %cst_14 : f32 to vector<8x128xf32>
    %26 = arith.addf %25, %24 : vector<8x128xf32>
    %27 = arith.divf %25, %26 : vector<8x128xf32>
    %28 = vector.extract_strided_slice %19 {offsets = [0, 128], sizes = [8, 128], strides = [1, 1]} : vector<8x384xf32> to vector<8x128xf32>
    %29 = vector.extract_strided_slice %17 {offsets = [0, 128], sizes = [8, 128], strides = [1, 1]} : vector<8x384xf32> to vector<8x128xf32>
    %30 = arith.addf %28, %29 : vector<8x128xf32>
    %31 = arith.negf %30 : vector<8x128xf32>
    %32 = math.exp %31 : vector<8x128xf32>
    %cst_15 = arith.constant 1.000000e+00 : f32
    %33 = vector.broadcast %cst_15 : f32 to vector<8x128xf32>
    %34 = arith.addf %33, %32 : vector<8x128xf32>
    %35 = arith.divf %33, %34 : vector<8x128xf32>
    %36 = vector.extract_strided_slice %19 {offsets = [0, 256], sizes = [8, 128], strides = [1, 1]} : vector<8x384xf32> to vector<8x128xf32>
    %37 = vector.extract_strided_slice %17 {offsets = [0, 256], sizes = [8, 128], strides = [1, 1]} : vector<8x384xf32> to vector<8x128xf32>
    %38 = arith.mulf %27, %37 : vector<8x128xf32>
    %39 = arith.addf %36, %38 : vector<8x128xf32>
    %40 = math.tanh %39 : vector<8x128xf32>
    %cst_16 = arith.constant 1.000000e+00 : f32
    %41 = vector.broadcast %cst_16 : f32 to vector<8x128xf32>
    %42 = arith.subf %41, %35 : vector<8x128xf32>
    %43 = arith.mulf %42, %40 : vector<8x128xf32>
    %44 = arith.mulf %35, %13 : vector<8x128xf32>
    %45 = arith.addf %43, %44 : vector<8x128xf32>
    %46 = arith.truncf %45 : vector<8x128xf32> to vector<8x128xbf16>
    %c0_17 = arith.constant 0 : index
    %c0_18 = arith.constant 0 : index
    %c0_19 = arith.constant 0 : index
    %47 = vector.load %arg7[%c0_17, %c0_18, %c0_19] : memref<2x8x128xbf16, #tpu.memory_space<vmem>>, vector<1x8x128xbf16>
    %48 = vector.shape_cast %47 : vector<1x8x128xbf16> to vector<8x128xbf16>
    %49 = vector.shape_cast %46 : vector<8x128xbf16> to vector<1x8x128xbf16>
    tpu.vector_store %arg7[%c0_17, %c0_18, %c0_19], %49 {strides = array<i32>} : memref<2x8x128xbf16, #tpu.memory_space<vmem>>, vector<1x8x128xbf16>,
    %50 = arith.truncf %45 : vector<8x128xf32> to vector<8x128xbf16>
    %cst_20 = arith.constant dense<0.000000e+00> : vector<8x384xf32>
    %51 = tpu.matmul %50, %11, %cst_20 {dimension_numbers = #tpu.dot_dimension_numbers<[1], [0], [0], [1], [0, 0, 1, 1], [], []>} : vector<8x128xbf16>, vector<128x384xbf16>, vector<8x384xf32> -> vector<8x384xf32>
    %52 = vector.broadcast %12 : vector<1x384xf32> to vector<8x384xf32>
    %53 = arith.addf %51, %52 : vector<8x384xf32>
    %54 = vector.extract_strided_slice %10 {offsets = [1, 0, 0], sizes = [1, 8, 384], strides = [1, 1, 1]} : vector<2x8x384xf32> to vector<1x8x384xf32>
    %55 = vector.shape_cast %54 : vector<1x8x384xf32> to vector<8x384xf32>
    %56 = vector.extract_strided_slice %55 {offsets = [0, 0], sizes = [8, 128], strides = [1, 1]} : vector<8x384xf32> to vector<8x128xf32>
    %57 = vector.extract_strided_slice %53 {offsets = [0, 0], sizes = [8, 128], strides = [1, 1]} : vector<8x384xf32> to vector<8x128xf32>
    %58 = arith.addf %56, %57 : vector<8x128xf32>
    %59 = arith.negf %58 : vector<8x128xf32>
    %60 = math.exp %59 : vector<8x128xf32>
    %cst_21 = arith.constant 1.000000e+00 : f32
    %61 = vector.broadcast %cst_21 : f32 to vector<8x128xf32>
    %62 = arith.addf %61, %60 : vector<8x128xf32>
    %63 = arith.divf %61, %62 : vector<8x128xf32>
    %64 = vector.extract_strided_slice %55 {offsets = [0, 128], sizes = [8, 128], strides = [1, 1]} : vector<8x384xf32> to vector<8x128xf32>
    %65 = vector.extract_strided_slice %53 {offsets = [0, 128], sizes = [8, 128], strides = [1, 1]} : vector<8x384xf32> to vector<8x128xf32>
    %66 = arith.addf %64, %65 : vector<8x128xf32>
    %67 = arith.negf %66 : vector<8x128xf32>
    %68 = math.exp %67 : vector<8x128xf32>
    %cst_22 = arith.constant 1.000000e+00 : f32
    %69 = vector.broadcast %cst_22 : f32 to vector<8x128xf32>
    %70 = arith.addf %69, %68 : vector<8x128xf32>
    %71 = arith.divf %69, %70 : vector<8x128xf32>
    %72 = vector.extract_strided_slice %55 {offsets = [0, 256], sizes = [8, 128], strides = [1, 1]} : vector<8x384xf32> to vector<8x128xf32>
    %73 = vector.extract_strided_slice %53 {offsets = [0, 256], sizes = [8, 128], strides = [1, 1]} : vector<8x384xf32> to vector<8x128xf32>
    %74 = arith.mulf %63, %73 : vector<8x128xf32>
    %75 = arith.addf %72, %74 : vector<8x128xf32>
    %76 = math.tanh %75 : vector<8x128xf32>
    %cst_23 = arith.constant 1.000000e+00 : f32
    %77 = vector.broadcast %cst_23 : f32 to vector<8x128xf32>
    %78 = arith.subf %77, %71 : vector<8x128xf32>
    %79 = arith.mulf %78, %76 : vector<8x128xf32>
    %80 = arith.mulf %71, %45 : vector<8x128xf32>
    %81 = arith.addf %79, %80 : vector<8x128xf32>
    %82 = arith.truncf %81 : vector<8x128xf32> to vector<8x128xbf16>
    %c1 = arith.constant 1 : index
    %c0_24 = arith.constant 0 : index
    %c0_25 = arith.constant 0 : index
    %83 = vector.load %arg7[%c1, %c0_24, %c0_25] : memref<2x8x128xbf16, #tpu.memory_space<vmem>>, vector<1x8x128xbf16>
    %84 = vector.shape_cast %83 : vector<1x8x128xbf16> to vector<8x128xbf16>
    %85 = vector.shape_cast %82 : vector<8x128xbf16> to vector<1x8x128xbf16>
    tpu.vector_store %arg7[%c1, %c0_24, %c0_25], %85 {strides = array<i32>} : memref<2x8x128xbf16, #tpu.memory_space<vmem>>, vector<1x8x128xbf16>,
    %c0_26 = arith.constant 0 : index
    %c0_27 = arith.constant 0 : index
    %86 = vector.load %arg8[%c0_26, %c0_27] : memref<8x128xf32, #tpu.memory_space<vmem>>, vector<8x128xf32>
    tpu.vector_store %arg8[%c0_26, %c0_27], %81 {strides = array<i32>} : memref<8x128xf32, #tpu.memory_space<vmem>>, vector<8x128xf32>,
    return
  }
  func.func @transform_0(%arg0: i32, %arg1: i32) -> (i32, i32, i32) {
    %c0_i32 = arith.constant 0 : i32
    %c0_i32_0 = arith.constant 0 : i32
    return %arg1, %arg0, %c0_i32 : i32, i32, i32
  }
  func.func @transform_1(%arg0: i32, %arg1: i32) -> (i32, i32) {
    %c0_i32 = arith.constant 0 : i32
    %c0_i32_0 = arith.constant 0 : i32
    %c0_i32_1 = arith.constant 0 : i32
    return %c0_i32, %c0_i32_0 : i32, i32
  }
  func.func @transform_2(%arg0: i32, %arg1: i32) -> (i32, i32) {
    %c0_i32 = arith.constant 0 : i32
    %c0_i32_0 = arith.constant 0 : i32
    %c0_i32_1 = arith.constant 0 : i32
    return %c0_i32, %c0_i32_0 : i32, i32
  }
  func.func @transform_3(%arg0: i32, %arg1: i32) -> (i32, i32) {
    %c0_i32 = arith.constant 0 : i32
    %c0_i32_0 = arith.constant 0 : i32
    %c0_i32_1 = arith.constant 0 : i32
    return %c0_i32, %c0_i32_0 : i32, i32
  }
  func.func @transform_4(%arg0: i32, %arg1: i32) -> (i32, i32) {
    %c0_i32 = arith.constant 0 : i32
    %c0_i32_0 = arith.constant 0 : i32
    %c0_i32_1 = arith.constant 0 : i32
    return %c0_i32, %c0_i32_0 : i32, i32
  }
  func.func @transform_5(%arg0: i32, %arg1: i32) -> (i32, i32, i32) {
    %c0_i32 = arith.constant 0 : i32
    %c0_i32_0 = arith.constant 0 : i32
    return %arg1, %arg0, %c0_i32 : i32, i32, i32
  }
}

module attributes {stable_mosaic.version = 11 : i64} {
  func.func @_tss_kernel(%arg0: i32, %arg1: memref<8x128xbf16, #tpu.memory_space<vmem>>, %arg2: memref<128x4xbf16, #tpu.memory_space<vmem>>, %arg3: memref<1x4xf32, #tpu.memory_space<vmem>>, %arg4: memref<8x4xf32, #tpu.memory_space<vmem>>, %arg5: memref<1x1xf32, #tpu.memory_space<vmem>>, %arg6: memref<1x1xf32, #tpu.memory_space<vmem>>) attributes {dimension_semantics = [#tpu.dimension_semantics<arbitrary>], iteration_bounds = array<i64: 1>, scalar_prefetch = 0 : i64, scratch_operands = 1 : i64, tpu.core_type = #tpu.core_type<tc>, window_params = [{transform_indices = @transform_0, window_bounds = array<i64: 8, 128>}, {pipeline_mode = #tpu.pipeline_mode<synchronous>, transform_indices = @transform_1, window_bounds = array<i64: 128, 4>}, {pipeline_mode = #tpu.pipeline_mode<synchronous>, transform_indices = @transform_2, window_bounds = array<i64: 1, 4>}, {transform_indices = @transform_3, window_bounds = array<i64: 8, 4>}, {pipeline_mode = #tpu.pipeline_mode<synchronous>, transform_indices = @transform_4, window_bounds = array<i64: 1, 1>}]} {
    %c0_i32 = arith.constant 0 : i32
    %0 = arith.cmpi eq, %arg0, %c0_i32 : i32
    %1 = arith.extui %0 : i1 to i32
    %c0_i32_0 = arith.constant 0 : i32
    %2 = arith.cmpi ne, %1, %c0_i32_0 : i32
    scf.if %2 {
      %cst_17 = arith.constant 0.000000e+00 : f32
      %31 = vector.broadcast %cst_17 : f32 to vector<1x1xf32>
      %c0_18 = arith.constant 0 : index
      %c0_19 = arith.constant 0 : index
      %32 = vector.load %arg6[%c0_18, %c0_19] : memref<1x1xf32, #tpu.memory_space<vmem>>, vector<1x1xf32>
      tpu.vector_store %arg6[%c0_18, %c0_19], %31 {strides = array<i32>} : memref<1x1xf32, #tpu.memory_space<vmem>>, vector<1x1xf32>,
    } else {
    }
    %c0 = arith.constant 0 : index
    %c0_1 = arith.constant 0 : index
    %3 = vector.load %arg1[%c0, %c0_1] : memref<8x128xbf16, #tpu.memory_space<vmem>>, vector<8x128xbf16>
    %c0_2 = arith.constant 0 : index
    %c0_3 = arith.constant 0 : index
    %4 = vector.load %arg2[%c0_2, %c0_3] : memref<128x4xbf16, #tpu.memory_space<vmem>>, vector<128x4xbf16>
    %cst = arith.constant dense<0.000000e+00> : vector<8x4xf32>
    %5 = tpu.matmul %3, %4, %cst {dimension_numbers = #tpu.dot_dimension_numbers<[1], [0], [0], [1], [0, 0, 1, 1], [], []>} : vector<8x128xbf16>, vector<128x4xbf16>, vector<8x4xf32> -> vector<8x4xf32>
    %c0_4 = arith.constant 0 : index
    %c0_5 = arith.constant 0 : index
    %6 = vector.load %arg3[%c0_4, %c0_5] : memref<1x4xf32, #tpu.memory_space<vmem>>, vector<1x4xf32>
    %7 = vector.broadcast %6 : vector<1x4xf32> to vector<8x4xf32>
    %8 = arith.addf %5, %7 : vector<8x4xf32>
    %c0_6 = arith.constant 0 : index
    %c0_7 = arith.constant 0 : index
    %9 = vector.load %arg4[%c0_6, %c0_7] : memref<8x4xf32, #tpu.memory_space<vmem>>, vector<8x4xf32>
    %10 = arith.subf %8, %9 : vector<8x4xf32>
    %c8_i32 = arith.constant 8 : i32
    %11 = arith.muli %arg0, %c8_i32 : i32
    %12 = tpu.iota {dimensions = array<i32: 0>} : vector<8x4xi32>
    %13 = vector.broadcast %11 : i32 to vector<8x4xi32>
    %14 = arith.addi %13, %12 : vector<8x4xi32>
    %c8_i32_8 = arith.constant 8 : i32
    %15 = vector.broadcast %c8_i32_8 : i32 to vector<8x4xi32>
    %16 = arith.cmpi slt, %14, %15 : vector<8x4xi32>
    %17 = arith.mulf %10, %10 : vector<8x4xf32>
    %cst_9 = arith.constant 0.000000e+00 : f32
    %18 = vector.broadcast %cst_9 : f32 to vector<8x4xf32>
    %19 = arith.select %16, %17, %18 : vector<8x4xi1>, vector<8x4xf32>
    %c0_10 = arith.constant 0 : index
    %c0_11 = arith.constant 0 : index
    %20 = vector.load %arg6[%c0_10, %c0_11] : memref<1x1xf32, #tpu.memory_space<vmem>>, vector<1x1xf32>
    %21 = vector.shape_cast %19 : vector<8x4xf32> to vector<1x8x4xf32>
    %cst_12 = arith.constant dense<0.000000e+00> : vector<1xf32>
    %22 = vector.multi_reduction <add>, %21, %cst_12 [1, 2] : vector<1x8x4xf32> to vector<1xf32>
    %23 = vector.shape_cast %22 : vector<1xf32> to vector<1x1x1xf32>
    %24 = vector.extract %23[0, 0, 0] : f32 from vector<1x1x1xf32>
    %25 = vector.broadcast %24 : f32 to vector<1x1xf32>
    %26 = arith.addf %20, %25 : vector<1x1xf32>
    %c0_13 = arith.constant 0 : index
    %c0_14 = arith.constant 0 : index
    %27 = vector.load %arg6[%c0_13, %c0_14] : memref<1x1xf32, #tpu.memory_space<vmem>>, vector<1x1xf32>
    tpu.vector_store %arg6[%c0_13, %c0_14], %26 {strides = array<i32>} : memref<1x1xf32, #tpu.memory_space<vmem>>, vector<1x1xf32>,
    %c0_i32_15 = arith.constant 0 : i32
    %28 = arith.cmpi eq, %arg0, %c0_i32_15 : i32
    %29 = arith.extui %28 : i1 to i32
    %c0_i32_16 = arith.constant 0 : i32
    %30 = arith.cmpi ne, %29, %c0_i32_16 : i32
    scf.if %30 {
      %c0_17 = arith.constant 0 : index
      %c0_18 = arith.constant 0 : index
      %31 = vector.load %arg6[%c0_17, %c0_18] : memref<1x1xf32, #tpu.memory_space<vmem>>, vector<1x1xf32>
      %c0_19 = arith.constant 0 : index
      %c0_20 = arith.constant 0 : index
      %32 = vector.load %arg5[%c0_19, %c0_20] : memref<1x1xf32, #tpu.memory_space<vmem>>, vector<1x1xf32>
      tpu.vector_store %arg5[%c0_19, %c0_20], %31 {strides = array<i32>} : memref<1x1xf32, #tpu.memory_space<vmem>>, vector<1x1xf32>,
    } else {
    }
    return
  }
  func.func @transform_0(%arg0: i32) -> (i32, i32) {
    %c0_i32 = arith.constant 0 : i32
    %c0_i32_0 = arith.constant 0 : i32
    return %arg0, %c0_i32 : i32, i32
  }
  func.func @transform_1(%arg0: i32) -> (i32, i32) {
    %c0_i32 = arith.constant 0 : i32
    %c0_i32_0 = arith.constant 0 : i32
    %c0_i32_1 = arith.constant 0 : i32
    return %c0_i32, %c0_i32_0 : i32, i32
  }
  func.func @transform_2(%arg0: i32) -> (i32, i32) {
    %c0_i32 = arith.constant 0 : i32
    %c0_i32_0 = arith.constant 0 : i32
    %c0_i32_1 = arith.constant 0 : i32
    return %c0_i32, %c0_i32_0 : i32, i32
  }
  func.func @transform_3(%arg0: i32) -> (i32, i32) {
    %c0_i32 = arith.constant 0 : i32
    %c0_i32_0 = arith.constant 0 : i32
    return %arg0, %c0_i32 : i32, i32
  }
  func.func @transform_4(%arg0: i32) -> (i32, i32) {
    %c0_i32 = arith.constant 0 : i32
    %c0_i32_0 = arith.constant 0 : i32
    %c0_i32_1 = arith.constant 0 : i32
    return %c0_i32, %c0_i32_0 : i32, i32
  }
}

module attributes {stable_mosaic.version = 11 : i64} {
  func.func @_thoc_fused_kernel(%arg0: memref<2x1x32xf32, #tpu.memory_space<vmem>>, %arg1: memref<2x2x32xf32, #tpu.memory_space<vmem>>, %arg2: memref<3x32x6xf32, #tpu.memory_space<vmem>>, %arg3: memref<3x32x32xf32, #tpu.memory_space<vmem>>, %arg4: memref<3x1x32xf32, #tpu.memory_space<vmem>>, %arg5: memref<64x64xf32, #tpu.memory_space<vmem>>, %arg6: memref<1x64xf32, #tpu.memory_space<vmem>>, %arg7: memref<64x32xf32, #tpu.memory_space<vmem>>, %arg8: memref<1x32xf32, #tpu.memory_space<vmem>>, %arg9: memref<32x32xf32, #tpu.memory_space<vmem>>, %arg10: memref<1x32xf32, #tpu.memory_space<vmem>>, %arg11: memref<2x3xf32, #tpu.memory_space<vmem>>) attributes {dimension_semantics = [], scalar_prefetch = 0 : i64, scratch_operands = 0 : i64, tpu.core_type = #tpu.core_type<tc>} {
    %c0 = arith.constant 0 : index
    %c0_0 = arith.constant 0 : index
    %c0_1 = arith.constant 0 : index
    %0 = vector.load %arg0[%c0, %c0_0, %c0_1] : memref<2x1x32xf32, #tpu.memory_space<vmem>>, vector<2x1x32xf32>
    %cst = arith.constant 1.000000e+00 : f32
    %1 = vector.broadcast %cst : f32 to vector<2x1xf32>
    %c0_2 = arith.constant 0 : index
    %c0_3 = arith.constant 0 : index
    %2 = vector.load %arg5[%c0_2, %c0_3] : memref<64x64xf32, #tpu.memory_space<vmem>>, vector<64x64xf32>
    %c0_4 = arith.constant 0 : index
    %c0_5 = arith.constant 0 : index
    %c0_6 = arith.constant 0 : index
    %3 = vector.load %arg2[%c0_4, %c0_5, %c0_6] : memref<3x32x6xf32, #tpu.memory_space<vmem>>, vector<1x32x6xf32>
    %4 = vector.shape_cast %3 : vector<1x32x6xf32> to vector<32x6xf32>
    %5 = arith.mulf %0, %0 : vector<2x1x32xf32>
    %cst_7 = arith.constant dense<0.000000e+00> : vector<2x1xf32>
    %6 = vector.multi_reduction <add>, %5, %cst_7 [2] : vector<2x1x32xf32> to vector<2x1xf32>
    %7 = vector.shape_cast %6 : vector<2x1xf32> to vector<2x1x1xf32>
    %8 = math.sqrt %7 : vector<2x1x1xf32>
    %cst_8 = arith.constant 9.99999993E-9 : f32
    %9 = vector.broadcast %cst_8 : f32 to vector<2x1x1xf32>
    %10 = arith.maximumf %8, %9 : vector<2x1x1xf32>
    %11 = arith.mulf %4, %4 : vector<32x6xf32>
    %cst_9 = arith.constant dense<0.000000e+00> : vector<6xf32>
    %12 = vector.multi_reduction <add>, %11, %cst_9 [0] : vector<32x6xf32> to vector<6xf32>
    %13 = vector.shape_cast %12 : vector<6xf32> to vector<1x6xf32>
    %14 = math.sqrt %13 : vector<1x6xf32>
    %cst_10 = arith.constant 9.99999993E-9 : f32
    %15 = vector.broadcast %cst_10 : f32 to vector<1x6xf32>
    %16 = arith.maximumf %14, %15 : vector<1x6xf32>
    %17 = vector.broadcast %10 : vector<2x1x1xf32> to vector<2x1x32xf32>
    %18 = arith.divf %0, %17 : vector<2x1x32xf32>
    %19 = vector.shape_cast %18 : vector<2x1x32xf32> to vector<2x32xf32>
    %20 = vector.broadcast %16 : vector<1x6xf32> to vector<32x6xf32>
    %21 = arith.divf %4, %20 : vector<32x6xf32>
    %cst_11 = arith.constant dense<0.000000e+00> : vector<2x6xf32>
    %22 = tpu.matmul %19, %21, %cst_11 {dimension_numbers = #tpu.dot_dimension_numbers<[1], [0], [0], [1], [0, 0, 1, 1], [], []>} : vector<2x32xf32>, vector<32x6xf32>, vector<2x6xf32> -> vector<2x6xf32>
    %23 = vector.shape_cast %22 : vector<2x6xf32> to vector<2x1x6xf32>
    %cst_12 = arith.constant dense<0xFF800000> : vector<2x1xf32>
    %24 = vector.multi_reduction <maximumf>, %23, %cst_12 [2] : vector<2x1x6xf32> to vector<2x1xf32>
    %25 = vector.shape_cast %24 : vector<2x1xf32> to vector<2x1x1xf32>
    %26 = vector.broadcast %25 : vector<2x1x1xf32> to vector<2x1x6xf32>
    %27 = arith.subf %23, %26 : vector<2x1x6xf32>
    %28 = math.exp %27 : vector<2x1x6xf32>
    %cst_13 = arith.constant dense<0.000000e+00> : vector<2x1xf32>
    %29 = vector.multi_reduction <add>, %28, %cst_13 [2] : vector<2x1x6xf32> to vector<2x1xf32>
    %30 = vector.shape_cast %29 : vector<2x1xf32> to vector<2x1x1xf32>
    %31 = vector.broadcast %30 : vector<2x1x1xf32> to vector<2x1x6xf32>
    %32 = arith.divf %28, %31 : vector<2x1x6xf32>
    %33 = vector.shape_cast %1 : vector<2x1xf32> to vector<2x1x1xf32>
    %34 = vector.broadcast %33 : vector<2x1x1xf32> to vector<2x1x6xf32>
    %35 = arith.mulf %34, %32 : vector<2x1x6xf32>
    %cst_14 = arith.constant dense<0.000000e+00> : vector<2x6xf32>
    %36 = vector.multi_reduction <add>, %35, %cst_14 [1] : vector<2x1x6xf32> to vector<2x6xf32>
    %37 = vector.shape_cast %36 : vector<2x6xf32> to vector<2x1x6xf32>
    %cst_15 = arith.constant 1.000000e+00 : f32
    %38 = vector.broadcast %cst_15 : f32 to vector<2x1x6xf32>
    %39 = arith.subf %38, %23 : vector<2x1x6xf32>
    %40 = arith.mulf %37, %39 : vector<2x1x6xf32>
    %cst_16 = arith.constant dense<0.000000e+00> : vector<2x1xf32>
    %41 = vector.multi_reduction <add>, %40, %cst_16 [2] : vector<2x1x6xf32> to vector<2x1xf32>
    %cst_17 = arith.constant dense<0.000000e+00> : vector<2xf32>
    %42 = vector.multi_reduction <add>, %41, %cst_17 [1] : vector<2x1xf32> to vector<2xf32>
    %43 = vector.shape_cast %42 : vector<2xf32> to vector<2x1xf32>
    %cst_18 = arith.constant 0.166666672 : f32
    %44 = vector.broadcast %cst_18 : f32 to vector<2x1xf32>
    %45 = arith.mulf %43, %44 : vector<2x1xf32>
    %46 = vector.shape_cast %0 : vector<2x1x32xf32> to vector<2x32xf32>
    %c0_19 = arith.constant 0 : index
    %c0_20 = arith.constant 0 : index
    %c0_21 = arith.constant 0 : index
    %47 = vector.load %arg3[%c0_19, %c0_20, %c0_21] : memref<3x32x32xf32, #tpu.memory_space<vmem>>, vector<1x32x32xf32>
    %48 = vector.shape_cast %47 : vector<1x32x32xf32> to vector<32x32xf32>
    %cst_22 = arith.constant dense<0.000000e+00> : vector<2x32xf32>
    %49 = tpu.matmul %46, %48, %cst_22 {dimension_numbers = #tpu.dot_dimension_numbers<[1], [0], [0], [1], [0, 0, 1, 1], [], []>} : vector<2x32xf32>, vector<32x32xf32>, vector<2x32xf32> -> vector<2x32xf32>
    %c0_23 = arith.constant 0 : index
    %c0_24 = arith.constant 0 : index
    %c0_25 = arith.constant 0 : index
    %50 = vector.load %arg4[%c0_23, %c0_24, %c0_25] : memref<3x1x32xf32, #tpu.memory_space<vmem>>, vector<1x1x32xf32>
    %51 = vector.shape_cast %50 : vector<1x1x32xf32> to vector<1x32xf32>
    %52 = vector.broadcast %51 : vector<1x32xf32> to vector<2x32xf32>
    %53 = arith.addf %49, %52 : vector<2x32xf32>
    %cst_26 = arith.constant 0.000000e+00 : f32
    %54 = vector.broadcast %cst_26 : f32 to vector<2x32xf32>
    %55 = arith.maximumf %53, %54 : vector<2x32xf32>
    %56 = vector.shape_cast %55 : vector<2x32xf32> to vector<2x1x32xf32>
    %57 = vector.shape_cast %32 : vector<2x1x6xf32> to vector<2x6xf32>
    %58 = vector.shape_cast %57 : vector<2x6xf32> to vector<2x6x1xf32>
    %59 = vector.shape_cast %56 : vector<2x1x32xf32> to vector<2x32xf32>
    %60 = vector.shape_cast %59 : vector<2x32xf32> to vector<2x1x32xf32>
    %61 = vector.broadcast %58 : vector<2x6x1xf32> to vector<2x6x32xf32>
    %62 = vector.broadcast %60 : vector<2x1x32xf32> to vector<2x6x32xf32>
    %63 = arith.mulf %61, %62 : vector<2x6x32xf32>
    %c0_27 = arith.constant 0 : index
    %c0_28 = arith.constant 0 : index
    %c0_29 = arith.constant 0 : index
    %64 = vector.load %arg1[%c0_27, %c0_28, %c0_29] : memref<2x2x32xf32, #tpu.memory_space<vmem>>, vector<1x2x32xf32>
    %65 = vector.shape_cast %64 : vector<1x2x32xf32> to vector<2x32xf32>
    %66 = vector.shape_cast %63 : vector<2x6x32xf32> to vector<12x32xf32>
    %67 = vector.extract_strided_slice %2 {offsets = [0, 0], sizes = [32, 64], strides = [1, 1]} : vector<64x64xf32> to vector<32x64xf32>
    %cst_30 = arith.constant dense<0.000000e+00> : vector<12x64xf32>
    %68 = tpu.matmul %66, %67, %cst_30 {dimension_numbers = #tpu.dot_dimension_numbers<[1], [0], [0], [1], [0, 0, 1, 1], [], []>} : vector<12x32xf32>, vector<32x64xf32>, vector<12x64xf32> -> vector<12x64xf32>
    %69 = vector.shape_cast %68 : vector<12x64xf32> to vector<2x6x64xf32>
    %70 = vector.extract_strided_slice %2 {offsets = [32, 0], sizes = [32, 64], strides = [1, 1]} : vector<64x64xf32> to vector<32x64xf32>
    %cst_31 = arith.constant dense<0.000000e+00> : vector<2x64xf32>
    %71 = tpu.matmul %65, %70, %cst_31 {dimension_numbers = #tpu.dot_dimension_numbers<[1], [0], [0], [1], [0, 0, 1, 1], [], []>} : vector<2x32xf32>, vector<32x64xf32>, vector<2x64xf32> -> vector<2x64xf32>
    %72 = vector.shape_cast %71 : vector<2x64xf32> to vector<2x1x64xf32>
    %73 = vector.broadcast %72 : vector<2x1x64xf32> to vector<2x6x64xf32>
    %74 = arith.addf %69, %73 : vector<2x6x64xf32>
    %c0_32 = arith.constant 0 : index
    %c0_33 = arith.constant 0 : index
    %75 = vector.load %arg6[%c0_32, %c0_33] : memref<1x64xf32, #tpu.memory_space<vmem>>, vector<1x64xf32>
    %76 = vector.shape_cast %75 : vector<1x64xf32> to vector<1x1x64xf32>
    %77 = vector.broadcast %76 : vector<1x1x64xf32> to vector<2x6x64xf32>
    %78 = arith.addf %74, %77 : vector<2x6x64xf32>
    %cst_34 = arith.constant 0.000000e+00 : f32
    %79 = vector.broadcast %cst_34 : f32 to vector<2x6x64xf32>
    %80 = arith.maximumf %78, %79 : vector<2x6x64xf32>
    %81 = vector.shape_cast %80 : vector<2x6x64xf32> to vector<12x64xf32>
    %c0_35 = arith.constant 0 : index
    %c0_36 = arith.constant 0 : index
    %82 = vector.load %arg7[%c0_35, %c0_36] : memref<64x32xf32, #tpu.memory_space<vmem>>, vector<64x32xf32>
    %cst_37 = arith.constant dense<0.000000e+00> : vector<12x32xf32>
    %83 = tpu.matmul %81, %82, %cst_37 {dimension_numbers = #tpu.dot_dimension_numbers<[1], [0], [0], [1], [0, 0, 1, 1], [], []>} : vector<12x64xf32>, vector<64x32xf32>, vector<12x32xf32> -> vector<12x32xf32>
    %c0_38 = arith.constant 0 : index
    %c0_39 = arith.constant 0 : index
    %84 = vector.load %arg8[%c0_38, %c0_39] : memref<1x32xf32, #tpu.memory_space<vmem>>, vector<1x32xf32>
    %85 = vector.broadcast %84 : vector<1x32xf32> to vector<12x32xf32>
    %86 = arith.addf %83, %85 : vector<12x32xf32>
    %cst_40 = arith.constant 0.000000e+00 : f32
    %87 = vector.broadcast %cst_40 : f32 to vector<12x32xf32>
    %88 = arith.maximumf %86, %87 : vector<12x32xf32>
    %c0_41 = arith.constant 0 : index
    %c0_42 = arith.constant 0 : index
    %89 = vector.load %arg9[%c0_41, %c0_42] : memref<32x32xf32, #tpu.memory_space<vmem>>, vector<32x32xf32>
    %cst_43 = arith.constant dense<0.000000e+00> : vector<12x32xf32>
    %90 = tpu.matmul %88, %89, %cst_43 {dimension_numbers = #tpu.dot_dimension_numbers<[1], [0], [0], [1], [0, 0, 1, 1], [], []>} : vector<12x32xf32>, vector<32x32xf32>, vector<12x32xf32> -> vector<12x32xf32>
    %c0_44 = arith.constant 0 : index
    %c0_45 = arith.constant 0 : index
    %91 = vector.load %arg10[%c0_44, %c0_45] : memref<1x32xf32, #tpu.memory_space<vmem>>, vector<1x32xf32>
    %92 = vector.broadcast %91 : vector<1x32xf32> to vector<12x32xf32>
    %93 = arith.addf %90, %92 : vector<12x32xf32>
    %94 = vector.shape_cast %93 : vector<12x32xf32> to vector<2x6x32xf32>
    %c1 = arith.constant 1 : index
    %c0_46 = arith.constant 0 : index
    %c0_47 = arith.constant 0 : index
    %95 = vector.load %arg2[%c1, %c0_46, %c0_47] : memref<3x32x6xf32, #tpu.memory_space<vmem>>, vector<1x32x6xf32>
    %96 = vector.shape_cast %95 : vector<1x32x6xf32> to vector<32x6xf32>
    %97 = arith.mulf %94, %94 : vector<2x6x32xf32>
    %cst_48 = arith.constant dense<0.000000e+00> : vector<2x6xf32>
    %98 = vector.multi_reduction <add>, %97, %cst_48 [2] : vector<2x6x32xf32> to vector<2x6xf32>
    %99 = vector.shape_cast %98 : vector<2x6xf32> to vector<2x6x1xf32>
    %100 = math.sqrt %99 : vector<2x6x1xf32>
    %cst_49 = arith.constant 9.99999993E-9 : f32
    %101 = vector.broadcast %cst_49 : f32 to vector<2x6x1xf32>
    %102 = arith.maximumf %100, %101 : vector<2x6x1xf32>
    %103 = arith.mulf %96, %96 : vector<32x6xf32>
    %cst_50 = arith.constant dense<0.000000e+00> : vector<6xf32>
    %104 = vector.multi_reduction <add>, %103, %cst_50 [0] : vector<32x6xf32> to vector<6xf32>
    %105 = vector.shape_cast %104 : vector<6xf32> to vector<1x6xf32>
    %106 = math.sqrt %105 : vector<1x6xf32>
    %cst_51 = arith.constant 9.99999993E-9 : f32
    %107 = vector.broadcast %cst_51 : f32 to vector<1x6xf32>
    %108 = arith.maximumf %106, %107 : vector<1x6xf32>
    %109 = vector.broadcast %102 : vector<2x6x1xf32> to vector<2x6x32xf32>
    %110 = arith.divf %94, %109 : vector<2x6x32xf32>
    %111 = vector.shape_cast %110 : vector<2x6x32xf32> to vector<12x32xf32>
    %112 = vector.broadcast %108 : vector<1x6xf32> to vector<32x6xf32>
    %113 = arith.divf %96, %112 : vector<32x6xf32>
    %cst_52 = arith.constant dense<0.000000e+00> : vector<12x6xf32>
    %114 = tpu.matmul %111, %113, %cst_52 {dimension_numbers = #tpu.dot_dimension_numbers<[1], [0], [0], [1], [0, 0, 1, 1], [], []>} : vector<12x32xf32>, vector<32x6xf32>, vector<12x6xf32> -> vector<12x6xf32>
    %115 = vector.shape_cast %114 : vector<12x6xf32> to vector<2x6x6xf32>
    %cst_53 = arith.constant dense<0xFF800000> : vector<2x6xf32>
    %116 = vector.multi_reduction <maximumf>, %115, %cst_53 [2] : vector<2x6x6xf32> to vector<2x6xf32>
    %117 = vector.shape_cast %116 : vector<2x6xf32> to vector<2x6x1xf32>
    %118 = vector.broadcast %117 : vector<2x6x1xf32> to vector<2x6x6xf32>
    %119 = arith.subf %115, %118 : vector<2x6x6xf32>
    %120 = math.exp %119 : vector<2x6x6xf32>
    %cst_54 = arith.constant dense<0.000000e+00> : vector<2x6xf32>
    %121 = vector.multi_reduction <add>, %120, %cst_54 [2] : vector<2x6x6xf32> to vector<2x6xf32>
    %122 = vector.shape_cast %121 : vector<2x6xf32> to vector<2x6x1xf32>
    %123 = vector.broadcast %122 : vector<2x6x1xf32> to vector<2x6x6xf32>
    %124 = arith.divf %120, %123 : vector<2x6x6xf32>
    %125 = vector.shape_cast %36 : vector<2x6xf32> to vector<2x6x1xf32>
    %126 = vector.broadcast %125 : vector<2x6x1xf32> to vector<2x6x6xf32>
    %127 = arith.mulf %126, %124 : vector<2x6x6xf32>
    %cst_55 = arith.constant dense<0.000000e+00> : vector<2x6xf32>
    %128 = vector.multi_reduction <add>, %127, %cst_55 [1] : vector<2x6x6xf32> to vector<2x6xf32>
    %129 = vector.shape_cast %128 : vector<2x6xf32> to vector<2x1x6xf32>
    %cst_56 = arith.constant 1.000000e+00 : f32
    %130 = vector.broadcast %cst_56 : f32 to vector<2x6x6xf32>
    %131 = arith.subf %130, %115 : vector<2x6x6xf32>
    %132 = vector.broadcast %129 : vector<2x1x6xf32> to vector<2x6x6xf32>
    %133 = arith.mulf %132, %131 : vector<2x6x6xf32>
    %cst_57 = arith.constant dense<0.000000e+00> : vector<2x6xf32>
    %134 = vector.multi_reduction <add>, %133, %cst_57 [2] : vector<2x6x6xf32> to vector<2x6xf32>
    %cst_58 = arith.constant dense<0.000000e+00> : vector<2xf32>
    %135 = vector.multi_reduction <add>, %134, %cst_58 [1] : vector<2x6xf32> to vector<2xf32>
    %136 = vector.shape_cast %135 : vector<2xf32> to vector<2x1xf32>
    %cst_59 = arith.constant 0.027777778 : f32
    %137 = vector.broadcast %cst_59 : f32 to vector<2x1xf32>
    %138 = arith.mulf %136, %137 : vector<2x1xf32>
    %139 = vector.shape_cast %94 : vector<2x6x32xf32> to vector<12x32xf32>
    %c1_60 = arith.constant 1 : index
    %c0_61 = arith.constant 0 : index
    %c0_62 = arith.constant 0 : index
    %140 = vector.load %arg3[%c1_60, %c0_61, %c0_62] : memref<3x32x32xf32, #tpu.memory_space<vmem>>, vector<1x32x32xf32>
    %141 = vector.shape_cast %140 : vector<1x32x32xf32> to vector<32x32xf32>
    %cst_63 = arith.constant dense<0.000000e+00> : vector<12x32xf32>
    %142 = tpu.matmul %139, %141, %cst_63 {dimension_numbers = #tpu.dot_dimension_numbers<[1], [0], [0], [1], [0, 0, 1, 1], [], []>} : vector<12x32xf32>, vector<32x32xf32>, vector<12x32xf32> -> vector<12x32xf32>
    %c1_64 = arith.constant 1 : index
    %c0_65 = arith.constant 0 : index
    %c0_66 = arith.constant 0 : index
    %143 = vector.load %arg4[%c1_64, %c0_65, %c0_66] : memref<3x1x32xf32, #tpu.memory_space<vmem>>, vector<1x1x32xf32>
    %144 = vector.shape_cast %143 : vector<1x1x32xf32> to vector<1x32xf32>
    %145 = vector.broadcast %144 : vector<1x32xf32> to vector<12x32xf32>
    %146 = arith.addf %142, %145 : vector<12x32xf32>
    %cst_67 = arith.constant 0.000000e+00 : f32
    %147 = vector.broadcast %cst_67 : f32 to vector<12x32xf32>
    %148 = arith.maximumf %146, %147 : vector<12x32xf32>
    %149 = vector.shape_cast %148 : vector<12x32xf32> to vector<2x6x32xf32>
    %150 = vector.extract_strided_slice %124 {offsets = [0, 0, 0], sizes = [2, 1, 6], strides = [1, 1, 1]} : vector<2x6x6xf32> to vector<2x1x6xf32>
    %151 = vector.shape_cast %150 : vector<2x1x6xf32> to vector<2x6xf32>
    %152 = vector.shape_cast %151 : vector<2x6xf32> to vector<2x6x1xf32>
    %153 = vector.extract_strided_slice %149 {offsets = [0, 0, 0], sizes = [2, 1, 32], strides = [1, 1, 1]} : vector<2x6x32xf32> to vector<2x1x32xf32>
    %154 = vector.shape_cast %153 : vector<2x1x32xf32> to vector<2x32xf32>
    %155 = vector.shape_cast %154 : vector<2x32xf32> to vector<2x1x32xf32>
    %156 = vector.broadcast %152 : vector<2x6x1xf32> to vector<2x6x32xf32>
    %157 = vector.broadcast %155 : vector<2x1x32xf32> to vector<2x6x32xf32>
    %158 = arith.mulf %156, %157 : vector<2x6x32xf32>
    %159 = vector.extract_strided_slice %124 {offsets = [0, 1, 0], sizes = [2, 1, 6], strides = [1, 1, 1]} : vector<2x6x6xf32> to vector<2x1x6xf32>
    %160 = vector.shape_cast %159 : vector<2x1x6xf32> to vector<2x6xf32>
    %161 = vector.shape_cast %160 : vector<2x6xf32> to vector<2x6x1xf32>
    %162 = vector.extract_strided_slice %149 {offsets = [0, 1, 0], sizes = [2, 1, 32], strides = [1, 1, 1]} : vector<2x6x32xf32> to vector<2x1x32xf32>
    %163 = vector.shape_cast %162 : vector<2x1x32xf32> to vector<2x32xf32>
    %164 = vector.shape_cast %163 : vector<2x32xf32> to vector<2x1x32xf32>
    %165 = vector.broadcast %161 : vector<2x6x1xf32> to vector<2x6x32xf32>
    %166 = vector.broadcast %164 : vector<2x1x32xf32> to vector<2x6x32xf32>
    %167 = arith.mulf %165, %166 : vector<2x6x32xf32>
    %168 = arith.addf %158, %167 : vector<2x6x32xf32>
    %169 = vector.extract_strided_slice %124 {offsets = [0, 2, 0], sizes = [2, 1, 6], strides = [1, 1, 1]} : vector<2x6x6xf32> to vector<2x1x6xf32>
    %170 = vector.shape_cast %169 : vector<2x1x6xf32> to vector<2x6xf32>
    %171 = vector.shape_cast %170 : vector<2x6xf32> to vector<2x6x1xf32>
    %172 = vector.extract_strided_slice %149 {offsets = [0, 2, 0], sizes = [2, 1, 32], strides = [1, 1, 1]} : vector<2x6x32xf32> to vector<2x1x32xf32>
    %173 = vector.shape_cast %172 : vector<2x1x32xf32> to vector<2x32xf32>
    %174 = vector.shape_cast %173 : vector<2x32xf32> to vector<2x1x32xf32>
    %175 = vector.broadcast %171 : vector<2x6x1xf32> to vector<2x6x32xf32>
    %176 = vector.broadcast %174 : vector<2x1x32xf32> to vector<2x6x32xf32>
    %177 = arith.mulf %175, %176 : vector<2x6x32xf32>
    %178 = arith.addf %168, %177 : vector<2x6x32xf32>
    %179 = vector.extract_strided_slice %124 {offsets = [0, 3, 0], sizes = [2, 1, 6], strides = [1, 1, 1]} : vector<2x6x6xf32> to vector<2x1x6xf32>
    %180 = vector.shape_cast %179 : vector<2x1x6xf32> to vector<2x6xf32>
    %181 = vector.shape_cast %180 : vector<2x6xf32> to vector<2x6x1xf32>
    %182 = vector.extract_strided_slice %149 {offsets = [0, 3, 0], sizes = [2, 1, 32], strides = [1, 1, 1]} : vector<2x6x32xf32> to vector<2x1x32xf32>
    %183 = vector.shape_cast %182 : vector<2x1x32xf32> to vector<2x32xf32>
    %184 = vector.shape_cast %183 : vector<2x32xf32> to vector<2x1x32xf32>
    %185 = vector.broadcast %181 : vector<2x6x1xf32> to vector<2x6x32xf32>
    %186 = vector.broadcast %184 : vector<2x1x32xf32> to vector<2x6x32xf32>
    %187 = arith.mulf %185, %186 : vector<2x6x32xf32>
    %188 = arith.addf %178, %187 : vector<2x6x32xf32>
    %189 = vector.extract_strided_slice %124 {offsets = [0, 4, 0], sizes = [2, 1, 6], strides = [1, 1, 1]} : vector<2x6x6xf32> to vector<2x1x6xf32>
    %190 = vector.shape_cast %189 : vector<2x1x6xf32> to vector<2x6xf32>
    %191 = vector.shape_cast %190 : vector<2x6xf32> to vector<2x6x1xf32>
    %192 = vector.extract_strided_slice %149 {offsets = [0, 4, 0], sizes = [2, 1, 32], strides = [1, 1, 1]} : vector<2x6x32xf32> to vector<2x1x32xf32>
    %193 = vector.shape_cast %192 : vector<2x1x32xf32> to vector<2x32xf32>
    %194 = vector.shape_cast %193 : vector<2x32xf32> to vector<2x1x32xf32>
    %195 = vector.broadcast %191 : vector<2x6x1xf32> to vector<2x6x32xf32>
    %196 = vector.broadcast %194 : vector<2x1x32xf32> to vector<2x6x32xf32>
    %197 = arith.mulf %195, %196 : vector<2x6x32xf32>
    %198 = arith.addf %188, %197 : vector<2x6x32xf32>
    %199 = vector.extract_strided_slice %124 {offsets = [0, 5, 0], sizes = [2, 1, 6], strides = [1, 1, 1]} : vector<2x6x6xf32> to vector<2x1x6xf32>
    %200 = vector.shape_cast %199 : vector<2x1x6xf32> to vector<2x6xf32>
    %201 = vector.shape_cast %200 : vector<2x6xf32> to vector<2x6x1xf32>
    %202 = vector.extract_strided_slice %149 {offsets = [0, 5, 0], sizes = [2, 1, 32], strides = [1, 1, 1]} : vector<2x6x32xf32> to vector<2x1x32xf32>
    %203 = vector.shape_cast %202 : vector<2x1x32xf32> to vector<2x32xf32>
    %204 = vector.shape_cast %203 : vector<2x32xf32> to vector<2x1x32xf32>
    %205 = vector.broadcast %201 : vector<2x6x1xf32> to vector<2x6x32xf32>
    %206 = vector.broadcast %204 : vector<2x1x32xf32> to vector<2x6x32xf32>
    %207 = arith.mulf %205, %206 : vector<2x6x32xf32>
    %208 = arith.addf %198, %207 : vector<2x6x32xf32>
    %c1_68 = arith.constant 1 : index
    %c0_69 = arith.constant 0 : index
    %c0_70 = arith.constant 0 : index
    %209 = vector.load %arg1[%c1_68, %c0_69, %c0_70] : memref<2x2x32xf32, #tpu.memory_space<vmem>>, vector<1x2x32xf32>
    %210 = vector.shape_cast %209 : vector<1x2x32xf32> to vector<2x32xf32>
    %211 = vector.shape_cast %208 : vector<2x6x32xf32> to vector<12x32xf32>
    %212 = vector.extract_strided_slice %2 {offsets = [0, 0], sizes = [32, 64], strides = [1, 1]} : vector<64x64xf32> to vector<32x64xf32>
    %cst_71 = arith.constant dense<0.000000e+00> : vector<12x64xf32>
    %213 = tpu.matmul %211, %212, %cst_71 {dimension_numbers = #tpu.dot_dimension_numbers<[1], [0], [0], [1], [0, 0, 1, 1], [], []>} : vector<12x32xf32>, vector<32x64xf32>, vector<12x64xf32> -> vector<12x64xf32>
    %214 = vector.shape_cast %213 : vector<12x64xf32> to vector<2x6x64xf32>
    %215 = vector.extract_strided_slice %2 {offsets = [32, 0], sizes = [32, 64], strides = [1, 1]} : vector<64x64xf32> to vector<32x64xf32>
    %cst_72 = arith.constant dense<0.000000e+00> : vector<2x64xf32>
    %216 = tpu.matmul %210, %215, %cst_72 {dimension_numbers = #tpu.dot_dimension_numbers<[1], [0], [0], [1], [0, 0, 1, 1], [], []>} : vector<2x32xf32>, vector<32x64xf32>, vector<2x64xf32> -> vector<2x64xf32>
    %217 = vector.shape_cast %216 : vector<2x64xf32> to vector<2x1x64xf32>
    %218 = vector.broadcast %217 : vector<2x1x64xf32> to vector<2x6x64xf32>
    %219 = arith.addf %214, %218 : vector<2x6x64xf32>
    %c0_73 = arith.constant 0 : index
    %c0_74 = arith.constant 0 : index
    %220 = vector.load %arg6[%c0_73, %c0_74] : memref<1x64xf32, #tpu.memory_space<vmem>>, vector<1x64xf32>
    %221 = vector.shape_cast %220 : vector<1x64xf32> to vector<1x1x64xf32>
    %222 = vector.broadcast %221 : vector<1x1x64xf32> to vector<2x6x64xf32>
    %223 = arith.addf %219, %222 : vector<2x6x64xf32>
    %cst_75 = arith.constant 0.000000e+00 : f32
    %224 = vector.broadcast %cst_75 : f32 to vector<2x6x64xf32>
    %225 = arith.maximumf %223, %224 : vector<2x6x64xf32>
    %226 = vector.shape_cast %225 : vector<2x6x64xf32> to vector<12x64xf32>
    %c0_76 = arith.constant 0 : index
    %c0_77 = arith.constant 0 : index
    %227 = vector.load %arg7[%c0_76, %c0_77] : memref<64x32xf32, #tpu.memory_space<vmem>>, vector<64x32xf32>
    %cst_78 = arith.constant dense<0.000000e+00> : vector<12x32xf32>
    %228 = tpu.matmul %226, %227, %cst_78 {dimension_numbers = #tpu.dot_dimension_numbers<[1], [0], [0], [1], [0, 0, 1, 1], [], []>} : vector<12x64xf32>, vector<64x32xf32>, vector<12x32xf32> -> vector<12x32xf32>
    %c0_79 = arith.constant 0 : index
    %c0_80 = arith.constant 0 : index
    %229 = vector.load %arg8[%c0_79, %c0_80] : memref<1x32xf32, #tpu.memory_space<vmem>>, vector<1x32xf32>
    %230 = vector.broadcast %229 : vector<1x32xf32> to vector<12x32xf32>
    %231 = arith.addf %228, %230 : vector<12x32xf32>
    %cst_81 = arith.constant 0.000000e+00 : f32
    %232 = vector.broadcast %cst_81 : f32 to vector<12x32xf32>
    %233 = arith.maximumf %231, %232 : vector<12x32xf32>
    %c0_82 = arith.constant 0 : index
    %c0_83 = arith.constant 0 : index
    %234 = vector.load %arg9[%c0_82, %c0_83] : memref<32x32xf32, #tpu.memory_space<vmem>>, vector<32x32xf32>
    %cst_84 = arith.constant dense<0.000000e+00> : vector<12x32xf32>
    %235 = tpu.matmul %233, %234, %cst_84 {dimension_numbers = #tpu.dot_dimension_numbers<[1], [0], [0], [1], [0, 0, 1, 1], [], []>} : vector<12x32xf32>, vector<32x32xf32>, vector<12x32xf32> -> vector<12x32xf32>
    %c0_85 = arith.constant 0 : index
    %c0_86 = arith.constant 0 : index
    %236 = vector.load %arg10[%c0_85, %c0_86] : memref<1x32xf32, #tpu.memory_space<vmem>>, vector<1x32xf32>
    %237 = vector.broadcast %236 : vector<1x32xf32> to vector<12x32xf32>
    %238 = arith.addf %235, %237 : vector<12x32xf32>
    %239 = vector.shape_cast %238 : vector<12x32xf32> to vector<2x6x32xf32>
    %c2 = arith.constant 2 : index
    %c0_87 = arith.constant 0 : index
    %c0_88 = arith.constant 0 : index
    %240 = vector.load %arg2[%c2, %c0_87, %c0_88] : memref<3x32x6xf32, #tpu.memory_space<vmem>>, vector<1x32x6xf32>
    %241 = vector.shape_cast %240 : vector<1x32x6xf32> to vector<32x6xf32>
    %242 = arith.mulf %239, %239 : vector<2x6x32xf32>
    %cst_89 = arith.constant dense<0.000000e+00> : vector<2x6xf32>
    %243 = vector.multi_reduction <add>, %242, %cst_89 [2] : vector<2x6x32xf32> to vector<2x6xf32>
    %244 = vector.shape_cast %243 : vector<2x6xf32> to vector<2x6x1xf32>
    %245 = math.sqrt %244 : vector<2x6x1xf32>
    %cst_90 = arith.constant 9.99999993E-9 : f32
    %246 = vector.broadcast %cst_90 : f32 to vector<2x6x1xf32>
    %247 = arith.maximumf %245, %246 : vector<2x6x1xf32>
    %248 = arith.mulf %241, %241 : vector<32x6xf32>
    %cst_91 = arith.constant dense<0.000000e+00> : vector<6xf32>
    %249 = vector.multi_reduction <add>, %248, %cst_91 [0] : vector<32x6xf32> to vector<6xf32>
    %250 = vector.shape_cast %249 : vector<6xf32> to vector<1x6xf32>
    %251 = math.sqrt %250 : vector<1x6xf32>
    %cst_92 = arith.constant 9.99999993E-9 : f32
    %252 = vector.broadcast %cst_92 : f32 to vector<1x6xf32>
    %253 = arith.maximumf %251, %252 : vector<1x6xf32>
    %254 = vector.broadcast %247 : vector<2x6x1xf32> to vector<2x6x32xf32>
    %255 = arith.divf %239, %254 : vector<2x6x32xf32>
    %256 = vector.shape_cast %255 : vector<2x6x32xf32> to vector<12x32xf32>
    %257 = vector.broadcast %253 : vector<1x6xf32> to vector<32x6xf32>
    %258 = arith.divf %241, %257 : vector<32x6xf32>
    %cst_93 = arith.constant dense<0.000000e+00> : vector<12x6xf32>
    %259 = tpu.matmul %256, %258, %cst_93 {dimension_numbers = #tpu.dot_dimension_numbers<[1], [0], [0], [1], [0, 0, 1, 1], [], []>} : vector<12x32xf32>, vector<32x6xf32>, vector<12x6xf32> -> vector<12x6xf32>
    %260 = vector.shape_cast %259 : vector<12x6xf32> to vector<2x6x6xf32>
    %cst_94 = arith.constant dense<0xFF800000> : vector<2x6xf32>
    %261 = vector.multi_reduction <maximumf>, %260, %cst_94 [2] : vector<2x6x6xf32> to vector<2x6xf32>
    %262 = vector.shape_cast %261 : vector<2x6xf32> to vector<2x6x1xf32>
    %263 = vector.broadcast %262 : vector<2x6x1xf32> to vector<2x6x6xf32>
    %264 = arith.subf %260, %263 : vector<2x6x6xf32>
    %265 = math.exp %264 : vector<2x6x6xf32>
    %cst_95 = arith.constant dense<0.000000e+00> : vector<2x6xf32>
    %266 = vector.multi_reduction <add>, %265, %cst_95 [2] : vector<2x6x6xf32> to vector<2x6xf32>
    %267 = vector.shape_cast %266 : vector<2x6xf32> to vector<2x6x1xf32>
    %268 = vector.broadcast %267 : vector<2x6x1xf32> to vector<2x6x6xf32>
    %269 = arith.divf %265, %268 : vector<2x6x6xf32>
    %270 = vector.shape_cast %128 : vector<2x6xf32> to vector<2x6x1xf32>
    %271 = vector.broadcast %270 : vector<2x6x1xf32> to vector<2x6x6xf32>
    %272 = arith.mulf %271, %269 : vector<2x6x6xf32>
    %cst_96 = arith.constant dense<0.000000e+00> : vector<2x6xf32>
    %273 = vector.multi_reduction <add>, %272, %cst_96 [1] : vector<2x6x6xf32> to vector<2x6xf32>
    %274 = vector.shape_cast %273 : vector<2x6xf32> to vector<2x1x6xf32>
    %cst_97 = arith.constant 1.000000e+00 : f32
    %275 = vector.broadcast %cst_97 : f32 to vector<2x6x6xf32>
    %276 = arith.subf %275, %260 : vector<2x6x6xf32>
    %277 = vector.broadcast %274 : vector<2x1x6xf32> to vector<2x6x6xf32>
    %278 = arith.mulf %277, %276 : vector<2x6x6xf32>
    %cst_98 = arith.constant dense<0.000000e+00> : vector<2x6xf32>
    %279 = vector.multi_reduction <add>, %278, %cst_98 [2] : vector<2x6x6xf32> to vector<2x6xf32>
    %cst_99 = arith.constant dense<0.000000e+00> : vector<2xf32>
    %280 = vector.multi_reduction <add>, %279, %cst_99 [1] : vector<2x6xf32> to vector<2xf32>
    %281 = vector.shape_cast %280 : vector<2xf32> to vector<2x1xf32>
    %cst_100 = arith.constant 0.027777778 : f32
    %282 = vector.broadcast %cst_100 : f32 to vector<2x1xf32>
    %283 = arith.mulf %281, %282 : vector<2x1xf32>
    %284 = tpu.concatenate %45, %138, %283 in 1 : vector<2x1xf32>, vector<2x1xf32>, vector<2x1xf32> -> vector<2x3xf32>
    %c0_101 = arith.constant 0 : index
    %c0_102 = arith.constant 0 : index
    %285 = vector.load %arg11[%c0_101, %c0_102] : memref<2x3xf32, #tpu.memory_space<vmem>>, vector<2x3xf32>
    tpu.vector_store %arg11[%c0_101, %c0_102], %284 {strides = array<i32>} : memref<2x3xf32, #tpu.memory_space<vmem>>, vector<2x3xf32>,
    return
  }
}

</mosaic_0001>

<bundles_post_ra>
// kernel: thoc_forward.12
= control target key start
LH: loop header
LB: loop body
LE: loop exit
PB: predicated region body
PF: predicated region fallthrough
CT: control target
= control target key end

     0   :  { %v276_v1 = vmov 0.0   ;;  %vm277_vm0 = vmmov 0   ;;  %s355_s0 = inlined_call_operand.vmem [shape: bf16[16,128], index: 0, kind: input, shape index: {}]   ;;  %s356_s1 = inlined_call_operand.vmem [shape: bf16[128,4], index: 1, kind: input, shape index: {}]   ;;  %s357_s2 = inlined_call_operand.vmem [shape: f32[1,4], index: 2, kind: input, shape index: {}]   ;;  %s358_s3 = inlined_call_operand.vmem [shape: f32[16,4], index: 3, kind: input, shape index: {}]   ;;  %s359_s4 = inlined_call_operand.hbm [shape: f32[1,1], index: 4, kind: output, shape index: {}]  }
   0x1   :  { %v243_v0 = vld [vmem:[%s356_s1] sm:$0xff]   ;;  %218 = vmatprep.subr.bf16.mxu0 %v276_v1  ;;  %v244_v2 = vld [vmem:[%s356_s1 + $0x8] sm:$0xff]   ;;  %234 = vmatprep.mubr.msk.bf16.mxu0 %vm277_vm0, %v276_v1  ;;  %v245_v3 = vld [vmem:[%s356_s1 + $0x10] sm:$0xff]  }
   0x2   :  { %219 = vmatpush3.bf16.msra.mxu0 %v243_v0 }
   0x3   :  { %220 = vmatprep.subr.bf16.mxu0 %v276_v1 }
   0x6   :  { %221 = vmatpush3.bf16.msra.mxu0 %v244_v2 }
   0x7   :  { %222 = vmatprep.subr.bf16.mxu0 %v276_v1 }
   0x8   :  { %9 = vsyncpa [#allocation4], 0  ;;  %v246_v4 = vld [vmem:[%s356_s1 + $0x18] sm:$0xff]   ;;  %v247_v5 = vld [vmem:[%s356_s1 + $0x20] sm:$0xff]   ;;  %v150_v10 = vlaneseq  ;;  %vm163_vm2 = vcmask 31744   ;;  %vm23_vm3 = vcmask 0  }
   0x9   :  { %v248_v6 = vld [vmem:[%s356_s1 + $0x28] sm:$0xff]   ;;  %v249_v7 = vld [vmem:[%s356_s1 + $0x30] sm:$0xff]   ;;  %v250_v8 = vld [vmem:[%s356_s1 + $0x38] sm:$0xff]   ;;  %24 = vst.msk [vmem:[#allocation2] sm:$0x1] %vm23_vm3, %v276_v1 }
   0xa   :  { %223 = vmatpush3.bf16.msra.mxu0 %v245_v3  ;;  %v251_v9 = vld [vmem:[%s355_s0] sm:$0xff]   ;;  %v151_v12 = vshrl.u32 %v150_v10, 7  ;;  %v146_v18 = vld [vmem:[%s358_s3 + $0x8] sm:$0xff] }
   0xb   :  { %224 = vmatprep.subr.bf16.mxu0 %v276_v1  ;;  %v199_v11 = vld [vmem:[%s357_s2] ss:$0 sm:$0xff]  ;;  %s278_s2 = smov [#allocation3]  }
   0xc   :  { %v145_v14 = vld [vmem:[%s358_s3] sm:$0xff]  ;;  %v152_v19 = vadd.s32 8, %v151_v12  ;;  %s191_s3 = sshll.u32 %s278_s2, 4  ;;  %s192_s3 = int_to_ptr.vmem [resolvable:$true] %s191_s3 }
   0xd   :  { %s252_s12 = scalar_lea.vmem %s192_s3, 16  ;;  %s256_s13 = scalar_lea.vmem %s192_s3, 32 }
   0xe   :  { %225 = vmatpush3.bf16.msra.mxu0 %v246_v4  ;;  %vm157_vm1 = vcmp.lt.s32.totalorder %v152_v19, 12  ;;  %p253_p0 = scmp.ne.s32.totalorder %s192_s3, %s252_s12  ;;  %p257_p1 = scmp.lt.s32.totalorder %s192_s3, %s192_s3 }
   0xf   :  { %226 = vmatprep.subr.bf16.mxu0 %v276_v1  ;;  %p258_p2 = scmp.lt.s32.totalorder %s256_s13, %s252_s12 }
  0x10   :  { %v162_v37 = vld [vmem:[#allocation2] sm:$0x1] }
  0x11   :  { %p259_p3 = por %p258_p2, %p257_p1 }
  0x12   :  { %227 = vmatpush3.bf16.msra.mxu0 %v247_v5 }
  0x13   :  { %228 = vmatprep.subr.bf16.mxu0 %v276_v1  ;;  %p260_p4 = pnand %p259_p3, %p253_p0 }
  0x16   :  { %229 = vmatpush3.bf16.msra.mxu0 %v248_v6 }
  0x17   :  { %230 = vmatprep.subr.bf16.mxu0 %v276_v1 }
  0x1a   :  { %231 = vmatpush3.bf16.msra.mxu0 %v249_v7 }
  0x1b   :  { %232 = vmatprep.subr.bf16.mxu0 %v276_v1 }
  0x1e   :  { %233 = vmatpush3.bf16.msra.mxu0 %v250_v8 }
  0x21   :  { %235 = vmatmul.mubr.bf16.vlgmr.msra.gmra.mrb[0].mxu0 %v251_v9 }
  0xf4   :  { %v138_v13 = vpop.f32.mrb[0].mxu0 }
  0xf5   :  { %v139_v15 = vadd.f32 %v199_v11, %v138_v13  ;;  %v236_v16 = vpop.f32.mrb[1].mxu0 }
  0xf6   :  { %v141_v17 = vpop.f32.mrb[2].mxu0 }
  0xf7   :  { %v147_v20 = vsub.f32 %v139_v15, %v145_v14  ;;  %v142_v21 = vadd.f32 %v199_v11, %v141_v17  ;;  %v237_v22 = vpop.f32.mrb[3].mxu0 }
  0xf9   :  { %v148_v23 = vsub.f32 %v142_v21, %v146_v18  ;;  %v158_v24 = vmul.f32 %v147_v20, %v147_v20 }
  0xfb   :  { %v159_v25 = vmul.f32 %v148_v23, %v148_v23  ;;  %v164_v27 = vsel %vm163_vm2, %v158_v24, 0.0 }
  0xfd   :  { %v161_v26 = vsel %vm157_vm1, %v159_v25, 0.0 }
  0xfe   :  { %v165_v28 = vsel %vm163_vm2, %v161_v26, 0.0 }
  0xff   :  { %v166_v29 = vadd.f32 %v165_v28, %v164_v27 }
 0x101   :  { %167 = vadd.xlane.f32.xlu0 %v166_v29 }
 0x18e   :  { %v168_v30 = vpop.xlane.xlu0 %167 }
 0x18f   :  { %v169_v31 = vrot.slane %v168_v30, 4 }
 0x191   :  { %v170_v32 = vadd.f32 %v169_v31, %v168_v30 }
 0x193   :  { %v171_v33 = vrot.slane %v170_v32, 2 }
 0x195   :  { %v172_v34 = vadd.f32 %v171_v33, %v170_v32 }
 0x197   :  { %v173_v35 = vrot.slane %v172_v34, 1 }
 0x199   :  { %v174_v36 = vadd.f32 %v173_v35, %v172_v34 }
 0x19b   :  { %238 = vpush %v174_v36 }
 0x1cc   :  { %s239_s0 = spop %238 }
 0x1cd   :  { %v176_v38 = vstv %s239_s0 }
 0x1ce   :  { %v177_v39 = vadd.f32 %v176_v38, %v162_v37 }
 0x1d0   :  { %179 = vst.msk [vmem:[#allocation2] sm:$0x1] %vm23_vm3, %v177_v39 }
 0x1d7   :  { %v183_v40 = vld [vmem:[#allocation2] sm:$0x1] }
 0x1d8   :  { %184 = vst.msk [vmem:[#allocation3] sm:$0x1] %vm23_vm3, %v183_v40 }
 0x1d9   :  { %263 = shalt.err (!%p260_p4)
}
 0x1da   :  { %s264_s16 = scalar_lea.hbm %s359_s4, 16 }
 0x1db   :  { %p265_p5 = scmp.ne.s32.totalorder %s359_s4, %s264_s16  ;;  %p268_p6 = scmp.lt.u32.totalorder %s264_s16, %s359_s4 }
 0x1dd   :  { %p270_p7 = pnand %p268_p6, %p265_p5 }
 0x1df   :  { %273 = shalt.err (!%p270_p7)
}
 0x1e0   :  { %194 = dma.vmem_to_hbm [thread:$0]  %s192_s3, 16, %s359_s4, [#allocation4]  }
 0x1e1   :  { %274 = dma.done.wait [#allocation4], 16  }
 0x1e2   :  { %275 = vsyncadd [#allocation4], 4294967280 }
 0x1e3   :  { %198 = vsyncpa [#allocation4], 1 }

// kernel: thoc_forward.11
= control target key start
LH: loop header
LB: loop body
LE: loop exit
PB: predicated region body
PF: predicated region fallthrough
CT: control target
= control target key end

     0   :  { %v276_v1 = vmov 0.0   ;;  %vm277_vm0 = vmmov 0   ;;  %s355_s0 = inlined_call_operand.vmem [shape: bf16[16,128], index: 0, kind: input, shape index: {}]   ;;  %s356_s1 = inlined_call_operand.vmem [shape: bf16[128,4], index: 1, kind: input, shape index: {}]   ;;  %s357_s2 = inlined_call_operand.vmem [shape: f32[1,4], index: 2, kind: input, shape index: {}]   ;;  %s358_s3 = inlined_call_operand.vmem [shape: f32[16,4], index: 3, kind: input, shape index: {}]   ;;  %s359_s4 = inlined_call_operand.hbm [shape: f32[1,1], index: 4, kind: output, shape index: {}]  }
   0x1   :  { %v243_v0 = vld [vmem:[%s356_s1] sm:$0xff]   ;;  %218 = vmatprep.subr.bf16.mxu0 %v276_v1  ;;  %v244_v2 = vld [vmem:[%s356_s1 + $0x8] sm:$0xff]   ;;  %234 = vmatprep.mubr.msk.bf16.mxu0 %vm277_vm0, %v276_v1  ;;  %v245_v3 = vld [vmem:[%s356_s1 + $0x10] sm:$0xff]  }
   0x2   :  { %219 = vmatpush3.bf16.msra.mxu0 %v243_v0 }
   0x3   :  { %220 = vmatprep.subr.bf16.mxu0 %v276_v1 }
   0x6   :  { %221 = vmatpush3.bf16.msra.mxu0 %v244_v2 }
   0x7   :  { %222 = vmatprep.subr.bf16.mxu0 %v276_v1 }
   0x8   :  { %9 = vsyncpa [#allocation4], 0  ;;  %v246_v4 = vld [vmem:[%s356_s1 + $0x18] sm:$0xff]   ;;  %v247_v5 = vld [vmem:[%s356_s1 + $0x20] sm:$0xff]   ;;  %v150_v10 = vlaneseq  ;;  %vm163_vm2 = vcmask 31744   ;;  %vm23_vm3 = vcmask 0  }
   0x9   :  { %v248_v6 = vld [vmem:[%s356_s1 + $0x28] sm:$0xff]   ;;  %v249_v7 = vld [vmem:[%s356_s1 + $0x30] sm:$0xff]   ;;  %v250_v8 = vld [vmem:[%s356_s1 + $0x38] sm:$0xff]   ;;  %24 = vst.msk [vmem:[#allocation2] sm:$0x1] %vm23_vm3, %v276_v1 }
   0xa   :  { %223 = vmatpush3.bf16.msra.mxu0 %v245_v3  ;;  %v251_v9 = vld [vmem:[%s355_s0] sm:$0xff]   ;;  %v151_v12 = vshrl.u32 %v150_v10, 7  ;;  %v146_v18 = vld [vmem:[%s358_s3 + $0x8] sm:$0xff] }
   0xb   :  { %224 = vmatprep.subr.bf16.mxu0 %v276_v1  ;;  %v199_v11 = vld [vmem:[%s357_s2] ss:$0 sm:$0xff]  ;;  %s278_s2 = smov [#allocation3]  }
   0xc   :  { %v145_v14 = vld [vmem:[%s358_s3] sm:$0xff]  ;;  %v152_v19 = vadd.s32 8, %v151_v12  ;;  %s191_s3 = sshll.u32 %s278_s2, 4  ;;  %s192_s3 = int_to_ptr.vmem [resolvable:$true] %s191_s3 }
   0xd   :  { %s252_s12 = scalar_lea.vmem %s192_s3, 16  ;;  %s256_s13 = scalar_lea.vmem %s192_s3, 32 }
   0xe   :  { %225 = vmatpush3.bf16.msra.mxu0 %v246_v4  ;;  %vm157_vm1 = vcmp.lt.s32.totalorder %v152_v19, 14  ;;  %p253_p0 = scmp.ne.s32.totalorder %s192_s3, %s252_s12  ;;  %p257_p1 = scmp.lt.s32.totalorder %s192_s3, %s192_s3 }
   0xf   :  { %226 = vmatprep.subr.bf16.mxu0 %v276_v1  ;;  %p258_p2 = scmp.lt.s32.totalorder %s256_s13, %s252_s12 }
  0x10   :  { %v162_v37 = vld [vmem:[#allocation2] sm:$0x1] }
  0x11   :  { %p259_p3 = por %p258_p2, %p257_p1 }
  0x12   :  { %227 = vmatpush3.bf16.msra.mxu0 %v247_v5 }
  0x13   :  { %228 = vmatprep.subr.bf16.mxu0 %v276_v1  ;;  %p260_p4 = pnand %p259_p3, %p253_p0 }
  0x16   :  { %229 = vmatpush3.bf16.msra.mxu0 %v248_v6 }
  0x17   :  { %230 = vmatprep.subr.bf16.mxu0 %v276_v1 }
  0x1a   :  { %231 = vmatpush3.bf16.msra.mxu0 %v249_v7 }
  0x1b   :  { %232 = vmatprep.subr.bf16.mxu0 %v276_v1 }
  0x1e   :  { %233 = vmatpush3.bf16.msra.mxu0 %v250_v8 }
  0x21   :  { %235 = vmatmul.mubr.bf16.vlgmr.msra.gmra.mrb[0].mxu0 %v251_v9 }
  0xf4   :  { %v138_v13 = vpop.f32.mrb[0].mxu0 }
  0xf5   :  { %v139_v15 = vadd.f32 %v199_v11, %v138_v13  ;;  %v236_v16 = vpop.f32.mrb[1].mxu0 }
  0xf6   :  { %v141_v17 = vpop.f32.mrb[2].mxu0 }
  0xf7   :  { %v147_v20 = vsub.f32 %v139_v15, %v145_v14  ;;  %v142_v21 = vadd.f32 %v199_v11, %v141_v17  ;;  %v237_v22 = vpop.f32.mrb[3].mxu0 }
  0xf9   :  { %v148_v23 = vsub.f32 %v142_v21, %v146_v18  ;;  %v158_v24 = vmul.f32 %v147_v20, %v147_v20 }
  0xfb   :  { %v159_v25 = vmul.f32 %v148_v23, %v148_v23  ;;  %v164_v27 = vsel %vm163_vm2, %v158_v24, 0.0 }
  0xfd   :  { %v161_v26 = vsel %vm157_vm1, %v159_v25, 0.0 }
  0xfe   :  { %v165_v28 = vsel %vm163_vm2, %v161_v26, 0.0 }
  0xff   :  { %v166_v29 = vadd.f32 %v165_v28, %v164_v27 }
 0x101   :  { %167 = vadd.xlane.f32.xlu0 %v166_v29 }
 0x18e   :  { %v168_v30 = vpop.xlane.xlu0 %167 }
 0x18f   :  { %v169_v31 = vrot.slane %v168_v30, 4 }
 0x191   :  { %v170_v32 = vadd.f32 %v169_v31, %v168_v30 }
 0x193   :  { %v171_v33 = vrot.slane %v170_v32, 2 }
 0x195   :  { %v172_v34 = vadd.f32 %v171_v33, %v170_v32 }
 0x197   :  { %v173_v35 = vrot.slane %v172_v34, 1 }
 0x199   :  { %v174_v36 = vadd.f32 %v173_v35, %v172_v34 }
 0x19b   :  { %238 = vpush %v174_v36 }
 0x1cc   :  { %s239_s0 = spop %238 }
 0x1cd   :  { %v176_v38 = vstv %s239_s0 }
 0x1ce   :  { %v177_v39 = vadd.f32 %v176_v38, %v162_v37 }
 0x1d0   :  { %179 = vst.msk [vmem:[#allocation2] sm:$0x1] %vm23_vm3, %v177_v39 }
 0x1d7   :  { %v183_v40 = vld [vmem:[#allocation2] sm:$0x1] }
 0x1d8   :  { %184 = vst.msk [vmem:[#allocation3] sm:$0x1] %vm23_vm3, %v183_v40 }
 0x1d9   :  { %263 = shalt.err (!%p260_p4)
}
 0x1da   :  { %s264_s16 = scalar_lea.hbm %s359_s4, 16 }
 0x1db   :  { %p265_p5 = scmp.ne.s32.totalorder %s359_s4, %s264_s16  ;;  %p268_p6 = scmp.lt.u32.totalorder %s264_s16, %s359_s4 }
 0x1dd   :  { %p270_p7 = pnand %p268_p6, %p265_p5 }
 0x1df   :  { %273 = shalt.err (!%p270_p7)
}
 0x1e0   :  { %194 = dma.vmem_to_hbm [thread:$0]  %s192_s3, 16, %s359_s4, [#allocation4]  }
 0x1e1   :  { %274 = dma.done.wait [#allocation4], 16  }
 0x1e2   :  { %275 = vsyncadd [#allocation4], 4294967280 }
 0x1e3   :  { %198 = vsyncpa [#allocation4], 1 }

// kernel: thoc_forward.7
= control target key start
LH: loop header
LB: loop body
LE: loop exit
PB: predicated region body
PF: predicated region fallthrough
CT: control target
= control target key end

     0   :  { %10 = vsyncpa [#allocation4], 0  ;;  %s1834_s18 = smov [#allocation3]   ;;  %s2364_s0 = inlined_call_operand.vmem [shape: bf16[8,2,8], index: 0, kind: input, shape index: {}]   ;;  %s2365_s1 = inlined_call_operand.vmem [shape: bf16[8,384], index: 1, kind: input, shape index: {}]   ;;  %s2366_s2 = inlined_call_operand.vmem [shape: f32[1,384], index: 2, kind: input, shape index: {}]   ;;  %s2367_s3 = inlined_call_operand.hbm [shape: bf16[128,384], index: 3, kind: input, shape index: {}]   ;;  %s2368_s4 = inlined_call_operand.vmem [shape: f32[1,384], index: 4, kind: input, shape index: {}]   ;;  %s2369_s5 = inlined_call_operand.vmem [shape: bf16[8,2,128], index: 5, kind: output, shape index: {}]  }
   0x1   :  { %s22_s19 = sshll.u32 %s1834_s18, 4  ;;  %s1810_s22 = scalar_lea.hbm %s2367_s3, 3072  ;;  %s23_s19 = int_to_ptr.vmem [resolvable:$true] %s22_s19 }
   0x2   :  { %p1811_p0 = scmp.ne.s32.totalorder %s2367_s3, %s1810_s22  ;;  %p1814_p1 = scmp.lt.u32.totalorder %s1810_s22, %s2367_s3 }
   0x4   :  { %p1816_p2 = pnand %p1814_p1, %p1811_p0 }
   0x6   :  { %1819 = shalt.err (!%p1816_p2)
}
   0x7   :  { %s1820_s27 = scalar_lea.vmem %s23_s19, 3072  ;;  %p1825_p4 = scmp.lt.s32.totalorder %s23_s19, %s23_s19 }
   0x8   :  { %p1821_p3 = scmp.ne.s32.totalorder %s23_s19, %s1820_s27  ;;  %p1826_p5 = scmp.lt.s32.totalorder %s1820_s27, %s1820_s27 }
   0xa   :  { %p1827_p6 = por %p1826_p5, %p1825_p4 }
   0xc   :  { %p1828_p7 = pnand %p1827_p6, %p1821_p3 }
   0xe   :  { %1831 = shalt.err (!%p1828_p7)
}
   0xf   :  { %s1835_s28 = smov 192   ;;  %s1836_s29 = smov 12  }
  0x10   :  { %28 = dma.hbm_to_vmem [thread:$0]  %s2367_s3, 3072, %s23_s19, [#allocation4], %s1835_s28, %s1835_s28, %s1836_s29  }
  0x11   :  { %1832 = dma.done.wait [#allocation4], 3072  }
  0x12   :  { %1833 = vsyncadd [#allocation4], 4294964224  ;;  %v52_v0 = vlaneseq  ;;  %v1837_v1 = vmov 0.0   ;;  %v1838_v2 = vmov 0   ;;  %v1839_v3 = vmov 1966171168  }
  0x13   :  { %1497 = vmatprep.subr.bf16.mxu1 %v1837_v1  ;;  %39 = vst [vmem:[#allocation2] sm:$0x3] %v1837_v1  ;;  %178 = vmatprep.mubr.bf16.mxu0 %v1838_v2  ;;  %v80_v4 = vunpack.c.l.s4 %v1839_v3  ;;  %vm1840_vm0 = vmmov 0   ;;  %v48_v7 = vld [vmem:[%s2365_s1] sm:$0xff]  ;;  %vm136_vm1 = vcmask 1043456   ;;  %vm132_vm2 = vcmask 64512  }
  0x14   :  { %1499 = vmatprep.mubr.msk.bf16.mxu1 %vm1840_vm0, %v1837_v1  ;;  %v1889_v5 = vshrl.u32 %v52_v0, 7  ;;  %v1673_v8 = vld [vmem:[%s2365_s1 + $0x8] ss:$0 sps:$4 sm:$0xff]   ;;  %v1371_v9 = vcombine.high %v48_v7, %v48_v7  ;;  %v1370_v10 = vcombine.low %v48_v7, %v48_v7  ;;  %v40_v14 = vld [vmem:[%s2364_s0] sm:$0x1] }
  0x15   :  { %v81_v6 = vunpack.c.0.s8 %v80_v4  ;;  %v1897_v11 = vld [vmem:[#allocation3 + $0x4] ss:$12 sps:$4 sm:$0xff]   ;;  %v144_v13 = vsel %vm136_vm1, %v1673_v8, 0  ;;  %v41_v15 = vld [vmem:[%s2364_s0 + $0x1] sm:$0x1] }
  0x16   :  { %1373 = vmatprep.subr.msk.bf16.mxu0 %vm136_vm1, %v1371_v9  ;;  %v138_v16 = vsel %vm136_vm1, %v1370_v10, 0  ;;  %1498 = vmatpush3.bf16.msra.mxu1 %v144_v13  ;;  %v42_v17 = vld [vmem:[%s2364_s0 + $0x2] sm:$0x1]  ;;  %v43_v18 = vld [vmem:[%s2364_s0 + $0x3] sm:$0x1]  ;;  %v75_v19 = vcombine.low %v40_v14, %v41_v15  ;;  %v54_v63 = vsub.s32 0, %v1889_v5 }
  0x17   :  { %v84_v12 = vsub.s32 %v81_v6, %v1889_v5  ;;  %147 = vmatpush1.bf16.msra.mxu0 %v138_v16  ;;  %v44_v20 = vld [vmem:[%s2364_s0 + $0x4] sm:$0x1]  ;;  %v45_v21 = vld [vmem:[%s2364_s0 + $0x5] sm:$0x1]  ;;  %v46_v22 = vld [vmem:[%s2364_s0 + $0x6] sm:$0x1]  ;;  %v76_v23 = vcombine.low %v42_v17, %v43_v18  ;;  %1503 = vmatprep.subr.bf16.mxu1 %v1837_v1 }
  0x18   :  { %493 = vmatprep.subr.bf16.mxu0 %v1897_v11  ;;  %v47_v24 = vld [vmem:[%s2364_s0 + $0x7] sm:$0x1]  ;;  %v77_v25 = vcombine.low %v44_v20, %v45_v21  ;;  %v1926_v35 = vld [vmem:[#allocation3] ss:$12 sps:$4 sm:$0xff]   ;;  %v1928_v36 = vld [vmem:[#allocation3 + $0x8] ss:$12 sps:$4 sm:$0xff]  }
  0x19   :  { %v85_v26 = vrot.slane %v75_v19, %v84_v12  ;;  %v78_v27 = vcombine.low %v46_v22, %v47_v24  ;;  %v92_v28 = vrot.slane %v76_v23, %v84_v12  ;;  %v1930_v38 = vld [vmem:[#allocation3 + $0x1c] ss:$12 sps:$4 sm:$0xff]   ;;  %v1932_v39 = vld [vmem:[#allocation3 + $0x18] ss:$12 sps:$4 sm:$0xff]   ;;  %v1936_v40 = vld [vmem:[#allocation3 + $0x20] ss:$12 sps:$4 sm:$0xff]  }
  0x1a   :  { %v99_v29 = vrot.slane %v77_v25, %v84_v12  ;;  %v1939_v41 = vld [vmem:[#allocation3 + $0x34] ss:$12 sps:$4 sm:$0xff]   ;;  %v1945_v42 = vld [vmem:[#allocation3 + $0x30] ss:$12 sps:$4 sm:$0xff]   ;;  %v1949_v43 = vld [vmem:[#allocation3 + $0x38] ss:$12 sps:$4 sm:$0xff]  }
  0x1b   :  { %v106_v30 = vrot.slane %v78_v27, %v84_v12  ;;  %v107_v31 = vcombine.low %v85_v26, %v92_v28  ;;  %v1952_v44 = vld [vmem:[#allocation3 + $0x4c] ss:$12 sps:$4 sm:$0xff]   ;;  %v1956_v45 = vld [vmem:[#allocation3 + $0x48] ss:$12 sps:$4 sm:$0xff]   ;;  %v1959_v46 = vld [vmem:[#allocation3 + $0x50] ss:$12 sps:$4 sm:$0xff]  }
  0x1c   :  { %v1962_v47 = vld [vmem:[#allocation3 + $0x64] ss:$12 sps:$4 sm:$0xff]   ;;  %v1966_v48 = vld [vmem:[#allocation3 + $0x60] ss:$12 sps:$4 sm:$0xff]   ;;  %v1969_v49 = vld [vmem:[#allocation3 + $0x68] ss:$12 sps:$4 sm:$0xff]  }
  0x1d   :  { %v108_v32 = vcombine.low %v99_v29, %v106_v30  ;;  %v115_v33 = vrot.slane %v107_v31, %v84_v12  ;;  %v1972_v50 = vld [vmem:[#allocation3 + $0x7c] ss:$12 sps:$4 sm:$0xff]   ;;  %v1976_v51 = vld [vmem:[#allocation3 + $0x78] ss:$12 sps:$4 sm:$0xff]   ;;  %v1979_v52 = vld [vmem:[#allocation3 + $0x80] ss:$12 sps:$4 sm:$0xff]  }
  0x1e   :  { %v1982_v53 = vld [vmem:[#allocation3 + $0x94] ss:$12 sps:$4 sm:$0xff]   ;;  %v1986_v54 = vld [vmem:[#allocation3 + $0x90] ss:$12 sps:$4 sm:$0xff]   ;;  %v1989_v55 = vld [vmem:[#allocation3 + $0x98] ss:$12 sps:$4 sm:$0xff]  }
  0x1f   :  { %v122_v34 = vrot.slane %v108_v32, %v84_v12  ;;  %v1992_v56 = vld [vmem:[#allocation3 + $0xac] ss:$12 sps:$4 sm:$0xff]   ;;  %v1996_v57 = vld [vmem:[#allocation3 + $0xa8] ss:$12 sps:$4 sm:$0xff]   ;;  %v1998_v58 = vld [vmem:[#allocation2] sm:$0x3] }
  0x20   :  { %v2001_v59 = vld [vmem:[#allocation3 + $0xb0] ss:$12 sps:$4 sm:$0xff]   ;;  %v348_v60 = vpack.c.bf16 %v1998_v58, %v1998_v58  ;;  %v1841_v61 = vmov 1983009808   ;;  %v62_v0 = vsub.s32 2, %v1889_v5  ;;  %v58_v4 = vsub.s32 1, %v1889_v5 }
  0x21   :  { %v123_v37 = vcombine.low %v115_v33, %v122_v34  ;;  %v240_v62 = vunpack.c.l.s4 %v1841_v61  ;;  %v50_v3 = vld [vmem:[%s2366_s2] sm:$0x7] }
  0x22   :  { %v55_v7 = vrot.slane %v50_v3, %v54_v63  ;;  %v63_v8 = vrot.slane %v50_v3, %v62_v0  ;;  %v59_v9 = vrot.slane %v50_v3, %v58_v4 }
  0x23   :  { %1374 = vmatmul.mubr.msk.bf16.vlgmr.msra.gmra.mrb[0].mxu0 %vm132_vm2, %v123_v37  ;;  %1500 = vmatmul.mubr.msk.bf16.vlgmr.msra.gmra.mrb[0].mxu1 %vm132_vm2, %v123_v37  ;;  %v241_v6 = vunpack.c.0.s8 %v240_v62 }
  0x24   :  { %494 = vmatpush1.bf16.msra.mxu0 %v1926_v35  ;;  %1504 = vmatpush3.bf16.msra.mxu1 %v1928_v36 }
  0x25   :  { %495 = vmatprep.subr.bf16.mxu0 %v1930_v38  ;;  %1505 = vmatprep.subr.bf16.mxu1 %v1837_v1  ;;  %v244_v12 = vsub.s32 %v241_v6, %v1889_v5 }
  0x26   :  { %525 = vmatprep.mubr.bf16.mxu0 %v1838_v2  ;;  %1519 = vmatprep.mubr.msk.bf16.mxu1 %vm1840_vm0, %v1837_v1 }
  0x28   :  { %496 = vmatpush1.bf16.msra.mxu0 %v1932_v39  ;;  %1506 = vmatpush3.bf16.msra.mxu1 %v1936_v40 }
  0x29   :  { %497 = vmatprep.subr.bf16.mxu0 %v1939_v41  ;;  %1507 = vmatprep.subr.bf16.mxu1 %v1837_v1 }
  0x2c   :  { %498 = vmatpush1.bf16.msra.mxu0 %v1945_v42  ;;  %1508 = vmatpush3.bf16.msra.mxu1 %v1949_v43 }
  0x2d   :  { %499 = vmatprep.subr.bf16.mxu0 %v1952_v44  ;;  %1509 = vmatprep.subr.bf16.mxu1 %v1837_v1 }
  0x30   :  { %500 = vmatpush1.bf16.msra.mxu0 %v1956_v45  ;;  %1510 = vmatpush3.bf16.msra.mxu1 %v1959_v46 }
  0x31   :  { %501 = vmatprep.subr.bf16.mxu0 %v1962_v47  ;;  %1511 = vmatprep.subr.bf16.mxu1 %v1837_v1 }
  0x34   :  { %502 = vmatpush1.bf16.msra.mxu0 %v1966_v48  ;;  %1512 = vmatpush3.bf16.msra.mxu1 %v1969_v49 }
  0x35   :  { %503 = vmatprep.subr.bf16.mxu0 %v1972_v50  ;;  %1513 = vmatprep.subr.bf16.mxu1 %v1837_v1 }
  0x38   :  { %504 = vmatpush1.bf16.msra.mxu0 %v1976_v51  ;;  %1514 = vmatpush3.bf16.msra.mxu1 %v1979_v52 }
  0x39   :  { %505 = vmatprep.subr.bf16.mxu0 %v1982_v53  ;;  %1515 = vmatprep.subr.bf16.mxu1 %v1837_v1 }
  0x3c   :  { %506 = vmatpush1.bf16.msra.mxu0 %v1986_v54  ;;  %1516 = vmatpush3.bf16.msra.mxu1 %v1989_v55 }
  0x3d   :  { %507 = vmatprep.subr.bf16.mxu0 %v1992_v56  ;;  %1517 = vmatprep.subr.bf16.mxu1 %v1837_v1 }
  0x40   :  { %508 = vmatpush1.bf16.msra.mxu0 %v1996_v57  ;;  %1518 = vmatpush3.bf16.msra.mxu1 %v2001_v59 }
  0x41   :  { %601 = vmatprep.subr.bf16.mxu0 %v1897_v11  ;;  %1523 = vmatprep.subr.bf16.mxu1 %v1837_v1 }
  0x43   :  { %526 = vmatmul.mubr.bf16.vlgmr.msra.gmra.mrb[4].mxu0 %v348_v60  ;;  %1520 = vmatmul.mubr.bf16.vlgmr.msra.gmra.mrb[4].mxu1 %v348_v60 }
  0x44   :  { %602 = vmatpush1.bf16.msra.mxu0 %v1926_v35  ;;  %1524 = vmatpush3.bf16.msra.mxu1 %v1928_v36 }
  0x45   :  { %603 = vmatprep.subr.bf16.mxu0 %v1930_v38  ;;  %1525 = vmatprep.subr.bf16.mxu1 %v1837_v1 }
  0x46   :  { %633 = vmatprep.mubr.bf16.mxu0 %v1838_v2  ;;  %1539 = vmatprep.mubr.msk.bf16.mxu1 %vm1840_vm0, %v1837_v1 }
  0x48   :  { %604 = vmatpush1.bf16.msra.mxu0 %v1932_v39  ;;  %1526 = vmatpush3.bf16.msra.mxu1 %v1936_v40 }
  0x49   :  { %605 = vmatprep.subr.bf16.mxu0 %v1939_v41  ;;  %1527 = vmatprep.subr.bf16.mxu1 %v1837_v1 }
  0x4c   :  { %606 = vmatpush1.bf16.msra.mxu0 %v1945_v42  ;;  %1528 = vmatpush3.bf16.msra.mxu1 %v1949_v43 }
  0x4d   :  { %607 = vmatprep.subr.bf16.mxu0 %v1952_v44  ;;  %1529 = vmatprep.subr.bf16.mxu1 %v1837_v1 }
  0x50   :  { %608 = vmatpush1.bf16.msra.mxu0 %v1956_v45  ;;  %1530 = vmatpush3.bf16.msra.mxu1 %v1959_v46 }
  0x51   :  { %609 = vmatprep.subr.bf16.mxu0 %v1962_v47  ;;  %1531 = vmatprep.subr.bf16.mxu1 %v1837_v1 }
  0x54   :  { %610 = vmatpush1.bf16.msra.mxu0 %v1966_v48  ;;  %1532 = vmatpush3.bf16.msra.mxu1 %v1969_v49 }
  0x55   :  { %611 = vmatprep.subr.bf16.mxu0 %v1972_v50  ;;  %1533 = vmatprep.subr.bf16.mxu1 %v1837_v1 }
  0x58   :  { %612 = vmatpush1.bf16.msra.mxu0 %v1976_v51  ;;  %1534 = vmatpush3.bf16.msra.mxu1 %v1979_v52 }
  0x59   :  { %613 = vmatprep.subr.bf16.mxu0 %v1982_v53  ;;  %1535 = vmatprep.subr.bf16.mxu1 %v1837_v1 }
  0x5c   :  { %614 = vmatpush1.bf16.msra.mxu0 %v1986_v54  ;;  %1536 = vmatpush3.bf16.msra.mxu1 %v1989_v55 }
  0x5d   :  { %615 = vmatprep.subr.bf16.mxu0 %v1992_v56  ;;  %1537 = vmatprep.subr.bf16.mxu1 %v1837_v1 }
  0x60   :  { %616 = vmatpush1.bf16.msra.mxu0 %v1996_v57  ;;  %1538 = vmatpush3.bf16.msra.mxu1 %v2001_v59 }
  0x61   :  { %710 = vmatprep.subr.bf16.mxu0 %v1897_v11  ;;  %1543 = vmatprep.subr.bf16.mxu1 %v1837_v1 }
  0xf6   :  { %v180_v10 = vpop.f32.mrb[0].mxu0  ;;  %v223_v13 = vpop.f32.mrb[0].mxu1 }
  0xf7   :  { %v181_v14 = vadd.f32 %v180_v10, %v55_v7  ;;  %v182_v15 = vpop.f32.mrb[1].mxu0  ;;  %v224_v16 = vadd.f32 %v223_v13, %v63_v8  ;;  %v1501_v17 = vpop.f32.mrb[1].mxu1 }
  0xf8   :  { %v183_v18 = vadd.f32 %v182_v15, %v59_v9  ;;  %v184_v19 = vpop.f32.mrb[2].mxu0  ;;  %v226_v20 = vpop.f32.mrb[2].mxu1 }
  0xf9   :  { %v238_v21 = vcombine.high %v224_v16, %v224_v16  ;;  %v185_v22 = vadd.f32 %v184_v19, %v55_v7  ;;  %v186_v23 = vpop.f32.mrb[3].mxu0  ;;  %v227_v24 = vadd.f32 %v226_v20, %v63_v8  ;;  %v1502_v25 = vpop.f32.mrb[3].mxu1  ;;  %v259_v28 = vrot.slane %v224_v16, %v244_v12  ;;  %v346_v16 = vld [vmem:[%s2368_s4] sm:$0x7] }
  0xfa   :  { %v236_v26 = vcombine.low %v181_v14, %v183_v18  ;;  %v237_v27 = vcombine.high %v181_v14, %v183_v18  ;;  %v187_v29 = vadd.f32 %v186_v23, %v59_v9  ;;  %v2072_v17 = vrot.slane %v346_v16, %v54_v63 }
  0xfb   :  { %v266_v30 = vrot.slane %v238_v21, %v244_v12  ;;  %v273_v31 = vcombine.high %v227_v24, %v227_v24  ;;  %v294_v32 = vrot.slane %v227_v24, %v244_v12  ;;  %v2074_v18 = vrot.slane %v346_v16, %v58_v4 }
  0xfc   :  { %v245_v33 = vrot.slane %v236_v26, %v244_v12  ;;  %v252_v34 = vrot.slane %v237_v27, %v244_v12  ;;  %v271_v37 = vcombine.low %v185_v22, %v187_v29  ;;  %v272_v60 = vcombine.high %v185_v22, %v187_v29 }
  0xfd   :  { %v301_v61 = vrot.slane %v273_v31, %v244_v12 }
  0xfe   :  { %v267_v62 = vcombine.low %v245_v33, %v259_v28  ;;  %v2055_v3 = vcombine.high %v245_v33, %v259_v28  ;;  %v2057_v6 = vcombine.low %v252_v34, %v266_v30  ;;  %v2059_v7 = vcombine.high %v252_v34, %v266_v30 }
  0xff   :  { %v280_v8 = vrot.slane %v271_v37, %v244_v12  ;;  %v287_v10 = vrot.slane %v272_v60, %v244_v12  ;;  %v2080_v33 = vrot.slane %v346_v16, %v62_v0 }
 0x100   :  { %v581_v24 = vrot.slane %v267_v62, 2 }
 0x101   :  { %v2061_v13 = vcombine.low %v280_v8, %v294_v32  ;;  %v2063_v9 = vcombine.high %v280_v8, %v294_v32  ;;  %v2065_v14 = vcombine.low %v287_v10, %v301_v61  ;;  %v2067_v15 = vcombine.high %v287_v10, %v301_v61 }
 0x102   :  { %v591_v10 = vrot.slane %v267_v62, 4 }
 0x116   :  { %v527_v19 = vpop.f32.mrb[4].mxu0  ;;  %v568_v20 = vpop.f32.mrb[4].mxu1 }
 0x117   :  { %v528_v12 = vadd.f32 %v527_v19, %v2072_v17  ;;  %v529_v21 = vpop.f32.mrb[5].mxu0  ;;  %v1521_v22 = vpop.f32.mrb[5].mxu1  ;;  %v569_v60 = vadd.f32 %v568_v20, %v2080_v33 }
 0x118   :  { %v530_v23 = vadd.f32 %v529_v21, %v2074_v18  ;;  %v531_v25 = vpop.f32.mrb[6].mxu0  ;;  %v571_v26 = vpop.f32.mrb[6].mxu1 }
 0x119   :  { %v574_v27 = vadd.f32 %v528_v12, %v267_v62  ;;  %v532_v28 = vpop.f32.mrb[7].mxu0  ;;  %v1522_v29 = vpop.f32.mrb[7].mxu1 }
 0x11a   :  { %v583_v30 = vadd.f32 %v581_v24, %v530_v23 }
 0x11b   :  { %v1400_v31 = vmul.f32 -1.442695, %v574_v27  ;;  %v689_v27 = vrot.slane %v2055_v3, 2 }
 0x11c   :  { %v1401_v63 = vmul.f32 -1.442695, %v583_v30 }
 0x11d   :  { %1706 = vpow2.f32 %v1400_v31 }
 0x11e   :  { %1708 = vpow2.f32 %v1401_v63 }
 0x127   :  { %v1707_v4 = vpop.eup %1706 }
 0x128   :  { %v578_v32 = vadd.f32 1.0, %v1707_v4  ;;  %v1709_v34 = vpop.eup %1708 }
 0x129   :  { %v587_v37 = vadd.f32 1.0, %v1709_v34 }
 0x12a   :  { %1710 = vrcp.f32 %v578_v32 }
 0x12b   :  { %1712 = vrcp.f32 %v587_v37 }
 0x134   :  { %v1711_v61 = vpop.eup %1710 }
 0x135   :  { %v590_v8 = vmul.f32 %v1711_v61, %v569_v60  ;;  %v1713_v12 = vpop.eup %1712 }
 0x136   :  { %v595_v21 = vsub.f32 1.0, %v1713_v12  ;;  %v597_v24 = vmul.f32 %v1713_v12, %v1998_v58 }
 0x137   :  { %v593_v19 = vadd.f32 %v591_v10, %v590_v8 }
 0x139   :  { %1714 = vtanh.f32 %v593_v19 }
 0x143   :  { %v1715_v22 = vpop.eup %1714 }
 0x144   :  { %v596_v23 = vmul.f32 %v1715_v22, %v595_v21  ;;  %v699_v21 = vrot.slane %v2055_v3, 4 }
 0x146   :  { %v2084_v25 = vadd.f32 %v597_v24, %v596_v23 }
 0x148   :  { %v599_v5 = vpack.c.bf16 %v2084_v25, %v2084_v25 }
 0x14a   :  { %600 = vst [vmem:[%s2369_s5] sm:$0x1] %v599_v5  ;;  %634 = vmatmul.mubr.bf16.vlgmr.msra.gmra.mrb[8].mxu0 %v599_v5  ;;  %1540 = vmatmul.mubr.bf16.vlgmr.msra.gmra.mrb[8].mxu1 %v599_v5 }
 0x14b   :  { %711 = vmatpush1.bf16.msra.mxu0 %v1926_v35  ;;  %1544 = vmatpush3.bf16.msra.mxu1 %v1928_v36 }
 0x14c   :  { %712 = vmatprep.subr.bf16.mxu0 %v1930_v38  ;;  %1545 = vmatprep.subr.bf16.mxu1 %v1837_v1 }
 0x14d   :  { %742 = vmatprep.mubr.bf16.mxu0 %v1838_v2  ;;  %1559 = vmatprep.mubr.msk.bf16.mxu1 %vm1840_vm0, %v1837_v1 }
 0x14f   :  { %713 = vmatpush1.bf16.msra.mxu0 %v1932_v39  ;;  %1546 = vmatpush3.bf16.msra.mxu1 %v1936_v40 }
 0x150   :  { %714 = vmatprep.subr.bf16.mxu0 %v1939_v41  ;;  %1547 = vmatprep.subr.bf16.mxu1 %v1837_v1 }
 0x153   :  { %715 = vmatpush1.bf16.msra.mxu0 %v1945_v42  ;;  %1548 = vmatpush3.bf16.msra.mxu1 %v1949_v43 }
 0x154   :  { %716 = vmatprep.subr.bf16.mxu0 %v1952_v44  ;;  %1549 = vmatprep.subr.bf16.mxu1 %v1837_v1 }
 0x157   :  { %717 = vmatpush1.bf16.msra.mxu0 %v1956_v45  ;;  %1550 = vmatpush3.bf16.msra.mxu1 %v1959_v46 }
 0x158   :  { %718 = vmatprep.subr.bf16.mxu0 %v1962_v47  ;;  %1551 = vmatprep.subr.bf16.mxu1 %v1837_v1 }
 0x15b   :  { %719 = vmatpush1.bf16.msra.mxu0 %v1966_v48  ;;  %1552 = vmatpush3.bf16.msra.mxu1 %v1969_v49 }
 0x15c   :  { %720 = vmatprep.subr.bf16.mxu0 %v1972_v50  ;;  %1553 = vmatprep.subr.bf16.mxu1 %v1837_v1 }
 0x15f   :  { %721 = vmatpush1.bf16.msra.mxu0 %v1976_v51  ;;  %1554 = vmatpush3.bf16.msra.mxu1 %v1979_v52 }
 0x160   :  { %722 = vmatprep.subr.bf16.mxu0 %v1982_v53  ;;  %1555 = vmatprep.subr.bf16.mxu1 %v1837_v1 }
 0x163   :  { %723 = vmatpush1.bf16.msra.mxu0 %v1986_v54  ;;  %1556 = vmatpush3.bf16.msra.mxu1 %v1989_v55 }
 0x164   :  { %724 = vmatprep.subr.bf16.mxu0 %v1992_v56  ;;  %1557 = vmatprep.subr.bf16.mxu1 %v1837_v1 }
 0x167   :  { %725 = vmatpush1.bf16.msra.mxu0 %v1996_v57  ;;  %1558 = vmatpush3.bf16.msra.mxu1 %v2001_v59 }
 0x168   :  { %819 = vmatprep.subr.bf16.mxu0 %v1897_v11  ;;  %1563 = vmatprep.subr.bf16.mxu1 %v1837_v1 }
 0x21d   :  { %v635_v58 = vpop.f32.mrb[8].mxu0  ;;  %v676_v0 = vpop.f32.mrb[8].mxu1 }
 0x21e   :  { %v636_v62 = vadd.f32 %v635_v58, %v2072_v17  ;;  %v637_v16 = vpop.f32.mrb[9].mxu0  ;;  %v1541_v20 = vpop.f32.mrb[9].mxu1  ;;  %v677_v10 = vadd.f32 %v676_v0, %v2080_v33 }
 0x21f   :  { %v638_v26 = vadd.f32 %v637_v16, %v2074_v18  ;;  %v639_v28 = vpop.f32.mrb[10].mxu0  ;;  %v679_v29 = vpop.f32.mrb[10].mxu1 }
 0x220   :  { %v682_v30 = vadd.f32 %v636_v62, %v2055_v3  ;;  %v640_v31 = vpop.f32.mrb[11].mxu0  ;;  %v1542_v63 = vpop.f32.mrb[11].mxu1  ;;  %v798_v29 = vrot.slane %v2057_v6, 2 }
 0x221   :  { %v691_v4 = vadd.f32 %v689_v27, %v638_v26 }
 0x222   :  { %v1402_v32 = vmul.f32 -1.442695, %v682_v30 }
 0x223   :  { %v1403_v34 = vmul.f32 -1.442695, %v691_v4 }
 0x224   :  { %1716 = vpow2.f32 %v1402_v32 }
 0x225   :  { %1718 = vpow2.f32 %v1403_v34 }
 0x22e   :  { %v1717_v37 = vpop.eup %1716 }
 0x22f   :  { %v686_v60 = vadd.f32 1.0, %v1717_v37  ;;  %v1719_v61 = vpop.eup %1718 }
 0x230   :  { %v695_v8 = vadd.f32 1.0, %v1719_v61 }
 0x231   :  { %1720 = vrcp.f32 %v686_v60 }
 0x232   :  { %1722 = vrcp.f32 %v695_v8 }
 0x23b   :  { %v1721_v19 = vpop.eup %1720 }
 0x23c   :  { %v698_v12 = vmul.f32 %v1721_v19, %v677_v10  ;;  %v1723_v23 = vpop.eup %1722 }
 0x23d   :  { %v703_v24 = vsub.f32 1.0, %v1723_v23  ;;  %v705_v62 = vmul.f32 %v1723_v23, %v2084_v25  ;;  %v808_v23 = vrot.slane %v2057_v6, 4 }
 0x23e   :  { %v701_v22 = vadd.f32 %v699_v21, %v698_v12 }
 0x240   :  { %1724 = vtanh.f32 %v701_v22 }
 0x24a   :  { %v1725_v5 = vpop.eup %1724 }
 0x24b   :  { %v704_v58 = vmul.f32 %v1725_v5, %v703_v24 }
 0x24d   :  { %v2133_v16 = vadd.f32 %v705_v62, %v704_v58 }
 0x24f   :  { %v707_v20 = vpack.c.bf16 %v2133_v16, %v2133_v16 }
 0x251   :  { %1404 = vst [vmem:[%s2369_s5 + $0x1] sm:$0x1] %v707_v20  ;;  %743 = vmatmul.mubr.bf16.vlgmr.msra.gmra.mrb[12].mxu0 %v707_v20  ;;  %1560 = vmatmul.mubr.bf16.vlgmr.msra.gmra.mrb[12].mxu1 %v707_v20 }
 0x252   :  { %820 = vmatpush1.bf16.msra.mxu0 %v1926_v35  ;;  %1564 = vmatpush3.bf16.msra.mxu1 %v1928_v36 }
 0x253   :  { %821 = vmatprep.subr.bf16.mxu0 %v1930_v38  ;;  %1565 = vmatprep.subr.bf16.mxu1 %v1837_v1 }
 0x254   :  { %851 = vmatprep.mubr.bf16.mxu0 %v1838_v2  ;;  %1579 = vmatprep.mubr.msk.bf16.mxu1 %vm1840_vm0, %v1837_v1 }
 0x256   :  { %822 = vmatpush1.bf16.msra.mxu0 %v1932_v39  ;;  %1566 = vmatpush3.bf16.msra.mxu1 %v1936_v40 }
 0x257   :  { %823 = vmatprep.subr.bf16.mxu0 %v1939_v41  ;;  %1567 = vmatprep.subr.bf16.mxu1 %v1837_v1 }
 0x25a   :  { %824 = vmatpush1.bf16.msra.mxu0 %v1945_v42  ;;  %1568 = vmatpush3.bf16.msra.mxu1 %v1949_v43 }
 0x25b   :  { %825 = vmatprep.subr.bf16.mxu0 %v1952_v44  ;;  %1569 = vmatprep.subr.bf16.mxu1 %v1837_v1 }
 0x25e   :  { %826 = vmatpush1.bf16.msra.mxu0 %v1956_v45  ;;  %1570 = vmatpush3.bf16.msra.mxu1 %v1959_v46 }
 0x25f   :  { %827 = vmatprep.subr.bf16.mxu0 %v1962_v47  ;;  %1571 = vmatprep.subr.bf16.mxu1 %v1837_v1 }
 0x262   :  { %828 = vmatpush1.bf16.msra.mxu0 %v1966_v48  ;;  %1572 = vmatpush3.bf16.msra.mxu1 %v1969_v49 }
 0x263   :  { %829 = vmatprep.subr.bf16.mxu0 %v1972_v50  ;;  %1573 = vmatprep.subr.bf16.mxu1 %v1837_v1 }
 0x266   :  { %830 = vmatpush1.bf16.msra.mxu0 %v1976_v51  ;;  %1574 = vmatpush3.bf16.msra.mxu1 %v1979_v52 }
 0x267   :  { %831 = vmatprep.subr.bf16.mxu0 %v1982_v53  ;;  %1575 = vmatprep.subr.bf16.mxu1 %v1837_v1 }
 0x26a   :  { %832 = vmatpush1.bf16.msra.mxu0 %v1986_v54  ;;  %1576 = vmatpush3.bf16.msra.mxu1 %v1989_v55 }
 0x26b   :  { %833 = vmatprep.subr.bf16.mxu0 %v1992_v56  ;;  %1577 = vmatprep.subr.bf16.mxu1 %v1837_v1 }
 0x26e   :  { %834 = vmatpush1.bf16.msra.mxu0 %v1996_v57  ;;  %1578 = vmatpush3.bf16.msra.mxu1 %v2001_v59 }
 0x26f   :  { %928 = vmatprep.subr.bf16.mxu0 %v1897_v11  ;;  %1583 = vmatprep.subr.bf16.mxu1 %v1837_v1 }
 0x324   :  { %v744_v3 = vpop.f32.mrb[12].mxu0  ;;  %v785_v25 = vpop.f32.mrb[12].mxu1 }
 0x325   :  { %v745_v0 = vadd.f32 %v744_v3, %v2072_v17  ;;  %v746_v26 = vpop.f32.mrb[13].mxu0  ;;  %v1561_v27 = vpop.f32.mrb[13].mxu1  ;;  %v786_v12 = vadd.f32 %v785_v25, %v2080_v33 }
 0x326   :  { %v747_v28 = vadd.f32 %v746_v26, %v2074_v18  ;;  %v748_v30 = vpop.f32.mrb[14].mxu0  ;;  %v788_v31 = vpop.f32.mrb[14].mxu1 }
 0x327   :  { %v791_v63 = vadd.f32 %v745_v0, %v2057_v6  ;;  %v749_v4 = vpop.f32.mrb[15].mxu0  ;;  %v1562_v32 = vpop.f32.mrb[15].mxu1  ;;  %v907_v30 = vrot.slane %v2059_v7, 2 }
 0x328   :  { %v800_v34 = vadd.f32 %v798_v29, %v747_v28 }
 0x329   :  { %v1405_v37 = vmul.f32 -1.442695, %v791_v63 }
 0x32a   :  { %v1406_v60 = vmul.f32 -1.442695, %v800_v34 }
 0x32b   :  { %1726 = vpow2.f32 %v1405_v37 }
 0x32c   :  { %1728 = vpow2.f32 %v1406_v60 }
 0x335   :  { %v1727_v61 = vpop.eup %1726 }
 0x336   :  { %v795_v8 = vadd.f32 1.0, %v1727_v61  ;;  %v1729_v10 = vpop.eup %1728 }
 0x337   :  { %v804_v19 = vadd.f32 1.0, %v1729_v10 }
 0x338   :  { %1730 = vrcp.f32 %v795_v8 }
 0x339   :  { %1732 = vrcp.f32 %v804_v19 }
 0x342   :  { %v1731_v21 = vpop.eup %1730 }
 0x343   :  { %v807_v22 = vmul.f32 %v1731_v21, %v786_v12  ;;  %v1733_v5 = vpop.eup %1732 }
 0x344   :  { %v812_v58 = vsub.f32 1.0, %v1733_v5  ;;  %v814_v3 = vmul.f32 %v1733_v5, %v2133_v16 }
 0x345   :  { %v810_v24 = vadd.f32 %v808_v23, %v807_v22 }
 0x347   :  { %1734 = vtanh.f32 %v810_v24  ;;  %v917_v24 = vrot.slane %v2059_v7, 4 }
 0x351   :  { %v1735_v62 = vpop.eup %1734 }
 0x352   :  { %v813_v20 = vmul.f32 %v1735_v62, %v812_v58 }
 0x354   :  { %v2182_v0 = vadd.f32 %v814_v3, %v813_v20 }
 0x356   :  { %v816_v26 = vpack.c.bf16 %v2182_v0, %v2182_v0 }
 0x358   :  { %1407 = vst [vmem:[%s2369_s5 + $0x2] sm:$0x1] %v816_v26  ;;  %852 = vmatmul.mubr.bf16.vlgmr.msra.gmra.mrb[16].mxu0 %v816_v26  ;;  %1580 = vmatmul.mubr.bf16.vlgmr.msra.gmra.mrb[16].mxu1 %v816_v26 }
 0x359   :  { %929 = vmatpush1.bf16.msra.mxu0 %v1926_v35  ;;  %1584 = vmatpush3.bf16.msra.mxu1 %v1928_v36 }
 0x35a   :  { %930 = vmatprep.subr.bf16.mxu0 %v1930_v38  ;;  %1585 = vmatprep.subr.bf16.mxu1 %v1837_v1 }
 0x35b   :  { %960 = vmatprep.mubr.bf16.mxu0 %v1838_v2  ;;  %1599 = vmatprep.mubr.msk.bf16.mxu1 %vm1840_vm0, %v1837_v1 }
 0x35d   :  { %931 = vmatpush1.bf16.msra.mxu0 %v1932_v39  ;;  %1586 = vmatpush3.bf16.msra.mxu1 %v1936_v40 }
 0x35e   :  { %932 = vmatprep.subr.bf16.mxu0 %v1939_v41  ;;  %1587 = vmatprep.subr.bf16.mxu1 %v1837_v1 }
 0x361   :  { %933 = vmatpush1.bf16.msra.mxu0 %v1945_v42  ;;  %1588 = vmatpush3.bf16.msra.mxu1 %v1949_v43 }
 0x362   :  { %934 = vmatprep.subr.bf16.mxu0 %v1952_v44  ;;  %1589 = vmatprep.subr.bf16.mxu1 %v1837_v1 }
 0x365   :  { %935 = vmatpush1.bf16.msra.mxu0 %v1956_v45  ;;  %1590 = vmatpush3.bf16.msra.mxu1 %v1959_v46 }
 0x366   :  { %936 = vmatprep.subr.bf16.mxu0 %v1962_v47  ;;  %1591 = vmatprep.subr.bf16.mxu1 %v1837_v1 }
 0x369   :  { %937 = vmatpush1.bf16.msra.mxu0 %v1966_v48  ;;  %1592 = vmatpush3.bf16.msra.mxu1 %v1969_v49 }
 0x36a   :  { %938 = vmatprep.subr.bf16.mxu0 %v1972_v50  ;;  %1593 = vmatprep.subr.bf16.mxu1 %v1837_v1 }
 0x36d   :  { %939 = vmatpush1.bf16.msra.mxu0 %v1976_v51  ;;  %1594 = vmatpush3.bf16.msra.mxu1 %v1979_v52 }
 0x36e   :  { %940 = vmatprep.subr.bf16.mxu0 %v1982_v53  ;;  %1595 = vmatprep.subr.bf16.mxu1 %v1837_v1 }
 0x371   :  { %941 = vmatpush1.bf16.msra.mxu0 %v1986_v54  ;;  %1596 = vmatpush3.bf16.msra.mxu1 %v1989_v55 }
 0x372   :  { %942 = vmatprep.subr.bf16.mxu0 %v1992_v56  ;;  %1597 = vmatprep.subr.bf16.mxu1 %v1837_v1 }
 0x375   :  { %943 = vmatpush1.bf16.msra.mxu0 %v1996_v57  ;;  %1598 = vmatpush3.bf16.msra.mxu1 %v2001_v59 }
 0x376   :  { %1037 = vmatprep.subr.bf16.mxu0 %v1897_v11  ;;  %1603 = vmatprep.subr.bf16.mxu1 %v1837_v1 }
 0x42b   :  { %v853_v6 = vpop.f32.mrb[16].mxu0  ;;  %v894_v16 = vpop.f32.mrb[16].mxu1 }
 0x42c   :  { %v854_v25 = vadd.f32 %v853_v6, %v2072_v17  ;;  %v855_v27 = vpop.f32.mrb[17].mxu0  ;;  %v1581_v28 = vpop.f32.mrb[17].mxu1  ;;  %v895_v21 = vadd.f32 %v894_v16, %v2080_v33 }
 0x42d   :  { %v856_v29 = vadd.f32 %v855_v27, %v2074_v18  ;;  %v857_v31 = vpop.f32.mrb[18].mxu0  ;;  %v897_v63 = vpop.f32.mrb[18].mxu1 }
 0x42e   :  { %v900_v4 = vadd.f32 %v854_v25, %v2059_v7  ;;  %v858_v32 = vpop.f32.mrb[19].mxu0  ;;  %v1582_v34 = vpop.f32.mrb[19].mxu1 }
 0x42f   :  { %v909_v37 = vadd.f32 %v907_v30, %v856_v29  ;;  %v1016_v30 = vrot.slane %v2061_v13, 2 }
 0x430   :  { %v1408_v60 = vmul.f32 -1.442695, %v900_v4 }
 0x431   :  { %v1409_v61 = vmul.f32 -1.442695, %v909_v37 }
 0x432   :  { %1736 = vpow2.f32 %v1408_v60 }
 0x433   :  { %1738 = vpow2.f32 %v1409_v61 }
 0x43c   :  { %v1737_v8 = vpop.eup %1736 }
 0x43d   :  { %v904_v10 = vadd.f32 1.0, %v1737_v8  ;;  %v1739_v19 = vpop.eup %1738 }
 0x43e   :  { %v913_v12 = vadd.f32 1.0, %v1739_v19 }
 0x43f   :  { %1740 = vrcp.f32 %v904_v10 }
 0x440   :  { %1742 = vrcp.f32 %v913_v12 }
 0x449   :  { %v1741_v22 = vpop.eup %1740 }
 0x44a   :  { %v916_v23 = vmul.f32 %v1741_v22, %v895_v21  ;;  %v1743_v58 = vpop.eup %1742 }
 0x44b   :  { %v921_v62 = vsub.f32 1.0, %v1743_v58  ;;  %v923_v26 = vmul.f32 %v1743_v58, %v2182_v0 }
 0x44c   :  { %v919_v5 = vadd.f32 %v917_v24, %v916_v23  ;;  %v1026_v23 = vrot.slane %v2061_v13, 4 }
 0x44e   :  { %1744 = vtanh.f32 %v919_v5 }
 0x458   :  { %v1745_v20 = vpop.eup %1744 }
 0x459   :  { %v922_v3 = vmul.f32 %v1745_v20, %v921_v62 }
 0x45b   :  { %v2231_v6 = vadd.f32 %v923_v26, %v922_v3 }
 0x45d   :  { %v925_v25 = vpack.c.bf16 %v2231_v6, %v2231_v6 }
 0x45f   :  { %1410 = vst [vmem:[%s2369_s5 + $0x3] sm:$0x1] %v925_v25  ;;  %961 = vmatmul.mubr.bf16.vlgmr.msra.gmra.mrb[20].mxu0 %v925_v25  ;;  %1600 = vmatmul.mubr.bf16.vlgmr.msra.gmra.mrb[20].mxu1 %v925_v25 }
 0x460   :  { %1038 = vmatpush1.bf16.msra.mxu0 %v1926_v35  ;;  %1604 = vmatpush3.bf16.msra.mxu1 %v1928_v36 }
 0x461   :  { %1039 = vmatprep.subr.bf16.mxu0 %v1930_v38  ;;  %1605 = vmatprep.subr.bf16.mxu1 %v1837_v1 }
 0x462   :  { %1069 = vmatprep.mubr.bf16.mxu0 %v1838_v2  ;;  %1619 = vmatprep.mubr.msk.bf16.mxu1 %vm1840_vm0, %v1837_v1 }
 0x464   :  { %1040 = vmatpush1.bf16.msra.mxu0 %v1932_v39  ;;  %1606 = vmatpush3.bf16.msra.mxu1 %v1936_v40 }
 0x465   :  { %1041 = vmatprep.subr.bf16.mxu0 %v1939_v41  ;;  %1607 = vmatprep.subr.bf16.mxu1 %v1837_v1 }
 0x468   :  { %1042 = vmatpush1.bf16.msra.mxu0 %v1945_v42  ;;  %1608 = vmatpush3.bf16.msra.mxu1 %v1949_v43 }
 0x469   :  { %1043 = vmatprep.subr.bf16.mxu0 %v1952_v44  ;;  %1609 = vmatprep.subr.bf16.mxu1 %v1837_v1 }
 0x46c   :  { %1044 = vmatpush1.bf16.msra.mxu0 %v1956_v45  ;;  %1610 = vmatpush3.bf16.msra.mxu1 %v1959_v46 }
 0x46d   :  { %1045 = vmatprep.subr.bf16.mxu0 %v1962_v47  ;;  %1611 = vmatprep.subr.bf16.mxu1 %v1837_v1 }
 0x470   :  { %1046 = vmatpush1.bf16.msra.mxu0 %v1966_v48  ;;  %1612 = vmatpush3.bf16.msra.mxu1 %v1969_v49 }
 0x471   :  { %1047 = vmatprep.subr.bf16.mxu0 %v1972_v50  ;;  %1613 = vmatprep.subr.bf16.mxu1 %v1837_v1 }
 0x474   :  { %1048 = vmatpush1.bf16.msra.mxu0 %v1976_v51  ;;  %1614 = vmatpush3.bf16.msra.mxu1 %v1979_v52 }
 0x475   :  { %1049 = vmatprep.subr.bf16.mxu0 %v1982_v53  ;;  %1615 = vmatprep.subr.bf16.mxu1 %v1837_v1 }
 0x478   :  { %1050 = vmatpush1.bf16.msra.mxu0 %v1986_v54  ;;  %1616 = vmatpush3.bf16.msra.mxu1 %v1989_v55 }
 0x479   :  { %1051 = vmatprep.subr.bf16.mxu0 %v1992_v56  ;;  %1617 = vmatprep.subr.bf16.mxu1 %v1837_v1 }
 0x47c   :  { %1052 = vmatpush1.bf16.msra.mxu0 %v1996_v57  ;;  %1618 = vmatpush3.bf16.msra.mxu1 %v2001_v59 }
 0x47d   :  { %1146 = vmatprep.subr.bf16.mxu0 %v1897_v11  ;;  %1623 = vmatprep.subr.bf16.mxu1 %v1837_v1 }
 0x532   :  { %v962_v7 = vpop.f32.mrb[20].mxu0  ;;  %v1003_v0 = vpop.f32.mrb[20].mxu1 }
 0x533   :  { %v963_v16 = vadd.f32 %v962_v7, %v2072_v17  ;;  %v964_v27 = vpop.f32.mrb[21].mxu0  ;;  %v1601_v28 = vpop.f32.mrb[21].mxu1  ;;  %v1004_v12 = vadd.f32 %v1003_v0, %v2080_v33 }
 0x534   :  { %v965_v29 = vadd.f32 %v964_v27, %v2074_v18  ;;  %v966_v31 = vpop.f32.mrb[22].mxu0  ;;  %v1006_v63 = vpop.f32.mrb[22].mxu1 }
 0x535   :  { %v1009_v4 = vadd.f32 %v963_v16, %v2061_v13  ;;  %v967_v32 = vpop.f32.mrb[23].mxu0  ;;  %v1602_v34 = vpop.f32.mrb[23].mxu1  ;;  %v1135_v13 = vrot.slane %v2063_v9, 4  ;;  %v1788_v31 = vld [vmem:[#allocation3 + $0x8] ss:$12 sps:$4 sm:$0xff]  }
 0x536   :  { %v1018_v37 = vadd.f32 %v1016_v30, %v965_v29  ;;  %v1789_v63 = vld [vmem:[#allocation3 + $0x1c] ss:$12 sps:$4 sm:$0xff]   ;;  %v1791_v32 = vld [vmem:[#allocation3 + $0x20] ss:$12 sps:$4 sm:$0xff]  }
 0x537   :  { %v1411_v11 = vmul.f32 -1.442695, %v1009_v4  ;;  %v1790_v4 = vld [vmem:[#allocation3 + $0x18] ss:$12 sps:$4 sm:$0xff]   ;;  %v1792_v34 = vld [vmem:[#allocation3 + $0x34] ss:$12 sps:$4 sm:$0xff]  }
 0x538   :  { %v1412_v60 = vmul.f32 -1.442695, %v1018_v37  ;;  %v1793_v37 = vld [vmem:[#allocation3 + $0x30] ss:$12 sps:$4 sm:$0xff]  }
 0x539   :  { %1746 = vpow2.f32 %v1411_v11  ;;  %v1794_v11 = vld [vmem:[#allocation3 + $0x38] ss:$12 sps:$4 sm:$0xff]  }
 0x53a   :  { %1748 = vpow2.f32 %v1412_v60  ;;  %v1795_v60 = vld [vmem:[#allocation3 + $0x4c] ss:$12 sps:$4 sm:$0xff]  }
 0x543   :  { %v1747_v61 = vpop.eup %1746 }
 0x544   :  { %v1013_v8 = vadd.f32 1.0, %v1747_v61  ;;  %v1749_v10 = vpop.eup %1748  ;;  %v1797_v61 = vld [vmem:[#allocation3 + $0x50] ss:$12 sps:$4 sm:$0xff]  }
 0x545   :  { %v1022_v19 = vadd.f32 1.0, %v1749_v10  ;;  %v1799_v10 = vld [vmem:[#allocation3 + $0x60] ss:$12 sps:$4 sm:$0xff]  }
 0x546   :  { %1750 = vrcp.f32 %v1013_v8  ;;  %v1798_v8 = vld [vmem:[#allocation3 + $0x64] ss:$12 sps:$4 sm:$0xff]  }
 0x547   :  { %1752 = vrcp.f32 %v1022_v19  ;;  %v1800_v19 = vld [vmem:[#allocation3 + $0x68] ss:$12 sps:$4 sm:$0xff]  }
 0x550   :  { %v1751_v21 = vpop.eup %1750 }
 0x551   :  { %v1025_v22 = vmul.f32 %v1751_v21, %v1004_v12  ;;  %v1753_v5 = vpop.eup %1752  ;;  %v1801_v12 = vld [vmem:[#allocation3 + $0x7c] ss:$12 sps:$4 sm:$0xff]   ;;  %v1802_v21 = vld [vmem:[#allocation3 + $0x78] ss:$12 sps:$4 sm:$0xff]  }
 0x552   :  { %v1030_v58 = vsub.f32 1.0, %v1753_v5  ;;  %v1032_v3 = vmul.f32 %v1753_v5, %v2231_v6  ;;  %v1806_v5 = vld [vmem:[#allocation3 + $0x98] ss:$12 sps:$4 sm:$0xff]  }
 0x553   :  { %v1028_v24 = vadd.f32 %v1026_v23, %v1025_v22  ;;  %v1803_v22 = vld [vmem:[#allocation3 + $0x80] ss:$12 sps:$4 sm:$0xff]  }
 0x554   :  { %v1804_v23 = vld [vmem:[#allocation3 + $0x94] ss:$12 sps:$4 sm:$0xff]  }
 0x555   :  { %1754 = vtanh.f32 %v1028_v24  ;;  %v1805_v24 = vld [vmem:[#allocation3 + $0x90] ss:$12 sps:$4 sm:$0xff]  }
 0x55f   :  { %v1755_v62 = vpop.eup %1754 }
 0x560   :  { %v1031_v20 = vmul.f32 %v1755_v62, %v1030_v58  ;;  %v1807_v58 = vld [vmem:[#allocation3 + $0xac] ss:$12 sps:$4 sm:$0xff]   ;;  %v1808_v62 = vld [vmem:[#allocation3 + $0xa8] ss:$12 sps:$4 sm:$0xff]  }
 0x562   :  { %v2280_v26 = vadd.f32 %v1032_v3, %v1031_v20  ;;  %v1809_v20 = vld [vmem:[#allocation3 + $0xb0] ss:$12 sps:$4 sm:$0xff]  }
 0x564   :  { %v1034_v25 = vpack.c.bf16 %v2280_v26, %v2280_v26 }
 0x566   :  { %1413 = vst [vmem:[%s2369_s5 + $0x4] sm:$0x1] %v1034_v25  ;;  %1070 = vmatmul.mubr.bf16.vlgmr.msra.gmra.mrb[24].mxu0 %v1034_v25  ;;  %1620 = vmatmul.mubr.bf16.vlgmr.msra.gmra.mrb[24].mxu1 %v1034_v25 }
 0x567   :  { %1147 = vmatpush1.bf16.msra.mxu0 %v1926_v35  ;;  %1624 = vmatpush3.bf16.msra.mxu1 %v1928_v36  ;;  %v1786_v35 = vld [vmem:[#allocation3 + $0x4] ss:$12 sps:$4 sm:$0xff]  }
 0x568   :  { %1148 = vmatprep.subr.bf16.mxu0 %v1930_v38  ;;  %1625 = vmatprep.subr.bf16.mxu1 %v1837_v1 }
 0x569   :  { %1178 = vmatprep.mubr.bf16.mxu0 %v1838_v2  ;;  %1639 = vmatprep.mubr.msk.bf16.mxu1 %vm1840_vm0, %v1837_v1 }
 0x56b   :  { %1149 = vmatpush1.bf16.msra.mxu0 %v1932_v39  ;;  %1626 = vmatpush3.bf16.msra.mxu1 %v1936_v40 }
 0x56c   :  { %1150 = vmatprep.subr.bf16.mxu0 %v1939_v41  ;;  %1627 = vmatprep.subr.bf16.mxu1 %v1837_v1 }
 0x56f   :  { %1151 = vmatpush1.bf16.msra.mxu0 %v1945_v42  ;;  %1628 = vmatpush3.bf16.msra.mxu1 %v1949_v43  ;;  %v1125_v43 = vrot.slane %v2063_v9, 2 }
 0x570   :  { %1152 = vmatprep.subr.bf16.mxu0 %v1952_v44  ;;  %1629 = vmatprep.subr.bf16.mxu1 %v1837_v1 }
 0x573   :  { %1153 = vmatpush1.bf16.msra.mxu0 %v1956_v45  ;;  %1630 = vmatpush3.bf16.msra.mxu1 %v1959_v46 }
 0x574   :  { %1154 = vmatprep.subr.bf16.mxu0 %v1962_v47  ;;  %1631 = vmatprep.subr.bf16.mxu1 %v1837_v1 }
 0x577   :  { %1155 = vmatpush1.bf16.msra.mxu0 %v1966_v48  ;;  %1632 = vmatpush3.bf16.msra.mxu1 %v1969_v49 }
 0x578   :  { %1156 = vmatprep.subr.bf16.mxu0 %v1972_v50  ;;  %1633 = vmatprep.subr.bf16.mxu1 %v1837_v1 }
 0x57b   :  { %1157 = vmatpush1.bf16.msra.mxu0 %v1976_v51  ;;  %1634 = vmatpush3.bf16.msra.mxu1 %v1979_v52 }
 0x57c   :  { %1158 = vmatprep.subr.bf16.mxu0 %v1982_v53  ;;  %1635 = vmatprep.subr.bf16.mxu1 %v1837_v1 }
 0x57f   :  { %1159 = vmatpush1.bf16.msra.mxu0 %v1986_v54  ;;  %1636 = vmatpush3.bf16.msra.mxu1 %v1989_v55 }
 0x580   :  { %1160 = vmatprep.subr.bf16.mxu0 %v1992_v56  ;;  %1637 = vmatprep.subr.bf16.mxu1 %v1837_v1 }
 0x583   :  { %1161 = vmatpush1.bf16.msra.mxu0 %v1996_v57  ;;  %1638 = vmatpush3.bf16.msra.mxu1 %v2001_v59 }
 0x584   :  { %1255 = vmatprep.subr.bf16.mxu0 %v1786_v35  ;;  %1643 = vmatprep.subr.bf16.mxu1 %v1837_v1 }
 0x639   :  { %v1071_v36 = vpop.f32.mrb[24].mxu0  ;;  %v1112_v38 = vpop.f32.mrb[24].mxu1 }
 0x63a   :  { %v1072_v39 = vadd.f32 %v1071_v36, %v2072_v17  ;;  %v1073_v40 = vpop.f32.mrb[25].mxu0  ;;  %v1621_v41 = vpop.f32.mrb[25].mxu1  ;;  %v1113_v56 = vadd.f32 %v1112_v38, %v2080_v33 }
 0x63b   :  { %v1074_v42 = vadd.f32 %v1073_v40, %v2074_v18  ;;  %v1075_v44 = vpop.f32.mrb[26].mxu0  ;;  %v1115_v45 = vpop.f32.mrb[26].mxu1 }
 0x63c   :  { %v1118_v46 = vadd.f32 %v1072_v39, %v2063_v9  ;;  %v1076_v47 = vpop.f32.mrb[27].mxu0  ;;  %v1622_v48 = vpop.f32.mrb[27].mxu1  ;;  %v1787_v9 = vld [vmem:[#allocation3] ss:$12 sps:$4 sm:$0xff]   ;;  %v1234_v39 = vrot.slane %v2065_v14, 2 }
 0x63d   :  { %v1127_v49 = vadd.f32 %v1125_v43, %v1074_v42 }
 0x63e   :  { %v1414_v50 = vmul.f32 -1.442695, %v1118_v46 }
 0x63f   :  { %v1415_v51 = vmul.f32 -1.442695, %v1127_v49 }
 0x640   :  { %1756 = vpow2.f32 %v1414_v50 }
 0x641   :  { %1758 = vpow2.f32 %v1415_v51 }
 0x64a   :  { %v1757_v52 = vpop.eup %1756 }
 0x64b   :  { %v1122_v53 = vadd.f32 1.0, %v1757_v52  ;;  %v1759_v54 = vpop.eup %1758 }
 0x64c   :  { %v1131_v55 = vadd.f32 1.0, %v1759_v54  ;;  %v1244_v54 = vrot.slane %v2065_v14, 4 }
 0x64d   :  { %1760 = vrcp.f32 %v1122_v53 }
 0x64e   :  { %1762 = vrcp.f32 %v1131_v55 }
 0x657   :  { %v1761_v57 = vpop.eup %1760 }
 0x658   :  { %v1134_v59 = vmul.f32 %v1761_v57, %v1113_v56  ;;  %v1763_v7 = vpop.eup %1762 }
 0x659   :  { %v1139_v0 = vsub.f32 1.0, %v1763_v7  ;;  %v1141_v28 = vmul.f32 %v1763_v7, %v2280_v26 }
 0x65a   :  { %v1137_v6 = vadd.f32 %v1135_v13, %v1134_v59 }
 0x65c   :  { %1764 = vtanh.f32 %v1137_v6 }
 0x666   :  { %v1765_v16 = vpop.eup %1764 }
 0x667   :  { %v1140_v27 = vmul.f32 %v1765_v16, %v1139_v0 }
 0x669   :  { %v2328_v29 = vadd.f32 %v1141_v28, %v1140_v27 }
 0x66b   :  { %v1143_v30 = vpack.c.bf16 %v2328_v29, %v2328_v29 }
 0x66d   :  { %1416 = vst [vmem:[%s2369_s5 + $0x5] sm:$0x1] %v1143_v30  ;;  %1179 = vmatmul.mubr.bf16.vlgmr.msra.gmra.mrb[28].mxu0 %v1143_v30  ;;  %1640 = vmatmul.mubr.bf16.vlgmr.msra.gmra.mrb[28].mxu1 %v1143_v30 }
 0x66e   :  { %1256 = vmatpush1.bf16.msra.mxu0 %v1787_v9  ;;  %1644 = vmatpush3.bf16.msra.mxu1 %v1788_v31  ;;  %v1343_v31 = vrot.slane %v2067_v15, 2 }
 0x66f   :  { %1257 = vmatprep.subr.bf16.mxu0 %v1789_v63  ;;  %1645 = vmatprep.subr.bf16.mxu1 %v1837_v1 }
 0x670   :  { %1287 = vmatprep.mubr.bf16.mxu0 %v1838_v2  ;;  %1659 = vmatprep.mubr.msk.bf16.mxu1 %vm1840_vm0, %v1837_v1  ;;  %v1796_v2 = vld [vmem:[#allocation3 + $0x48] ss:$12 sps:$4 sm:$0xff]  }
 0x672   :  { %1258 = vmatpush1.bf16.msra.mxu0 %v1790_v4  ;;  %1646 = vmatpush3.bf16.msra.mxu1 %v1791_v32 }
 0x673   :  { %1259 = vmatprep.subr.bf16.mxu0 %v1792_v34  ;;  %1647 = vmatprep.subr.bf16.mxu1 %v1837_v1 }
 0x676   :  { %1260 = vmatpush1.bf16.msra.mxu0 %v1793_v37  ;;  %1648 = vmatpush3.bf16.msra.mxu1 %v1794_v11 }
 0x677   :  { %1261 = vmatprep.subr.bf16.mxu0 %v1795_v60  ;;  %1649 = vmatprep.subr.bf16.mxu1 %v1837_v1 }
 0x67a   :  { %1262 = vmatpush1.bf16.msra.mxu0 %v1796_v2  ;;  %1650 = vmatpush3.bf16.msra.mxu1 %v1797_v61 }
 0x67b   :  { %1263 = vmatprep.subr.bf16.mxu0 %v1798_v8  ;;  %1651 = vmatprep.subr.bf16.mxu1 %v1837_v1 }
 0x67e   :  { %1264 = vmatpush1.bf16.msra.mxu0 %v1799_v10  ;;  %1652 = vmatpush3.bf16.msra.mxu1 %v1800_v19 }
 0x67f   :  { %1265 = vmatprep.subr.bf16.mxu0 %v1801_v12  ;;  %1653 = vmatprep.subr.bf16.mxu1 %v1837_v1  ;;  %v1353_v12 = vrot.slane %v2067_v15, 4 }
 0x682   :  { %1266 = vmatpush1.bf16.msra.mxu0 %v1802_v21  ;;  %1654 = vmatpush3.bf16.msra.mxu1 %v1803_v22 }
 0x683   :  { %1267 = vmatprep.subr.bf16.mxu0 %v1804_v23  ;;  %1655 = vmatprep.subr.bf16.mxu1 %v1837_v1 }
 0x686   :  { %1268 = vmatpush1.bf16.msra.mxu0 %v1805_v24  ;;  %1656 = vmatpush3.bf16.msra.mxu1 %v1806_v5 }
 0x687   :  { %1269 = vmatprep.subr.bf16.mxu0 %v1807_v58  ;;  %1657 = vmatprep.subr.bf16.mxu1 %v1837_v1 }
 0x68a   :  { %1270 = vmatpush1.bf16.msra.mxu0 %v1808_v62  ;;  %1658 = vmatpush3.bf16.msra.mxu1 %v1809_v20 }
 0x740   :  { %v1180_v3 = vpop.f32.mrb[28].mxu0  ;;  %v1221_v26 = vpop.f32.mrb[28].mxu1 }
 0x741   :  { %v1181_v25 = vadd.f32 %v1180_v3, %v2072_v17  ;;  %v1182_v35 = vpop.f32.mrb[29].mxu0  ;;  %v1641_v36 = vpop.f32.mrb[29].mxu1  ;;  %v1222_v51 = vadd.f32 %v1221_v26, %v2080_v33 }
 0x742   :  { %v1183_v38 = vadd.f32 %v1182_v35, %v2074_v18  ;;  %v1184_v40 = vpop.f32.mrb[30].mxu0  ;;  %v1224_v41 = vpop.f32.mrb[30].mxu1 }
 0x743   :  { %v1227_v42 = vadd.f32 %v1181_v25, %v2065_v14  ;;  %v1185_v43 = vpop.f32.mrb[31].mxu0  ;;  %v1642_v1 = vpop.f32.mrb[31].mxu1 }
 0x744   :  { %v1236_v44 = vadd.f32 %v1234_v39, %v1183_v38 }
 0x745   :  { %v1417_v45 = vmul.f32 -1.442695, %v1227_v42 }
 0x746   :  { %v1418_v46 = vmul.f32 -1.442695, %v1236_v44 }
 0x747   :  { %1766 = vpow2.f32 %v1417_v45 }
 0x748   :  { %1768 = vpow2.f32 %v1418_v46 }
 0x751   :  { %v1767_v47 = vpop.eup %1766 }
 0x752   :  { %v1231_v48 = vadd.f32 1.0, %v1767_v47  ;;  %v1769_v49 = vpop.eup %1768 }
 0x753   :  { %v1240_v50 = vadd.f32 1.0, %v1769_v49 }
 0x754   :  { %1770 = vrcp.f32 %v1231_v48 }
 0x755   :  { %1772 = vrcp.f32 %v1240_v50 }
 0x75e   :  { %v1771_v52 = vpop.eup %1770 }
 0x75f   :  { %v1243_v53 = vmul.f32 %v1771_v52, %v1222_v51  ;;  %v1773_v56 = vpop.eup %1772 }
 0x760   :  { %v1248_v57 = vsub.f32 1.0, %v1773_v56  ;;  %v1250_v6 = vmul.f32 %v1773_v56, %v2328_v29 }
 0x761   :  { %v1246_v55 = vadd.f32 %v1244_v54, %v1243_v53 }
 0x763   :  { %1774 = vtanh.f32 %v1246_v55 }
 0x76d   :  { %v1775_v59 = vpop.eup %1774 }
 0x76e   :  { %v1249_v13 = vmul.f32 %v1775_v59, %v1248_v57 }
 0x770   :  { %v1251_v7 = vadd.f32 %v1250_v6, %v1249_v13 }
 0x772   :  { %v1252_v0 = vpack.c.bf16 %v1251_v7, %v1251_v7 }
 0x774   :  { %1419 = vst [vmem:[%s2369_s5 + $0x6] sm:$0x1] %v1252_v0  ;;  %1288 = vmatmul.mubr.bf16.vlgmr.msra.gmra.mrb[32].mxu0 %v1252_v0  ;;  %1660 = vmatmul.mubr.bf16.vlgmr.msra.gmra.mrb[32].mxu1 %v1252_v0 }
 0x847   :  { %v1289_v16 = vpop.f32.mrb[32].mxu0  ;;  %v1330_v27 = vpop.f32.mrb[32].mxu1 }
 0x848   :  { %v1290_v14 = vadd.f32 %v1289_v16, %v2072_v17  ;;  %v1291_v28 = vpop.f32.mrb[33].mxu0  ;;  %v1661_v30 = vpop.f32.mrb[33].mxu1 }
 0x849   :  { %v1292_v9 = vadd.f32 %v1291_v28, %v2074_v18  ;;  %v1293_v63 = vpop.f32.mrb[34].mxu0  ;;  %v1333_v29 = vpop.f32.mrb[34].mxu1  ;;  %v1331_v18 = vadd.f32 %v1330_v27, %v2080_v33 }
 0x84a   :  { %v1336_v4 = vadd.f32 %v1290_v14, %v2067_v15  ;;  %v1294_v32 = vpop.f32.mrb[35].mxu0  ;;  %v1662_v34 = vpop.f32.mrb[35].mxu1 }
 0x84b   :  { %v1345_v37 = vadd.f32 %v1343_v31, %v1292_v9 }
 0x84c   :  { %v1420_v11 = vmul.f32 -1.442695, %v1336_v4 }
 0x84d   :  { %v1421_v60 = vmul.f32 -1.442695, %v1345_v37 }
 0x84e   :  { %1776 = vpow2.f32 %v1420_v11 }
 0x84f   :  { %1778 = vpow2.f32 %v1421_v60 }
 0x858   :  { %v1777_v2 = vpop.eup %1776 }
 0x859   :  { %v1340_v61 = vadd.f32 1.0, %v1777_v2  ;;  %v1779_v17 = vpop.eup %1778 }
 0x85a   :  { %v1349_v8 = vadd.f32 1.0, %v1779_v17 }
 0x85b   :  { %1780 = vrcp.f32 %v1340_v61 }
 0x85c   :  { %1782 = vrcp.f32 %v1349_v8 }
 0x865   :  { %v1781_v10 = vpop.eup %1780 }
 0x866   :  { %v1352_v19 = vmul.f32 %v1781_v10, %v1331_v18  ;;  %v1783_v22 = vpop.eup %1782 }
 0x867   :  { %v1357_v23 = vsub.f32 1.0, %v1783_v22  ;;  %v1359_v58 = vmul.f32 %v1783_v22, %v1251_v7 }
 0x868   :  { %v1355_v21 = vadd.f32 %v1353_v12, %v1352_v19 }
 0x86a   :  { %1784 = vtanh.f32 %v1355_v21 }
 0x874   :  { %v1785_v24 = vpop.eup %1784 }
 0x875   :  { %v1358_v5 = vmul.f32 %v1785_v24, %v1357_v23 }
 0x877   :  { %v1360_v62 = vadd.f32 %v1359_v58, %v1358_v5 }
 0x879   :  { %v1361_v20 = vpack.c.bf16 %v1360_v62, %v1360_v62  ;;  %1364 = vst [vmem:[#allocation2] sm:$0x3] %v1360_v62 }
 0x87b   :  { %1422 = vst [vmem:[%s2369_s5 + $0x7] sm:$0x1] %v1361_v20 }
 0x87c   :  { %1369 = vsyncpa [#allocation4], 1 }

// kernel: thoc_forward.8
= control target key start
LH: loop header
LB: loop body
LE: loop exit
PB: predicated region body
PF: predicated region fallthrough
CT: control target
= control target key end

     0   :  { %10 = vsyncpa [#allocation4], 0  ;;  %s1296_s18 = smov [#allocation3]   ;;  %s1708_s0 = inlined_call_operand.vmem [shape: bf16[4,4,128], index: 0, kind: input, shape index: {}]   ;;  %s1709_s1 = inlined_call_operand.vmem [shape: bf16[128,384], index: 1, kind: input, shape index: {}]   ;;  %s1710_s2 = inlined_call_operand.vmem [shape: f32[1,384], index: 2, kind: input, shape index: {}]   ;;  %s1711_s3 = inlined_call_operand.hbm [shape: bf16[128,384], index: 3, kind: input, shape index: {}]   ;;  %s1712_s4 = inlined_call_operand.vmem [shape: f32[1,384], index: 4, kind: input, shape index: {}]   ;;  %s1713_s5 = inlined_call_operand.vmem [shape: bf16[4,4,128], index: 5, kind: output, shape index: {}]  }
   0x1   :  { %s22_s19 = sshll.u32 %s1296_s18, 4  ;;  %s1272_s22 = scalar_lea.hbm %s1711_s3, 3072  ;;  %s23_s19 = int_to_ptr.vmem [resolvable:$true] %s22_s19 }
   0x2   :  { %p1273_p0 = scmp.ne.s32.totalorder %s1711_s3, %s1272_s22  ;;  %p1276_p1 = scmp.lt.u32.totalorder %s1272_s22, %s1711_s3 }
   0x4   :  { %p1278_p2 = pnand %p1276_p1, %p1273_p0 }
   0x6   :  { %1281 = shalt.err (!%p1278_p2)
}
   0x7   :  { %s1282_s27 = scalar_lea.vmem %s23_s19, 3072  ;;  %p1287_p4 = scmp.lt.s32.totalorder %s23_s19, %s23_s19 }
   0x8   :  { %p1283_p3 = scmp.ne.s32.totalorder %s23_s19, %s1282_s27  ;;  %p1288_p5 = scmp.lt.s32.totalorder %s1282_s27, %s1282_s27 }
   0xa   :  { %p1289_p6 = por %p1288_p5, %p1287_p4 }
   0xc   :  { %p1290_p7 = pnand %p1289_p6, %p1283_p3 }
   0xe   :  { %1293 = shalt.err (!%p1290_p7)
}
   0xf   :  { %s1297_s28 = smov 192   ;;  %s1298_s29 = smov 12  }
  0x10   :  { %28 = dma.hbm_to_vmem [thread:$0]  %s1711_s3, 3072, %s23_s19, [#allocation4], %s1297_s28, %s1297_s28, %s1298_s29  }
  0x11   :  { %1294 = dma.done.wait [#allocation4], 3072  }
  0x12   :  { %1295 = vsyncadd [#allocation4], 4294964224  ;;  %v1299_v0 = vmov 0.0   ;;  %v1300_v1 = vmov 0   ;;  %vm1301_vm0 = vmmov 0   ;;  %v78_v14 = vlaneseq }
  0x13   :  { %1061 = vmatprep.subr.bf16.mxu1 %v1299_v0  ;;  %39 = vst [vmem:[#allocation2] sm:$0xf] %v1299_v0  ;;  %275 = vmatprep.mubr.bf16.mxu0 %v1300_v1  ;;  %v1168_v2 = vld [vmem:[%s1709_s1 + $0x4] ss:$12 sps:$4 sm:$0xff]   ;;  %v1170_v3 = vld [vmem:[%s1709_s1] ss:$12 sps:$4 sm:$0xff]  }
  0x14   :  { %1077 = vmatprep.mubr.msk.bf16.mxu1 %vm1301_vm0, %v1299_v0  ;;  %243 = vmatprep.subr.bf16.mxu0 %v1168_v2  ;;  %v1171_v4 = vld [vmem:[%s1709_s1 + $0x1c] ss:$12 sps:$4 sm:$0xff]   ;;  %v1173_v5 = vld [vmem:[%s1709_s1 + $0x18] ss:$12 sps:$4 sm:$0xff]   ;;  %v1174_v6 = vld [vmem:[%s1709_s1 + $0x34] ss:$12 sps:$4 sm:$0xff]  }
  0x15   :  { %244 = vmatpush1.bf16.msra.mxu0 %v1170_v3  ;;  %v1176_v7 = vld [vmem:[%s1709_s1 + $0x30] ss:$12 sps:$4 sm:$0xff]   ;;  %v1177_v8 = vld [vmem:[%s1709_s1 + $0x4c] ss:$12 sps:$4 sm:$0xff]   ;;  %v1189_v9 = vld [vmem:[%s1709_s1 + $0x8] ss:$12 sps:$4 sm:$0xff]  }
  0x16   :  { %245 = vmatprep.subr.bf16.mxu0 %v1171_v4  ;;  %v1179_v10 = vld [vmem:[%s1709_s1 + $0x48] ss:$12 sps:$4 sm:$0xff]   ;;  %v1180_v11 = vld [vmem:[%s1709_s1 + $0x64] ss:$12 sps:$4 sm:$0xff]   ;;  %1062 = vmatpush3.bf16.msra.mxu1 %v1189_v9  ;;  %v1193_v12 = vld [vmem:[%s1709_s1 + $0x20] ss:$12 sps:$4 sm:$0xff]  }
  0x17   :  { %1063 = vmatprep.subr.bf16.mxu1 %v1299_v0  ;;  %v1182_v13 = vld [vmem:[%s1709_s1 + $0x60] ss:$12 sps:$4 sm:$0xff]   ;;  %v1302_v15 = vmov 1983009808   ;;  %v1183_v17 = vld [vmem:[%s1709_s1 + $0x7c] ss:$12 sps:$4 sm:$0xff]  }
  0x18   :  { %v100_v16 = vunpack.c.l.s4 %v1302_v15  ;;  %v1197_v18 = vld [vmem:[%s1709_s1 + $0x38] ss:$12 sps:$4 sm:$0xff]   ;;  %v40_v20 = vld [vmem:[%s1708_s0] sm:$0x3]  ;;  %v41_v22 = vld [vmem:[%s1708_s0 + $0x2] sm:$0x3] }
  0x19   :  { %246 = vmatpush1.bf16.msra.mxu0 %v1173_v5  ;;  %v1185_v19 = vld [vmem:[%s1709_s1 + $0x78] ss:$12 sps:$4 sm:$0xff]   ;;  %v1186_v21 = vld [vmem:[%s1709_s1 + $0x94] ss:$12 sps:$4 sm:$0xff]   ;;  %v1406_v23 = vshrl.u32 %v78_v14, 7  ;;  %v97_v28 = vcombine.low %v40_v20, %v41_v22 }
  0x1a   :  { %247 = vmatprep.subr.bf16.mxu0 %v1174_v6  ;;  %1064 = vmatpush3.bf16.msra.mxu1 %v1193_v12  ;;  %v101_v24 = vunpack.c.0.s8 %v100_v16  ;;  %v42_v25 = vld [vmem:[%s1708_s0 + $0x4] sm:$0x3]  ;;  %v43_v26 = vld [vmem:[%s1708_s0 + $0x6] sm:$0x3]  ;;  %v1201_v27 = vld [vmem:[%s1709_s1 + $0x50] ss:$12 sps:$4 sm:$0xff]  }
  0x1b   :  { %1065 = vmatprep.subr.bf16.mxu1 %v1299_v0  ;;  %v98_v29 = vcombine.low %v42_v25, %v43_v26  ;;  %v1188_v31 = vld [vmem:[%s1709_s1 + $0x90] ss:$12 sps:$4 sm:$0xff]   ;;  %v1190_v32 = vld [vmem:[%s1709_s1 + $0xac] ss:$12 sps:$4 sm:$0xff]   ;;  %v1205_v33 = vld [vmem:[%s1709_s1 + $0x68] ss:$12 sps:$4 sm:$0xff]  }
  0x1c   :  { %v104_v30 = vsub.s32 %v101_v24, %v1406_v23  ;;  %v1192_v34 = vld [vmem:[%s1709_s1 + $0xa8] ss:$12 sps:$4 sm:$0xff]   ;;  %v1209_v38 = vld [vmem:[%s1709_s1 + $0x80] ss:$12 sps:$4 sm:$0xff]   ;;  %v1438_v40 = vld [vmem:[#allocation3] ss:$12 sps:$4 sm:$0xff]  }
  0x1d   :  { %248 = vmatpush1.bf16.msra.mxu0 %v1176_v7  ;;  %v1432_v37 = vld [vmem:[#allocation3 + $0x4] ss:$12 sps:$4 sm:$0xff]   ;;  %v1441_v41 = vld [vmem:[#allocation3 + $0x1c] ss:$12 sps:$4 sm:$0xff]   ;;  %v1213_v42 = vld [vmem:[%s1709_s1 + $0x98] ss:$12 sps:$4 sm:$0xff]  }
  0x1e   :  { %249 = vmatprep.subr.bf16.mxu0 %v1177_v8  ;;  %1066 = vmatpush3.bf16.msra.mxu1 %v1197_v18  ;;  %v105_v35 = vrot.slane %v97_v28, %v104_v30  ;;  %v112_v36 = vrot.slane %v98_v29, %v104_v30  ;;  %v1447_v43 = vld [vmem:[#allocation3 + $0x18] ss:$12 sps:$4 sm:$0xff]   ;;  %v1450_v44 = vld [vmem:[#allocation3 + $0x34] ss:$12 sps:$4 sm:$0xff]   ;;  %v1459_v46 = vld [vmem:[#allocation3 + $0x30] ss:$12 sps:$4 sm:$0xff]  }
  0x1f   :  { %1067 = vmatprep.subr.bf16.mxu1 %v1299_v0  ;;  %v1217_v45 = vld [vmem:[%s1709_s1 + $0xb0] ss:$12 sps:$4 sm:$0xff]   ;;  %v1464_v48 = vld [vmem:[#allocation3 + $0x8] ss:$12 sps:$4 sm:$0xff]   ;;  %v1471_v50 = vld [vmem:[#allocation3 + $0x64] ss:$12 sps:$4 sm:$0xff]  }
  0x20   :  { %v113_v39 = vcombine.low %v105_v35, %v112_v36  ;;  %v1462_v47 = vld [vmem:[#allocation3 + $0x4c] ss:$12 sps:$4 sm:$0xff]   ;;  %v1468_v49 = vld [vmem:[#allocation3 + $0x48] ss:$12 sps:$4 sm:$0xff]   ;;  %v1496_v57 = vld [vmem:[#allocation3 + $0x50] ss:$12 sps:$4 sm:$0xff]  }
  0x21   :  { %250 = vmatpush1.bf16.msra.mxu0 %v1179_v10  ;;  %v1474_v51 = vld [vmem:[#allocation3 + $0x20] ss:$12 sps:$4 sm:$0xff]   ;;  %v1483_v53 = vld [vmem:[#allocation3 + $0x7c] ss:$12 sps:$4 sm:$0xff]   ;;  %v1486_v54 = vld [vmem:[#allocation3 + $0x38] ss:$12 sps:$4 sm:$0xff]  }
  0x22   :  { %251 = vmatprep.subr.bf16.mxu0 %v1180_v11  ;;  %1068 = vmatpush3.bf16.msra.mxu1 %v1201_v27  ;;  %v1480_v52 = vld [vmem:[#allocation3 + $0x60] ss:$12 sps:$4 sm:$0xff]   ;;  %v1490_v55 = vld [vmem:[#allocation3 + $0x78] ss:$12 sps:$4 sm:$0xff]   ;;  %v1500_v58 = vld [vmem:[#allocation3 + $0x90] ss:$12 sps:$4 sm:$0xff]  }
  0x23   :  { %1069 = vmatprep.subr.bf16.mxu1 %v1299_v0  ;;  %v1493_v56 = vld [vmem:[#allocation3 + $0x94] ss:$12 sps:$4 sm:$0xff]   ;;  %v1503_v59 = vld [vmem:[#allocation3 + $0xac] ss:$12 sps:$4 sm:$0xff]   ;;  %v1512_v62 = vld [vmem:[#allocation2] sm:$0xf] }
  0x24   :  { %v1506_v60 = vld [vmem:[#allocation3 + $0x68] ss:$12 sps:$4 sm:$0xff]   ;;  %v1516_v63 = vld [vmem:[#allocation3 + $0x80] ss:$12 sps:$4 sm:$0xff]   ;;  %v379_v2 = vpack.c.bf16 %v1512_v62, %v1512_v62  ;;  %v1523_v3 = vld [vmem:[#allocation3 + $0x98] ss:$12 sps:$4 sm:$0xff]  }
  0x25   :  { %252 = vmatpush1.bf16.msra.mxu0 %v1182_v13  ;;  %v1510_v61 = vld [vmem:[#allocation3 + $0xa8] ss:$12 sps:$4 sm:$0xff]   ;;  %v1530_v4 = vld [vmem:[#allocation3 + $0xb0] ss:$12 sps:$4 sm:$0xff]   ;;  %v80_v5 = vsub.s32 0, %v1406_v23  ;;  %v84_v7 = vsub.s32 1, %v1406_v23 }
  0x26   :  { %253 = vmatprep.subr.bf16.mxu0 %v1183_v17  ;;  %1070 = vmatpush3.bf16.msra.mxu1 %v1205_v33  ;;  %v76_v6 = vld [vmem:[%s1710_s2] sm:$0x7]  ;;  %v88_v20 = vsub.s32 2, %v1406_v23 }
  0x27   :  { %1071 = vmatprep.subr.bf16.mxu1 %v1299_v0  ;;  %v81_v8 = vrot.slane %v76_v6, %v80_v5  ;;  %v85_v9 = vrot.slane %v76_v6, %v84_v7  ;;  %v377_v30 = vld [vmem:[%s1712_s4] sm:$0x7] }
  0x28   :  { %v89_v24 = vrot.slane %v76_v6, %v88_v20 }
  0x29   :  { %254 = vmatpush1.bf16.msra.mxu0 %v1185_v19 }
  0x2a   :  { %255 = vmatprep.subr.bf16.mxu0 %v1186_v21  ;;  %1072 = vmatpush3.bf16.msra.mxu1 %v1209_v38 }
  0x2b   :  { %1073 = vmatprep.subr.bf16.mxu1 %v1299_v0 }
  0x2d   :  { %256 = vmatpush1.bf16.msra.mxu0 %v1188_v31  ;;  %v1585_v31 = vrot.slane %v377_v30, %v80_v5 }
  0x2e   :  { %257 = vmatprep.subr.bf16.mxu0 %v1190_v32  ;;  %1074 = vmatpush3.bf16.msra.mxu1 %v1213_v42  ;;  %v1587_v32 = vrot.slane %v377_v30, %v84_v7 }
  0x2f   :  { %1075 = vmatprep.subr.bf16.mxu1 %v1299_v0 }
  0x31   :  { %258 = vmatpush1.bf16.msra.mxu0 %v1192_v34 }
  0x32   :  { %524 = vmatprep.subr.bf16.mxu0 %v1432_v37  ;;  %1076 = vmatpush3.bf16.msra.mxu1 %v1217_v45 }
  0x33   :  { %1081 = vmatprep.subr.bf16.mxu1 %v1299_v0 }
  0x34   :  { %276 = vmatmul.mubr.bf16.vlgmr.msra.gmra.mrb[0].mxu0 %v113_v39 }
  0x35   :  { %525 = vmatpush1.bf16.msra.mxu0 %v1438_v40  ;;  %556 = vmatprep.mubr.bf16.mxu0 %v1300_v1 }
  0x36   :  { %526 = vmatprep.subr.bf16.mxu0 %v1441_v41  ;;  %1078 = vmatmul.mubr.bf16.vlgmr.msra.gmra.mrb[0].mxu1 %v113_v39 }
  0x37   :  { %1082 = vmatpush3.bf16.msra.mxu1 %v1464_v48  ;;  %1097 = vmatprep.mubr.msk.bf16.mxu1 %vm1301_vm0, %v1299_v0 }
  0x38   :  { %1083 = vmatprep.subr.bf16.mxu1 %v1299_v0 }
  0x39   :  { %527 = vmatpush1.bf16.msra.mxu0 %v1447_v43 }
  0x3a   :  { %528 = vmatprep.subr.bf16.mxu0 %v1450_v44 }
  0x3b   :  { %1084 = vmatpush3.bf16.msra.mxu1 %v1474_v51 }
  0x3c   :  { %1085 = vmatprep.subr.bf16.mxu1 %v1299_v0 }
  0x3d   :  { %529 = vmatpush1.bf16.msra.mxu0 %v1459_v46 }
  0x3e   :  { %530 = vmatprep.subr.bf16.mxu0 %v1462_v47 }
  0x3f   :  { %1086 = vmatpush3.bf16.msra.mxu1 %v1486_v54 }
  0x40   :  { %1087 = vmatprep.subr.bf16.mxu1 %v1299_v0 }
  0x41   :  { %531 = vmatpush1.bf16.msra.mxu0 %v1468_v49 }
  0x42   :  { %532 = vmatprep.subr.bf16.mxu0 %v1471_v50 }
  0x43   :  { %1088 = vmatpush3.bf16.msra.mxu1 %v1496_v57 }
  0x44   :  { %1089 = vmatprep.subr.bf16.mxu1 %v1299_v0 }
  0x45   :  { %533 = vmatpush1.bf16.msra.mxu0 %v1480_v52 }
  0x46   :  { %534 = vmatprep.subr.bf16.mxu0 %v1483_v53 }
  0x47   :  { %1090 = vmatpush3.bf16.msra.mxu1 %v1506_v60 }
  0x48   :  { %1091 = vmatprep.subr.bf16.mxu1 %v1299_v0 }
  0x49   :  { %535 = vmatpush1.bf16.msra.mxu0 %v1490_v55 }
  0x4a   :  { %536 = vmatprep.subr.bf16.mxu0 %v1493_v56 }
  0x4b   :  { %1092 = vmatpush3.bf16.msra.mxu1 %v1516_v63 }
  0x4c   :  { %1093 = vmatprep.subr.bf16.mxu1 %v1299_v0 }
  0x4d   :  { %537 = vmatpush1.bf16.msra.mxu0 %v1500_v58 }
  0x4e   :  { %538 = vmatprep.subr.bf16.mxu0 %v1503_v59 }
  0x4f   :  { %1094 = vmatpush3.bf16.msra.mxu1 %v1523_v3 }
  0x50   :  { %1095 = vmatprep.subr.bf16.mxu1 %v1299_v0 }
  0x51   :  { %539 = vmatpush1.bf16.msra.mxu0 %v1510_v61 }
  0x52   :  { %630 = vmatprep.subr.bf16.mxu0 %v1432_v37 }
  0x53   :  { %1096 = vmatpush3.bf16.msra.mxu1 %v1530_v4 }
  0x54   :  { %557 = vmatmul.mubr.bf16.vlgmr.msra.gmra.mrb[4].mxu0 %v379_v2  ;;  %1101 = vmatprep.subr.bf16.mxu1 %v1299_v0 }
  0x55   :  { %631 = vmatpush1.bf16.msra.mxu0 %v1438_v40  ;;  %662 = vmatprep.mubr.bf16.mxu0 %v1300_v1 }
  0x56   :  { %632 = vmatprep.subr.bf16.mxu0 %v1441_v41  ;;  %1098 = vmatmul.mubr.bf16.vlgmr.msra.gmra.mrb[4].mxu1 %v379_v2 }
  0x57   :  { %1102 = vmatpush3.bf16.msra.mxu1 %v1464_v48  ;;  %1117 = vmatprep.mubr.msk.bf16.mxu1 %vm1301_vm0, %v1299_v0 }
  0x58   :  { %1103 = vmatprep.subr.bf16.mxu1 %v1299_v0 }
  0x59   :  { %633 = vmatpush1.bf16.msra.mxu0 %v1447_v43 }
  0x5a   :  { %634 = vmatprep.subr.bf16.mxu0 %v1450_v44 }
  0x5b   :  { %1104 = vmatpush3.bf16.msra.mxu1 %v1474_v51 }
  0x5c   :  { %1105 = vmatprep.subr.bf16.mxu1 %v1299_v0 }
  0x5d   :  { %635 = vmatpush1.bf16.msra.mxu0 %v1459_v46 }
  0x5e   :  { %636 = vmatprep.subr.bf16.mxu0 %v1462_v47 }
  0x5f   :  { %1106 = vmatpush3.bf16.msra.mxu1 %v1486_v54 }
  0x60   :  { %1107 = vmatprep.subr.bf16.mxu1 %v1299_v0 }
  0x61   :  { %637 = vmatpush1.bf16.msra.mxu0 %v1468_v49 }
  0x62   :  { %638 = vmatprep.subr.bf16.mxu0 %v1471_v50 }
  0x63   :  { %1108 = vmatpush3.bf16.msra.mxu1 %v1496_v57 }
  0x64   :  { %1109 = vmatprep.subr.bf16.mxu1 %v1299_v0 }
  0x65   :  { %639 = vmatpush1.bf16.msra.mxu0 %v1480_v52 }
  0x66   :  { %640 = vmatprep.subr.bf16.mxu0 %v1483_v53 }
  0x67   :  { %1110 = vmatpush3.bf16.msra.mxu1 %v1506_v60 }
  0x68   :  { %1111 = vmatprep.subr.bf16.mxu1 %v1299_v0 }
  0x69   :  { %641 = vmatpush1.bf16.msra.mxu0 %v1490_v55 }
  0x6a   :  { %642 = vmatprep.subr.bf16.mxu0 %v1493_v56 }
  0x6b   :  { %1112 = vmatpush3.bf16.msra.mxu1 %v1516_v63 }
  0x6c   :  { %1113 = vmatprep.subr.bf16.mxu1 %v1299_v0 }
  0x6d   :  { %643 = vmatpush1.bf16.msra.mxu0 %v1500_v58 }
  0x6e   :  { %644 = vmatprep.subr.bf16.mxu0 %v1503_v59 }
  0x6f   :  { %1114 = vmatpush3.bf16.msra.mxu1 %v1523_v3 }
  0x70   :  { %1115 = vmatprep.subr.bf16.mxu1 %v1299_v0 }
  0x71   :  { %645 = vmatpush1.bf16.msra.mxu0 %v1510_v61 }
  0x72   :  { %737 = vmatprep.subr.bf16.mxu0 %v1432_v37 }
  0x73   :  { %1116 = vmatpush3.bf16.msra.mxu1 %v1530_v4 }
  0x74   :  { %1121 = vmatprep.subr.bf16.mxu1 %v1299_v0 }
 0x107   :  { %v277_v10 = vpop.f32.mrb[0].mxu0 }
 0x108   :  { %v278_v11 = vadd.f32 %v277_v10, %v81_v8  ;;  %v279_v12 = vpop.f32.mrb[1].mxu0 }
 0x109   :  { %v280_v13 = vadd.f32 %v279_v12, %v85_v9  ;;  %v281_v14 = vpop.f32.mrb[2].mxu0  ;;  %v320_v25 = vpop.f32.mrb[0].mxu1  ;;  %v1591_v12 = vrot.slane %v377_v30, %v88_v20 }
 0x10a   :  { %v282_v15 = vadd.f32 %v281_v14, %v81_v8  ;;  %v283_v16 = vpop.f32.mrb[3].mxu0  ;;  %v1079_v26 = vpop.f32.mrb[1].mxu1 }
 0x10b   :  { %v333_v17 = vcombine.low %v278_v11, %v280_v13  ;;  %v1573_v18 = vcombine.high %v278_v11, %v280_v13  ;;  %v284_v19 = vadd.f32 %v283_v16, %v85_v9  ;;  %v323_v27 = vpop.f32.mrb[2].mxu1 }
 0x10c   :  { %v1580_v28 = vadd.f32 %v323_v27, %v89_v24  ;;  %v1080_v29 = vpop.f32.mrb[3].mxu1 }
 0x10d   :  { %v1576_v21 = vcombine.low %v282_v15, %v284_v19  ;;  %v1578_v22 = vcombine.high %v282_v15, %v284_v19  ;;  %v612_v36 = vrot.slane %v333_v17, 4 }
 0x127   :  { %v558_v23 = vpop.f32.mrb[4].mxu0 }
 0x128   :  { %v559_v33 = vadd.f32 %v558_v23, %v1585_v31  ;;  %v560_v34 = vpop.f32.mrb[5].mxu0 }
 0x129   :  { %v561_v35 = vadd.f32 %v560_v34, %v1587_v32  ;;  %v562_v38 = vpop.f32.mrb[6].mxu0  ;;  %v599_v6 = vpop.f32.mrb[4].mxu1 }
 0x12a   :  { %v605_v39 = vadd.f32 %v559_v33, %v333_v17  ;;  %v563_v42 = vpop.f32.mrb[7].mxu0  ;;  %v1099_v9 = vpop.f32.mrb[5].mxu1  ;;  %v600_v15 = vadd.f32 %v599_v6, %v1591_v12  ;;  %v1594_v17 = vadd.f32 %v320_v25, %v89_v24 }
 0x12b   :  { %v614_v45 = vadd.f32 %v612_v36, %v561_v35  ;;  %v602_v5 = vpop.f32.mrb[6].mxu1 }
 0x12c   :  { %v1005_v2 = vmul.f32 -1.442695, %v605_v39  ;;  %v1100_v10 = vpop.f32.mrb[7].mxu1  ;;  %v718_v39 = vrot.slane %v1573_v18, 4 }
 0x12d   :  { %v1006_v8 = vmul.f32 -1.442695, %v614_v45 }
 0x12e   :  { %1232 = vpow2.f32 %v1005_v2 }
 0x12f   :  { %1234 = vpow2.f32 %v1006_v8 }
 0x138   :  { %v1233_v7 = vpop.eup %1232 }
 0x139   :  { %v609_v11 = vadd.f32 1.0, %v1233_v7  ;;  %v1235_v13 = vpop.eup %1234 }
 0x13a   :  { %v618_v14 = vadd.f32 1.0, %v1235_v13 }
 0x13b   :  { %1236 = vrcp.f32 %v609_v11 }
 0x13c   :  { %1238 = vrcp.f32 %v618_v14 }
 0x145   :  { %v1237_v16 = vpop.eup %1236 }
 0x146   :  { %v621_v19 = vmul.f32 %v1237_v16, %v600_v15  ;;  %v1239_v27 = vpop.eup %1238  ;;  %v335_v16 = vcombine.high %v1594_v17, %v1594_v17 }
 0x147   :  { %v624_v29 = vsub.f32 1.0, %v1239_v27  ;;  %v626_v34 = vmul.f32 %v1239_v27, %v1512_v62 }
 0x148   :  { %v622_v26 = vadd.f32 %v621_v19, %v1594_v17 }
 0x14a   :  { %1240 = vtanh.f32 %v622_v26 }
 0x154   :  { %v1241_v23 = vpop.eup %1240 }
 0x155   :  { %v625_v33 = vmul.f32 %v1241_v23, %v624_v29 }
 0x157   :  { %v1598_v20 = vadd.f32 %v626_v34, %v625_v33 }
 0x159   :  { %v628_v30 = vpack.c.bf16 %v1598_v20, %v1598_v20 }
 0x15b   :  { %629 = vst [vmem:[%s1713_s5] sm:$0x3] %v628_v30  ;;  %663 = vmatmul.mubr.bf16.vlgmr.msra.gmra.mrb[8].mxu0 %v628_v30  ;;  %1118 = vmatmul.mubr.bf16.vlgmr.msra.gmra.mrb[8].mxu1 %v628_v30 }
 0x15c   :  { %738 = vmatpush1.bf16.msra.mxu0 %v1438_v40  ;;  %1122 = vmatpush3.bf16.msra.mxu1 %v1464_v48 }
 0x15d   :  { %739 = vmatprep.subr.bf16.mxu0 %v1441_v41  ;;  %1123 = vmatprep.subr.bf16.mxu1 %v1299_v0 }
 0x15e   :  { %769 = vmatprep.mubr.bf16.mxu0 %v1300_v1  ;;  %1137 = vmatprep.mubr.msk.bf16.mxu1 %vm1301_vm0, %v1299_v0 }
 0x160   :  { %740 = vmatpush1.bf16.msra.mxu0 %v1447_v43  ;;  %1124 = vmatpush3.bf16.msra.mxu1 %v1474_v51 }
 0x161   :  { %741 = vmatprep.subr.bf16.mxu0 %v1450_v44  ;;  %1125 = vmatprep.subr.bf16.mxu1 %v1299_v0 }
 0x164   :  { %742 = vmatpush1.bf16.msra.mxu0 %v1459_v46  ;;  %1126 = vmatpush3.bf16.msra.mxu1 %v1486_v54 }
 0x165   :  { %743 = vmatprep.subr.bf16.mxu0 %v1462_v47  ;;  %1127 = vmatprep.subr.bf16.mxu1 %v1299_v0 }
 0x168   :  { %744 = vmatpush1.bf16.msra.mxu0 %v1468_v49  ;;  %1128 = vmatpush3.bf16.msra.mxu1 %v1496_v57 }
 0x169   :  { %745 = vmatprep.subr.bf16.mxu0 %v1471_v50  ;;  %1129 = vmatprep.subr.bf16.mxu1 %v1299_v0 }
 0x16c   :  { %746 = vmatpush1.bf16.msra.mxu0 %v1480_v52  ;;  %1130 = vmatpush3.bf16.msra.mxu1 %v1506_v60 }
 0x16d   :  { %747 = vmatprep.subr.bf16.mxu0 %v1483_v53  ;;  %1131 = vmatprep.subr.bf16.mxu1 %v1299_v0 }
 0x170   :  { %748 = vmatpush1.bf16.msra.mxu0 %v1490_v55  ;;  %1132 = vmatpush3.bf16.msra.mxu1 %v1516_v63 }
 0x171   :  { %749 = vmatprep.subr.bf16.mxu0 %v1493_v56  ;;  %1133 = vmatprep.subr.bf16.mxu1 %v1299_v0 }
 0x174   :  { %750 = vmatpush1.bf16.msra.mxu0 %v1500_v58  ;;  %1134 = vmatpush3.bf16.msra.mxu1 %v1523_v3 }
 0x175   :  { %751 = vmatprep.subr.bf16.mxu0 %v1503_v59  ;;  %1135 = vmatprep.subr.bf16.mxu1 %v1299_v0 }
 0x178   :  { %752 = vmatpush1.bf16.msra.mxu0 %v1510_v61  ;;  %1136 = vmatpush3.bf16.msra.mxu1 %v1530_v4 }
 0x179   :  { %844 = vmatprep.subr.bf16.mxu0 %v1432_v37  ;;  %1141 = vmatprep.subr.bf16.mxu1 %v1299_v0 }
 0x22e   :  { %v664_v62 = vpop.f32.mrb[8].mxu0  ;;  %v705_v24 = vpop.f32.mrb[8].mxu1 }
 0x22f   :  { %v665_v25 = vadd.f32 %v664_v62, %v1585_v31  ;;  %v666_v35 = vpop.f32.mrb[9].mxu0  ;;  %v1119_v36 = vpop.f32.mrb[9].mxu1  ;;  %v706_v14 = vadd.f32 %v705_v24, %v1591_v12 }
 0x230   :  { %v667_v38 = vadd.f32 %v666_v35, %v1587_v32  ;;  %v668_v42 = vpop.f32.mrb[10].mxu0  ;;  %v708_v45 = vpop.f32.mrb[10].mxu1 }
 0x231   :  { %v711_v2 = vadd.f32 %v665_v25, %v1573_v18  ;;  %v669_v6 = vpop.f32.mrb[11].mxu0  ;;  %v1120_v8 = vpop.f32.mrb[11].mxu1  ;;  %v932_v45 = vrot.slane %v1578_v22, 4 }
 0x232   :  { %v720_v9 = vadd.f32 %v718_v39, %v667_v38 }
 0x233   :  { %v1007_v37 = vmul.f32 -1.442695, %v711_v2 }
 0x234   :  { %v1008_v5 = vmul.f32 -1.442695, %v720_v9 }
 0x235   :  { %1242 = vpow2.f32 %v1007_v37 }
 0x236   :  { %1244 = vpow2.f32 %v1008_v5 }
 0x23f   :  { %v1243_v10 = vpop.eup %1242 }
 0x240   :  { %v715_v7 = vadd.f32 1.0, %v1243_v10  ;;  %v1245_v11 = vpop.eup %1244 }
 0x241   :  { %v724_v13 = vadd.f32 1.0, %v1245_v11 }
 0x242   :  { %1246 = vrcp.f32 %v715_v7 }
 0x243   :  { %1248 = vrcp.f32 %v724_v13 }
 0x24c   :  { %v1247_v15 = vpop.eup %1246 }
 0x24d   :  { %v727_v19 = vmul.f32 %v1247_v15, %v706_v14  ;;  %v1249_v26 = vpop.eup %1248 }
 0x24e   :  { %v730_v27 = vsub.f32 1.0, %v1249_v26  ;;  %v732_v33 = vmul.f32 %v1249_v26, %v1598_v20 }
 0x24f   :  { %v728_v18 = vadd.f32 %v727_v19, %v335_v16  ;;  %v338_v16 = vcombine.high %v1580_v28, %v1580_v28 }
 0x251   :  { %1250 = vtanh.f32 %v728_v18 }
 0x25b   :  { %v1251_v29 = vpop.eup %1250 }
 0x25c   :  { %v731_v23 = vmul.f32 %v1251_v29, %v730_v27 }
 0x25e   :  { %v1648_v34 = vadd.f32 %v732_v33, %v731_v23 }
 0x260   :  { %v734_v30 = vpack.c.bf16 %v1648_v34, %v1648_v34 }
 0x262   :  { %1009 = vst [vmem:[%s1713_s5 + $0x2] sm:$0x3] %v734_v30  ;;  %770 = vmatmul.mubr.bf16.vlgmr.msra.gmra.mrb[12].mxu0 %v734_v30  ;;  %1138 = vmatmul.mubr.bf16.vlgmr.msra.gmra.mrb[12].mxu1 %v734_v30 }
 0x263   :  { %845 = vmatpush1.bf16.msra.mxu0 %v1438_v40  ;;  %1142 = vmatpush3.bf16.msra.mxu1 %v1464_v48 }
 0x264   :  { %846 = vmatprep.subr.bf16.mxu0 %v1441_v41  ;;  %1143 = vmatprep.subr.bf16.mxu1 %v1299_v0 }
 0x265   :  { %876 = vmatprep.mubr.bf16.mxu0 %v1300_v1  ;;  %1157 = vmatprep.mubr.msk.bf16.mxu1 %vm1301_vm0, %v1299_v0 }
 0x267   :  { %847 = vmatpush1.bf16.msra.mxu0 %v1447_v43  ;;  %1144 = vmatpush3.bf16.msra.mxu1 %v1474_v51 }
 0x268   :  { %848 = vmatprep.subr.bf16.mxu0 %v1450_v44  ;;  %1145 = vmatprep.subr.bf16.mxu1 %v1299_v0 }
 0x26b   :  { %849 = vmatpush1.bf16.msra.mxu0 %v1459_v46  ;;  %1146 = vmatpush3.bf16.msra.mxu1 %v1486_v54 }
 0x26c   :  { %850 = vmatprep.subr.bf16.mxu0 %v1462_v47  ;;  %1147 = vmatprep.subr.bf16.mxu1 %v1299_v0  ;;  %v825_v47 = vrot.slane %v1576_v21, 4 }
 0x26f   :  { %851 = vmatpush1.bf16.msra.mxu0 %v1468_v49  ;;  %1148 = vmatpush3.bf16.msra.mxu1 %v1496_v57 }
 0x270   :  { %852 = vmatprep.subr.bf16.mxu0 %v1471_v50  ;;  %1149 = vmatprep.subr.bf16.mxu1 %v1299_v0 }
 0x273   :  { %853 = vmatpush1.bf16.msra.mxu0 %v1480_v52  ;;  %1150 = vmatpush3.bf16.msra.mxu1 %v1506_v60 }
 0x274   :  { %854 = vmatprep.subr.bf16.mxu0 %v1483_v53  ;;  %1151 = vmatprep.subr.bf16.mxu1 %v1299_v0 }
 0x277   :  { %855 = vmatpush1.bf16.msra.mxu0 %v1490_v55  ;;  %1152 = vmatpush3.bf16.msra.mxu1 %v1516_v63 }
 0x278   :  { %856 = vmatprep.subr.bf16.mxu0 %v1493_v56  ;;  %1153 = vmatprep.subr.bf16.mxu1 %v1299_v0 }
 0x27b   :  { %857 = vmatpush1.bf16.msra.mxu0 %v1500_v58  ;;  %1154 = vmatpush3.bf16.msra.mxu1 %v1523_v3 }
 0x27c   :  { %858 = vmatprep.subr.bf16.mxu0 %v1503_v59  ;;  %1155 = vmatprep.subr.bf16.mxu1 %v1299_v0 }
 0x27f   :  { %859 = vmatpush1.bf16.msra.mxu0 %v1510_v61  ;;  %1156 = vmatpush3.bf16.msra.mxu1 %v1530_v4 }
 0x335   :  { %v771_v1 = vpop.f32.mrb[12].mxu0  ;;  %v812_v40 = vpop.f32.mrb[12].mxu1 }
 0x336   :  { %v772_v41 = vadd.f32 %v771_v1, %v1585_v31  ;;  %v773_v43 = vpop.f32.mrb[13].mxu0  ;;  %v1139_v44 = vpop.f32.mrb[13].mxu1  ;;  %v813_v59 = vadd.f32 %v812_v40, %v1591_v12 }
 0x337   :  { %v774_v46 = vadd.f32 %v773_v43, %v1587_v32  ;;  %v775_v48 = vpop.f32.mrb[14].mxu0  ;;  %v815_v49 = vpop.f32.mrb[14].mxu1 }
 0x338   :  { %v818_v50 = vadd.f32 %v772_v41, %v1576_v21  ;;  %v776_v51 = vpop.f32.mrb[15].mxu0  ;;  %v1140_v0 = vpop.f32.mrb[15].mxu1 }
 0x339   :  { %v827_v52 = vadd.f32 %v825_v47, %v774_v46 }
 0x33a   :  { %v1010_v53 = vmul.f32 -1.442695, %v818_v50 }
 0x33b   :  { %v1011_v54 = vmul.f32 -1.442695, %v827_v52 }
 0x33c   :  { %1252 = vpow2.f32 %v1010_v53 }
 0x33d   :  { %1254 = vpow2.f32 %v1011_v54 }
 0x346   :  { %v1253_v55 = vpop.eup %1252 }
 0x347   :  { %v822_v56 = vadd.f32 1.0, %v1253_v55  ;;  %v1255_v57 = vpop.eup %1254 }
 0x348   :  { %v831_v58 = vadd.f32 1.0, %v1255_v57 }
 0x349   :  { %1256 = vrcp.f32 %v822_v56 }
 0x34a   :  { %1258 = vrcp.f32 %v831_v58 }
 0x353   :  { %v1257_v60 = vpop.eup %1256 }
 0x354   :  { %v834_v61 = vmul.f32 %v1257_v60, %v813_v59  ;;  %v1259_v3 = vpop.eup %1258 }
 0x355   :  { %v837_v4 = vsub.f32 1.0, %v1259_v3  ;;  %v839_v20 = vmul.f32 %v1259_v3, %v1648_v34 }
 0x356   :  { %v835_v63 = vadd.f32 %v834_v61, %v1580_v28 }
 0x358   :  { %1260 = vtanh.f32 %v835_v63 }
 0x362   :  { %v1261_v21 = vpop.eup %1260 }
 0x363   :  { %v838_v17 = vmul.f32 %v1261_v21, %v837_v4 }
 0x365   :  { %v840_v62 = vadd.f32 %v839_v20, %v838_v17 }
 0x367   :  { %v841_v24 = vpack.c.bf16 %v840_v62, %v840_v62 }
 0x369   :  { %1012 = vst [vmem:[%s1713_s5 + $0x4] sm:$0x3] %v841_v24  ;;  %877 = vmatmul.mubr.bf16.vlgmr.msra.gmra.mrb[16].mxu0 %v841_v24  ;;  %1158 = vmatmul.mubr.bf16.vlgmr.msra.gmra.mrb[16].mxu1 %v841_v24 }
 0x43c   :  { %v878_v25 = vpop.f32.mrb[16].mxu0  ;;  %v919_v35 = vpop.f32.mrb[16].mxu1 }
 0x43d   :  { %v879_v36 = vadd.f32 %v878_v25, %v1585_v31  ;;  %v880_v38 = vpop.f32.mrb[17].mxu0  ;;  %v1159_v39 = vpop.f32.mrb[17].mxu1 }
 0x43e   :  { %v881_v42 = vadd.f32 %v880_v38, %v1587_v32  ;;  %v882_v2 = vpop.f32.mrb[18].mxu0  ;;  %v922_v6 = vpop.f32.mrb[18].mxu1  ;;  %v920_v32 = vadd.f32 %v919_v35, %v1591_v12 }
 0x43f   :  { %v925_v8 = vadd.f32 %v879_v36, %v1578_v22  ;;  %v883_v9 = vpop.f32.mrb[19].mxu0  ;;  %v1160_v37 = vpop.f32.mrb[19].mxu1 }
 0x440   :  { %v934_v5 = vadd.f32 %v932_v45, %v881_v42 }
 0x441   :  { %v1013_v10 = vmul.f32 -1.442695, %v925_v8 }
 0x442   :  { %v1014_v7 = vmul.f32 -1.442695, %v934_v5 }
 0x443   :  { %1262 = vpow2.f32 %v1013_v10 }
 0x444   :  { %1264 = vpow2.f32 %v1014_v7 }
 0x44d   :  { %v1263_v11 = vpop.eup %1262 }
 0x44e   :  { %v929_v13 = vadd.f32 1.0, %v1263_v11  ;;  %v1265_v31 = vpop.eup %1264 }
 0x44f   :  { %v938_v14 = vadd.f32 1.0, %v1265_v31 }
 0x450   :  { %1266 = vrcp.f32 %v929_v13 }
 0x451   :  { %1268 = vrcp.f32 %v938_v14 }
 0x45a   :  { %v1267_v15 = vpop.eup %1266 }
 0x45b   :  { %v941_v19 = vmul.f32 %v1267_v15, %v920_v32  ;;  %v1269_v18 = vpop.eup %1268 }
 0x45c   :  { %v944_v26 = vsub.f32 1.0, %v1269_v18  ;;  %v946_v23 = vmul.f32 %v1269_v18, %v840_v62 }
 0x45d   :  { %v942_v22 = vadd.f32 %v941_v19, %v338_v16 }
 0x45f   :  { %1270 = vtanh.f32 %v942_v22 }
 0x469   :  { %v1271_v27 = vpop.eup %1270 }
 0x46a   :  { %v945_v29 = vmul.f32 %v1271_v27, %v944_v26 }
 0x46c   :  { %v947_v33 = vadd.f32 %v946_v23, %v945_v29 }
 0x46e   :  { %v948_v34 = vpack.c.bf16 %v947_v33, %v947_v33  ;;  %951 = vst [vmem:[#allocation2] sm:$0xf] %v947_v33 }
 0x470   :  { %1015 = vst [vmem:[%s1713_s5 + $0x6] sm:$0x3] %v948_v34 }
 0x471   :  { %956 = vsyncpa [#allocation4], 1 }

// kernel: thoc_forward.9
= control target key start
LH: loop header
LB: loop body
LE: loop exit
PB: predicated region body
PF: predicated region fallthrough
CT: control target
= control target key end

     0   :  { %v918_v1 = vmov 0.0   ;;  %v919_v2 = vmov 0   ;;  %vm920_vm0 = vmmov 0   ;;  %v921_v50 = vmov 0.0|0.0   ;;  %s1173_s1 = inlined_call_operand.vmem [shape: bf16[128,384], index: 1, kind: input, shape index: {}]   ;;  %s1174_s0 = inlined_call_operand.vmem [shape: bf16[2,8,128], index: 0, kind: input, shape index: {}]   ;;  %s1175_s3 = inlined_call_operand.vmem [shape: bf16[128,384], index: 3, kind: input, shape index: {}]   ;;  %s1176_s2 = inlined_call_operand.vmem [shape: f32[1,384], index: 2, kind: input, shape index: {}]   ;;  %s1177_s4 = inlined_call_operand.vmem [shape: f32[1,384], index: 4, kind: input, shape index: {}]   ;;  %s1178_s5 = inlined_call_operand.vmem [shape: bf16[2,8,128], index: 5, kind: output, shape index: {}]  }
   0x1   :  { %v833_v0 = vld [vmem:[%s1173_s1 + $0x4] ss:$12 sps:$4 sm:$0xff]   ;;  %769 = vmatprep.subr.bf16.mxu1 %v918_v1  ;;  %243 = vmatprep.mubr.bf16.mxu0 %v919_v2  ;;  %v835_v3 = vld [vmem:[%s1173_s1] ss:$12 sps:$4 sm:$0xff]   ;;  %v836_v4 = vld [vmem:[%s1173_s1 + $0x1c] ss:$12 sps:$4 sm:$0xff]   ;;  %v62_v52 = vlaneseq }
   0x2   :  { %785 = vmatprep.mubr.msk.bf16.mxu1 %vm920_vm0, %v918_v1  ;;  %211 = vmatprep.subr.bf16.mxu0 %v833_v0  ;;  %v838_v5 = vld [vmem:[%s1173_s1 + $0x18] ss:$12 sps:$4 sm:$0xff]   ;;  %v839_v6 = vld [vmem:[%s1173_s1 + $0x34] ss:$12 sps:$4 sm:$0xff]   ;;  %v841_v7 = vld [vmem:[%s1173_s1 + $0x30] ss:$12 sps:$4 sm:$0xff]  }
   0x3   :  { %212 = vmatpush1.bf16.msra.mxu0 %v835_v3  ;;  %v842_v8 = vld [vmem:[%s1173_s1 + $0x4c] ss:$12 sps:$4 sm:$0xff]   ;;  %v854_v9 = vld [vmem:[%s1173_s1 + $0x8] ss:$12 sps:$4 sm:$0xff]   ;;  %v845_v11 = vld [vmem:[%s1173_s1 + $0x64] ss:$12 sps:$4 sm:$0xff]  }
   0x4   :  { %213 = vmatprep.subr.bf16.mxu0 %v836_v4  ;;  %v844_v10 = vld [vmem:[%s1173_s1 + $0x48] ss:$12 sps:$4 sm:$0xff]   ;;  %770 = vmatpush3.bf16.msra.mxu1 %v854_v9  ;;  %v858_v12 = vld [vmem:[%s1173_s1 + $0x20] ss:$12 sps:$4 sm:$0xff]   ;;  %v863_v15 = vld [vmem:[%s1173_s1 + $0x38] ss:$12 sps:$4 sm:$0xff]  }
   0x5   :  { %771 = vmatprep.subr.bf16.mxu1 %v918_v1  ;;  %v847_v13 = vld [vmem:[%s1173_s1 + $0x60] ss:$12 sps:$4 sm:$0xff]   ;;  %v848_v14 = vld [vmem:[%s1173_s1 + $0x7c] ss:$12 sps:$4 sm:$0xff]   ;;  %v850_v16 = vld [vmem:[%s1173_s1 + $0x78] ss:$12 sps:$4 sm:$0xff]  }
   0x6   :  { %v851_v17 = vld [vmem:[%s1173_s1 + $0x94] ss:$12 sps:$4 sm:$0xff]   ;;  %v867_v18 = vld [vmem:[%s1173_s1 + $0x50] ss:$12 sps:$4 sm:$0xff]   ;;  %v855_v20 = vld [vmem:[%s1173_s1 + $0xac] ss:$12 sps:$4 sm:$0xff]  }
   0x7   :  { %214 = vmatpush1.bf16.msra.mxu0 %v838_v5  ;;  %v853_v19 = vld [vmem:[%s1173_s1 + $0x90] ss:$12 sps:$4 sm:$0xff]   ;;  %v871_v21 = vld [vmem:[%s1173_s1 + $0x68] ss:$12 sps:$4 sm:$0xff]   ;;  %v875_v24 = vld [vmem:[%s1173_s1 + $0x80] ss:$12 sps:$4 sm:$0xff]  }
   0x8   :  { %215 = vmatprep.subr.bf16.mxu0 %v839_v6  ;;  %772 = vmatpush3.bf16.msra.mxu1 %v858_v12  ;;  %v857_v22 = vld [vmem:[%s1173_s1 + $0xa8] ss:$12 sps:$4 sm:$0xff]   ;;  %v1026_v23 = vld [vmem:[%s1175_s3 + $0x4] ss:$12 sps:$4 sm:$0xff]   ;;  %v1038_v26 = vld [vmem:[%s1175_s3] ss:$12 sps:$4 sm:$0xff]  }
   0x9   :  { %773 = vmatprep.subr.bf16.mxu1 %v918_v1  ;;  %v859_v25 = vld [vmem:[%s1174_s0] sm:$0xff]   ;;  %v1043_v27 = vld [vmem:[%s1175_s3 + $0x1c] ss:$12 sps:$4 sm:$0xff]   ;;  %v874_v33 = vld [vmem:[%s1175_s3 + $0x4c] ss:$12 sps:$4 sm:$0xff]   ;;  %v63_v53 = vshrl.u32 %v62_v52, 7 }
   0xa   :  { %v879_v28 = vld [vmem:[%s1173_s1 + $0x98] ss:$12 sps:$4 sm:$0xff]   ;;  %v1059_v30 = vld [vmem:[%s1175_s3 + $0x34] ss:$12 sps:$4 sm:$0xff]   ;;  %v883_v31 = vld [vmem:[%s1173_s1 + $0xb0] ss:$12 sps:$4 sm:$0xff]  }
   0xb   :  { %216 = vmatpush1.bf16.msra.mxu0 %v841_v7  ;;  %v1053_v29 = vld [vmem:[%s1175_s3 + $0x18] ss:$12 sps:$4 sm:$0xff]   ;;  %v868_v32 = vld [vmem:[%s1175_s3 + $0x30] ss:$12 sps:$4 sm:$0xff]   ;;  %v887_v34 = vld [vmem:[%s1175_s3 + $0x8] ss:$12 sps:$4 sm:$0xff]  }
   0xc   :  { %217 = vmatprep.subr.bf16.mxu0 %v842_v8  ;;  %774 = vmatpush3.bf16.msra.mxu1 %v863_v15  ;;  %v872_v35 = vld [vmem:[%s1175_s3 + $0x48] ss:$12 sps:$4 sm:$0xff]   ;;  %v878_v36 = vld [vmem:[%s1175_s3 + $0x64] ss:$12 sps:$4 sm:$0xff]   ;;  %v891_v37 = vld [vmem:[%s1175_s3 + $0x20] ss:$12 sps:$4 sm:$0xff]  }
   0xd   :  { %775 = vmatprep.subr.bf16.mxu1 %v918_v1  ;;  %v876_v38 = vld [vmem:[%s1175_s3 + $0x60] ss:$12 sps:$4 sm:$0xff]   ;;  %v882_v39 = vld [vmem:[%s1175_s3 + $0x7c] ss:$12 sps:$4 sm:$0xff]   ;;  %v892_v40 = vld [vmem:[%s1175_s3 + $0x38] ss:$12 sps:$4 sm:$0xff]  }
   0xe   :  { %v880_v41 = vld [vmem:[%s1175_s3 + $0x78] ss:$12 sps:$4 sm:$0xff]   ;;  %v886_v42 = vld [vmem:[%s1175_s3 + $0x94] ss:$12 sps:$4 sm:$0xff]   ;;  %v893_v43 = vld [vmem:[%s1175_s3 + $0x50] ss:$12 sps:$4 sm:$0xff]  }
   0xf   :  { %218 = vmatpush1.bf16.msra.mxu0 %v844_v10  ;;  %v884_v44 = vld [vmem:[%s1175_s3 + $0x90] ss:$12 sps:$4 sm:$0xff]   ;;  %v890_v45 = vld [vmem:[%s1175_s3 + $0xac] ss:$12 sps:$4 sm:$0xff]   ;;  %v894_v46 = vld [vmem:[%s1175_s3 + $0x68] ss:$12 sps:$4 sm:$0xff]  }
  0x10   :  { %219 = vmatprep.subr.bf16.mxu0 %v845_v11  ;;  %776 = vmatpush3.bf16.msra.mxu1 %v867_v18  ;;  %v888_v47 = vld [vmem:[%s1175_s3 + $0xa8] ss:$12 sps:$4 sm:$0xff]   ;;  %v895_v48 = vld [vmem:[%s1175_s3 + $0x80] ss:$12 sps:$4 sm:$0xff]   ;;  %v896_v49 = vld [vmem:[%s1175_s3 + $0x98] ss:$12 sps:$4 sm:$0xff]  }
  0x11   :  { %777 = vmatprep.subr.bf16.mxu1 %v918_v1  ;;  %v897_v51 = vld [vmem:[%s1175_s3 + $0xb0] ss:$12 sps:$4 sm:$0xff]   ;;  %v64_v54 = vsub.s32 0, %v63_v53  ;;  %v60_v55 = vld [vmem:[%s1176_s2] sm:$0x7]  ;;  %v68_v56 = vsub.s32 1, %v63_v53 }
  0x12   :  { %v327_v8 = vld [vmem:[%s1177_s4] sm:$0x7] }
  0x13   :  { %220 = vmatpush1.bf16.msra.mxu0 %v847_v13  ;;  %v65_v57 = vrot.slane %v60_v55, %v64_v54  ;;  %v69_v60 = vrot.slane %v60_v55, %v68_v56  ;;  %v334_v9 = vrot.slane %v327_v8, %v64_v54  ;;  %v338_v10 = vrot.slane %v327_v8, %v68_v56 }
  0x14   :  { %221 = vmatprep.subr.bf16.mxu0 %v848_v14  ;;  %778 = vmatpush3.bf16.msra.mxu1 %v871_v21 }
  0x15   :  { %779 = vmatprep.subr.bf16.mxu1 %v918_v1 }
  0x17   :  { %222 = vmatpush1.bf16.msra.mxu0 %v850_v16 }
  0x18   :  { %223 = vmatprep.subr.bf16.mxu0 %v851_v17  ;;  %780 = vmatpush3.bf16.msra.mxu1 %v875_v24 }
  0x19   :  { %781 = vmatprep.subr.bf16.mxu1 %v918_v1 }
  0x1b   :  { %224 = vmatpush1.bf16.msra.mxu0 %v853_v19 }
  0x1c   :  { %225 = vmatprep.subr.bf16.mxu0 %v855_v20  ;;  %782 = vmatpush3.bf16.msra.mxu1 %v879_v28 }
  0x1d   :  { %783 = vmatprep.subr.bf16.mxu1 %v918_v1 }
  0x1f   :  { %226 = vmatpush1.bf16.msra.mxu0 %v857_v22 }
  0x20   :  { %474 = vmatprep.subr.bf16.mxu0 %v1026_v23  ;;  %784 = vmatpush3.bf16.msra.mxu1 %v883_v31 }
  0x21   :  { %789 = vmatprep.subr.bf16.mxu1 %v918_v1 }
  0x22   :  { %244 = vmatmul.mubr.bf16.vlgmr.msra.gmra.mrb[0].mxu0 %v859_v25 }
  0x23   :  { %475 = vmatpush1.bf16.msra.mxu0 %v1038_v26  ;;  %506 = vmatprep.mubr.bf16.mxu0 %v919_v2 }
  0x24   :  { %476 = vmatprep.subr.bf16.mxu0 %v1043_v27  ;;  %786 = vmatmul.mubr.bf16.vlgmr.msra.gmra.mrb[0].mxu1 %v859_v25 }
  0x25   :  { %790 = vmatpush3.bf16.msra.mxu1 %v887_v34  ;;  %805 = vmatprep.mubr.msk.bf16.mxu1 %vm920_vm0, %v918_v1 }
  0x26   :  { %791 = vmatprep.subr.bf16.mxu1 %v918_v1 }
  0x27   :  { %477 = vmatpush1.bf16.msra.mxu0 %v1053_v29 }
  0x28   :  { %478 = vmatprep.subr.bf16.mxu0 %v1059_v30 }
  0x29   :  { %792 = vmatpush3.bf16.msra.mxu1 %v891_v37 }
  0x2a   :  { %793 = vmatprep.subr.bf16.mxu1 %v918_v1 }
  0x2b   :  { %479 = vmatpush1.bf16.msra.mxu0 %v868_v32 }
  0x2c   :  { %480 = vmatprep.subr.bf16.mxu0 %v874_v33 }
  0x2d   :  { %794 = vmatpush3.bf16.msra.mxu1 %v892_v40 }
  0x2e   :  { %795 = vmatprep.subr.bf16.mxu1 %v918_v1 }
  0x2f   :  { %481 = vmatpush1.bf16.msra.mxu0 %v872_v35 }
  0x30   :  { %482 = vmatprep.subr.bf16.mxu0 %v878_v36 }
  0x31   :  { %796 = vmatpush3.bf16.msra.mxu1 %v893_v43 }
  0x32   :  { %797 = vmatprep.subr.bf16.mxu1 %v918_v1 }
  0x33   :  { %483 = vmatpush1.bf16.msra.mxu0 %v876_v38 }
  0x34   :  { %484 = vmatprep.subr.bf16.mxu0 %v882_v39 }
  0x35   :  { %798 = vmatpush3.bf16.msra.mxu1 %v894_v46 }
  0x36   :  { %799 = vmatprep.subr.bf16.mxu1 %v918_v1 }
  0x37   :  { %485 = vmatpush1.bf16.msra.mxu0 %v880_v41 }
  0x38   :  { %486 = vmatprep.subr.bf16.mxu0 %v886_v42 }
  0x39   :  { %800 = vmatpush3.bf16.msra.mxu1 %v895_v48 }
  0x3a   :  { %801 = vmatprep.subr.bf16.mxu1 %v918_v1 }
  0x3b   :  { %487 = vmatpush1.bf16.msra.mxu0 %v884_v44 }
  0x3c   :  { %488 = vmatprep.subr.bf16.mxu0 %v890_v45 }
  0x3d   :  { %802 = vmatpush3.bf16.msra.mxu1 %v896_v49 }
  0x3e   :  { %803 = vmatprep.subr.bf16.mxu1 %v918_v1 }
  0x3f   :  { %489 = vmatpush1.bf16.msra.mxu0 %v888_v47 }
  0x40   :  { %578 = vmatprep.subr.bf16.mxu0 %v1026_v23 }
  0x41   :  { %804 = vmatpush3.bf16.msra.mxu1 %v897_v51 }
  0x42   :  { %507 = vmatmul.mubr.bf16.vlgmr.msra.gmra.mrb[4].mxu0 %v921_v50  ;;  %809 = vmatprep.subr.bf16.mxu1 %v918_v1 }
  0x43   :  { %579 = vmatpush1.bf16.msra.mxu0 %v1038_v26  ;;  %610 = vmatprep.mubr.bf16.mxu0 %v919_v2 }
  0x44   :  { %580 = vmatprep.subr.bf16.mxu0 %v1043_v27  ;;  %806 = vmatmul.mubr.bf16.vlgmr.msra.gmra.mrb[4].mxu1 %v921_v50 }
  0x45   :  { %810 = vmatpush3.bf16.msra.mxu1 %v887_v34  ;;  %825 = vmatprep.mubr.msk.bf16.mxu1 %vm920_vm0, %v918_v1 }
  0x46   :  { %811 = vmatprep.subr.bf16.mxu1 %v918_v1 }
  0x47   :  { %581 = vmatpush1.bf16.msra.mxu0 %v1053_v29 }
  0x48   :  { %582 = vmatprep.subr.bf16.mxu0 %v1059_v30 }
  0x49   :  { %812 = vmatpush3.bf16.msra.mxu1 %v891_v37 }
  0x4a   :  { %813 = vmatprep.subr.bf16.mxu1 %v918_v1 }
  0x4b   :  { %583 = vmatpush1.bf16.msra.mxu0 %v868_v32 }
  0x4c   :  { %584 = vmatprep.subr.bf16.mxu0 %v874_v33 }
  0x4d   :  { %814 = vmatpush3.bf16.msra.mxu1 %v892_v40 }
  0x4e   :  { %815 = vmatprep.subr.bf16.mxu1 %v918_v1 }
  0x4f   :  { %585 = vmatpush1.bf16.msra.mxu0 %v872_v35 }
  0x50   :  { %586 = vmatprep.subr.bf16.mxu0 %v878_v36 }
  0x51   :  { %816 = vmatpush3.bf16.msra.mxu1 %v893_v43 }
  0x52   :  { %817 = vmatprep.subr.bf16.mxu1 %v918_v1 }
  0x53   :  { %587 = vmatpush1.bf16.msra.mxu0 %v876_v38 }
  0x54   :  { %588 = vmatprep.subr.bf16.mxu0 %v882_v39 }
  0x55   :  { %818 = vmatpush3.bf16.msra.mxu1 %v894_v46 }
  0x56   :  { %819 = vmatprep.subr.bf16.mxu1 %v918_v1 }
  0x57   :  { %589 = vmatpush1.bf16.msra.mxu0 %v880_v41 }
  0x58   :  { %590 = vmatprep.subr.bf16.mxu0 %v886_v42 }
  0x59   :  { %820 = vmatpush3.bf16.msra.mxu1 %v895_v48 }
  0x5a   :  { %821 = vmatprep.subr.bf16.mxu1 %v918_v1 }
  0x5b   :  { %591 = vmatpush1.bf16.msra.mxu0 %v884_v44 }
  0x5c   :  { %592 = vmatprep.subr.bf16.mxu0 %v890_v45 }
  0x5d   :  { %822 = vmatpush3.bf16.msra.mxu1 %v896_v49 }
  0x5e   :  { %823 = vmatprep.subr.bf16.mxu1 %v918_v1  ;;  %v72_v1 = vsub.s32 2, %v63_v53 }
  0x5f   :  { %593 = vmatpush1.bf16.msra.mxu0 %v888_v47 }
  0x60   :  { %v73_v2 = vrot.slane %v60_v55, %v72_v1  ;;  %v342_v29 = vrot.slane %v327_v8, %v72_v1 }
  0x61   :  { %824 = vmatpush3.bf16.msra.mxu1 %v897_v51 }
  0xf5   :  { %v245_v58 = vpop.f32.mrb[0].mxu0 }
  0xf6   :  { %v247_v59 = vpop.f32.mrb[1].mxu0  ;;  %v246_v12 = vadd.f32 %v245_v58, %v65_v57 }
  0xf7   :  { %v249_v61 = vpop.f32.mrb[2].mxu0  ;;  %v288_v3 = vpop.f32.mrb[0].mxu1  ;;  %v248_v15 = vadd.f32 %v247_v59, %v69_v60 }
  0xf8   :  { %v1155_v62 = vadd.f32 %v249_v61, %v65_v57  ;;  %v251_v63 = vpop.f32.mrb[3].mxu0  ;;  %v787_v4 = vpop.f32.mrb[1].mxu1  ;;  %v289_v34 = vadd.f32 %v288_v3, %v73_v2 }
  0xf9   :  { %v1157_v0 = vadd.f32 %v251_v63, %v69_v60  ;;  %v291_v5 = vpop.f32.mrb[2].mxu1 }
  0xfa   :  { %v1159_v6 = vadd.f32 %v291_v5, %v73_v2  ;;  %v788_v7 = vpop.f32.mrb[3].mxu1 }
 0x115   :  { %v508_v11 = vpop.f32.mrb[4].mxu0 }
 0x116   :  { %v509_v13 = vadd.f32 %v508_v11, %v334_v9  ;;  %v510_v14 = vpop.f32.mrb[5].mxu0 }
 0x117   :  { %v511_v16 = vadd.f32 %v510_v14, %v338_v10  ;;  %v512_v17 = vpop.f32.mrb[6].mxu0  ;;  %v549_v22 = vpop.f32.mrb[4].mxu1 }
 0x118   :  { %v555_v18 = vadd.f32 %v509_v13, %v246_v12  ;;  %v513_v19 = vpop.f32.mrb[7].mxu0  ;;  %v807_v24 = vpop.f32.mrb[5].mxu1  ;;  %v550_v32 = vadd.f32 %v549_v22, %v342_v29 }
 0x119   :  { %v562_v20 = vadd.f32 %v511_v16, %v248_v15  ;;  %v552_v25 = vpop.f32.mrb[6].mxu1 }
 0x11a   :  { %v737_v21 = vmul.f32 -1.442695, %v555_v18  ;;  %v808_v26 = vpop.f32.mrb[7].mxu1 }
 0x11b   :  { %v738_v23 = vmul.f32 -1.442695, %v562_v20 }
 0x11c   :  { %898 = vpow2.f32 %v737_v21 }
 0x11d   :  { %900 = vpow2.f32 %v738_v23 }
 0x126   :  { %v899_v27 = vpop.eup %898 }
 0x127   :  { %v559_v28 = vadd.f32 1.0, %v899_v27  ;;  %v901_v30 = vpop.eup %900 }
 0x128   :  { %v566_v31 = vadd.f32 1.0, %v901_v30 }
 0x129   :  { %902 = vrcp.f32 %v559_v28 }
 0x12a   :  { %904 = vrcp.f32 %v566_v31 }
 0x133   :  { %v903_v33 = vpop.eup %902 }
 0x134   :  { %v569_v35 = vmul.f32 %v903_v33, %v550_v32  ;;  %v905_v37 = vpop.eup %904 }
 0x135   :  { %v572_v38 = vsub.f32 1.0, %v905_v37  ;;  %v574_v41 = vmul.f32 0.0, %v905_v37 }
 0x136   :  { %v570_v36 = vadd.f32 %v569_v35, %v289_v34 }
 0x138   :  { %906 = vtanh.f32 %v570_v36 }
 0x142   :  { %v907_v39 = vpop.eup %906 }
 0x143   :  { %v573_v40 = vmul.f32 %v907_v39, %v572_v38 }
 0x145   :  { %v575_v42 = vadd.f32 %v574_v41, %v573_v40 }
 0x147   :  { %v576_v43 = vpack.c.bf16 %v575_v42, %v575_v42 }
 0x149   :  { %577 = vst [vmem:[%s1178_s5] sm:$0xf] %v576_v43  ;;  %611 = vmatmul.mubr.bf16.vlgmr.msra.gmra.mrb[8].mxu0 %v576_v43  ;;  %826 = vmatmul.mubr.bf16.vlgmr.msra.gmra.mrb[8].mxu1 %v576_v43 }
 0x21c   :  { %v612_v44 = vpop.f32.mrb[8].mxu0  ;;  %v653_v45 = vpop.f32.mrb[8].mxu1 }
 0x21d   :  { %v613_v46 = vadd.f32 %v612_v44, %v334_v9  ;;  %v614_v47 = vpop.f32.mrb[9].mxu0  ;;  %v827_v48 = vpop.f32.mrb[9].mxu1  ;;  %v654_v63 = vadd.f32 %v653_v45, %v342_v29 }
 0x21e   :  { %v615_v49 = vadd.f32 %v614_v47, %v338_v10  ;;  %v616_v50 = vpop.f32.mrb[10].mxu0  ;;  %v656_v51 = vpop.f32.mrb[10].mxu1 }
 0x21f   :  { %v659_v52 = vadd.f32 %v613_v46, %v1155_v62  ;;  %v617_v53 = vpop.f32.mrb[11].mxu0  ;;  %v828_v54 = vpop.f32.mrb[11].mxu1 }
 0x220   :  { %v666_v55 = vadd.f32 %v615_v49, %v1157_v0 }
 0x221   :  { %v739_v56 = vmul.f32 -1.442695, %v659_v52 }
 0x222   :  { %v740_v57 = vmul.f32 -1.442695, %v666_v55 }
 0x223   :  { %908 = vpow2.f32 %v739_v56 }
 0x224   :  { %910 = vpow2.f32 %v740_v57 }
 0x22d   :  { %v909_v58 = vpop.eup %908 }
 0x22e   :  { %v663_v59 = vadd.f32 1.0, %v909_v58  ;;  %v911_v60 = vpop.eup %910 }
 0x22f   :  { %v670_v61 = vadd.f32 1.0, %v911_v60 }
 0x230   :  { %912 = vrcp.f32 %v663_v59 }
 0x231   :  { %914 = vrcp.f32 %v670_v61 }
 0x23a   :  { %v913_v1 = vpop.eup %912 }
 0x23b   :  { %v673_v2 = vmul.f32 %v913_v1, %v654_v63  ;;  %v915_v62 = vpop.eup %914 }
 0x23c   :  { %v676_v4 = vsub.f32 1.0, %v915_v62  ;;  %v678_v7 = vmul.f32 %v915_v62, %v575_v42 }
 0x23d   :  { %v674_v3 = vadd.f32 %v673_v2, %v1159_v6 }
 0x23f   :  { %916 = vtanh.f32 %v674_v3 }
 0x249   :  { %v917_v5 = vpop.eup %916 }
 0x24a   :  { %v677_v0 = vmul.f32 %v917_v5, %v676_v4 }
 0x24c   :  { %v679_v8 = vadd.f32 %v678_v7, %v677_v0 }
 0x24e   :  { %v680_v9 = vpack.c.bf16 %v679_v8, %v679_v8 }
 0x250   :  { %741 = vst [vmem:[%s1178_s5 + $0x4] sm:$0xf] %v680_v9 }

// kernel: thoc_forward.13
= control target key start
LH: loop header
LB: loop body
LE: loop exit
PB: predicated region body
PF: predicated region fallthrough
CT: control target
= control target key end

     0   :  { %v257_v1 = vmov 0.0   ;;  %vm258_vm0 = vmmov 0   ;;  %s333_s0 = inlined_call_operand.vmem [shape: bf16[8,128], index: 0, kind: input, shape index: {}]   ;;  %s334_s1 = inlined_call_operand.vmem [shape: bf16[128,4], index: 1, kind: input, shape index: {}]   ;;  %s335_s2 = inlined_call_operand.vmem [shape: f32[1,4], index: 2, kind: input, shape index: {}]   ;;  %s336_s3 = inlined_call_operand.vmem [shape: f32[8,4], index: 3, kind: input, shape index: {}]   ;;  %s337_s4 = inlined_call_operand.hbm [shape: f32[1,1], index: 4, kind: output, shape index: {}]  }
   0x1   :  { %v225_v0 = vld [vmem:[%s334_s1] sm:$0xff]   ;;  %200 = vmatprep.subr.bf16.mxu0 %v257_v1  ;;  %v226_v2 = vld [vmem:[%s334_s1 + $0x8] sm:$0xff]   ;;  %216 = vmatprep.mubr.msk.bf16.mxu0 %vm258_vm0, %v257_v1  ;;  %v227_v3 = vld [vmem:[%s334_s1 + $0x10] sm:$0xff]  }
   0x2   :  { %201 = vmatpush3.bf16.msra.mxu0 %v225_v0 }
   0x3   :  { %202 = vmatprep.subr.bf16.mxu0 %v257_v1 }
   0x6   :  { %203 = vmatpush3.bf16.msra.mxu0 %v226_v2 }
   0x7   :  { %204 = vmatprep.subr.bf16.mxu0 %v257_v1 }
   0x8   :  { %9 = vsyncpa [#allocation4], 0  ;;  %v228_v4 = vld [vmem:[%s334_s1 + $0x18] sm:$0xff]   ;;  %v229_v5 = vld [vmem:[%s334_s1 + $0x20] sm:$0xff]   ;;  %vm148_vm1 = vcmask 31744   ;;  %vm23_vm2 = vcmask 0  }
   0x9   :  { %v230_v6 = vld [vmem:[%s334_s1 + $0x28] sm:$0xff]   ;;  %v231_v7 = vld [vmem:[%s334_s1 + $0x30] sm:$0xff]   ;;  %v232_v8 = vld [vmem:[%s334_s1 + $0x38] sm:$0xff]   ;;  %24 = vst.msk [vmem:[#allocation2] sm:$0x1] %vm23_vm2, %v257_v1  ;;  %s259_s1 = smov [#allocation3]  }
   0xa   :  { %205 = vmatpush3.bf16.msra.mxu0 %v227_v3  ;;  %v25_v9 = vld [vmem:[%s333_s0] sm:$0xf] }
   0xb   :  { %206 = vmatprep.subr.bf16.mxu0 %v257_v1  ;;  %v182_v10 = vld [vmem:[%s335_s2] ss:$0 sm:$0xff]  ;;  %s174_s2 = sshll.u32 %s259_s1, 4  ;;  %s175_s2 = int_to_ptr.vmem [resolvable:$true] %s174_s2 }
   0xc   :  { %v137_v12 = vld [vmem:[%s336_s3] sm:$0xff]  ;;  %s233_s3 = scalar_lea.vmem %s175_s2, 16  ;;  %s237_s11 = scalar_lea.vmem %s175_s2, 32 }
   0xd   :  { %p234_p0 = scmp.ne.s32.totalorder %s175_s2, %s233_s3  ;;  %p238_p1 = scmp.lt.s32.totalorder %s175_s2, %s175_s2 }
   0xe   :  { %207 = vmatpush3.bf16.msra.mxu0 %v228_v4  ;;  %p239_p2 = scmp.lt.s32.totalorder %s237_s11, %s233_s3 }
   0xf   :  { %208 = vmatprep.subr.bf16.mxu0 %v257_v1 }
  0x10   :  { %v147_v27 = vld [vmem:[#allocation2] sm:$0x1]  ;;  %p240_p3 = por %p239_p2, %p238_p1 }
  0x12   :  { %209 = vmatpush3.bf16.msra.mxu0 %v229_v5  ;;  %p241_p4 = pnand %p240_p3, %p234_p0 }
  0x13   :  { %210 = vmatprep.subr.bf16.mxu0 %v257_v1 }
  0x16   :  { %211 = vmatpush3.bf16.msra.mxu0 %v230_v6 }
  0x17   :  { %212 = vmatprep.subr.bf16.mxu0 %v257_v1 }
  0x1a   :  { %213 = vmatpush3.bf16.msra.mxu0 %v231_v7 }
  0x1b   :  { %214 = vmatprep.subr.bf16.mxu0 %v257_v1 }
  0x1e   :  { %215 = vmatpush3.bf16.msra.mxu0 %v232_v8 }
  0x21   :  { %217 = vmatmul.mubr.bf16.vlgmr.msra.gmra.mrb[0].mxu0 %v25_v9 }
  0xf4   :  { %v131_v11 = vpop.f32.mrb[0].mxu0 }
  0xf5   :  { %v132_v13 = vadd.f32 %v182_v10, %v131_v11  ;;  %v218_v14 = vpop.f32.mrb[1].mxu0 }
  0xf6   :  { %v134_v15 = vpop.f32.mrb[2].mxu0 }
  0xf7   :  { %v219_v16 = vpop.f32.mrb[3].mxu0  ;;  %v138_v17 = vsub.f32 %v132_v13, %v137_v12 }
  0xf9   :  { %v145_v18 = vmul.f32 %v138_v17, %v138_v17 }
  0xfb   :  { %v149_v19 = vsel %vm148_vm1, %v145_v18, 0.0 }
  0xfc   :  { %150 = vadd.xlane.f32.xlu0 %v149_v19 }
 0x189   :  { %v151_v20 = vpop.xlane.xlu0 %150 }
 0x18a   :  { %v152_v21 = vrot.slane %v151_v20, 4 }
 0x18c   :  { %v153_v22 = vadd.f32 %v152_v21, %v151_v20 }
 0x18e   :  { %v154_v23 = vrot.slane %v153_v22, 2 }
 0x190   :  { %v155_v24 = vadd.f32 %v154_v23, %v153_v22 }
 0x192   :  { %v156_v25 = vrot.slane %v155_v24, 1 }
 0x194   :  { %v157_v26 = vadd.f32 %v156_v25, %v155_v24 }
 0x196   :  { %220 = vpush %v157_v26 }
 0x1c7   :  { %s221_s0 = spop %220 }
 0x1c8   :  { %v159_v28 = vstv %s221_s0 }
 0x1c9   :  { %v160_v29 = vadd.f32 %v159_v28, %v147_v27 }
 0x1cb   :  { %162 = vst.msk [vmem:[#allocation2] sm:$0x1] %vm23_vm2, %v160_v29 }
 0x1d2   :  { %v166_v30 = vld [vmem:[#allocation2] sm:$0x1] }
 0x1d3   :  { %167 = vst.msk [vmem:[#allocation3] sm:$0x1] %vm23_vm2, %v166_v30 }
 0x1d4   :  { %244 = shalt.err (!%p241_p4)
}
 0x1d5   :  { %s245_s14 = scalar_lea.hbm %s337_s4, 16 }
 0x1d6   :  { %p246_p5 = scmp.ne.s32.totalorder %s337_s4, %s245_s14  ;;  %p249_p6 = scmp.lt.u32.totalorder %s245_s14, %s337_s4 }
 0x1d8   :  { %p251_p7 = pnand %p249_p6, %p246_p5 }
 0x1da   :  { %254 = shalt.err (!%p251_p7)
}
 0x1db   :  { %177 = dma.vmem_to_hbm [thread:$0]  %s175_s2, 16, %s337_s4, [#allocation4]  }
 0x1dc   :  { %255 = dma.done.wait [#allocation4], 16  }
 0x1dd   :  { %256 = vsyncadd [#allocation4], 4294967280 }
 0x1de   :  { %181 = vsyncpa [#allocation4], 1 }

// kernel: thoc_forward.10
= control target key start
LH: loop header
LB: loop body
LE: loop exit
PB: predicated region body
PF: predicated region fallthrough
CT: control target
= control target key end

     0   :  { %vm54_vm0 = vcmask 253952   ;;  %vm81_vm1 = vcmask 48128   ;;  %v3717_v33 = vmov 0.0|0.0   ;;  %vm3718_vm4 = vmmov 0   ;;  %s4529_s0 = inlined_call_operand.vmem [shape: f32[2,1,32], index: 0, kind: input, shape index: {}]   ;;  %s4530_s2 = inlined_call_operand.vmem [shape: f32[3,32,6], index: 2, kind: input, shape index: {}]   ;;  %s4531_s3 = inlined_call_operand.vmem [shape: f32[3,32,32], index: 3, kind: input, shape index: {}]   ;;  %s4532_s5 = inlined_call_operand.vmem [shape: f32[64,64], index: 5, kind: input, shape index: {}]   ;;  %s4533_s1 = inlined_call_operand.vmem [shape: f32[2,2,32], index: 1, kind: input, shape index: {}]   ;;  %s4534_s4 = inlined_call_operand.vmem [shape: f32[3,1,32], index: 4, kind: input, shape index: {}]   ;;  %s4535_s7 = inlined_call_operand.vmem [shape: f32[64,32], index: 7, kind: input, shape index: {}]   ;;  %s4536_s9 = inlined_call_operand.vmem [shape: f32[32,32], index: 9, kind: input, shape index: {}]   ;;  %s4537_s6 = inlined_call_operand.vmem [shape: f32[1,64], index: 6, kind: input, shape index: {}]   ;;  %s4538_s8 = inlined_call_operand.vmem [shape: f32[1,32], index: 8, kind: input, shape index: {}]   ;;  %s4539_s10 = inlined_call_operand.vmem [shape: f32[1,32], index: 10, kind: input, shape index: {}]   ;;  %s4540_s11 = inlined_call_operand.vmem [shape: f32[2,3], index: 11, kind: output, shape index: {}]  }
   0x1   :  { %v3788_v0 = vld [vmem:[%s4529_s0] sm:$0x1]  ;;  %v3793_v1 = vld [vmem:[%s4529_s0 + $0x1] sm:$0x1]  ;;  %v49_v5 = vld [vmem:[%s4530_s2 + $0x8] sm:$0xff]  ;;  %3489 = vmatprep.subr.bf16.mxu0 %v3717_v33  ;;  %v3719_v34 = vmov 0.0   ;;  %3495 = vmatprep.subr.bf16.mxu1 %v3717_v33  ;;  %v118_v58 = vlaneseq }
   0x2   :  { %v48_v2 = vld [vmem:[%s4530_s2] sm:$0xff]  ;;  %v52_v3 = vmul.f32 %v3788_v0, %v3788_v0  ;;  %v53_v4 = vmul.f32 %v3793_v1, %v3793_v1  ;;  %v50_v6 = vld [vmem:[%s4530_s2 + $0x10] sm:$0xff]  ;;  %v51_v7 = vld [vmem:[%s4530_s2 + $0x18] sm:$0xff]  ;;  %v78_v9 = vmul.f32 %v49_v5, %v49_v5  ;;  %3338 = vmatprep.mubr.msk.f32.mxu0 %vm3718_vm4, %v3719_v34  ;;  %3349 = vmatprep.mubr.msk.f32.mxu1 %vm3718_vm4, %v3719_v34  ;;  %v3720_v56 = vmov 1966171168  }
   0x3   :  { %v77_v8 = vmul.f32 %v48_v2, %v48_v2  ;;  %v79_v10 = vmul.f32 %v50_v6, %v50_v6  ;;  %v80_v12 = vmul.f32 %v51_v7, %v51_v7  ;;  %v116_v57 = vunpack.c.l.s4 %v3720_v56 }
   0x4   :  { %v55_v11 = vsel %vm54_vm0, %v52_v3, 0.0  ;;  %v83_v14 = vsel %vm81_vm1, %v78_v9, 0.0  ;;  %v58_v16 = vsel %vm54_vm0, %v53_v4, 0.0  ;;  %v3825_v60 = vshrl.u32 %v118_v58, 7 }
   0x5   :  { %56 = vadd.xlane.f32.xlu0 %v55_v11  ;;  %v82_v13 = vsel %vm81_vm1, %v77_v8, 0.0  ;;  %v85_v15 = vsel %vm81_vm1, %v79_v10, 0.0  ;;  %v87_v18 = vsel %vm81_vm1, %v80_v12, 0.0  ;;  %v117_v59 = vunpack.c.0.s8 %v116_v57 }
   0x6   :  { %v84_v17 = vadd.f32 %v83_v14, %v82_v13  ;;  %vm129_vm9 = vcmask 261120   ;;  %vm227_vm10 = vcmask 40960   ;;  %vm819_vm11 = vcmask 523264  }
   0x7   :  { %v3828_v63 = vsub.s32 %v117_v59, %v3825_v60  ;;  %v3208_v59 = vld [vmem:[%s4534_s4] ss:$0 sm:$0xff]  ;;  %vm1077_vm12 = vcmask 259072  }
   0x8   :  { %v86_v19 = vadd.f32 %v85_v15, %v84_v17  ;;  %v279_v15 = vcombine.low %v3788_v0, %v3793_v1  ;;  %v267_v17 = vld [vmem:[%s4531_s3 + $0x8] sm:$0xff] }
   0x9   :  { %59 = vadd.xlane.f32.xlu0 %v58_v16  ;;  %v266_v16 = vld [vmem:[%s4531_s3] sm:$0xff] }
   0xa   :  { %v88_v20 = vadd.f32 %v87_v18, %v86_v19  ;;  %v268_v18 = vld [vmem:[%s4531_s3 + $0x10] sm:$0xff]  ;;  %v3496_v19 = vpack.c.bf16 %v267_v17, %v266_v16 }
   0xc   :  { %v89_v21 = vrot.slane %v88_v20, 4  ;;  %3497 = vmatpush3.bf16.msra.mxu1 %v3496_v19 }
   0xd   :  { %3498 = vmatprep.subr.bf16.mxu1 %v3717_v33 }
   0xe   :  { %v90_v22 = vadd.f32 %v89_v21, %v88_v20  ;;  %v269_v20 = vld [vmem:[%s4531_s3 + $0x18] sm:$0xff]  ;;  %v286_v21 = vrot.slane %v279_v15, %v3828_v63 }
  0x10   :  { %v91_v23 = vrot.slane %v90_v22, 2 }
  0x12   :  { %v92_v24 = vadd.f32 %v91_v23, %v90_v22 }
  0x14   :  { %v93_v25 = vrot.slane %v92_v24, 1 }
  0x16   :  { %v94_v26 = vadd.f32 %v93_v25, %v92_v24 }
  0x18   :  { %3609 = vrsqrt.f32 %v94_v26  ;;  %vm97_vm2 = vcmp.eq.f32.partialorder %v94_v26, inf  ;;  %v100_v28 = vand.u32 2147483648, %v94_v26  ;;  %vm99_vm3 = vcmp.eq.f32.partialorder %v94_v26, 0.0 }
  0x22   :  { %v3610_v27 = vpop.eup %3609 }
  0x23   :  { %v96_v29 = vmul.f32 %v3610_v27, %v94_v26 }
  0x25   :  { %v98_v30 = vsel %vm97_vm2, %v94_v26, %v96_v29 }
  0x26   :  { %v101_v31 = vsel %vm99_vm3, %v100_v28, %v98_v30 }
  0x27   :  { %v102_v32 = vmax.f32 %v101_v31, 1e-08 }
  0x29   :  { %3611 = vrcp.f32 %v102_v32  ;;  %v44_v32 = vld [vmem:[%s4532_s5 + $0x20] sm:$0xff] }
  0x33   :  { %v3612_v35 = vpop.eup %3611 }
  0x34   :  { %v108_v36 = vmul.f32 %v3612_v35, %v48_v2  ;;  %v109_v37 = vmul.f32 %v3612_v35, %v49_v5  ;;  %v110_v38 = vmul.f32 %v3612_v35, %v50_v6  ;;  %v111_v39 = vmul.f32 %v3612_v35, %v51_v7  ;;  %v45_v35 = vld [vmem:[%s4532_s5 + $0x28] sm:$0xff] }
  0x36   :  { %v3490_v40 = vpack.c.bf16 %v109_v37, %v108_v36  ;;  %v3493_v41 = vpack.c.bf16 %v111_v39, %v110_v38  ;;  %v3877_v36 = vpack.c.bf16 %v45_v35, %v44_v32  ;;  %v773_v35 = vld [vmem:[%s4535_s7] sm:$0xff] }
  0x38   :  { %3491 = vmatpush3.bf16.msra.mxu0 %v3490_v40  ;;  %v46_v40 = vld [vmem:[%s4532_s5 + $0x30] sm:$0xff] }
  0x39   :  { %3492 = vmatprep.subr.bf16.mxu0 %v3717_v33 }
  0x3c   :  { %3494 = vmatpush3.bf16.msra.mxu0 %v3493_v41  ;;  %v47_v41 = vld [vmem:[%s4532_s5 + $0x38] sm:$0xff] }
  0x92   :  { %v57_v42 = vpop.xlane.xlu0 %56 }
  0x93   :  { %3613 = vrsqrt.f32 %v57_v42  ;;  %vm63_vm5 = vcmp.eq.f32.partialorder %v57_v42, inf  ;;  %v66_v46 = vand.u32 2147483648, %v57_v42  ;;  %vm65_vm6 = vcmp.eq.f32.partialorder %v57_v42, 0.0 }
  0x96   :  { %v60_v43 = vpop.xlane.xlu0 %59 }
  0x97   :  { %3615 = vrsqrt.f32 %v60_v43  ;;  %vm70_vm7 = vcmp.eq.f32.partialorder %v60_v43, inf  ;;  %v73_v52 = vand.u32 2147483648, %v60_v43  ;;  %vm72_vm8 = vcmp.eq.f32.partialorder %v60_v43, 0.0 }
  0x9d   :  { %v3614_v44 = vpop.eup %3613 }
  0x9e   :  { %v62_v45 = vmul.f32 %v3614_v44, %v57_v42  ;;  %v416_v44 = vld [vmem:[%s4533_s1] sm:$0x3] }
  0xa0   :  { %v64_v47 = vsel %vm63_vm5, %v57_v42, %v62_v45  ;;  %v3887_v42 = vpack.c.bf16 %v47_v41, %v46_v40  ;;  %v40_v45 = vld [vmem:[%s4532_s5] sm:$0xff]  ;;  %v776_v40 = vld [vmem:[%s4535_s7 + $0x18] sm:$0xff] }
  0xa1   :  { %v3616_v48 = vpop.eup %3615  ;;  %v67_v49 = vsel %vm65_vm6, %v66_v46, %v64_v47  ;;  %v41_v46 = vld [vmem:[%s4532_s5 + $0x8] sm:$0xff] }
  0xa2   :  { %v75_v50 = vmax.f32 %v67_v49, 1e-08  ;;  %v69_v51 = vmul.f32 %v3616_v48, %v60_v43  ;;  %v3900_v47 = vpack.c.bf16 %v41_v46, %v40_v45  ;;  %v3903_v48 = vsub.s32 0, %v3825_v60  ;;  %v779_v46 = vld [vmem:[%s4535_s7 + $0x30] sm:$0xff] }
  0xa4   :  { %v71_v53 = vsel %vm70_vm7, %v60_v43, %v69_v51  ;;  %3617 = vrcp.f32 %v75_v50  ;;  %3502 = vmatprep.subr.bf16.mxu0 %v3900_v47  ;;  %v42_v50 = vld [vmem:[%s4532_s5 + $0x10] sm:$0xff]  ;;  %v43_v51 = vld [vmem:[%s4532_s5 + $0x18] sm:$0xff] }
  0xa5   :  { %v74_v54 = vsel %vm72_vm8, %v73_v52, %v71_v53  ;;  %v3915_v53 = vpack.c.bf16 %v43_v51, %v42_v50  ;;  %v901_v51 = vld [vmem:[%s4536_s9] sm:$0xff] }
  0xa6   :  { %v76_v55 = vmax.f32 %v74_v54, 1e-08 }
  0xa8   :  { %3619 = vrcp.f32 %v76_v55 }
  0xae   :  { %v3618_v61 = vpop.eup %3617 }
  0xaf   :  { %v104_v2 = vmul.f32 %v3618_v61, %v3788_v0  ;;  %v3499_v0 = vpack.c.bf16 %v269_v20, %v268_v18 }
  0xb1   :  { %3500 = vmatpush3.bf16.msra.mxu1 %v3499_v0 }
  0xb2   :  { %v3620_v62 = vpop.eup %3619  ;;  %3509 = vmatprep.subr.bf16.mxu1 %v3717_v33 }
  0xb3   :  { %v106_v3 = vmul.f32 %v3620_v62, %v3793_v1  ;;  %v293_v1 = vrot.slane %v286_v21, %v3828_v63 }
  0xb5   :  { %v114_v4 = vcombine.low %v104_v2, %v106_v3  ;;  %3350 = vmatmul.mubr.msk.f32.vlgmr.msra.gmra.mrb[0].mxu1 %vm129_vm9, %v293_v1  ;;  %v3721_v3 = vmov 1983009808  }
  0xb6   :  { %3371 = vmatprep.mubr.msk.f32.mxu1 %vm3718_vm4, %v3719_v34  ;;  %3511 = vmatpush3.bf16.msra.mxu1 %v3877_v36 }
  0xb7   :  { %v121_v5 = vrot.slane %v114_v4, %v3828_v63  ;;  %3512 = vmatprep.subr.bf16.mxu1 %v3717_v33  ;;  %v421_v4 = vunpack.c.l.s4 %v3721_v3 }
  0xb9   :  { %v128_v6 = vrot.slane %v121_v5, %v3828_v63 }
  0xba   :  { %3514 = vmatpush3.bf16.msra.mxu1 %v3887_v42 }
  0xbb   :  { %3339 = vmatmul.mubr.msk.f32.vlgmr.msra.gmra.mrb[0].mxu0 %vm129_vm9, %v128_v6 }
  0xbc   :  { %3504 = vmatpush3.bf16.msra.mxu0 %v3900_v47 }
  0xbd   :  { %3372 = vmatmul.mubr.msk.f32.vlgmr.msra.gmra.mrb[2].mxu1 %vm129_vm9, %v416_v44  ;;  %3506 = vmatprep.subr.bf16.mxu0 %v3915_v53  ;;  %v778_v44 = vld [vmem:[%s4535_s7 + $0x28] sm:$0xff] }
  0xc0   :  { %3508 = vmatpush3.bf16.msra.mxu0 %v3915_v53 }
 0x188   :  { %v362_v37 = vpop.f32.mrb[0].mxu1 }
 0x189   :  { %v3351_v38 = vpop.f32.mrb[1].mxu1  ;;  %v363_v61 = vadd.f32 %v3208_v59, %v362_v37  ;;  %v774_v37 = vld [vmem:[%s4535_s7 + $0x8] sm:$0xff] }
 0x18a   :  { %v3957_v38 = vpack.c.bf16 %v774_v37, %v773_v35 }
 0x18b   :  { %v366_v62 = vmax.f32 %v363_v61, 0.0 }
 0x18c   :  { %3516 = vmatprep.subr.bf16.mxu0 %v3957_v38 }
 0x18d   :  { %v374_v2 = vrot.slane %v366_v62, %v3828_v63 }
 0x18e   :  { %v198_v7 = vpop.f32.mrb[0].mxu0 }
 0x18f   :  { %v209_v8 = vrot.slane %v198_v7, %v3828_v63  ;;  %v3340_v9 = vpop.f32.mrb[1].mxu0  ;;  %v375_v5 = vcombine.high %v374_v2, %v374_v2  ;;  %v382_v6 = vrot.slane %v374_v2, %v3828_v63  ;;  %v422_v7 = vunpack.c.0.s8 %v421_v4 }
 0x191   :  { %v210_v10 = vcombine.high %v209_v8, %v209_v8  ;;  %v3837_v11 = vrot.slane %v209_v8, %v3828_v63  ;;  %v407_v8 = vrot.slane %v382_v6, %v3903_v48  ;;  %v389_v9 = vrot.slane %v375_v5, %v3828_v63  ;;  %v3213_v6 = vld [vmem:[%s4537_s6] ss:$0 sm:$0xff] }
 0x193   :  { %v3840_v12 = vrot.slane %v210_v10, %v3828_v63  ;;  %v228_v13 = vsel %vm227_vm10, %v3837_v11, -inf  ;;  %v3939_v10 = vsub.s32 %v422_v7, %v3825_v60  ;;  %v411_v15 = vrot.slane %v389_v9, %v3903_v48 }
 0x194   :  { %229 = vmax.xlane.f32.xlu1 %v228_v13 }
 0x195   :  { %v231_v14 = vsel %vm227_vm10, %v3840_v12, -inf  ;;  %v4011_v9 = vrot.slane %v3213_v6, %v3939_v10 }
 0x198   :  { %232 = vmax.xlane.f32.xlu1 %v231_v14 }
 0x221   :  { %v230_v22 = vpop.xlane.xlu1 %229 }
 0x222   :  { %v234_v23 = vsub.f32 %v3837_v11, %v230_v22 }
 0x224   :  { %v236_v24 = vmul.f32 1.442695, %v234_v23 }
 0x225   :  { %v233_v25 = vpop.xlane.xlu1 %232 }
 0x226   :  { %3621 = vpow2.f32 %v236_v24  ;;  %v235_v26 = vsub.f32 %v3840_v12, %v233_v25 }
 0x228   :  { %v238_v27 = vmul.f32 1.442695, %v235_v26 }
 0x22a   :  { %3623 = vpow2.f32 %v238_v27 }
 0x230   :  { %v3622_v28 = vpop.eup %3621 }
 0x231   :  { %v240_v29 = vsel %vm227_vm10, %v3622_v28, 0.0 }
 0x232   :  { %241 = vadd.xlane.f32.xlu0 %v240_v29 }
 0x234   :  { %v3624_v30 = vpop.eup %3623 }
 0x235   :  { %v243_v31 = vsel %vm227_vm10, %v3624_v30, 0.0 }
 0x236   :  { %244 = vadd.xlane.f32.xlu1 %v243_v31  ;;  %v657_v31 = vpop.f32.mrb[2].mxu1 }
 0x237   :  { %v3373_v32 = vpop.f32.mrb[3].mxu1  ;;  %v668_v61 = vrot.slane %v657_v31, %v3828_v63 }
 0x239   :  { %v669_v62 = vcombine.high %v668_v61, %v668_v61  ;;  %v676_v3 = vrot.slane %v668_v61, %v3828_v63 }
 0x23b   :  { %v683_v2 = vrot.slane %v669_v62, %v3828_v63  ;;  %v687_v5 = vrot.slane %v676_v3, %v3903_v48 }
 0x23d   :  { %v691_v4 = vrot.slane %v683_v2, %v3903_v48 }
 0x23f   :  { %v715_v7 = vrot.slane %v691_v4, %v3939_v10 }
 0x2bf   :  { %v242_v39 = vpop.xlane.xlu0 %241 }
 0x2c0   :  { %3625 = vrcp.f32 %v242_v39  ;;  %v775_v39 = vld [vmem:[%s4535_s7 + $0x10] sm:$0xff] }
 0x2c1   :  { %v3967_v41 = vpack.c.bf16 %v776_v40, %v775_v39 }
 0x2c3   :  { %v245_v43 = vpop.xlane.xlu1 %244 }
 0x2c4   :  { %3627 = vrcp.f32 %v245_v43  ;;  %v777_v43 = vld [vmem:[%s4535_s7 + $0x20] sm:$0xff] }
 0x2c5   :  { %v3977_v45 = vpack.c.bf16 %v778_v44, %v777_v43 }
 0x2ca   :  { %v3626_v49 = vpop.eup %3625 }
 0x2cb   :  { %v3913_v52 = vmul.f32 %v3626_v49, %v3622_v28  ;;  %v780_v49 = vld [vmem:[%s4535_s7 + $0x38] sm:$0xff] }
 0x2cc   :  { %v3987_v50 = vpack.c.bf16 %v780_v49, %v779_v46 }
 0x2cd   :  { %v3919_v54 = vrot.slane %v3913_v52, %v3903_v48 }
 0x2ce   :  { %v3628_v55 = vpop.eup %3627 }
 0x2cf   :  { %395 = vbcast.lane.b32.xlu0 %v3919_v54, 256  ;;  %v3924_v56 = vmul.f32 %v3628_v55, %v3624_v30  ;;  %v902_v55 = vld [vmem:[%s4536_s9 + $0x8] sm:$0xff] }
 0x2d0   :  { %v3997_v59 = vpack.c.bf16 %v902_v55, %v901_v51 }
 0x2d1   :  { %v3928_v57 = vrot.slane %v3924_v56, %v3903_v48 }
 0x2d2   :  { %3532 = vmatprep.subr.bf16.mxu1 %v3997_v59 }
 0x2d3   :  { %402 = vbcast.lane.b32.xlu1 %v3928_v57, 256  ;;  %3534 = vmatpush3.bf16.msra.mxu1 %v3997_v59 }
 0x341   :  { %v396_v13 = vpop.permute.xlu0 %395 }
 0x342   :  { %v414_v14 = vmul.f32 %v407_v8, %v396_v13  ;;  %v708_v8 = vcombine.high %v691_v4, %v691_v4  ;;  %v692_v13 = vcombine.high %v687_v5, %v687_v5 }
 0x344   :  { %v419_v16 = vcombine.high %v414_v14, %v414_v14  ;;  %v426_v17 = vrot.slane %v414_v14, %v3939_v10  ;;  %v699_v14 = vrot.slane %v687_v5, %v3939_v10 }
 0x345   :  { %v403_v18 = vpop.permute.xlu1 %402 }
 0x346   :  { %v434_v19 = vcombine.high %v426_v17, %v426_v17  ;;  %v415_v20 = vmul.f32 %v411_v15, %v403_v18  ;;  %v433_v21 = vrot.slane %v419_v16, %v3939_v10  ;;  %v723_v15 = vcombine.high %v715_v7, %v715_v7 }
 0x347   :  { %v742_v16 = vcombine.high %v3213_v6, %v3213_v6 }
 0x348   :  { %v451_v0 = vcombine.low %v426_v17, %v434_v19  ;;  %v435_v1 = vcombine.high %v415_v20, %v415_v20  ;;  %v442_v22 = vrot.slane %v415_v20, %v3939_v10  ;;  %v722_v19 = vrot.slane %v708_v8, %v3939_v10 }
 0x349   :  { %v4018_v20 = vcombine.high %v4011_v9, %v4011_v9 }
 0x34a   :  { %v449_v23 = vrot.slane %v435_v1, %v3939_v10  ;;  %v450_v24 = vcombine.high %v442_v22, %v442_v22  ;;  %v452_v25 = vcombine.low %v433_v21, %v442_v22  ;;  %v459_v26 = vrot.slane %v451_v0, %v3939_v10 }
 0x34b   :  { %v706_v22 = vrot.slane %v692_v13, %v3939_v10 }
 0x34c   :  { %v466_v27 = vrot.slane %v452_v25, %v3939_v10  ;;  %v468_v28 = vcombine.low %v450_v24, %v449_v23  ;;  %v707_v23 = vcombine.high %v699_v14, %v699_v14 }
 0x34e   :  { %v475_v29 = vrot.slane %v468_v28, %v3939_v10  ;;  %v467_v30 = vcombine.low %v459_v26, %v466_v27  ;;  %v4023_v26 = vrot.slane %v742_v16, %v3939_v10  ;;  %v904_v16 = vld [vmem:[%s4536_s9 + $0x18] sm:$0xff] }
 0x350   :  { %3360 = vmatprep.mubr.msk.f32.mxu0 %vm129_vm9, %v467_v30 }
 0x351   :  { %3361 = vmatmul.mubr.msk.f32.vlgmr.msra.gmra.mrb[2].mxu0 %vm129_vm9, %v475_v29 }
 0x352   :  { %3518 = vmatpush3.bf16.msra.mxu0 %v3957_v38 }
 0x353   :  { %3520 = vmatprep.subr.bf16.mxu0 %v3967_v41 }
 0x356   :  { %3522 = vmatpush3.bf16.msra.mxu0 %v3967_v41 }
 0x357   :  { %3524 = vmatprep.subr.bf16.mxu0 %v3977_v45 }
 0x35a   :  { %3526 = vmatpush3.bf16.msra.mxu0 %v3977_v45 }
 0x35b   :  { %3528 = vmatprep.subr.bf16.mxu0 %v3987_v50 }
 0x35e   :  { %3530 = vmatpush3.bf16.msra.mxu0 %v3987_v50 }
 0x424   :  { %v3362_v17 = vpop.f32.mrb[2].mxu0 }
 0x425   :  { %v580_v18 = vrot.slane %v3362_v17, %v3939_v10  ;;  %v546_v21 = vpop.f32.mrb[3].mxu0 }
 0x426   :  { %v557_v0 = vcombine.high %v546_v21, %v546_v21  ;;  %v564_v1 = vrot.slane %v546_v21, %v3939_v10 }
 0x427   :  { %v581_v24 = vcombine.high %v580_v18, %v580_v18  ;;  %v734_v25 = vadd.f32 %v723_v15, %v580_v18  ;;  %v903_v15 = vld [vmem:[%s4536_s9 + $0x10] sm:$0xff]  ;;  %v3226_v18 = vld [vmem:[%s4531_s3 + $0x20] sm:$0xff] }
 0x428   :  { %v571_v27 = vrot.slane %v557_v0, %v3939_v10  ;;  %v572_v28 = vcombine.high %v564_v1, %v564_v1  ;;  %v730_v29 = vadd.f32 %v699_v14, %v564_v1  ;;  %v4043_v17 = vpack.c.bf16 %v904_v16, %v903_v15  ;;  %v4056_v0 = vld [vmem:[%s4538_s8] ss:$0 sm:$0xff] }
 0x429   :  { %v735_v30 = vadd.f32 %v722_v19, %v581_v24  ;;  %v765_v31 = vadd.f32 %v4018_v20, %v734_v25  ;;  %v3227_v19 = vld [vmem:[%s4531_s3 + $0x28] sm:$0xff] }
 0x42a   :  { %v573_v32 = vcombine.high %v571_v27, %v571_v27  ;;  %v731_v35 = vadd.f32 %v707_v23, %v572_v28  ;;  %v732_v37 = vadd.f32 %v706_v22, %v571_v27  ;;  %v761_v39 = vadd.f32 %v4011_v9, %v730_v29  ;;  %3536 = vmatprep.subr.bf16.mxu1 %v4043_v17  ;;  %v3228_v28 = vld [vmem:[%s4531_s3 + $0x30] sm:$0xff]  ;;  %v3229_v29 = vld [vmem:[%s4531_s3 + $0x38] sm:$0xff] }
 0x42b   :  { %v766_v40 = vadd.f32 %v4023_v26, %v735_v30  ;;  %v771_v49 = vmax.f32 %v765_v31, 0.0  ;;  %3538 = vmatpush3.bf16.msra.mxu1 %v4043_v17  ;;  %v3547_v21 = vpack.c.bf16 %v3227_v19, %v3226_v18  ;;  %v3551_v30 = vpack.c.bf16 %v3229_v29, %v3228_v28  ;;  %v4072_v31 = vld [vmem:[%s4539_s10] ss:$0 sm:$0xff]  ;;  %v3222_v18 = vld [vmem:[%s4530_s2 + $0x30] sm:$0xff] }
 0x42c   :  { %v733_v43 = vadd.f32 %v715_v7, %v573_v32  ;;  %v762_v44 = vadd.f32 %v4018_v20, %v731_v35  ;;  %v763_v46 = vadd.f32 %v4023_v26, %v732_v37  ;;  %v767_v61 = vmax.f32 %v761_v39, 0.0 }
 0x42d   :  { %v772_v51 = vmax.f32 %v766_v40, 0.0  ;;  %3548 = vmatprep.subr.bf16.mxu0 %v3547_v21 }
 0x42e   :  { %v764_v55 = vadd.f32 %v4011_v9, %v733_v43  ;;  %v768_v62 = vmax.f32 %v762_v44, 0.0  ;;  %v769_v3 = vmax.f32 %v763_v46, 0.0 }
 0x42f   :  { %v811_v2 = vcombine.low %v771_v49, %v772_v51 }
 0x430   :  { %v770_v4 = vmax.f32 %v764_v55, 0.0  ;;  %v794_v5 = vcombine.low %v767_v61, %v768_v62 }
 0x431   :  { %v818_v14 = vrot.slane %v811_v2, %v3939_v10 }
 0x432   :  { %v795_v6 = vcombine.low %v769_v3, %v770_v4  ;;  %v802_v8 = vrot.slane %v794_v5, %v3939_v10 }
 0x434   :  { %v809_v13 = vrot.slane %v795_v6, %v3939_v10 }
 0x436   :  { %v810_v7 = vcombine.low %v802_v8, %v809_v13  ;;  %v3220_v13 = vld [vmem:[%s4530_s2 + $0x20] sm:$0xff] }
 0x437   :  { %v1100_v15 = vmul.f32 %v3220_v13, %v3220_v13 }
 0x438   :  { %3390 = vmatprep.mubr.msk.f32.mxu0 %vm819_vm11, %v810_v7  ;;  %v3221_v7 = vld [vmem:[%s4530_s2 + $0x28] sm:$0xff] }
 0x439   :  { %3391 = vmatmul.mubr.msk.f32.vlgmr.msra.gmra.mrb[4].mxu0 %vm819_vm11, %v818_v14  ;;  %v1101_v16 = vmul.f32 %v3221_v7, %v3221_v7 }
 0x43a   :  { %3550 = vmatpush3.bf16.msra.mxu0 %v3547_v21 }
 0x43b   :  { %3552 = vmatprep.subr.bf16.mxu0 %v3551_v30 }
 0x43e   :  { %3554 = vmatpush3.bf16.msra.mxu0 %v3551_v30 }
 0x43f   :  { %3563 = vmatprep.subr.bf16.mxu0 %v3717_v33 }
 0x50c   :  { %v3392_v1 = vpop.f32.mrb[4].mxu0 }
 0x50d   :  { %v896_v22 = vadd.f32 %v3392_v1, %v4056_v0  ;;  %v890_v23 = vpop.f32.mrb[5].mxu0  ;;  %v1102_v1 = vmul.f32 %v3222_v18, %v3222_v18 }
 0x50e   :  { %v891_v24 = vadd.f32 %v4056_v0, %v890_v23  ;;  %v3223_v23 = vld [vmem:[%s4530_s2 + $0x38] sm:$0xff] }
 0x50f   :  { %v900_v27 = vmax.f32 %v896_v22, 0.0  ;;  %v1104_v22 = vsel %vm81_vm1, %v1100_v15, 0.0  ;;  %v1107_v29 = vsel %vm81_vm1, %v1102_v1, 0.0 }
 0x510   :  { %v899_v25 = vmax.f32 %v891_v24, 0.0  ;;  %v1105_v24 = vsel %vm81_vm1, %v1101_v16, 0.0 }
 0x511   :  { %v1106_v28 = vadd.f32 %v1105_v24, %v1104_v22  ;;  %v3722_v22 = vmov 269488144  }
 0x512   :  { %3401 = vmatprep.mubr.msk.f32.mxu1 %vm129_vm9, %v899_v25  ;;  %v1128_v24 = vunpack.c.l.s4 %v3722_v22 }
 0x513   :  { %3402 = vmatmul.mubr.msk.f32.vlgmr.msra.gmra.mrb[4].mxu1 %vm129_vm9, %v900_v27  ;;  %v1103_v27 = vmul.f32 %v3223_v23, %v3223_v23  ;;  %v1108_v30 = vadd.f32 %v1107_v29, %v1106_v28 }
 0x5e6   :  { %v3403_v32 = vpop.f32.mrb[4].mxu1 }
 0x5e7   :  { %v990_v35 = vadd.f32 %v3403_v32, %v4072_v31  ;;  %v984_v37 = vpop.f32.mrb[5].mxu1  ;;  %v1109_v32 = vsel %vm81_vm1, %v1103_v27, 0.0 }
 0x5e8   :  { %v985_v39 = vadd.f32 %v4072_v31, %v984_v37 }
 0x5e9   :  { %v4077_v40 = vrot.slane %v990_v35, %v3939_v10 }
 0x5ea   :  { %v995_v43 = vcombine.high %v985_v39, %v985_v39  ;;  %v4080_v44 = vrot.slane %v985_v39, %v3939_v10  ;;  %3423 = vmatprep.mubr.msk.f32.mxu0 %vm129_vm9, %v985_v39 }
 0x5eb   :  { %v4085_v46 = vcombine.high %v4077_v40, %v4077_v40  ;;  %3424 = vmatmul.mubr.msk.f32.vlgmr.msra.gmra.mrb[6].mxu0 %vm129_vm9, %v990_v35  ;;  %v1110_v35 = vadd.f32 %v1109_v32, %v1108_v30 }
 0x5ec   :  { %v4089_v49 = vrot.slane %v995_v43, %v3939_v10  ;;  %v4093_v51 = vcombine.high %v4080_v44, %v4080_v44  ;;  %3565 = vmatpush3.bf16.msra.mxu0 %v3877_v36  ;;  %3445 = vmatprep.mubr.msk.f32.mxu0 %vm3718_vm4, %v3719_v34  ;;  %v1031_v55 = vmul.f32 %v4080_v44, %v4080_v44  ;;  %vm1369_vm4 = vcmask 46080  }
 0x5ed   :  { %3566 = vmatprep.subr.bf16.mxu0 %v3717_v33  ;;  %v1036_v36 = vmul.f32 %v4085_v46, %v4085_v46  ;;  %v1035_v34 = vmul.f32 %v4077_v40, %v4077_v40  ;;  %v1111_v37 = vrot.slane %v1110_v35, 4 }
 0x5ee   :  { %v1032_v61 = vmul.f32 %v4093_v51, %v4093_v51  ;;  %v1033_v62 = vmul.f32 %v4089_v49, %v4089_v49  ;;  %v4107_v2 = vcombine.high %v4089_v49, %v4089_v49 }
 0x5ef   :  { %v1073_v8 = vrot.slane %v1036_v36, %v3939_v10  ;;  %v1112_v39 = vadd.f32 %v1111_v37, %v1110_v35 }
 0x5f0   :  { %v1043_v33 = vcombine.low %v1031_v55, %v1032_v61  ;;  %v1034_v3 = vmul.f32 %v4107_v2, %v4107_v2  ;;  %3568 = vmatpush3.bf16.msra.mxu0 %v3887_v42  ;;  %v1057_v5 = vrot.slane %v1033_v62, %v3939_v10 }
 0x5f1   :  { %3586 = vmatprep.subr.bf16.mxu0 %v3997_v59  ;;  %v1113_v43 = vrot.slane %v1112_v39, 2 }
 0x5f2   :  { %v1050_v4 = vrot.slane %v1043_v33, %v3939_v10  ;;  %v1059_v6 = vcombine.low %v1034_v3, %v1035_v34 }
 0x5f3   :  { %v1114_v55 = vadd.f32 %v1113_v43, %v1112_v39 }
 0x5f4   :  { %v1058_v14 = vcombine.low %v1050_v4, %v1057_v5  ;;  %v1066_v42 = vrot.slane %v1059_v6, %v3939_v10 }
 0x5f5   :  { %v1115_v61 = vrot.slane %v1114_v55, 1 }
 0x5f6   :  { %v1078_v19 = vsel %vm1077_vm12, %v1058_v14, 0.0  ;;  %v1074_v21 = vcombine.low %v1066_v42, %v1073_v8 }
 0x5f7   :  { %1079 = vadd.xlane.f32.xlu1 %v1078_v19  ;;  %v1116_v62 = vadd.f32 %v1115_v61, %v1114_v55 }
 0x5f8   :  { %v1081_v25 = vsel %vm1077_vm12, %v1074_v21, 0.0 }
 0x5f9   :  { %1082 = vadd.xlane.f32.xlu0 %v1081_v25  ;;  %3629 = vrsqrt.f32 %v1116_v62  ;;  %vm1119_vm13 = vcmp.eq.f32.partialorder %v1116_v62, inf  ;;  %v1122_v33 = vand.u32 2147483648, %v1116_v62  ;;  %vm1121_vm14 = vcmp.eq.f32.partialorder %v1116_v62, 0.0 }
 0x5fa   :  { %v3723_v25 = vmov 842150450  }
 0x5fb   :  { %v1135_v27 = vunpack.c.l.s4 %v3723_v25 }
 0x603   :  { %v3630_v36 = vpop.eup %3629 }
 0x604   :  { %v1118_v34 = vmul.f32 %v3630_v36, %v1116_v62 }
 0x606   :  { %v1120_v3 = vsel %vm1119_vm13, %v1116_v62, %v1118_v34  ;;  %vm3199_vm13 = vcmask 15360  }
 0x607   :  { %v1123_v4 = vsel %vm1121_vm14, %v1122_v33, %v1120_v3  ;;  %vm3201_vm14 = vcmask 17408  }
 0x608   :  { %v1124_v5 = vmax.f32 %v1123_v4, 1e-08 }
 0x60a   :  { %3631 = vrcp.f32 %v1124_v5 }
 0x614   :  { %v3632_v6 = vpop.eup %3631 }
 0x615   :  { %v1188_v8 = vmul.f32 %v3632_v6, %v3220_v13  ;;  %v1189_v14 = vmul.f32 %v3632_v6, %v3221_v7  ;;  %v1190_v42 = vmul.f32 %v3632_v6, %v3222_v18  ;;  %v1191_v15 = vmul.f32 %v3632_v6, %v3223_v23 }
 0x616   :  { %v3724_v13 = vmov 1414812756   ;;  %v1129_v18 = vunpack.c.0.s8 %v1128_v24  ;;  %v1136_v23 = vunpack.c.0.s8 %v1135_v27 }
 0x617   :  { %v3539_v16 = vpack.c.bf16 %v1189_v14, %v1188_v8  ;;  %v3543_v19 = vpack.c.bf16 %v1191_v15, %v1190_v42  ;;  %v1142_v7 = vunpack.c.l.s4 %v3724_v13 }
 0x618   :  { %v4141_v35 = vsub.s32 %v1129_v18, %v3825_v60  ;;  %v4144_v37 = vsub.s32 %v1136_v23, %v3825_v60 }
 0x619   :  { %3540 = vmatprep.subr.bf16.mxu1 %v3539_v16  ;;  %v1143_v28 = vunpack.c.0.s8 %v1142_v7 }
 0x61a   :  { %3542 = vmatpush3.bf16.msra.mxu1 %v3539_v16 }
 0x61b   :  { %3544 = vmatprep.subr.bf16.mxu1 %v3543_v19  ;;  %v4147_v43 = vsub.s32 %v1143_v28, %v3825_v60 }
 0x61e   :  { %3546 = vmatpush3.bf16.msra.mxu1 %v3543_v19 }
 0x61f   :  { %3556 = vmatprep.subr.bf16.mxu1 %v3900_v47 }
 0x684   :  { %v1080_v21 = vpop.xlane.xlu1 %1079 }
 0x685   :  { %3633 = vrsqrt.f32 %v1080_v21  ;;  %vm1086_vm15 = vcmp.eq.f32.partialorder %v1080_v21, inf  ;;  %v1089_v39 = vand.u32 2147483648, %v1080_v21  ;;  %vm1088_vm0 = vcmp.eq.f32.partialorder %v1080_v21, 0.0 }
 0x686   :  { %v1083_v1 = vpop.xlane.xlu0 %1082 }
 0x687   :  { %3635 = vrsqrt.f32 %v1083_v1  ;;  %vm1093_vm2 = vcmp.eq.f32.partialorder %v1083_v1, inf  ;;  %v1096_v36 = vand.u32 2147483648, %v1083_v1  ;;  %vm1095_vm3 = vcmp.eq.f32.partialorder %v1083_v1, 0.0 }
 0x68f   :  { %v3634_v29 = vpop.eup %3633 }
 0x690   :  { %v1085_v30 = vmul.f32 %v3634_v29, %v1080_v21 }
 0x691   :  { %v3636_v32 = vpop.eup %3635 }
 0x692   :  { %v1087_v55 = vsel %vm1086_vm15, %v1080_v21, %v1085_v30  ;;  %v1092_v61 = vmul.f32 %v3636_v32, %v1083_v1 }
 0x693   :  { %v1090_v62 = vsel %vm1088_vm0, %v1089_v39, %v1087_v55 }
 0x694   :  { %v1098_v34 = vmax.f32 %v1090_v62, 1e-08  ;;  %v1094_v33 = vsel %vm1093_vm2, %v1083_v1, %v1092_v61 }
 0x695   :  { %v1097_v3 = vsel %vm1095_vm3, %v1096_v36, %v1094_v33 }
 0x696   :  { %v1133_v4 = vrot.slane %v1098_v34, %v4141_v35  ;;  %v1140_v5 = vrot.slane %v1098_v34, %v4144_v37  ;;  %v1147_v6 = vrot.slane %v1098_v34, %v4147_v43  ;;  %v1099_v8 = vmax.f32 %v1097_v3, 1e-08 }
 0x698   :  { %3637 = vrcp.f32 %v1133_v4  ;;  %v1154_v14 = vrot.slane %v1099_v8, %v4141_v35  ;;  %v1161_v42 = vrot.slane %v1099_v8, %v4144_v37  ;;  %v1168_v15 = vrot.slane %v1099_v8, %v4147_v43 }
 0x699   :  { %3639 = vrcp.f32 %v1140_v5 }
 0x69a   :  { %3641 = vrcp.f32 %v1147_v6 }
 0x69b   :  { %3643 = vrcp.f32 %v1154_v14 }
 0x69c   :  { %3645 = vrcp.f32 %v1161_v42 }
 0x69d   :  { %3647 = vrcp.f32 %v1168_v15 }
 0x6a2   :  { %v3638_v16 = vpop.eup %3637 }
 0x6a3   :  { %v3640_v19 = vpop.eup %3639  ;;  %v1176_v21 = vmul.f32 %v3638_v16, %v4080_v44 }
 0x6a4   :  { %v3642_v1 = vpop.eup %3641  ;;  %v1178_v22 = vmul.f32 %v3640_v19, %v4093_v51 }
 0x6a5   :  { %v3644_v24 = vpop.eup %3643  ;;  %v1180_v27 = vmul.f32 %v3642_v1, %v4089_v49 }
 0x6a6   :  { %v3646_v25 = vpop.eup %3645  ;;  %v1182_v13 = vmul.f32 %v3644_v24, %v4107_v2  ;;  %v1198_v7 = vcombine.low %v1176_v21, %v1178_v22 }
 0x6a7   :  { %v3648_v18 = vpop.eup %3647  ;;  %v1184_v23 = vmul.f32 %v3646_v25, %v4077_v40 }
 0x6a8   :  { %v1199_v28 = vcombine.low %v1180_v27, %v1182_v13  ;;  %v1186_v29 = vmul.f32 %v3648_v18, %v4085_v46  ;;  %v1206_v30 = vrot.slane %v1198_v7, %v3939_v10 }
 0x6aa   :  { %v1213_v44 = vrot.slane %v1199_v28, %v3939_v10  ;;  %v1215_v32 = vcombine.low %v1184_v23, %v1186_v29 }
 0x6ac   :  { %v1214_v39 = vcombine.low %v1206_v30, %v1213_v44  ;;  %v1222_v51 = vrot.slane %v1215_v32, %v3939_v10 }
 0x6ae   :  { %3412 = vmatprep.mubr.msk.f32.mxu1 %vm129_vm9, %v1214_v39 }
 0x6af   :  { %3413 = vmatmul.mubr.msk.f32.vlgmr.msra.gmra.mrb[6].mxu1 %vm129_vm9, %v1222_v51 }
 0x6b0   :  { %3558 = vmatpush3.bf16.msra.mxu1 %v3900_v47 }
 0x6b1   :  { %3560 = vmatprep.subr.bf16.mxu1 %v3915_v53 }
 0x6b4   :  { %3562 = vmatpush3.bf16.msra.mxu1 %v3915_v53 }
 0x6b5   :  { %3570 = vmatprep.subr.bf16.mxu1 %v3957_v38 }
 0x6be   :  { %v4170_v40 = vpop.f32.mrb[6].mxu0 }
 0x6bf   :  { %v4172_v46 = vpop.f32.mrb[7].mxu0 }
 0x782   :  { %v3414_v49 = vpop.f32.mrb[6].mxu1 }
 0x783   :  { %v1293_v2 = vpop.f32.mrb[7].mxu1  ;;  %v4175_v55 = vrot.slane %v3414_v49, %v3939_v10 }
 0x784   :  { %v1304_v61 = vcombine.high %v1293_v2, %v1293_v2  ;;  %v4178_v62 = vrot.slane %v1293_v2, %v3939_v10 }
 0x785   :  { %v4189_v36 = vcombine.high %v4175_v55, %v4175_v55 }
 0x786   :  { %v4181_v47 = vrot.slane %v1304_v61, %v3939_v10  ;;  %v4185_v53 = vcombine.high %v4178_v62, %v4178_v62 }
 0x787   :  { %v1365_v14 = vrot.slane %v4189_v36, %v3939_v10 }
 0x788   :  { %v1335_v34 = vcombine.low %v4178_v62, %v4185_v53  ;;  %v4195_v33 = vcombine.high %v4181_v47, %v4181_v47  ;;  %v1349_v4 = vrot.slane %v4181_v47, %v3939_v10 }
 0x78a   :  { %v1342_v3 = vrot.slane %v1335_v34, %v3939_v10  ;;  %v1351_v5 = vcombine.low %v4195_v33, %v4175_v55 }
 0x78c   :  { %v1350_v6 = vcombine.low %v1342_v3, %v1349_v4  ;;  %v1358_v8 = vrot.slane %v1351_v5, %v3939_v10 }
 0x78e   :  { %v1370_v42 = vsel %vm1369_vm4, %v1350_v6, -inf  ;;  %v1366_v15 = vcombine.low %v1358_v8, %v1365_v14 }
 0x78f   :  { %1371 = vmax.xlane.f32.xlu0 %v1370_v42 }
 0x790   :  { %v1373_v16 = vsel %vm1369_vm4, %v1366_v15, -inf }
 0x791   :  { %1374 = vmax.xlane.f32.xlu1 %v1373_v16 }
 0x81c   :  { %v1372_v19 = vpop.xlane.xlu0 %1371 }
 0x81d   :  { %v1384_v21 = vrot.slane %v1372_v19, %v4141_v35  ;;  %v1391_v1 = vrot.slane %v1372_v19, %v4144_v37  ;;  %v1398_v22 = vrot.slane %v1372_v19, %v4147_v43 }
 0x81e   :  { %v1375_v24 = vpop.xlane.xlu1 %1374 }
 0x81f   :  { %v1426_v25 = vsub.f32 %v4178_v62, %v1384_v21  ;;  %v1427_v27 = vsub.f32 %v4185_v53, %v1391_v1  ;;  %v1428_v13 = vsub.f32 %v4181_v47, %v1398_v22  ;;  %v1405_v7 = vrot.slane %v1375_v24, %v4141_v35 }
 0x820   :  { %v1412_v18 = vrot.slane %v1375_v24, %v4144_v37  ;;  %v1419_v23 = vrot.slane %v1375_v24, %v4147_v43 }
 0x821   :  { %v1432_v28 = vmul.f32 1.442695, %v1426_v25  ;;  %v1434_v29 = vmul.f32 1.442695, %v1427_v27  ;;  %v1436_v30 = vmul.f32 1.442695, %v1428_v13  ;;  %v1429_v44 = vsub.f32 %v4195_v33, %v1405_v7 }
 0x822   :  { %v1430_v32 = vsub.f32 %v4175_v55, %v1412_v18  ;;  %v1431_v39 = vsub.f32 %v4189_v36, %v1419_v23 }
 0x823   :  { %3649 = vpow2.f32 %v1432_v28  ;;  %v1438_v51 = vmul.f32 1.442695, %v1429_v44 }
 0x824   :  { %3651 = vpow2.f32 %v1434_v29  ;;  %v1440_v49 = vmul.f32 1.442695, %v1430_v32  ;;  %v1442_v2 = vmul.f32 1.442695, %v1431_v39  ;;  %v4232_v39 = vsub.s32 1, %v3825_v60 }
 0x825   :  { %3653 = vpow2.f32 %v1436_v30 }
 0x826   :  { %3655 = vpow2.f32 %v1438_v51 }
 0x827   :  { %3657 = vpow2.f32 %v1440_v49 }
 0x828   :  { %3659 = vpow2.f32 %v1442_v2 }
 0x82d   :  { %v3650_v61 = vpop.eup %3649 }
 0x82e   :  { %v3652_v34 = vpop.eup %3651 }
 0x82f   :  { %v3654_v3 = vpop.eup %3653  ;;  %v1450_v4 = vcombine.low %v3650_v61, %v3652_v34 }
 0x830   :  { %v3656_v5 = vpop.eup %3655  ;;  %v1464_v14 = vrot.slane %v3654_v3, %v3939_v10 }
 0x831   :  { %v3658_v6 = vpop.eup %3657  ;;  %v1457_v8 = vrot.slane %v1450_v4, %v3939_v10 }
 0x832   :  { %v3660_v42 = vpop.eup %3659  ;;  %v1466_v15 = vcombine.low %v3656_v5, %v3658_v6 }
 0x833   :  { %v1465_v16 = vcombine.low %v1457_v8, %v1464_v14  ;;  %v1480_v21 = vrot.slane %v3660_v42, %v3939_v10 }
 0x834   :  { %v1473_v19 = vrot.slane %v1466_v15, %v3939_v10 }
 0x835   :  { %v1484_v1 = vsel %vm1369_vm4, %v1465_v16, 0.0 }
 0x836   :  { %1485 = vadd.xlane.f32.xlu0 %v1484_v1  ;;  %v1481_v22 = vcombine.low %v1473_v19, %v1480_v21 }
 0x838   :  { %v1487_v24 = vsel %vm1369_vm4, %v1481_v22, 0.0 }
 0x839   :  { %1488 = vadd.xlane.f32.xlu1 %v1487_v24 }
 0x8c3   :  { %v1486_v25 = vpop.xlane.xlu0 %1485 }
 0x8c4   :  { %v1498_v27 = vrot.slane %v1486_v25, %v4141_v35  ;;  %v1505_v13 = vrot.slane %v1486_v25, %v4144_v37  ;;  %v1512_v7 = vrot.slane %v1486_v25, %v4147_v43 }
 0x8c6   :  { %3661 = vrcp.f32 %v1498_v27  ;;  %v1489_v18 = vpop.xlane.xlu1 %1488 }
 0x8c7   :  { %3663 = vrcp.f32 %v1505_v13  ;;  %v1519_v23 = vrot.slane %v1489_v18, %v4141_v35  ;;  %v1526_v28 = vrot.slane %v1489_v18, %v4144_v37  ;;  %v1533_v29 = vrot.slane %v1489_v18, %v4147_v43 }
 0x8c8   :  { %3665 = vrcp.f32 %v1512_v7 }
 0x8c9   :  { %3667 = vrcp.f32 %v1519_v23 }
 0x8ca   :  { %3669 = vrcp.f32 %v1526_v28 }
 0x8cb   :  { %3671 = vrcp.f32 %v1533_v29 }
 0x8d0   :  { %v3662_v30 = vpop.eup %3661 }
 0x8d1   :  { %v3664_v44 = vpop.eup %3663  ;;  %v1541_v32 = vmul.f32 %v3662_v30, %v3650_v61  ;;  %v3234_v30 = vld [vmem:[%s4533_s1 + $0x2] sm:$0x3] }
 0x8d2   :  { %v3666_v51 = vpop.eup %3665  ;;  %v1543_v49 = vmul.f32 %v3664_v44, %v3652_v34  ;;  %3446 = vmatmul.mubr.msk.f32.vlgmr.msra.gmra.mrb[8].mxu0 %vm129_vm9, %v3234_v30 }
 0x8d3   :  { %v3668_v2 = vpop.eup %3667  ;;  %v1826_v4 = vrot.slane %v1541_v32, %v3903_v48  ;;  %v1850_v8 = vrot.slane %v1541_v32, %v4232_v39  ;;  %v1545_v14 = vmul.f32 %v3666_v51, %v3654_v3  ;;  %3588 = vmatpush3.bf16.msra.mxu0 %v3997_v59  ;;  %v3231_v51 = vld [vmem:[%s4534_s4 + $0x1] ss:$0 sm:$0xff] }
 0x8d4   :  { %v3670_v15 = vpop.eup %3669  ;;  %v1547_v16 = vmul.f32 %v3668_v2, %v3656_v5  ;;  %v1572_v19 = vcombine.low %v1541_v32, %v1543_v49  ;;  %v1876_v24 = vrot.slane %v1543_v49, %v3903_v48  ;;  %3590 = vmatprep.subr.bf16.mxu0 %v4043_v17 }
 0x8d5   :  { %v3672_v21 = vpop.eup %3671  ;;  %1828 = vbcast.lane.b32.xlu0 %v1826_v4, 256  ;;  %1852 = vbcast.lane.b32.xlu1 %v1850_v8, 256  ;;  %v1549_v1 = vmul.f32 %v3670_v15, %v3658_v6  ;;  %v1586_v27 = vrot.slane %v1545_v14, %v3939_v10  ;;  %v1902_v6 = vrot.slane %v1543_v49, %v4232_v39 }
 0x8d6   :  { %v1551_v22 = vmul.f32 %v3672_v21, %v3660_v42  ;;  %v1579_v61 = vrot.slane %v1572_v19, %v3939_v10  ;;  %v1833_v34 = vrot.slane %v1547_v16, %v3903_v48  ;;  %v1857_v42 = vrot.slane %v1547_v16, %v4232_v39 }
 0x8d7   :  { %v1588_v25 = vcombine.low %v1547_v16, %v1549_v1  ;;  %v1928_v18 = vrot.slane %v1545_v14, %v3903_v48  ;;  %v1883_v23 = vrot.slane %v1549_v1, %v3903_v48  ;;  %v1954_v28 = vrot.slane %v1545_v14, %v4232_v39  ;;  %3592 = vmatpush3.bf16.msra.mxu0 %v4043_v17 }
 0x8d8   :  { %v1602_v5 = vrot.slane %v1551_v22, %v3939_v10  ;;  %v4242_v13 = vcombine.low %v1579_v61, %v1586_v27  ;;  %v1909_v29 = vrot.slane %v1549_v1, %v4232_v39  ;;  %v1935_v44 = vrot.slane %v1551_v22, %v3903_v48 }
 0x8d9   :  { %1878 = vbcast.lane.b32.xlu0 %v1876_v24, 256  ;;  %1835 = vbcast.lane.b32.xlu1 %v1833_v34, 256  ;;  %v1595_v3 = vrot.slane %v1588_v25, %v3939_v10  ;;  %v1961_v32 = vrot.slane %v1551_v22, %v4232_v39  ;;  %v1780_v49 = vadd.f32 %v3231_v51, %v4172_v46 }
 0x8da   :  { %v1785_v8 = vadd.f32 %v4170_v40, %v3231_v51 }
 0x8db   :  { %v4246_v7 = vcombine.low %v1595_v3, %v1602_v5  ;;  %v1788_v2 = vmax.f32 %v1780_v49, 0.0 }
 0x8dc   :  { %v1789_v19 = vmax.f32 %v1785_v8, 0.0 }
 0x8dd   :  { %1904 = vbcast.lane.b32.xlu0 %v1902_v6, 256  ;;  %1859 = vbcast.lane.b32.xlu1 %v1857_v42, 256  ;;  %v1792_v4 = vcombine.high %v1788_v2, %v1788_v2  ;;  %v1799_v59 = vrot.slane %v1788_v2, %v3939_v10 }
 0x8de   :  { %v1815_v46 = vrot.slane %v1789_v19, %v3939_v10 }
 0x8df   :  { %v1806_v14 = vrot.slane %v1792_v4, %v3939_v10  ;;  %v1807_v21 = vcombine.high %v1799_v59, %v1799_v59  ;;  %v1840_v61 = vrot.slane %v1799_v59, %v3903_v48  ;;  %v1864_v24 = vrot.slane %v1799_v59, %v4232_v39 }
 0x8e1   :  { %1930 = vbcast.lane.b32.xlu0 %v1928_v18, 256  ;;  %1885 = vbcast.lane.b32.xlu1 %v1883_v23, 256  ;;  %v1808_v17 = vcombine.high %v1806_v14, %v1806_v14  ;;  %v1890_v40 = vrot.slane %v1807_v21, %v3903_v48  ;;  %v1916_v18 = vrot.slane %v1807_v21, %v4232_v39 }
 0x8e2   :  { %v1968_v21 = vrot.slane %v1806_v14, %v4232_v39 }
 0x8e3   :  { %v1868_v27 = vrot.slane %v1808_v17, %v4232_v39  ;;  %v1844_v42 = vrot.slane %v1808_v17, %v3903_v48  ;;  %v1816_v17 = vcombine.high %v1815_v46, %v1815_v46 }
 0x8e5   :  { %1956 = vbcast.lane.b32.xlu0 %v1954_v28, 256  ;;  %1911 = vbcast.lane.b32.xlu1 %v1909_v29, 256  ;;  %v1894_v28 = vrot.slane %v1815_v46, %v3903_v48 }
 0x8e9   :  { %1937 = vbcast.lane.b32.xlu1 %v1935_v44, 256 }
 0x8ed   :  { %1963 = vbcast.lane.b32.xlu1 %v1961_v32, 256  ;;  %v1942_v32 = vrot.slane %v1806_v14, %v3903_v48 }
 0x947   :  { %v1829_v15 = vpop.permute.xlu0 %1828  ;;  %v1853_v16 = vpop.permute.xlu1 %1852 }
 0x948   :  { %v1845_v34 = vmul.f32 %v1840_v61, %v1829_v15  ;;  %v1869_v25 = vmul.f32 %v1864_v24, %v1853_v16  ;;  %v1920_v15 = vrot.slane %v1815_v46, %v4232_v39 }
 0x94a   :  { %v1871_v29 = vadd.f32 %v1869_v25, %v1845_v34 }
 0x94b   :  { %v1879_v1 = vpop.permute.xlu0 %1878  ;;  %v1836_v22 = vpop.permute.xlu1 %1835 }
 0x94c   :  { %v1895_v6 = vmul.f32 %v1890_v40, %v1879_v1  ;;  %v1846_v30 = vmul.f32 %v1844_v42, %v1836_v22 }
 0x94e   :  { %v1897_v2 = vadd.f32 %v1895_v6, %v1871_v29 }
 0x94f   :  { %v1905_v3 = vpop.permute.xlu0 %1904  ;;  %v1860_v5 = vpop.permute.xlu1 %1859 }
 0x950   :  { %v1870_v23 = vmul.f32 %v1868_v27, %v1860_v5  ;;  %v1921_v44 = vmul.f32 %v1916_v18, %v1905_v3  ;;  %v1946_v27 = vrot.slane %v1816_v17, %v3903_v48  ;;  %v1972_v18 = vrot.slane %v1816_v17, %v4232_v39 }
 0x952   :  { %v1872_v4 = vadd.f32 %v1870_v23, %v1846_v30  ;;  %v1923_v16 = vadd.f32 %v1921_v44, %v1897_v2 }
 0x953   :  { %v1931_v51 = vpop.permute.xlu0 %1930  ;;  %v1886_v49 = vpop.permute.xlu1 %1885 }
 0x954   :  { %v1947_v8 = vmul.f32 %v1942_v32, %v1931_v51  ;;  %v1896_v59 = vmul.f32 %v1894_v28, %v1886_v49 }
 0x956   :  { %v1898_v19 = vadd.f32 %v1896_v59, %v1872_v4  ;;  %v1949_v24 = vadd.f32 %v1947_v8, %v1923_v16 }
 0x957   :  { %v1957_v1 = vpop.permute.xlu0 %1956  ;;  %v1912_v61 = vpop.permute.xlu1 %1911 }
 0x958   :  { %v1973_v22 = vmul.f32 %v1968_v21, %v1957_v1  ;;  %v1922_v34 = vmul.f32 %v1920_v15, %v1912_v61 }
 0x95a   :  { %v1975_v25 = vadd.f32 %v1973_v22, %v1949_v24  ;;  %v1924_v40 = vadd.f32 %v1922_v34, %v1898_v19 }
 0x95b   :  { %v1938_v3 = vpop.permute.xlu1 %1937 }
 0x95c   :  { %v1988_v5 = vrot.slane %v1975_v25, %v3939_v10  ;;  %v1948_v6 = vmul.f32 %v1946_v27, %v1938_v3  ;;  %v1981_v28 = vcombine.high %v1975_v25, %v1975_v25 }
 0x95e   :  { %v1950_v42 = vadd.f32 %v1948_v6, %v1924_v40  ;;  %v1996_v14 = vcombine.high %v1988_v5, %v1988_v5  ;;  %v1995_v30 = vrot.slane %v1981_v28, %v3939_v10 }
 0x95f   :  { %v1964_v23 = vpop.permute.xlu1 %1963 }
 0x960   :  { %v1974_v46 = vmul.f32 %v1972_v18, %v1964_v23  ;;  %v2013_v44 = vcombine.low %v1988_v5, %v1996_v14 }
 0x962   :  { %v1976_v29 = vadd.f32 %v1974_v46, %v1950_v42  ;;  %v2021_v8 = vrot.slane %v2013_v44, %v3939_v10 }
 0x964   :  { %v1997_v32 = vcombine.high %v1976_v29, %v1976_v29  ;;  %v2004_v51 = vrot.slane %v1976_v29, %v3939_v10 }
 0x966   :  { %v2011_v49 = vrot.slane %v1997_v32, %v3939_v10  ;;  %v2012_v2 = vcombine.high %v2004_v51, %v2004_v51  ;;  %v2014_v4 = vcombine.low %v1995_v30, %v2004_v51 }
 0x968   :  { %v2028_v59 = vrot.slane %v2014_v4, %v3939_v10  ;;  %v2030_v39 = vcombine.low %v2012_v2, %v2011_v49 }
 0x96a   :  { %v2037_v15 = vrot.slane %v2030_v39, %v3939_v10  ;;  %v2029_v16 = vcombine.low %v2021_v8, %v2028_v59 }
 0x96c   :  { %3434 = vmatprep.mubr.msk.f32.mxu1 %vm129_vm9, %v2029_v16 }
 0x96d   :  { %3435 = vmatmul.mubr.msk.f32.vlgmr.msra.gmra.mrb[8].mxu1 %vm129_vm9, %v2037_v15 }
 0x96e   :  { %3572 = vmatpush3.bf16.msra.mxu1 %v3957_v38 }
 0x96f   :  { %3574 = vmatprep.subr.bf16.mxu1 %v3967_v41 }
 0x972   :  { %3576 = vmatpush3.bf16.msra.mxu1 %v3967_v41 }
 0x973   :  { %3578 = vmatprep.subr.bf16.mxu1 %v3977_v45 }
 0x976   :  { %3580 = vmatpush3.bf16.msra.mxu1 %v3977_v45 }
 0x977   :  { %3582 = vmatprep.subr.bf16.mxu1 %v3987_v50 }
 0x97a   :  { %3584 = vmatpush3.bf16.msra.mxu1 %v3987_v50 }
 0x9a5   :  { %v2219_v19 = vpop.f32.mrb[8].mxu0 }
 0x9a6   :  { %v3447_v21 = vpop.f32.mrb[9].mxu0  ;;  %v2230_v17 = vrot.slane %v2219_v19, %v3828_v63 }
 0x9a8   :  { %v2231_v1 = vcombine.high %v2230_v17, %v2230_v17  ;;  %v2238_v38 = vrot.slane %v2230_v17, %v3828_v63 }
 0x9aa   :  { %v2245_v61 = vrot.slane %v2231_v1, %v3828_v63  ;;  %v2249_v41 = vrot.slane %v2238_v38, %v3903_v48 }
 0x9ac   :  { %v2253_v24 = vrot.slane %v2245_v61, %v3903_v48  ;;  %v2254_v34 = vcombine.high %v2249_v41, %v2249_v41  ;;  %v2261_v25 = vrot.slane %v2249_v41, %v3939_v10 }
 0x9ae   :  { %v2277_v22 = vrot.slane %v2253_v24, %v3939_v10  ;;  %v2270_v45 = vcombine.high %v2253_v24, %v2253_v24  ;;  %v2268_v42 = vrot.slane %v2254_v34, %v3939_v10  ;;  %v2269_v18 = vcombine.high %v2261_v25, %v2261_v25 }
 0x9b0   :  { %v2285_v50 = vcombine.high %v2277_v22, %v2277_v22  ;;  %v2284_v3 = vrot.slane %v2270_v45, %v3939_v10 }
 0xa40   :  { %v3436_v40 = vpop.f32.mrb[8].mxu1 }
 0xa41   :  { %v2142_v27 = vrot.slane %v3436_v40, %v3939_v10  ;;  %v2108_v5 = vpop.f32.mrb[9].mxu1 }
 0xa42   :  { %v2119_v6 = vcombine.high %v2108_v5, %v2108_v5  ;;  %v2126_v63 = vrot.slane %v2108_v5, %v3939_v10 }
 0xa43   :  { %v2143_v48 = vcombine.high %v2142_v27, %v2142_v27  ;;  %v2296_v23 = vadd.f32 %v2285_v50, %v2142_v27 }
 0xa44   :  { %v2133_v28 = vrot.slane %v2119_v6, %v3939_v10  ;;  %v2134_v14 = vcombine.high %v2126_v63, %v2126_v63  ;;  %v2292_v46 = vadd.f32 %v2261_v25, %v2126_v63 }
 0xa45   :  { %v2297_v29 = vadd.f32 %v2284_v3, %v2143_v48  ;;  %v2302_v30 = vadd.f32 %v2296_v23, %v4018_v20 }
 0xa46   :  { %v2135_v44 = vcombine.high %v2133_v28, %v2133_v28  ;;  %v2293_v32 = vadd.f32 %v2269_v18, %v2134_v14  ;;  %v2294_v51 = vadd.f32 %v2268_v42, %v2133_v28  ;;  %v2298_v49 = vadd.f32 %v2292_v46, %v4011_v9 }
 0xa47   :  { %v2303_v2 = vadd.f32 %v2297_v29, %v4023_v26  ;;  %v2308_v39 = vmax.f32 %v2302_v30, 0.0 }
 0xa48   :  { %v2295_v4 = vadd.f32 %v2277_v22, %v2135_v44  ;;  %v2299_v8 = vadd.f32 %v2293_v32, %v4018_v20  ;;  %v2300_v59 = vadd.f32 %v2294_v51, %v4023_v26  ;;  %v2304_v19 = vmax.f32 %v2298_v49, 0.0 }
 0xa49   :  { %v2309_v15 = vmax.f32 %v2303_v2, 0.0 }
 0xa4a   :  { %v2301_v16 = vadd.f32 %v2295_v4, %v4011_v9  ;;  %v2305_v21 = vmax.f32 %v2299_v8, 0.0  ;;  %v2306_v1 = vmax.f32 %v2300_v59, 0.0  ;;  %v3242_v8 = vld [vmem:[%s4530_s2 + $0x40] sm:$0xff]  ;;  %v3243_v59 = vld [vmem:[%s4530_s2 + $0x48] sm:$0xff] }
 0xa4b   :  { %v2333_v17 = vcombine.low %v2308_v39, %v2309_v15 }
 0xa4c   :  { %v2307_v61 = vmax.f32 %v2301_v16, 0.0  ;;  %v2316_v38 = vcombine.low %v2304_v19, %v2305_v21  ;;  %v2609_v16 = vmul.f32 %v3242_v8, %v3242_v8  ;;  %v2610_v19 = vmul.f32 %v3243_v59, %v3243_v59  ;;  %v3244_v21 = vld [vmem:[%s4530_s2 + $0x50] sm:$0xff] }
 0xa4d   :  { %v2340_v20 = vrot.slane %v2333_v17, %v3939_v10 }
 0xa4e   :  { %v2317_v24 = vcombine.low %v2306_v1, %v2307_v61  ;;  %v2324_v41 = vrot.slane %v2316_v38, %v3939_v10  ;;  %v2611_v61 = vmul.f32 %v3244_v21, %v3244_v21  ;;  %v2613_v38 = vsel %vm81_vm1, %v2609_v16, 0.0 }
 0xa50   :  { %v2331_v45 = vrot.slane %v2317_v24, %v3939_v10  ;;  %v3245_v24 = vld [vmem:[%s4530_s2 + $0x58] sm:$0xff] }
 0xa52   :  { %v2332_v22 = vcombine.low %v2324_v41, %v2331_v45  ;;  %v2614_v41 = vsel %vm81_vm1, %v2610_v19, 0.0 }
 0xa54   :  { %3464 = vmatprep.mubr.msk.f32.mxu1 %vm819_vm11, %v2332_v22  ;;  %v2612_v22 = vmul.f32 %v3245_v24, %v3245_v24 }
 0xa55   :  { %3465 = vmatmul.mubr.msk.f32.vlgmr.msra.gmra.mrb[10].mxu1 %vm819_vm11, %v2340_v20  ;;  %v2615_v20 = vadd.f32 %v2614_v41, %v2613_v38 }
 0xb28   :  { %v3466_v26 = vpop.f32.mrb[10].mxu1 }
 0xb29   :  { %v2417_v9 = vadd.f32 %v3466_v26, %v4056_v0  ;;  %v2411_v34 = vpop.f32.mrb[11].mxu1  ;;  %v2616_v26 = vsel %vm81_vm1, %v2611_v61, 0.0 }
 0xb2a   :  { %v2412_v25 = vadd.f32 %v4056_v0, %v2411_v34  ;;  %v2618_v34 = vsel %vm81_vm1, %v2612_v22, 0.0 }
 0xb2b   :  { %v2421_v40 = vmax.f32 %v2417_v9, 0.0  ;;  %v2617_v9 = vadd.f32 %v2616_v26, %v2615_v20 }
 0xb2c   :  { %v2420_v50 = vmax.f32 %v2412_v25, 0.0 }
 0xb2d   :  { %v2619_v25 = vadd.f32 %v2618_v34, %v2617_v9 }
 0xb2e   :  { %3475 = vmatprep.mubr.msk.f32.mxu0 %vm129_vm9, %v2420_v50 }
 0xb2f   :  { %3476 = vmatmul.mubr.msk.f32.vlgmr.msra.gmra.mrb[10].mxu0 %vm129_vm9, %v2421_v40  ;;  %v2620_v50 = vrot.slane %v2619_v25, 4 }
 0xb31   :  { %v2621_v40 = vadd.f32 %v2620_v50, %v2619_v25 }
 0xc02   :  { %v3477_v27 = vpop.f32.mrb[10].mxu0 }
 0xc03   :  { %v2500_v3 = vadd.f32 %v3477_v27, %v4072_v31  ;;  %v2494_v5 = vpop.f32.mrb[11].mxu0  ;;  %v2622_v27 = vrot.slane %v2621_v40, 2 }
 0xc04   :  { %v2495_v6 = vadd.f32 %v4072_v31, %v2494_v5 }
 0xc05   :  { %v4327_v63 = vrot.slane %v2500_v3, %v3939_v10  ;;  %v2623_v3 = vadd.f32 %v2622_v27, %v2621_v40 }
 0xc06   :  { %v2505_v42 = vcombine.high %v2495_v6, %v2495_v6  ;;  %v4330_v18 = vrot.slane %v2495_v6, %v3939_v10 }
 0xc07   :  { %v4334_v0 = vcombine.high %v4327_v63, %v4327_v63  ;;  %v2545_v30 = vmul.f32 %v4327_v63, %v4327_v63  ;;  %v2624_v5 = vrot.slane %v2623_v3, 1 }
 0xc08   :  { %v4337_v48 = vrot.slane %v2505_v42, %v3939_v10  ;;  %v4341_v23 = vcombine.high %v4330_v18, %v4330_v18  ;;  %v2541_v28 = vmul.f32 %v4330_v18, %v4330_v18 }
 0xc09   :  { %v2546_v29 = vmul.f32 %v4334_v0, %v4334_v0  ;;  %v2625_v6 = vadd.f32 %v2624_v5, %v2623_v3 }
 0xc0a   :  { %v4345_v31 = vcombine.high %v4337_v48, %v4337_v48  ;;  %v2542_v14 = vmul.f32 %v4341_v23, %v4341_v23  ;;  %v2543_v46 = vmul.f32 %v4337_v48, %v4337_v48 }
 0xc0b   :  { %v2583_v4 = vrot.slane %v2546_v29, %v3939_v10  ;;  %3673 = vrsqrt.f32 %v2625_v6  ;;  %vm2628_vm5 = vcmp.eq.f32.partialorder %v2625_v6, inf  ;;  %vm2630_vm6 = vcmp.eq.f32.partialorder %v2625_v6, 0.0 }
 0xc0c   :  { %v2553_v44 = vcombine.low %v2541_v28, %v2542_v14  ;;  %v2544_v32 = vmul.f32 %v4345_v31, %v4345_v31  ;;  %v2567_v49 = vrot.slane %v2543_v46, %v3939_v10  ;;  %v2631_v14 = vand.u32 2147483648, %v2625_v6 }
 0xc0e   :  { %v2560_v51 = vrot.slane %v2553_v44, %v3939_v10  ;;  %v2569_v2 = vcombine.low %v2544_v32, %v2545_v30 }
 0xc10   :  { %v2568_v39 = vcombine.low %v2560_v51, %v2567_v49  ;;  %v2576_v15 = vrot.slane %v2569_v2, %v3939_v10 }
 0xc12   :  { %v2587_v17 = vsel %vm1077_vm12, %v2568_v39, 0.0  ;;  %v2584_v1 = vcombine.low %v2576_v15, %v2583_v4 }
 0xc13   :  { %2588 = vadd.xlane.f32.xlu0 %v2587_v17 }
 0xc14   :  { %v2590_v45 = vsel %vm1077_vm12, %v2584_v1, 0.0  ;;  %vm1691_vm12 = vcmask 41984  }
 0xc15   :  { %2591 = vadd.xlane.f32.xlu1 %v2590_v45  ;;  %v3674_v42 = vpop.eup %3673 }
 0xc16   :  { %v2627_v28 = vmul.f32 %v3674_v42, %v2625_v6 }
 0xc18   :  { %v2629_v46 = vsel %vm2628_vm5, %v2625_v6, %v2627_v28 }
 0xc19   :  { %v2632_v29 = vsel %vm2630_vm6, %v2631_v14, %v2629_v46 }
 0xc1a   :  { %v2633_v30 = vmax.f32 %v2632_v29, 1e-08 }
 0xc1c   :  { %3675 = vrcp.f32 %v2633_v30 }
 0xc26   :  { %1564 = vbcast.lane.b32.xlu1 %v3928_v57, 256  ;;  %v3676_v44 = vpop.eup %3675 }
 0xc27   :  { %v2697_v32 = vmul.f32 %v3676_v44, %v3242_v8  ;;  %v2698_v51 = vmul.f32 %v3676_v44, %v3243_v59  ;;  %v2699_v49 = vmul.f32 %v3676_v44, %v3244_v21  ;;  %v2700_v2 = vmul.f32 %v3676_v44, %v3245_v24 }
 0xc29   :  { %v3593_v4 = vpack.c.bf16 %v2698_v51, %v2697_v32  ;;  %v3597_v39 = vpack.c.bf16 %v2700_v2, %v2699_v49 }
 0xc2b   :  { %3594 = vmatprep.subr.bf16.mxu0 %v3593_v4 }
 0xc2c   :  { %3596 = vmatpush3.bf16.msra.mxu0 %v3593_v4 }
 0xc2d   :  { %3598 = vmatprep.subr.bf16.mxu0 %v3597_v39 }
 0xc30   :  { %3600 = vmatpush3.bf16.msra.mxu0 %v3597_v39 }
 0xca0   :  { %v2589_v57 = vpop.xlane.xlu0 %2588 }
 0xca1   :  { %3677 = vrsqrt.f32 %v2589_v57  ;;  %vm2595_vm1 = vcmp.eq.f32.partialorder %v2589_v57, inf  ;;  %v2598_v1 = vand.u32 2147483648, %v2589_v57  ;;  %vm2597_vm7 = vcmp.eq.f32.partialorder %v2589_v57, 0.0 }
 0xca2   :  { %v2592_v15 = vpop.xlane.xlu1 %2591 }
 0xca3   :  { %3679 = vrsqrt.f32 %v2592_v15  ;;  %vm2602_vm8 = vcmp.eq.f32.partialorder %v2592_v15, inf  ;;  %v2605_v21 = vand.u32 2147483648, %v2592_v15  ;;  %vm2604_vm11 = vcmp.eq.f32.partialorder %v2592_v15, 0.0 }
 0xcab   :  { %v3678_v16 = vpop.eup %3677 }
 0xcac   :  { %v2594_v19 = vmul.f32 %v3678_v16, %v2589_v57 }
 0xcad   :  { %v3680_v17 = vpop.eup %3679 }
 0xcae   :  { %v2596_v61 = vsel %vm2595_vm1, %v2589_v57, %v2594_v19  ;;  %v2601_v8 = vmul.f32 %v3680_v17, %v2592_v15 }
 0xcaf   :  { %v2599_v59 = vsel %vm2597_vm7, %v2598_v1, %v2596_v61 }
 0xcb0   :  { %v2607_v38 = vmax.f32 %v2599_v59, 1e-08  ;;  %v2603_v24 = vsel %vm2602_vm8, %v2592_v15, %v2601_v8 }
 0xcb1   :  { %v2606_v41 = vsel %vm2604_vm11, %v2605_v21, %v2603_v24 }
 0xcb2   :  { %v2642_v45 = vrot.slane %v2607_v38, %v4141_v35  ;;  %v2649_v22 = vrot.slane %v2607_v38, %v4144_v37  ;;  %v2656_v20 = vrot.slane %v2607_v38, %v4147_v43  ;;  %v2608_v26 = vmax.f32 %v2606_v41, 1e-08 }
 0xcb4   :  { %3681 = vrcp.f32 %v2642_v45  ;;  %v2663_v9 = vrot.slane %v2608_v26, %v4141_v35  ;;  %v2670_v34 = vrot.slane %v2608_v26, %v4144_v37  ;;  %v2677_v25 = vrot.slane %v2608_v26, %v4147_v43 }
 0xcb5   :  { %3683 = vrcp.f32 %v2649_v22 }
 0xcb6   :  { %3685 = vrcp.f32 %v2656_v20 }
 0xcb7   :  { %3687 = vrcp.f32 %v2663_v9 }
 0xcb8   :  { %3689 = vrcp.f32 %v2670_v34 }
 0xcb9   :  { %3691 = vrcp.f32 %v2677_v25 }
 0xcbe   :  { %v3682_v50 = vpop.eup %3681 }
 0xcbf   :  { %v3684_v40 = vpop.eup %3683  ;;  %v2685_v27 = vmul.f32 %v3682_v50, %v4330_v18 }
 0xcc0   :  { %v3686_v3 = vpop.eup %3685  ;;  %v2687_v5 = vmul.f32 %v3684_v40, %v4341_v23 }
 0xcc1   :  { %v3688_v6 = vpop.eup %3687  ;;  %v2689_v28 = vmul.f32 %v3686_v3, %v4337_v48 }
 0xcc2   :  { %v3690_v42 = vpop.eup %3689  ;;  %v2691_v14 = vmul.f32 %v3688_v6, %v4345_v31  ;;  %v2707_v46 = vcombine.low %v2685_v27, %v2687_v5 }
 0xcc3   :  { %v3692_v29 = vpop.eup %3691  ;;  %v2693_v30 = vmul.f32 %v3690_v42, %v4327_v63 }
 0xcc4   :  { %v2708_v44 = vcombine.low %v2689_v28, %v2691_v14  ;;  %v2695_v32 = vmul.f32 %v3692_v29, %v4334_v0  ;;  %v2715_v51 = vrot.slane %v2707_v46, %v3939_v10 }
 0xcc6   :  { %v2722_v18 = vrot.slane %v2708_v44, %v3939_v10  ;;  %v2724_v49 = vcombine.low %v2693_v30, %v2695_v32  ;;  %v1565_v44 = vpop.permute.xlu1 %1564 }
 0xcc7   :  { %v1607_v32 = vmul.f32 %v4246_v7, %v1565_v44 }
 0xcc8   :  { %v2723_v2 = vcombine.low %v2715_v51, %v2722_v18  ;;  %v2731_v23 = vrot.slane %v2724_v49, %v3939_v10 }
 0xcc9   :  { %v1615_v49 = vsel %vm1369_vm4, %v1607_v32, 0.0  ;;  %v1627_v32 = vsub.f32 1.0, %v4189_v36 }
 0xcca   :  { %3486 = vmatprep.mubr.msk.f32.mxu0 %vm129_vm9, %v2723_v2 }
 0xccb   :  { %3487 = vmatmul.mubr.msk.f32.vlgmr.msra.gmra.mrb[12].mxu0 %vm129_vm9, %v2731_v23  ;;  %vm1688_vm9 = vcmask 1041409  }
 0xd9e   :  { %v3488_v48 = vpop.f32.mrb[12].mxu0 }
 0xd9f   :  { %v2802_v31 = vpop.f32.mrb[13].mxu0  ;;  %v4400_v4 = vrot.slane %v3488_v48, %v3939_v10 }
 0xda0   :  { %v2813_v63 = vcombine.high %v2802_v31, %v2802_v31  ;;  %v4403_v0 = vrot.slane %v2802_v31, %v3939_v10 }
 0xda1   :  { %v4414_v15 = vcombine.high %v4400_v4, %v4400_v4 }
 0xda2   :  { %v4406_v39 = vrot.slane %v2813_v63, %v3939_v10  ;;  %v4410_v57 = vcombine.high %v4403_v0, %v4403_v0  ;;  %v1616_v63 = vrot.slane %v1615_v49, 4 }
 0xda3   :  { %v2874_v21 = vrot.slane %v4414_v15, %v3939_v10 }
 0xda4   :  { %v4418_v16 = vcombine.high %v4406_v39, %v4406_v39  ;;  %v2844_v19 = vcombine.low %v4403_v0, %v4410_v57  ;;  %v2858_v1 = vrot.slane %v4406_v39, %v3939_v10 }
 0xda6   :  { %v2851_v17 = vrot.slane %v2844_v19, %v3939_v10  ;;  %v2860_v61 = vcombine.low %v4418_v16, %v4400_v4 }
 0xda8   :  { %v2859_v8 = vcombine.low %v2851_v17, %v2858_v1  ;;  %v2867_v59 = vrot.slane %v2860_v61, %v3939_v10 }
 0xdaa   :  { %v2878_v38 = vsel %vm1369_vm4, %v2859_v8, -inf  ;;  %v2875_v24 = vcombine.low %v2867_v59, %v2874_v21  ;;  %v1617_v21 = vadd.f32 %v1616_v63, %v1615_v49 }
 0xdab   :  { %2879 = vmax.xlane.f32.xlu0 %v2878_v38 }
 0xdac   :  { %v2881_v41 = vsel %vm1369_vm4, %v2875_v24, -inf }
 0xdaf   :  { %2882 = vmax.xlane.f32.xlu0 %v2881_v41 }
 0xdc5   :  { %1557 = vbcast.lane.b32.xlu0 %v3919_v54, 256 }
 0xe38   :  { %v2880_v45 = vpop.xlane.xlu0 %2879 }
 0xe39   :  { %v2892_v22 = vrot.slane %v2880_v45, %v4141_v35  ;;  %v2899_v20 = vrot.slane %v2880_v45, %v4144_v37  ;;  %v2906_v26 = vrot.slane %v2880_v45, %v4147_v43 }
 0xe3b   :  { %v2934_v9 = vsub.f32 %v4403_v0, %v2892_v22  ;;  %v2935_v34 = vsub.f32 %v4410_v57, %v2899_v20  ;;  %v2936_v25 = vsub.f32 %v4406_v39, %v2906_v26  ;;  %v1618_v26 = vrot.slane %v1617_v21, 2 }
 0xe3c   :  { %v2883_v50 = vpop.xlane.xlu0 %2882 }
 0xe3d   :  { %v2940_v40 = vmul.f32 1.442695, %v2934_v9  ;;  %v2942_v27 = vmul.f32 1.442695, %v2935_v34  ;;  %v2944_v3 = vmul.f32 1.442695, %v2936_v25  ;;  %v2913_v5 = vrot.slane %v2883_v50, %v4141_v35 }
 0xe3e   :  { %v2920_v54 = vrot.slane %v2883_v50, %v4144_v37  ;;  %v2927_v6 = vrot.slane %v2883_v50, %v4147_v43  ;;  %v1619_v9 = vadd.f32 %v1618_v26, %v1617_v21 }
 0xe3f   :  { %3693 = vpow2.f32 %v2940_v40  ;;  %v2937_v42 = vsub.f32 %v4418_v16, %v2913_v5 }
 0xe40   :  { %3695 = vpow2.f32 %v2942_v27  ;;  %v2938_v28 = vsub.f32 %v4400_v4, %v2920_v54  ;;  %v2939_v14 = vsub.f32 %v4414_v15, %v2927_v6  ;;  %v1558_v48 = vpop.permute.xlu0 %1557  ;;  %v1620_v25 = vrot.slane %v1619_v9, 1 }
 0xe41   :  { %3697 = vpow2.f32 %v2944_v3  ;;  %v2946_v46 = vmul.f32 1.442695, %v2937_v42  ;;  %v1606_v61 = vmul.f32 %v4242_v13, %v1558_v48  ;;  %v1623_v54 = vsub.f32 1.0, %v4185_v53 }
 0xe42   :  { %v2948_v29 = vmul.f32 1.442695, %v2938_v28  ;;  %v2950_v30 = vmul.f32 1.442695, %v2939_v14  ;;  %v1621_v40 = vadd.f32 %v1620_v25, %v1619_v9  ;;  %v1622_v6 = vsub.f32 1.0, %v4178_v62 }
 0xe43   :  { %3699 = vpow2.f32 %v2946_v46  ;;  %v1608_v45 = vsel %vm1369_vm4, %v1606_v61, 0.0  ;;  %v1625_v28 = vsub.f32 1.0, %v4195_v33  ;;  %v1626_v14 = vsub.f32 1.0, %v4175_v55 }
 0xe44   :  { %3701 = vpow2.f32 %v2948_v29  ;;  %v1609_v13 = vrot.slane %v1608_v45, 4  ;;  %v1634_v42 = vcombine.low %v1622_v6, %v1623_v54  ;;  %v1624_v46 = vsub.f32 1.0, %v4181_v47 }
 0xe45   :  { %3703 = vpow2.f32 %v2950_v30  ;;  %v1650_v30 = vcombine.low %v1625_v28, %v1626_v14  ;;  %v1664_v62 = vrot.slane %v1627_v32, %v3939_v10 }
 0xe46   :  { %v1610_v34 = vadd.f32 %v1609_v13, %v1608_v45  ;;  %v1641_v29 = vrot.slane %v1634_v42, %v3939_v10  ;;  %v1648_v44 = vrot.slane %v1624_v46, %v3939_v10  ;;  %v3125_v46 = vsub.f32 1.0, %v4418_v16 }
 0xe48   :  { %v1611_v50 = vrot.slane %v1610_v34, 2  ;;  %v1649_v49 = vcombine.low %v1641_v29, %v1648_v44 }
 0xe49   :  { %v4446_v51 = vpop.eup %3693 }
 0xe4a   :  { %v4448_v18 = vpop.eup %3695  ;;  %v1612_v27 = vadd.f32 %v1611_v50, %v1610_v34 }
 0xe4b   :  { %v4451_v2 = vpop.eup %3697  ;;  %v2958_v23 = vcombine.low %v4446_v51, %v4448_v18 }
 0xe4c   :  { %v2972_v7 = vrot.slane %v4451_v2, %v3939_v10  ;;  %v1613_v3 = vrot.slane %v1612_v27, 1 }
 0xe4d   :  { %v4455_v31 = vpop.eup %3699  ;;  %v2965_v19 = vrot.slane %v2958_v23, %v3939_v10  ;;  %v1657_v23 = vrot.slane %v1650_v30, %v3939_v10  ;;  %v3126_v30 = vsub.f32 1.0, %v4400_v4 }
 0xe4e   :  { %v4460_v17 = vpop.eup %3701  ;;  %v1614_v5 = vadd.f32 %v1613_v3, %v1612_v27 }
 0xe4f   :  { %v4462_v1 = vpop.eup %3703  ;;  %v2973_v8 = vcombine.low %v2965_v19, %v2972_v7  ;;  %v2974_v59 = vcombine.low %v4455_v31, %v4460_v17  ;;  %v1665_v48 = vcombine.low %v1657_v23, %v1664_v62 }
 0xe50   :  { %v2988_v41 = vrot.slane %v4462_v1, %v3939_v10  ;;  %v1668_v53 = vmul.f32 %v1649_v49, %v1614_v5 }
 0xe51   :  { %v2992_v38 = vsel %vm1369_vm4, %v2973_v8, 0.0  ;;  %v2981_v24 = vrot.slane %v2974_v59, %v3939_v10  ;;  %v1669_v63 = vmul.f32 %v1665_v48, %v1621_v40 }
 0xe52   :  { %2993 = vadd.xlane.f32.xlu1 %v2992_v38  ;;  %v1670_v33 = vsel %vm1369_vm4, %v1668_v53, 0.0 }
 0xe53   :  { %v2989_v22 = vcombine.low %v2981_v24, %v2988_v41  ;;  %v1673_v55 = vsel %vm1369_vm4, %v1669_v63, 0.0  ;;  %v3127_v63 = vsub.f32 1.0, %v4414_v15  ;;  %v252_v15 = vsub.f32 1.0, %v3837_v11 }
 0xe55   :  { %v2995_v20 = vsel %vm1369_vm4, %v2989_v22, 0.0 }
 0xe56   :  { %2996 = vadd.xlane.f32.xlu0 %v2995_v20 }
 0xe63   :  { %3064 = vbcast.lane.b32.xlu1 %v1621_v40, 256 }
 0xe6c   :  { %3061 = vbcast.lane.b32.xlu0 %v1614_v5, 256  ;;  %v3123_v5 = vsub.f32 1.0, %v4410_v57  ;;  %v3124_v57 = vsub.f32 1.0, %v4406_v39 }
 0xe87   :  { %1671 = vadd.xlane.f32.xlu1 %v1670_v33  ;;  %v3148_v33 = vrot.slane %v3124_v57, %v3939_v10 }
 0xe8b   :  { %1674 = vadd.xlane.f32.xlu0 %v1673_v55 }
 0xedf   :  { %v2994_v47 = vpop.xlane.xlu1 %2993 }
 0xee0   :  { %v3006_v19 = vrot.slane %v2994_v47, %v4141_v35  ;;  %v3013_v7 = vrot.slane %v2994_v47, %v4144_v37  ;;  %v3020_v36 = vrot.slane %v2994_v47, %v4147_v43 }
 0xee2   :  { %3705 = vrcp.f32 %v3006_v19 }
 0xee3   :  { %3707 = vrcp.f32 %v3013_v7  ;;  %v2997_v61 = vpop.xlane.xlu0 %2996  ;;  %v3065_v6 = vpop.permute.xlu1 %3064  ;;  %v253_v7 = vsub.f32 1.0, %v3840_v12 }
 0xee4   :  { %3709 = vrcp.f32 %v3020_v36  ;;  %v3027_v8 = vrot.slane %v2997_v61, %v4141_v35  ;;  %v3034_v59 = vrot.slane %v2997_v61, %v4144_v37  ;;  %v3041_v21 = vrot.slane %v2997_v61, %v4147_v43 }
 0xee5   :  { %v3164_v36 = vrot.slane %v3127_v63, %v3939_v10 }
 0xee6   :  { %3711 = vrcp.f32 %v3027_v8  ;;  %v255_v8 = vmul.f32 %v253_v7, %v3924_v56 }
 0xee7   :  { %3713 = vrcp.f32 %v3034_v59  ;;  %v3062_v27 = vpop.permute.xlu0 %3061 }
 0xee8   :  { %3715 = vrcp.f32 %v3041_v21 }
 0xeec   :  { %v3706_v38 = vpop.eup %3705 }
 0xeed   :  { %v3708_v24 = vpop.eup %3707  ;;  %v3049_v41 = vmul.f32 %v3706_v38, %v4446_v51 }
 0xeee   :  { %v3710_v45 = vpop.eup %3709  ;;  %v3051_v22 = vmul.f32 %v3708_v24, %v4448_v18  ;;  %v259_v24 = vsel %vm227_vm10, %v255_v8, 0.0 }
 0xeef   :  { %v3053_v20 = vmul.f32 %v3710_v45, %v4451_v2  ;;  %v254_v45 = vmul.f32 %v252_v15, %v3913_v52 }
 0xef0   :  { %v3712_v26 = vpop.eup %3711  ;;  %v3072_v13 = vcombine.low %v3049_v41, %v3051_v22 }
 0xef1   :  { %v3714_v9 = vpop.eup %3713  ;;  %v3055_v35 = vmul.f32 %v3712_v26, %v4455_v31  ;;  %v3086_v25 = vrot.slane %v3053_v20, %v3939_v10  ;;  %v256_v12 = vsel %vm227_vm10, %v254_v45, 0.0  ;;  %vm3197_vm10 = vcmask 7168  }
 0xef2   :  { %v3716_v37 = vpop.eup %3715  ;;  %v3057_v43 = vmul.f32 %v3714_v9, %v4460_v17  ;;  %v3079_v34 = vrot.slane %v3072_v13, %v3939_v10  ;;  %v3122_v17 = vsub.f32 1.0, %v4403_v0  ;;  %v3150_v0 = vcombine.low %v3125_v46, %v3126_v30 }
 0xef3   :  { %v3059_v50 = vmul.f32 %v3716_v37, %v4462_v1 }
 0xef4   :  { %v3088_v51 = vcombine.low %v3055_v35, %v3057_v43  ;;  %v3087_v40 = vcombine.low %v3079_v34, %v3086_v25  ;;  %v3134_v1 = vcombine.low %v3122_v17, %v3123_v5  ;;  %v3157_v4 = vrot.slane %v3150_v0, %v3939_v10 }
 0xef5   :  { %v3102_v2 = vrot.slane %v3059_v50, %v3939_v10 }
 0xef6   :  { %v3095_v18 = vrot.slane %v3088_v51, %v3939_v10  ;;  %v3106_v3 = vmul.f32 %v3087_v40, %v3062_v27  ;;  %v3141_v53 = vrot.slane %v3134_v1, %v3939_v10  ;;  %v3165_v21 = vcombine.low %v3157_v4, %v3164_v36 }
 0xef7   :  { %v1679_v10 = vand.u32 127, %v118_v58 }
 0xef8   :  { %v3103_v31 = vcombine.low %v3095_v18, %v3102_v2  ;;  %v3108_v54 = vsel %vm1369_vm4, %v3106_v3, 0.0  ;;  %v3149_v47 = vcombine.low %v3141_v53, %v3148_v33 }
 0xef9   :  { %v3109_v42 = vrot.slane %v3108_v54, 4  ;;  %v1682_v56 = vsub.s32 %v1679_v10, %v3825_v60 }
 0xefa   :  { %v3107_v28 = vmul.f32 %v3103_v31, %v3065_v6 }
 0xefb   :  { %v3110_v14 = vadd.f32 %v3109_v42, %v3108_v54 }
 0xefc   :  { %v3115_v29 = vsel %vm1369_vm4, %v3107_v28, 0.0 }
 0xefd   :  { %v3116_v44 = vrot.slane %v3115_v29, 4  ;;  %v3111_v32 = vrot.slane %v3110_v14, 2 }
 0xeff   :  { %v3117_v49 = vadd.f32 %v3116_v44, %v3115_v29  ;;  %v3112_v23 = vadd.f32 %v3111_v32, %v3110_v14 }
 0xf01   :  { %v3118_v62 = vrot.slane %v3117_v49, 2  ;;  %v3113_v48 = vrot.slane %v3112_v23, 1 }
 0xf03   :  { %v3119_v16 = vadd.f32 %v3118_v62, %v3117_v49  ;;  %v3114_v55 = vadd.f32 %v3113_v48, %v3112_v23 }
 0xf05   :  { %v3168_v19 = vmul.f32 %v3149_v47, %v3114_v55  ;;  %v3120_v39 = vrot.slane %v3119_v16, 1 }
 0xf07   :  { %v3170_v61 = vsel %vm1369_vm4, %v3168_v19, 0.0  ;;  %v3121_v59 = vadd.f32 %v3120_v39, %v3119_v16 }
 0xf08   :  { %3171 = vadd.xlane.f32.xlu0 %v3170_v61 }
 0xf09   :  { %v3169_v38 = vmul.f32 %v3165_v21, %v3121_v59 }
 0xf0b   :  { %v3173_v41 = vsel %vm1369_vm4, %v3169_v38, 0.0 }
 0xf0c   :  { %260 = vadd.xlane.f32.xlu0 %v259_v24  ;;  %3174 = vadd.xlane.f32.xlu1 %v3173_v41 }
 0xf10   :  { %257 = vadd.xlane.f32.xlu1 %v256_v12 }
 0xf14   :  { %v1672_v22 = vpop.xlane.xlu1 %1671 }
 0xf15   :  { %v1683_v26 = vrot.slane %v1672_v22, %v1682_v56 }
 0xf18   :  { %v1675_v20 = vpop.xlane.xlu0 %1674 }
 0xf19   :  { %v1687_v11 = vrot.slane %v1675_v20, %v1682_v56 }
 0xf1b   :  { %v1689_v13 = vsel %vm1688_vm9, %v1687_v11, %v1683_v26 }
 0xf1c   :  { %v1692_v9 = vsel %vm1691_vm12, %v1689_v13, 0.0 }
 0xf1d   :  { %1693 = vadd.xlane.f32.xlu0 %v1692_v9 }
 0xf95   :  { %v3172_v52 = vpop.xlane.xlu0 %3171 }
 0xf96   :  { %v3181_v37 = vrot.slane %v3172_v52, %v1682_v56 }
 0xf99   :  { %v3175_v35 = vpop.xlane.xlu1 %3174  ;;  %v261_v58 = vpop.xlane.xlu0 %260 }
 0xf9a   :  { %v3185_v43 = vrot.slane %v3175_v35, %v1682_v56  ;;  %v265_v50 = vmul.f32 0.16666667, %v261_v58 }
 0xf9c   :  { %v3186_v34 = vsel %vm1688_vm9, %v3185_v43, %v3181_v37  ;;  %v3194_v18 = vrot.slane %v265_v50, 7 }
 0xf9d   :  { %v3188_v25 = vsel %vm1691_vm12, %v3186_v34, 0.0  ;;  %v258_v60 = vpop.xlane.xlu1 %257 }
 0xf9e   :  { %3189 = vadd.xlane.f32.xlu1 %v3188_v25  ;;  %v264_v40 = vmul.f32 0.16666667, %v258_v60 }
 0xfa0   :  { %v3195_v3 = vsel %vm1688_vm9, %v3194_v18, %v264_v40 }
 0xfaa   :  { %v1694_v51 = vpop.xlane.xlu0 %1693 }
 0xfab   :  { %v1695_v27 = vmul.f32 0.027777778, %v1694_v51 }
 0xfad   :  { %v3198_v31 = vsel %vm3197_vm10, %v3195_v3, %v1695_v27 }
0x102b   :  { %v3190_v2 = vpop.xlane.xlu1 %3189 }
0x102c   :  { %v3191_v5 = vmul.f32 0.027777778, %v3190_v2 }
0x102e   :  { %v3200_v54 = vsel %vm3199_vm13, %v3198_v31, %v3191_v5 }
0x102f   :  { %3202 = vst.msk [vmem:[%s4540_s11] sm:$0x3] %vm3201_vm14, %v3200_v54 }

</bundles_post_ra>
